<compile_context>
chip_gen: v6e
topology: v6e:2x2x1
jax: 0.10.0
libtpu: 0.0.40
codegen_flags: <defaults>
</compile_context>

<pallas_src>
import jax
import jax.numpy as jnp
from jax.experimental import pallas as pl
from jax.experimental.pallas import tpu as pltpu

NUM_CLASSES = 10


# ---------------------------------------------------------------------------
# Fused kernel. Channels-last activations: spatial (h*W+w) in sublanes,
# channels in lanes.  a1: 13x13x64 grid (+pad rows), a2: 5x5x32 grid (+pad).
# ---------------------------------------------------------------------------
def _cnn_fused_kernel(patch_ref, w1_ref, b1_ref, w2_ref, b2_ref, w3_ref,
                      b3_ref, wfc_ref, bfc_ref, out_ref, a1_ref, a2_ref):
    f32 = jnp.float32

    def dot(a, b):
        return jnp.dot(a, b, preferred_element_type=f32)

    w1 = w1_ref[...]                                   # (9, 64)   [tap, co]
    b1 = jnp.broadcast_to(b1_ref[...], (52, 64))       # hoisted broadcast
    b2 = b2_ref[...]                                   # (1, 32)
    b3 = b3_ref[...]                                   # (1, 16)

    # Zero the padding tails of the activation scratch (only ever read by the
    # junk output rows of the shifted GEMMs, but keep them deterministic).
    a1_ref[160:176, :] = jnp.zeros((16, 64), f32)
    a2_ref[24:32, :] = jnp.zeros((8, 32), f32)

    # ---- conv1 (1->64, 26x26) + ReLU + 2x2 pool -> a1 (13*13, 64) channels-last
    for p in range(13):
        rows = patch_ref[0, 52 * p:52 * p + 52, :]     # im2col rows of conv rows 2p,2p+1
        o = jnp.maximum(dot(rows, w1) + b1, 0.0)       # (52, 64)
        v = jnp.maximum(o[0:26, :], o[26:52, :])       # vertical pool -> (26, 64)
        pooled = jnp.concatenate(
            [jnp.max(v[2 * q:2 * q + 2, :], axis=0, keepdims=True)
             for q in range(13)], axis=0)              # horizontal pool -> (13, 64)
        a1_ref[13 * p:13 * (p + 1), :] = pooled

    # ---- conv2 (64->32, 11x11) as 9 shifted GEMMs over the 13x13 grid
    # O2[i*13+j, co] = sum_{kh,kw,ci} a1[(i+kh)*13+(j+kw), ci] * W2[kh,kw,ci,co]
    acc2 = jnp.broadcast_to(b2, (144, 32))             # rows r = i*13+j (j>=11 junk)
    for kh in range(3):
        for kw in range(3):
            off = 13 * kh + kw
            acc2 = acc2 + dot(a1_ref[off:off + 144, :], w2_ref[3 * kh + kw])
    acc2 = jnp.maximum(acc2, 0.0)                      # ReLU

    # 2x2 pool -> a2 (5*5, 32) channels-last
    for p in range(5):
        r0 = acc2[26 * p:26 * p + 10, :]               # conv row 2p,  cols 0..9
        r1 = acc2[26 * p + 13:26 * p + 23, :]          # conv row 2p+1, cols 0..9
        v = jnp.maximum(r0, r1)                        # (10, 32)
        pooled = jnp.concatenate(
            [jnp.max(v[2 * q:2 * q + 2, :], axis=0, keepdims=True)
             for q in range(5)], axis=0)               # (5, 32)
        a2_ref[5 * p:5 * (p + 1), :] = pooled

    # ---- conv3 (32->16, 3x3, no ReLU) as 9 shifted GEMMs over the 5x5 grid
    acc3 = jnp.broadcast_to(b3, (16, 16))              # rows r = h*5+w (w>=3 junk)
    for kh in range(3):
        for kw in range(3):
            off = 5 * kh + kw
            acc3 = acc3 + dot(a2_ref[off:off + 16, :], w3_ref[3 * kh + kw])

    # ---- flatten (PyTorch NCHW order folded into the fc weight layout) + FC
    acc = bfc_ref[...]                                 # (1, 10)
    for h in range(3):
        for w in range(3):
            row = acc3[5 * h + w:5 * h + w + 1, :]     # (1, 16)
            acc = acc + dot(row, wfc_ref[3 * h + w])   # (1,16)@(16,10)
    out_ref[...] = acc[None]                           # (1, 1, 10)


def _fused_forward(patches, w1t, b1r, w2t, b2r, w3t, b3r, wfc9, bfcr):
    B = patches.shape[0]
    grid_spec = pltpu.PrefetchScalarGridSpec(
        num_scalar_prefetch=0,
        grid=(B,),
        in_specs=[
            pl.BlockSpec((1, 676, 9), lambda b: (b, 0, 0)),          # conv1 im2col
            pl.BlockSpec((9, 64), lambda b: (0, 0)),                 # w1
            pl.BlockSpec((1, 64), lambda b: (0, 0)),                 # b1
            pl.BlockSpec((9, 64, 32), lambda b: (0, 0, 0)),          # w2 per-tap
            pl.BlockSpec((1, 32), lambda b: (0, 0)),                 # b2
            pl.BlockSpec((9, 32, 16), lambda b: (0, 0, 0)),          # w3 per-tap
            pl.BlockSpec((1, 16), lambda b: (0, 0)),                 # b3
            pl.BlockSpec((9, 16, NUM_CLASSES), lambda b: (0, 0, 0)), # fc per-pos
            pl.BlockSpec((1, NUM_CLASSES), lambda b: (0, 0)),        # fc bias
        ],
        out_specs=pl.BlockSpec((1, 1, NUM_CLASSES), lambda b: (b, 0, 0)),
        scratch_shapes=[
            pltpu.VMEM((176, 64), jnp.float32),   # pooled conv1 acts (169 valid rows)
            pltpu.VMEM((32, 32), jnp.float32),    # pooled conv2 acts (25 valid rows)
        ],
    )
    out = pl.pallas_call(
        _cnn_fused_kernel,
        out_shape=jax.ShapeDtypeStruct((B, 1, NUM_CLASSES), jnp.float32),
        grid_spec=grid_spec,
        compiler_params=pltpu.CompilerParams(
            dimension_semantics=("parallel",)),
    )(patches, w1t, b1r, w2t, b2r, w3t, b3r, wfc9, bfcr)
    return out.reshape(B, NUM_CLASSES)


# ---------------------------------------------------------------------------
# Jitted forward matching the PyTorch module.  The conv1 im2col (a 9-tap
# gather, Cin==1) and the tiny weight re-layouts run as one-off XLA ops inside
# the jit; the whole network's FLOPs run in one pallas_call.
# ---------------------------------------------------------------------------
@jax.jit
def cnn_forward(x_nchw, params):
    assert x_nchw.shape[1:] == (1, 28, 28), x_nchw.shape
    B = x_nchw.shape[0]
    x = x_nchw.reshape(B, 28, 28)                        # Cin == 1

    # conv1 im2col: patches[b, i*26+j, kh*3+kw] = x[b, i+kh, j+kw]
    patches = jnp.stack(
        [x[:, kh:kh + 26, kw:kw + 26] for kh in range(3) for kw in range(3)],
        axis=-1).reshape(B, 676, 9)

    # conv weights stored HWIO (kh, kw, ci, co) -> per-tap GEMM layouts
    w1t = params["w1"].reshape(9, 64)                    # (tap, co)
    w2t = params["w2"].reshape(9, 64, 32)                # (tap, ci, co)
    w3t = params["w3"].reshape(9, 32, 16)
    b1r = params["b1"].reshape(1, 64)
    b2r = params["b2"].reshape(1, 32)
    b3r = params["b3"].reshape(1, 16)
    # fc weight (144, 10): rows are PyTorch NCHW flatten order (c, h, w);
    # rearrange to (h*3+w, c, out) so the kernel never transposes activations.
    wfc9 = params["wfc"].reshape(16, 9, NUM_CLASSES).transpose(1, 0, 2)
    bfcr = params["bfc"].reshape(1, NUM_CLASSES)
    return _fused_forward(patches, w1t, b1r, w2t, b2r, w3t, b3r, wfc9, bfcr)


# ---------------------------------------------------------------------------
# Pure-JAX reference (correctness sanity check) and param init
# ---------------------------------------------------------------------------
def _reference_forward(x, params):
    dn = ("NCHW", "HWIO", "NCHW")
    hp = jax.lax.Precision.HIGHEST

    def conv(y, w, b):
        y = jax.lax.conv_general_dilated(y, w, (1, 1), "VALID",
                                         dimension_numbers=dn, precision=hp)
        return y + b[None, :, None, None]

    def pool(y):
        return jax.lax.reduce_window(y, -jnp.inf, jax.lax.max,
                                     (1, 1, 2, 2), (1, 1, 2, 2), "VALID")

    y = pool(jax.nn.relu(conv(x, params["w1"], params["b1"])))
    y = pool(jax.nn.relu(conv(y, params["w2"], params["b2"])))
    y = conv(y, params["w3"], params["b3"])
    y = y.reshape(y.shape[0], -1)                         # NCHW flatten (c,h,w)
    return y @ params["wfc"] + params["bfc"]


def init_params(key):
    ks = jax.random.split(key, 8)
    s = 0.05
    return {
        # conv weights stored HWIO: (kh, kw, Cin, Cout)
        "w1": s * jax.random.normal(ks[0], (3, 3, 1, 64), jnp.float32),
        "b1": s * jax.random.normal(ks[1], (64,), jnp.float32),
        "w2": s * jax.random.normal(ks[2], (3, 3, 64, 32), jnp.float32),
        "b2": s * jax.random.normal(ks[3], (32,), jnp.float32),
        "w3": s * jax.random.normal(ks[4], (3, 3, 32, 16), jnp.float32),
        "b3": s * jax.random.normal(ks[5], (16,), jnp.float32),
        # fc weight stored (in, out) == PyTorch Linear.weight.T
        "wfc": s * jax.random.normal(ks[6], (16 * 3 * 3, NUM_CLASSES), jnp.float32),
        "bfc": s * jax.random.normal(ks[7], (NUM_CLASSES,), jnp.float32),
    }


if __name__ == "__main__":
    key = jax.random.PRNGKey(0)
    k_x, k_p = jax.random.split(key)
    # fc in_features = 16*3*3 implies 28x28 single-channel inputs (MNIST-like).
    x = jax.random.normal(k_x, (2, 1, 28, 28), jnp.float32)
    params = init_params(k_p)

    logits = cnn_forward(x, params)
    jax.block_until_ready(logits)
    assert logits.shape == (2, NUM_CLASSES), logits.shape

    ref = _reference_forward(x, params)
    assert jnp.allclose(logits, ref, atol=5e-3, rtol=5e-2), (
        float(jnp.max(jnp.abs(logits - ref))))
    print("KERNEL_OK")
</pallas_src>

<mosaic_0001>
module attributes {stable_mosaic.version = 11 : i64} {
  func.func @_cnn_fused_kernel(%arg0: i32, %arg1: memref<1x676x9xf32, #tpu.memory_space<vmem>>, %arg2: memref<9x64xf32, #tpu.memory_space<vmem>>, %arg3: memref<1x64xf32, #tpu.memory_space<vmem>>, %arg4: memref<9x64x32xf32, #tpu.memory_space<vmem>>, %arg5: memref<1x32xf32, #tpu.memory_space<vmem>>, %arg6: memref<9x32x16xf32, #tpu.memory_space<vmem>>, %arg7: memref<1x16xf32, #tpu.memory_space<vmem>>, %arg8: memref<9x16x10xf32, #tpu.memory_space<vmem>>, %arg9: memref<1x10xf32, #tpu.memory_space<vmem>>, %arg10: memref<1x1x10xf32, #tpu.memory_space<vmem>>, %arg11: memref<176x64xf32, #tpu.memory_space<vmem>>, %arg12: memref<32x32xf32, #tpu.memory_space<vmem>>) attributes {dimension_semantics = [#tpu.dimension_semantics<parallel>], iteration_bounds = array<i64: 2>, scalar_prefetch = 0 : i64, scratch_operands = 2 : i64, tpu.core_type = #tpu.core_type<tc>, window_params = [{transform_indices = @transform_0, window_bounds = array<i64: 1, 676, 9>}, {pipeline_mode = #tpu.pipeline_mode<synchronous>, transform_indices = @transform_1, window_bounds = array<i64: 9, 64>}, {pipeline_mode = #tpu.pipeline_mode<synchronous>, transform_indices = @transform_2, window_bounds = array<i64: 1, 64>}, {pipeline_mode = #tpu.pipeline_mode<synchronous>, transform_indices = @transform_3, window_bounds = array<i64: 9, 64, 32>}, {pipeline_mode = #tpu.pipeline_mode<synchronous>, transform_indices = @transform_4, window_bounds = array<i64: 1, 32>}, {pipeline_mode = #tpu.pipeline_mode<synchronous>, transform_indices = @transform_5, window_bounds = array<i64: 9, 32, 16>}, {pipeline_mode = #tpu.pipeline_mode<synchronous>, transform_indices = @transform_6, window_bounds = array<i64: 1, 16>}, {pipeline_mode = #tpu.pipeline_mode<synchronous>, transform_indices = @transform_7, window_bounds = array<i64: 9, 16, 10>}, {pipeline_mode = #tpu.pipeline_mode<synchronous>, transform_indices = @transform_8, window_bounds = array<i64: 1, 10>}, {transform_indices = @transform_9, window_bounds = array<i64: 1, 1, 10>}]} {
    %c0 = arith.constant 0 : index
    %c0_0 = arith.constant 0 : index
    %0 = vector.load %arg2[%c0, %c0_0] : memref<9x64xf32, #tpu.memory_space<vmem>>, vector<9x64xf32>
    %c0_1 = arith.constant 0 : index
    %c0_2 = arith.constant 0 : index
    %1 = vector.load %arg3[%c0_1, %c0_2] : memref<1x64xf32, #tpu.memory_space<vmem>>, vector<1x64xf32>
    %2 = vector.shape_cast %1 : vector<1x64xf32> to vector<1x64xf32>
    %3 = vector.broadcast %2 : vector<1x64xf32> to vector<52x64xf32>
    %c0_3 = arith.constant 0 : index
    %c0_4 = arith.constant 0 : index
    %4 = vector.load %arg5[%c0_3, %c0_4] : memref<1x32xf32, #tpu.memory_space<vmem>>, vector<1x32xf32>
    %c0_5 = arith.constant 0 : index
    %c0_6 = arith.constant 0 : index
    %5 = vector.load %arg7[%c0_5, %c0_6] : memref<1x16xf32, #tpu.memory_space<vmem>>, vector<1x16xf32>
    %cst = arith.constant 0.000000e+00 : f32
    %6 = vector.broadcast %cst : f32 to vector<16x64xf32>
    %c160 = arith.constant 160 : index
    %c0_7 = arith.constant 0 : index
    %7 = vector.load %arg11[%c160, %c0_7] : memref<176x64xf32, #tpu.memory_space<vmem>>, vector<16x64xf32>
    tpu.vector_store %arg11[%c160, %c0_7], %6 {strides = array<i32>} : memref<176x64xf32, #tpu.memory_space<vmem>>, vector<16x64xf32>,
    %cst_8 = arith.constant 0.000000e+00 : f32
    %8 = vector.broadcast %cst_8 : f32 to vector<8x32xf32>
    %c24 = arith.constant 24 : index
    %c0_9 = arith.constant 0 : index
    %9 = vector.load %arg12[%c24, %c0_9] : memref<32x32xf32, #tpu.memory_space<vmem>>, vector<8x32xf32>
    tpu.vector_store %arg12[%c24, %c0_9], %8 {strides = array<i32>} : memref<32x32xf32, #tpu.memory_space<vmem>>, vector<8x32xf32>,
    %c0_10 = arith.constant 0 : index
    %c0_11 = arith.constant 0 : index
    %c0_12 = arith.constant 0 : index
    %10 = vector.load %arg1[%c0_10, %c0_11, %c0_12] : memref<1x676x9xf32, #tpu.memory_space<vmem>>, vector<1x52x9xf32>
    %11 = vector.shape_cast %10 : vector<1x52x9xf32> to vector<52x9xf32>
    %cst_13 = arith.constant dense<0.000000e+00> : vector<52x64xf32>
    %12 = tpu.matmul %11, %0, %cst_13 {dimension_numbers = #tpu.dot_dimension_numbers<[1], [0], [0], [1], [0, 0, 1, 1], [], []>} : vector<52x9xf32>, vector<9x64xf32>, vector<52x64xf32> -> vector<52x64xf32>
    %13 = arith.addf %12, %3 : vector<52x64xf32>
    %cst_14 = arith.constant 0.000000e+00 : f32
    %14 = vector.broadcast %cst_14 : f32 to vector<52x64xf32>
    %15 = arith.maximumf %13, %14 : vector<52x64xf32>
    %16 = vector.extract_strided_slice %15 {offsets = [0, 0], sizes = [26, 64], strides = [1, 1]} : vector<52x64xf32> to vector<26x64xf32>
    %17 = vector.extract_strided_slice %15 {offsets = [26, 0], sizes = [26, 64], strides = [1, 1]} : vector<52x64xf32> to vector<26x64xf32>
    %18 = arith.maximumf %16, %17 : vector<26x64xf32>
    %19 = vector.extract_strided_slice %18 {offsets = [0, 0], sizes = [2, 64], strides = [1, 1]} : vector<26x64xf32> to vector<2x64xf32>
    %cst_15 = arith.constant dense<0xFF800000> : vector<64xf32>
    %20 = vector.multi_reduction <maximumf>, %19, %cst_15 [0] : vector<2x64xf32> to vector<64xf32>
    %21 = vector.shape_cast %20 : vector<64xf32> to vector<1x64xf32>
    %22 = vector.extract_strided_slice %18 {offsets = [2, 0], sizes = [2, 64], strides = [1, 1]} : vector<26x64xf32> to vector<2x64xf32>
    %cst_16 = arith.constant dense<0xFF800000> : vector<64xf32>
    %23 = vector.multi_reduction <maximumf>, %22, %cst_16 [0] : vector<2x64xf32> to vector<64xf32>
    %24 = vector.shape_cast %23 : vector<64xf32> to vector<1x64xf32>
    %25 = vector.extract_strided_slice %18 {offsets = [4, 0], sizes = [2, 64], strides = [1, 1]} : vector<26x64xf32> to vector<2x64xf32>
    %cst_17 = arith.constant dense<0xFF800000> : vector<64xf32>
    %26 = vector.multi_reduction <maximumf>, %25, %cst_17 [0] : vector<2x64xf32> to vector<64xf32>
    %27 = vector.shape_cast %26 : vector<64xf32> to vector<1x64xf32>
    %28 = vector.extract_strided_slice %18 {offsets = [6, 0], sizes = [2, 64], strides = [1, 1]} : vector<26x64xf32> to vector<2x64xf32>
    %cst_18 = arith.constant dense<0xFF800000> : vector<64xf32>
    %29 = vector.multi_reduction <maximumf>, %28, %cst_18 [0] : vector<2x64xf32> to vector<64xf32>
    %30 = vector.shape_cast %29 : vector<64xf32> to vector<1x64xf32>
    %31 = vector.extract_strided_slice %18 {offsets = [8, 0], sizes = [2, 64], strides = [1, 1]} : vector<26x64xf32> to vector<2x64xf32>
    %cst_19 = arith.constant dense<0xFF800000> : vector<64xf32>
    %32 = vector.multi_reduction <maximumf>, %31, %cst_19 [0] : vector<2x64xf32> to vector<64xf32>
    %33 = vector.shape_cast %32 : vector<64xf32> to vector<1x64xf32>
    %34 = vector.extract_strided_slice %18 {offsets = [10, 0], sizes = [2, 64], strides = [1, 1]} : vector<26x64xf32> to vector<2x64xf32>
    %cst_20 = arith.constant dense<0xFF800000> : vector<64xf32>
    %35 = vector.multi_reduction <maximumf>, %34, %cst_20 [0] : vector<2x64xf32> to vector<64xf32>
    %36 = vector.shape_cast %35 : vector<64xf32> to vector<1x64xf32>
    %37 = vector.extract_strided_slice %18 {offsets = [12, 0], sizes = [2, 64], strides = [1, 1]} : vector<26x64xf32> to vector<2x64xf32>
    %cst_21 = arith.constant dense<0xFF800000> : vector<64xf32>
    %38 = vector.multi_reduction <maximumf>, %37, %cst_21 [0] : vector<2x64xf32> to vector<64xf32>
    %39 = vector.shape_cast %38 : vector<64xf32> to vector<1x64xf32>
    %40 = vector.extract_strided_slice %18 {offsets = [14, 0], sizes = [2, 64], strides = [1, 1]} : vector<26x64xf32> to vector<2x64xf32>
    %cst_22 = arith.constant dense<0xFF800000> : vector<64xf32>
    %41 = vector.multi_reduction <maximumf>, %40, %cst_22 [0] : vector<2x64xf32> to vector<64xf32>
    %42 = vector.shape_cast %41 : vector<64xf32> to vector<1x64xf32>
    %43 = vector.extract_strided_slice %18 {offsets = [16, 0], sizes = [2, 64], strides = [1, 1]} : vector<26x64xf32> to vector<2x64xf32>
    %cst_23 = arith.constant dense<0xFF800000> : vector<64xf32>
    %44 = vector.multi_reduction <maximumf>, %43, %cst_23 [0] : vector<2x64xf32> to vector<64xf32>
    %45 = vector.shape_cast %44 : vector<64xf32> to vector<1x64xf32>
    %46 = vector.extract_strided_slice %18 {offsets = [18, 0], sizes = [2, 64], strides = [1, 1]} : vector<26x64xf32> to vector<2x64xf32>
    %cst_24 = arith.constant dense<0xFF800000> : vector<64xf32>
    %47 = vector.multi_reduction <maximumf>, %46, %cst_24 [0] : vector<2x64xf32> to vector<64xf32>
    %48 = vector.shape_cast %47 : vector<64xf32> to vector<1x64xf32>
    %49 = vector.extract_strided_slice %18 {offsets = [20, 0], sizes = [2, 64], strides = [1, 1]} : vector<26x64xf32> to vector<2x64xf32>
    %cst_25 = arith.constant dense<0xFF800000> : vector<64xf32>
    %50 = vector.multi_reduction <maximumf>, %49, %cst_25 [0] : vector<2x64xf32> to vector<64xf32>
    %51 = vector.shape_cast %50 : vector<64xf32> to vector<1x64xf32>
    %52 = vector.extract_strided_slice %18 {offsets = [22, 0], sizes = [2, 64], strides = [1, 1]} : vector<26x64xf32> to vector<2x64xf32>
    %cst_26 = arith.constant dense<0xFF800000> : vector<64xf32>
    %53 = vector.multi_reduction <maximumf>, %52, %cst_26 [0] : vector<2x64xf32> to vector<64xf32>
    %54 = vector.shape_cast %53 : vector<64xf32> to vector<1x64xf32>
    %55 = vector.extract_strided_slice %18 {offsets = [24, 0], sizes = [2, 64], strides = [1, 1]} : vector<26x64xf32> to vector<2x64xf32>
    %cst_27 = arith.constant dense<0xFF800000> : vector<64xf32>
    %56 = vector.multi_reduction <maximumf>, %55, %cst_27 [0] : vector<2x64xf32> to vector<64xf32>
    %57 = vector.shape_cast %56 : vector<64xf32> to vector<1x64xf32>
    %58 = tpu.concatenate %21, %24, %27, %30, %33, %36, %39, %42, %45, %48, %51, %54, %57 in 0 : vector<1x64xf32>, vector<1x64xf32>, vector<1x64xf32>, vector<1x64xf32>, vector<1x64xf32>, vector<1x64xf32>, vector<1x64xf32>, vector<1x64xf32>, vector<1x64xf32>, vector<1x64xf32>, vector<1x64xf32>, vector<1x64xf32>, vector<1x64xf32> -> vector<13x64xf32>
    %c0_28 = arith.constant 0 : index
    %c0_29 = arith.constant 0 : index
    %59 = vector.load %arg11[%c0_28, %c0_29] : memref<176x64xf32, #tpu.memory_space<vmem>>, vector<13x64xf32>
    tpu.vector_store %arg11[%c0_28, %c0_29], %58 {strides = array<i32>} : memref<176x64xf32, #tpu.memory_space<vmem>>, vector<13x64xf32>,
    %c0_30 = arith.constant 0 : index
    %c52 = arith.constant 52 : index
    %c0_31 = arith.constant 0 : index
    %60 = vector.load %arg1[%c0_30, %c52, %c0_31] : memref<1x676x9xf32, #tpu.memory_space<vmem>>, vector<1x52x9xf32>
    %61 = vector.shape_cast %60 : vector<1x52x9xf32> to vector<52x9xf32>
    %cst_32 = arith.constant dense<0.000000e+00> : vector<52x64xf32>
    %62 = tpu.matmul %61, %0, %cst_32 {dimension_numbers = #tpu.dot_dimension_numbers<[1], [0], [0], [1], [0, 0, 1, 1], [], []>} : vector<52x9xf32>, vector<9x64xf32>, vector<52x64xf32> -> vector<52x64xf32>
    %63 = arith.addf %62, %3 : vector<52x64xf32>
    %cst_33 = arith.constant 0.000000e+00 : f32
    %64 = vector.broadcast %cst_33 : f32 to vector<52x64xf32>
    %65 = arith.maximumf %63, %64 : vector<52x64xf32>
    %66 = vector.extract_strided_slice %65 {offsets = [0, 0], sizes = [26, 64], strides = [1, 1]} : vector<52x64xf32> to vector<26x64xf32>
    %67 = vector.extract_strided_slice %65 {offsets = [26, 0], sizes = [26, 64], strides = [1, 1]} : vector<52x64xf32> to vector<26x64xf32>
    %68 = arith.maximumf %66, %67 : vector<26x64xf32>
    %69 = vector.extract_strided_slice %68 {offsets = [0, 0], sizes = [2, 64], strides = [1, 1]} : vector<26x64xf32> to vector<2x64xf32>
    %cst_34 = arith.constant dense<0xFF800000> : vector<64xf32>
    %70 = vector.multi_reduction <maximumf>, %69, %cst_34 [0] : vector<2x64xf32> to vector<64xf32>
    %71 = vector.shape_cast %70 : vector<64xf32> to vector<1x64xf32>
    %72 = vector.extract_strided_slice %68 {offsets = [2, 0], sizes = [2, 64], strides = [1, 1]} : vector<26x64xf32> to vector<2x64xf32>
    %cst_35 = arith.constant dense<0xFF800000> : vector<64xf32>
    %73 = vector.multi_reduction <maximumf>, %72, %cst_35 [0] : vector<2x64xf32> to vector<64xf32>
    %74 = vector.shape_cast %73 : vector<64xf32> to vector<1x64xf32>
    %75 = vector.extract_strided_slice %68 {offsets = [4, 0], sizes = [2, 64], strides = [1, 1]} : vector<26x64xf32> to vector<2x64xf32>
    %cst_36 = arith.constant dense<0xFF800000> : vector<64xf32>
    %76 = vector.multi_reduction <maximumf>, %75, %cst_36 [0] : vector<2x64xf32> to vector<64xf32>
    %77 = vector.shape_cast %76 : vector<64xf32> to vector<1x64xf32>
    %78 = vector.extract_strided_slice %68 {offsets = [6, 0], sizes = [2, 64], strides = [1, 1]} : vector<26x64xf32> to vector<2x64xf32>
    %cst_37 = arith.constant dense<0xFF800000> : vector<64xf32>
    %79 = vector.multi_reduction <maximumf>, %78, %cst_37 [0] : vector<2x64xf32> to vector<64xf32>
    %80 = vector.shape_cast %79 : vector<64xf32> to vector<1x64xf32>
    %81 = vector.extract_strided_slice %68 {offsets = [8, 0], sizes = [2, 64], strides = [1, 1]} : vector<26x64xf32> to vector<2x64xf32>
    %cst_38 = arith.constant dense<0xFF800000> : vector<64xf32>
    %82 = vector.multi_reduction <maximumf>, %81, %cst_38 [0] : vector<2x64xf32> to vector<64xf32>
    %83 = vector.shape_cast %82 : vector<64xf32> to vector<1x64xf32>
    %84 = vector.extract_strided_slice %68 {offsets = [10, 0], sizes = [2, 64], strides = [1, 1]} : vector<26x64xf32> to vector<2x64xf32>
    %cst_39 = arith.constant dense<0xFF800000> : vector<64xf32>
    %85 = vector.multi_reduction <maximumf>, %84, %cst_39 [0] : vector<2x64xf32> to vector<64xf32>
    %86 = vector.shape_cast %85 : vector<64xf32> to vector<1x64xf32>
    %87 = vector.extract_strided_slice %68 {offsets = [12, 0], sizes = [2, 64], strides = [1, 1]} : vector<26x64xf32> to vector<2x64xf32>
    %cst_40 = arith.constant dense<0xFF800000> : vector<64xf32>
    %88 = vector.multi_reduction <maximumf>, %87, %cst_40 [0] : vector<2x64xf32> to vector<64xf32>
    %89 = vector.shape_cast %88 : vector<64xf32> to vector<1x64xf32>
    %90 = vector.extract_strided_slice %68 {offsets = [14, 0], sizes = [2, 64], strides = [1, 1]} : vector<26x64xf32> to vector<2x64xf32>
    %cst_41 = arith.constant dense<0xFF800000> : vector<64xf32>
    %91 = vector.multi_reduction <maximumf>, %90, %cst_41 [0] : vector<2x64xf32> to vector<64xf32>
    %92 = vector.shape_cast %91 : vector<64xf32> to vector<1x64xf32>
    %93 = vector.extract_strided_slice %68 {offsets = [16, 0], sizes = [2, 64], strides = [1, 1]} : vector<26x64xf32> to vector<2x64xf32>
    %cst_42 = arith.constant dense<0xFF800000> : vector<64xf32>
    %94 = vector.multi_reduction <maximumf>, %93, %cst_42 [0] : vector<2x64xf32> to vector<64xf32>
    %95 = vector.shape_cast %94 : vector<64xf32> to vector<1x64xf32>
    %96 = vector.extract_strided_slice %68 {offsets = [18, 0], sizes = [2, 64], strides = [1, 1]} : vector<26x64xf32> to vector<2x64xf32>
    %cst_43 = arith.constant dense<0xFF800000> : vector<64xf32>
    %97 = vector.multi_reduction <maximumf>, %96, %cst_43 [0] : vector<2x64xf32> to vector<64xf32>
    %98 = vector.shape_cast %97 : vector<64xf32> to vector<1x64xf32>
    %99 = vector.extract_strided_slice %68 {offsets = [20, 0], sizes = [2, 64], strides = [1, 1]} : vector<26x64xf32> to vector<2x64xf32>
    %cst_44 = arith.constant dense<0xFF800000> : vector<64xf32>
    %100 = vector.multi_reduction <maximumf>, %99, %cst_44 [0] : vector<2x64xf32> to vector<64xf32>
    %101 = vector.shape_cast %100 : vector<64xf32> to vector<1x64xf32>
    %102 = vector.extract_strided_slice %68 {offsets = [22, 0], sizes = [2, 64], strides = [1, 1]} : vector<26x64xf32> to vector<2x64xf32>
    %cst_45 = arith.constant dense<0xFF800000> : vector<64xf32>
    %103 = vector.multi_reduction <maximumf>, %102, %cst_45 [0] : vector<2x64xf32> to vector<64xf32>
    %104 = vector.shape_cast %103 : vector<64xf32> to vector<1x64xf32>
    %105 = vector.extract_strided_slice %68 {offsets = [24, 0], sizes = [2, 64], strides = [1, 1]} : vector<26x64xf32> to vector<2x64xf32>
    %cst_46 = arith.constant dense<0xFF800000> : vector<64xf32>
    %106 = vector.multi_reduction <maximumf>, %105, %cst_46 [0] : vector<2x64xf32> to vector<64xf32>
    %107 = vector.shape_cast %106 : vector<64xf32> to vector<1x64xf32>
    %108 = tpu.concatenate %71, %74, %77, %80, %83, %86, %89, %92, %95, %98, %101, %104, %107 in 0 : vector<1x64xf32>, vector<1x64xf32>, vector<1x64xf32>, vector<1x64xf32>, vector<1x64xf32>, vector<1x64xf32>, vector<1x64xf32>, vector<1x64xf32>, vector<1x64xf32>, vector<1x64xf32>, vector<1x64xf32>, vector<1x64xf32>, vector<1x64xf32> -> vector<13x64xf32>
    %c13 = arith.constant 13 : index
    %c0_47 = arith.constant 0 : index
    %109 = vector.load %arg11[%c13, %c0_47] : memref<176x64xf32, #tpu.memory_space<vmem>>, vector<13x64xf32>
    tpu.vector_store %arg11[%c13, %c0_47], %108 {strides = array<i32>} : memref<176x64xf32, #tpu.memory_space<vmem>>, vector<13x64xf32>,
    %c0_48 = arith.constant 0 : index
    %c104 = arith.constant 104 : index
    %c0_49 = arith.constant 0 : index
    %110 = vector.load %arg1[%c0_48, %c104, %c0_49] : memref<1x676x9xf32, #tpu.memory_space<vmem>>, vector<1x52x9xf32>
    %111 = vector.shape_cast %110 : vector<1x52x9xf32> to vector<52x9xf32>
    %cst_50 = arith.constant dense<0.000000e+00> : vector<52x64xf32>
    %112 = tpu.matmul %111, %0, %cst_50 {dimension_numbers = #tpu.dot_dimension_numbers<[1], [0], [0], [1], [0, 0, 1, 1], [], []>} : vector<52x9xf32>, vector<9x64xf32>, vector<52x64xf32> -> vector<52x64xf32>
    %113 = arith.addf %112, %3 : vector<52x64xf32>
    %cst_51 = arith.constant 0.000000e+00 : f32
    %114 = vector.broadcast %cst_51 : f32 to vector<52x64xf32>
    %115 = arith.maximumf %113, %114 : vector<52x64xf32>
    %116 = vector.extract_strided_slice %115 {offsets = [0, 0], sizes = [26, 64], strides = [1, 1]} : vector<52x64xf32> to vector<26x64xf32>
    %117 = vector.extract_strided_slice %115 {offsets = [26, 0], sizes = [26, 64], strides = [1, 1]} : vector<52x64xf32> to vector<26x64xf32>
    %118 = arith.maximumf %116, %117 : vector<26x64xf32>
    %119 = vector.extract_strided_slice %118 {offsets = [0, 0], sizes = [2, 64], strides = [1, 1]} : vector<26x64xf32> to vector<2x64xf32>
    %cst_52 = arith.constant dense<0xFF800000> : vector<64xf32>
    %120 = vector.multi_reduction <maximumf>, %119, %cst_52 [0] : vector<2x64xf32> to vector<64xf32>
    %121 = vector.shape_cast %120 : vector<64xf32> to vector<1x64xf32>
    %122 = vector.extract_strided_slice %118 {offsets = [2, 0], sizes = [2, 64], strides = [1, 1]} : vector<26x64xf32> to vector<2x64xf32>
    %cst_53 = arith.constant dense<0xFF800000> : vector<64xf32>
    %123 = vector.multi_reduction <maximumf>, %122, %cst_53 [0] : vector<2x64xf32> to vector<64xf32>
    %124 = vector.shape_cast %123 : vector<64xf32> to vector<1x64xf32>
    %125 = vector.extract_strided_slice %118 {offsets = [4, 0], sizes = [2, 64], strides = [1, 1]} : vector<26x64xf32> to vector<2x64xf32>
    %cst_54 = arith.constant dense<0xFF800000> : vector<64xf32>
    %126 = vector.multi_reduction <maximumf>, %125, %cst_54 [0] : vector<2x64xf32> to vector<64xf32>
    %127 = vector.shape_cast %126 : vector<64xf32> to vector<1x64xf32>
    %128 = vector.extract_strided_slice %118 {offsets = [6, 0], sizes = [2, 64], strides = [1, 1]} : vector<26x64xf32> to vector<2x64xf32>
    %cst_55 = arith.constant dense<0xFF800000> : vector<64xf32>
    %129 = vector.multi_reduction <maximumf>, %128, %cst_55 [0] : vector<2x64xf32> to vector<64xf32>
    %130 = vector.shape_cast %129 : vector<64xf32> to vector<1x64xf32>
    %131 = vector.extract_strided_slice %118 {offsets = [8, 0], sizes = [2, 64], strides = [1, 1]} : vector<26x64xf32> to vector<2x64xf32>
    %cst_56 = arith.constant dense<0xFF800000> : vector<64xf32>
    %132 = vector.multi_reduction <maximumf>, %131, %cst_56 [0] : vector<2x64xf32> to vector<64xf32>
    %133 = vector.shape_cast %132 : vector<64xf32> to vector<1x64xf32>
    %134 = vector.extract_strided_slice %118 {offsets = [10, 0], sizes = [2, 64], strides = [1, 1]} : vector<26x64xf32> to vector<2x64xf32>
    %cst_57 = arith.constant dense<0xFF800000> : vector<64xf32>
    %135 = vector.multi_reduction <maximumf>, %134, %cst_57 [0] : vector<2x64xf32> to vector<64xf32>
    %136 = vector.shape_cast %135 : vector<64xf32> to vector<1x64xf32>
    %137 = vector.extract_strided_slice %118 {offsets = [12, 0], sizes = [2, 64], strides = [1, 1]} : vector<26x64xf32> to vector<2x64xf32>
    %cst_58 = arith.constant dense<0xFF800000> : vector<64xf32>
    %138 = vector.multi_reduction <maximumf>, %137, %cst_58 [0] : vector<2x64xf32> to vector<64xf32>
    %139 = vector.shape_cast %138 : vector<64xf32> to vector<1x64xf32>
    %140 = vector.extract_strided_slice %118 {offsets = [14, 0], sizes = [2, 64], strides = [1, 1]} : vector<26x64xf32> to vector<2x64xf32>
    %cst_59 = arith.constant dense<0xFF800000> : vector<64xf32>
    %141 = vector.multi_reduction <maximumf>, %140, %cst_59 [0] : vector<2x64xf32> to vector<64xf32>
    %142 = vector.shape_cast %141 : vector<64xf32> to vector<1x64xf32>
    %143 = vector.extract_strided_slice %118 {offsets = [16, 0], sizes = [2, 64], strides = [1, 1]} : vector<26x64xf32> to vector<2x64xf32>
    %cst_60 = arith.constant dense<0xFF800000> : vector<64xf32>
    %144 = vector.multi_reduction <maximumf>, %143, %cst_60 [0] : vector<2x64xf32> to vector<64xf32>
    %145 = vector.shape_cast %144 : vector<64xf32> to vector<1x64xf32>
    %146 = vector.extract_strided_slice %118 {offsets = [18, 0], sizes = [2, 64], strides = [1, 1]} : vector<26x64xf32> to vector<2x64xf32>
    %cst_61 = arith.constant dense<0xFF800000> : vector<64xf32>
    %147 = vector.multi_reduction <maximumf>, %146, %cst_61 [0] : vector<2x64xf32> to vector<64xf32>
    %148 = vector.shape_cast %147 : vector<64xf32> to vector<1x64xf32>
    %149 = vector.extract_strided_slice %118 {offsets = [20, 0], sizes = [2, 64], strides = [1, 1]} : vector<26x64xf32> to vector<2x64xf32>
    %cst_62 = arith.constant dense<0xFF800000> : vector<64xf32>
    %150 = vector.multi_reduction <maximumf>, %149, %cst_62 [0] : vector<2x64xf32> to vector<64xf32>
    %151 = vector.shape_cast %150 : vector<64xf32> to vector<1x64xf32>
    %152 = vector.extract_strided_slice %118 {offsets = [22, 0], sizes = [2, 64], strides = [1, 1]} : vector<26x64xf32> to vector<2x64xf32>
    %cst_63 = arith.constant dense<0xFF800000> : vector<64xf32>
    %153 = vector.multi_reduction <maximumf>, %152, %cst_63 [0] : vector<2x64xf32> to vector<64xf32>
    %154 = vector.shape_cast %153 : vector<64xf32> to vector<1x64xf32>
    %155 = vector.extract_strided_slice %118 {offsets = [24, 0], sizes = [2, 64], strides = [1, 1]} : vector<26x64xf32> to vector<2x64xf32>
    %cst_64 = arith.constant dense<0xFF800000> : vector<64xf32>
    %156 = vector.multi_reduction <maximumf>, %155, %cst_64 [0] : vector<2x64xf32> to vector<64xf32>
    %157 = vector.shape_cast %156 : vector<64xf32> to vector<1x64xf32>
    %158 = tpu.concatenate %121, %124, %127, %130, %133, %136, %139, %142, %145, %148, %151, %154, %157 in 0 : vector<1x64xf32>, vector<1x64xf32>, vector<1x64xf32>, vector<1x64xf32>, vector<1x64xf32>, vector<1x64xf32>, vector<1x64xf32>, vector<1x64xf32>, vector<1x64xf32>, vector<1x64xf32>, vector<1x64xf32>, vector<1x64xf32>, vector<1x64xf32> -> vector<13x64xf32>
    %c26 = arith.constant 26 : index
    %c0_65 = arith.constant 0 : index
    %159 = vector.load %arg11[%c26, %c0_65] : memref<176x64xf32, #tpu.memory_space<vmem>>, vector<13x64xf32>
    tpu.vector_store %arg11[%c26, %c0_65], %158 {strides = array<i32>} : memref<176x64xf32, #tpu.memory_space<vmem>>, vector<13x64xf32>,
    %c0_66 = arith.constant 0 : index
    %c156 = arith.constant 156 : index
    %c0_67 = arith.constant 0 : index
    %160 = vector.load %arg1[%c0_66, %c156, %c0_67] : memref<1x676x9xf32, #tpu.memory_space<vmem>>, vector<1x52x9xf32>
    %161 = vector.shape_cast %160 : vector<1x52x9xf32> to vector<52x9xf32>
    %cst_68 = arith.constant dense<0.000000e+00> : vector<52x64xf32>
    %162 = tpu.matmul %161, %0, %cst_68 {dimension_numbers = #tpu.dot_dimension_numbers<[1], [0], [0], [1], [0, 0, 1, 1], [], []>} : vector<52x9xf32>, vector<9x64xf32>, vector<52x64xf32> -> vector<52x64xf32>
    %163 = arith.addf %162, %3 : vector<52x64xf32>
    %cst_69 = arith.constant 0.000000e+00 : f32
    %164 = vector.broadcast %cst_69 : f32 to vector<52x64xf32>
    %165 = arith.maximumf %163, %164 : vector<52x64xf32>
    %166 = vector.extract_strided_slice %165 {offsets = [0, 0], sizes = [26, 64], strides = [1, 1]} : vector<52x64xf32> to vector<26x64xf32>
    %167 = vector.extract_strided_slice %165 {offsets = [26, 0], sizes = [26, 64], strides = [1, 1]} : vector<52x64xf32> to vector<26x64xf32>
    %168 = arith.maximumf %166, %167 : vector<26x64xf32>
    %169 = vector.extract_strided_slice %168 {offsets = [0, 0], sizes = [2, 64], strides = [1, 1]} : vector<26x64xf32> to vector<2x64xf32>
    %cst_70 = arith.constant dense<0xFF800000> : vector<64xf32>
    %170 = vector.multi_reduction <maximumf>, %169, %cst_70 [0] : vector<2x64xf32> to vector<64xf32>
    %171 = vector.shape_cast %170 : vector<64xf32> to vector<1x64xf32>
    %172 = vector.extract_strided_slice %168 {offsets = [2, 0], sizes = [2, 64], strides = [1, 1]} : vector<26x64xf32> to vector<2x64xf32>
    %cst_71 = arith.constant dense<0xFF800000> : vector<64xf32>
    %173 = vector.multi_reduction <maximumf>, %172, %cst_71 [0] : vector<2x64xf32> to vector<64xf32>
    %174 = vector.shape_cast %173 : vector<64xf32> to vector<1x64xf32>
    %175 = vector.extract_strided_slice %168 {offsets = [4, 0], sizes = [2, 64], strides = [1, 1]} : vector<26x64xf32> to vector<2x64xf32>
    %cst_72 = arith.constant dense<0xFF800000> : vector<64xf32>
    %176 = vector.multi_reduction <maximumf>, %175, %cst_72 [0] : vector<2x64xf32> to vector<64xf32>
    %177 = vector.shape_cast %176 : vector<64xf32> to vector<1x64xf32>
    %178 = vector.extract_strided_slice %168 {offsets = [6, 0], sizes = [2, 64], strides = [1, 1]} : vector<26x64xf32> to vector<2x64xf32>
    %cst_73 = arith.constant dense<0xFF800000> : vector<64xf32>
    %179 = vector.multi_reduction <maximumf>, %178, %cst_73 [0] : vector<2x64xf32> to vector<64xf32>
    %180 = vector.shape_cast %179 : vector<64xf32> to vector<1x64xf32>
    %181 = vector.extract_strided_slice %168 {offsets = [8, 0], sizes = [2, 64], strides = [1, 1]} : vector<26x64xf32> to vector<2x64xf32>
    %cst_74 = arith.constant dense<0xFF800000> : vector<64xf32>
    %182 = vector.multi_reduction <maximumf>, %181, %cst_74 [0] : vector<2x64xf32> to vector<64xf32>
    %183 = vector.shape_cast %182 : vector<64xf32> to vector<1x64xf32>
    %184 = vector.extract_strided_slice %168 {offsets = [10, 0], sizes = [2, 64], strides = [1, 1]} : vector<26x64xf32> to vector<2x64xf32>
    %cst_75 = arith.constant dense<0xFF800000> : vector<64xf32>
    %185 = vector.multi_reduction <maximumf>, %184, %cst_75 [0] : vector<2x64xf32> to vector<64xf32>
    %186 = vector.shape_cast %185 : vector<64xf32> to vector<1x64xf32>
    %187 = vector.extract_strided_slice %168 {offsets = [12, 0], sizes = [2, 64], strides = [1, 1]} : vector<26x64xf32> to vector<2x64xf32>
    %cst_76 = arith.constant dense<0xFF800000> : vector<64xf32>
    %188 = vector.multi_reduction <maximumf>, %187, %cst_76 [0] : vector<2x64xf32> to vector<64xf32>
    %189 = vector.shape_cast %188 : vector<64xf32> to vector<1x64xf32>
    %190 = vector.extract_strided_slice %168 {offsets = [14, 0], sizes = [2, 64], strides = [1, 1]} : vector<26x64xf32> to vector<2x64xf32>
    %cst_77 = arith.constant dense<0xFF800000> : vector<64xf32>
    %191 = vector.multi_reduction <maximumf>, %190, %cst_77 [0] : vector<2x64xf32> to vector<64xf32>
    %192 = vector.shape_cast %191 : vector<64xf32> to vector<1x64xf32>
    %193 = vector.extract_strided_slice %168 {offsets = [16, 0], sizes = [2, 64], strides = [1, 1]} : vector<26x64xf32> to vector<2x64xf32>
    %cst_78 = arith.constant dense<0xFF800000> : vector<64xf32>
    %194 = vector.multi_reduction <maximumf>, %193, %cst_78 [0] : vector<2x64xf32> to vector<64xf32>
    %195 = vector.shape_cast %194 : vector<64xf32> to vector<1x64xf32>
    %196 = vector.extract_strided_slice %168 {offsets = [18, 0], sizes = [2, 64], strides = [1, 1]} : vector<26x64xf32> to vector<2x64xf32>
    %cst_79 = arith.constant dense<0xFF800000> : vector<64xf32>
    %197 = vector.multi_reduction <maximumf>, %196, %cst_79 [0] : vector<2x64xf32> to vector<64xf32>
    %198 = vector.shape_cast %197 : vector<64xf32> to vector<1x64xf32>
    %199 = vector.extract_strided_slice %168 {offsets = [20, 0], sizes = [2, 64], strides = [1, 1]} : vector<26x64xf32> to vector<2x64xf32>
    %cst_80 = arith.constant dense<0xFF800000> : vector<64xf32>
    %200 = vector.multi_reduction <maximumf>, %199, %cst_80 [0] : vector<2x64xf32> to vector<64xf32>
    %201 = vector.shape_cast %200 : vector<64xf32> to vector<1x64xf32>
    %202 = vector.extract_strided_slice %168 {offsets = [22, 0], sizes = [2, 64], strides = [1, 1]} : vector<26x64xf32> to vector<2x64xf32>
    %cst_81 = arith.constant dense<0xFF800000> : vector<64xf32>
    %203 = vector.multi_reduction <maximumf>, %202, %cst_81 [0] : vector<2x64xf32> to vector<64xf32>
    %204 = vector.shape_cast %203 : vector<64xf32> to vector<1x64xf32>
    %205 = vector.extract_strided_slice %168 {offsets = [24, 0], sizes = [2, 64], strides = [1, 1]} : vector<26x64xf32> to vector<2x64xf32>
    %cst_82 = arith.constant dense<0xFF800000> : vector<64xf32>
    %206 = vector.multi_reduction <maximumf>, %205, %cst_82 [0] : vector<2x64xf32> to vector<64xf32>
    %207 = vector.shape_cast %206 : vector<64xf32> to vector<1x64xf32>
    %208 = tpu.concatenate %171, %174, %177, %180, %183, %186, %189, %192, %195, %198, %201, %204, %207 in 0 : vector<1x64xf32>, vector<1x64xf32>, vector<1x64xf32>, vector<1x64xf32>, vector<1x64xf32>, vector<1x64xf32>, vector<1x64xf32>, vector<1x64xf32>, vector<1x64xf32>, vector<1x64xf32>, vector<1x64xf32>, vector<1x64xf32>, vector<1x64xf32> -> vector<13x64xf32>
    %c39 = arith.constant 39 : index
    %c0_83 = arith.constant 0 : index
    %209 = vector.load %arg11[%c39, %c0_83] : memref<176x64xf32, #tpu.memory_space<vmem>>, vector<13x64xf32>
    tpu.vector_store %arg11[%c39, %c0_83], %208 {strides = array<i32>} : memref<176x64xf32, #tpu.memory_space<vmem>>, vector<13x64xf32>,
    %c0_84 = arith.constant 0 : index
    %c208 = arith.constant 208 : index
    %c0_85 = arith.constant 0 : index
    %210 = vector.load %arg1[%c0_84, %c208, %c0_85] : memref<1x676x9xf32, #tpu.memory_space<vmem>>, vector<1x52x9xf32>
    %211 = vector.shape_cast %210 : vector<1x52x9xf32> to vector<52x9xf32>
    %cst_86 = arith.constant dense<0.000000e+00> : vector<52x64xf32>
    %212 = tpu.matmul %211, %0, %cst_86 {dimension_numbers = #tpu.dot_dimension_numbers<[1], [0], [0], [1], [0, 0, 1, 1], [], []>} : vector<52x9xf32>, vector<9x64xf32>, vector<52x64xf32> -> vector<52x64xf32>
    %213 = arith.addf %212, %3 : vector<52x64xf32>
    %cst_87 = arith.constant 0.000000e+00 : f32
    %214 = vector.broadcast %cst_87 : f32 to vector<52x64xf32>
    %215 = arith.maximumf %213, %214 : vector<52x64xf32>
    %216 = vector.extract_strided_slice %215 {offsets = [0, 0], sizes = [26, 64], strides = [1, 1]} : vector<52x64xf32> to vector<26x64xf32>
    %217 = vector.extract_strided_slice %215 {offsets = [26, 0], sizes = [26, 64], strides = [1, 1]} : vector<52x64xf32> to vector<26x64xf32>
    %218 = arith.maximumf %216, %217 : vector<26x64xf32>
    %219 = vector.extract_strided_slice %218 {offsets = [0, 0], sizes = [2, 64], strides = [1, 1]} : vector<26x64xf32> to vector<2x64xf32>
    %cst_88 = arith.constant dense<0xFF800000> : vector<64xf32>
    %220 = vector.multi_reduction <maximumf>, %219, %cst_88 [0] : vector<2x64xf32> to vector<64xf32>
    %221 = vector.shape_cast %220 : vector<64xf32> to vector<1x64xf32>
    %222 = vector.extract_strided_slice %218 {offsets = [2, 0], sizes = [2, 64], strides = [1, 1]} : vector<26x64xf32> to vector<2x64xf32>
    %cst_89 = arith.constant dense<0xFF800000> : vector<64xf32>
    %223 = vector.multi_reduction <maximumf>, %222, %cst_89 [0] : vector<2x64xf32> to vector<64xf32>
    %224 = vector.shape_cast %223 : vector<64xf32> to vector<1x64xf32>
    %225 = vector.extract_strided_slice %218 {offsets = [4, 0], sizes = [2, 64], strides = [1, 1]} : vector<26x64xf32> to vector<2x64xf32>
    %cst_90 = arith.constant dense<0xFF800000> : vector<64xf32>
    %226 = vector.multi_reduction <maximumf>, %225, %cst_90 [0] : vector<2x64xf32> to vector<64xf32>
    %227 = vector.shape_cast %226 : vector<64xf32> to vector<1x64xf32>
    %228 = vector.extract_strided_slice %218 {offsets = [6, 0], sizes = [2, 64], strides = [1, 1]} : vector<26x64xf32> to vector<2x64xf32>
    %cst_91 = arith.constant dense<0xFF800000> : vector<64xf32>
    %229 = vector.multi_reduction <maximumf>, %228, %cst_91 [0] : vector<2x64xf32> to vector<64xf32>
    %230 = vector.shape_cast %229 : vector<64xf32> to vector<1x64xf32>
    %231 = vector.extract_strided_slice %218 {offsets = [8, 0], sizes = [2, 64], strides = [1, 1]} : vector<26x64xf32> to vector<2x64xf32>
    %cst_92 = arith.constant dense<0xFF800000> : vector<64xf32>
    %232 = vector.multi_reduction <maximumf>, %231, %cst_92 [0] : vector<2x64xf32> to vector<64xf32>
    %233 = vector.shape_cast %232 : vector<64xf32> to vector<1x64xf32>
    %234 = vector.extract_strided_slice %218 {offsets = [10, 0], sizes = [2, 64], strides = [1, 1]} : vector<26x64xf32> to vector<2x64xf32>
    %cst_93 = arith.constant dense<0xFF800000> : vector<64xf32>
    %235 = vector.multi_reduction <maximumf>, %234, %cst_93 [0] : vector<2x64xf32> to vector<64xf32>
    %236 = vector.shape_cast %235 : vector<64xf32> to vector<1x64xf32>
    %237 = vector.extract_strided_slice %218 {offsets = [12, 0], sizes = [2, 64], strides = [1, 1]} : vector<26x64xf32> to vector<2x64xf32>
    %cst_94 = arith.constant dense<0xFF800000> : vector<64xf32>
    %238 = vector.multi_reduction <maximumf>, %237, %cst_94 [0] : vector<2x64xf32> to vector<64xf32>
    %239 = vector.shape_cast %238 : vector<64xf32> to vector<1x64xf32>
    %240 = vector.extract_strided_slice %218 {offsets = [14, 0], sizes = [2, 64], strides = [1, 1]} : vector<26x64xf32> to vector<2x64xf32>
    %cst_95 = arith.constant dense<0xFF800000> : vector<64xf32>
    %241 = vector.multi_reduction <maximumf>, %240, %cst_95 [0] : vector<2x64xf32> to vector<64xf32>
    %242 = vector.shape_cast %241 : vector<64xf32> to vector<1x64xf32>
    %243 = vector.extract_strided_slice %218 {offsets = [16, 0], sizes = [2, 64], strides = [1, 1]} : vector<26x64xf32> to vector<2x64xf32>
    %cst_96 = arith.constant dense<0xFF800000> : vector<64xf32>
    %244 = vector.multi_reduction <maximumf>, %243, %cst_96 [0] : vector<2x64xf32> to vector<64xf32>
    %245 = vector.shape_cast %244 : vector<64xf32> to vector<1x64xf32>
    %246 = vector.extract_strided_slice %218 {offsets = [18, 0], sizes = [2, 64], strides = [1, 1]} : vector<26x64xf32> to vector<2x64xf32>
    %cst_97 = arith.constant dense<0xFF800000> : vector<64xf32>
    %247 = vector.multi_reduction <maximumf>, %246, %cst_97 [0] : vector<2x64xf32> to vector<64xf32>
    %248 = vector.shape_cast %247 : vector<64xf32> to vector<1x64xf32>
    %249 = vector.extract_strided_slice %218 {offsets = [20, 0], sizes = [2, 64], strides = [1, 1]} : vector<26x64xf32> to vector<2x64xf32>
    %cst_98 = arith.constant dense<0xFF800000> : vector<64xf32>
    %250 = vector.multi_reduction <maximumf>, %249, %cst_98 [0] : vector<2x64xf32> to vector<64xf32>
    %251 = vector.shape_cast %250 : vector<64xf32> to vector<1x64xf32>
    %252 = vector.extract_strided_slice %218 {offsets = [22, 0], sizes = [2, 64], strides = [1, 1]} : vector<26x64xf32> to vector<2x64xf32>
    %cst_99 = arith.constant dense<0xFF800000> : vector<64xf32>
    %253 = vector.multi_reduction <maximumf>, %252, %cst_99 [0] : vector<2x64xf32> to vector<64xf32>
    %254 = vector.shape_cast %253 : vector<64xf32> to vector<1x64xf32>
    %255 = vector.extract_strided_slice %218 {offsets = [24, 0], sizes = [2, 64], strides = [1, 1]} : vector<26x64xf32> to vector<2x64xf32>
    %cst_100 = arith.constant dense<0xFF800000> : vector<64xf32>
    %256 = vector.multi_reduction <maximumf>, %255, %cst_100 [0] : vector<2x64xf32> to vector<64xf32>
    %257 = vector.shape_cast %256 : vector<64xf32> to vector<1x64xf32>
    %258 = tpu.concatenate %221, %224, %227, %230, %233, %236, %239, %242, %245, %248, %251, %254, %257 in 0 : vector<1x64xf32>, vector<1x64xf32>, vector<1x64xf32>, vector<1x64xf32>, vector<1x64xf32>, vector<1x64xf32>, vector<1x64xf32>, vector<1x64xf32>, vector<1x64xf32>, vector<1x64xf32>, vector<1x64xf32>, vector<1x64xf32>, vector<1x64xf32> -> vector<13x64xf32>
    %c52_101 = arith.constant 52 : index
    %c0_102 = arith.constant 0 : index
    %259 = vector.load %arg11[%c52_101, %c0_102] : memref<176x64xf32, #tpu.memory_space<vmem>>, vector<13x64xf32>
    tpu.vector_store %arg11[%c52_101, %c0_102], %258 {strides = array<i32>} : memref<176x64xf32, #tpu.memory_space<vmem>>, vector<13x64xf32>,
    %c0_103 = arith.constant 0 : index
    %c260 = arith.constant 260 : index
    %c0_104 = arith.constant 0 : index
    %260 = vector.load %arg1[%c0_103, %c260, %c0_104] : memref<1x676x9xf32, #tpu.memory_space<vmem>>, vector<1x52x9xf32>
    %261 = vector.shape_cast %260 : vector<1x52x9xf32> to vector<52x9xf32>
    %cst_105 = arith.constant dense<0.000000e+00> : vector<52x64xf32>
    %262 = tpu.matmul %261, %0, %cst_105 {dimension_numbers = #tpu.dot_dimension_numbers<[1], [0], [0], [1], [0, 0, 1, 1], [], []>} : vector<52x9xf32>, vector<9x64xf32>, vector<52x64xf32> -> vector<52x64xf32>
    %263 = arith.addf %262, %3 : vector<52x64xf32>
    %cst_106 = arith.constant 0.000000e+00 : f32
    %264 = vector.broadcast %cst_106 : f32 to vector<52x64xf32>
    %265 = arith.maximumf %263, %264 : vector<52x64xf32>
    %266 = vector.extract_strided_slice %265 {offsets = [0, 0], sizes = [26, 64], strides = [1, 1]} : vector<52x64xf32> to vector<26x64xf32>
    %267 = vector.extract_strided_slice %265 {offsets = [26, 0], sizes = [26, 64], strides = [1, 1]} : vector<52x64xf32> to vector<26x64xf32>
    %268 = arith.maximumf %266, %267 : vector<26x64xf32>
    %269 = vector.extract_strided_slice %268 {offsets = [0, 0], sizes = [2, 64], strides = [1, 1]} : vector<26x64xf32> to vector<2x64xf32>
    %cst_107 = arith.constant dense<0xFF800000> : vector<64xf32>
    %270 = vector.multi_reduction <maximumf>, %269, %cst_107 [0] : vector<2x64xf32> to vector<64xf32>
    %271 = vector.shape_cast %270 : vector<64xf32> to vector<1x64xf32>
    %272 = vector.extract_strided_slice %268 {offsets = [2, 0], sizes = [2, 64], strides = [1, 1]} : vector<26x64xf32> to vector<2x64xf32>
    %cst_108 = arith.constant dense<0xFF800000> : vector<64xf32>
    %273 = vector.multi_reduction <maximumf>, %272, %cst_108 [0] : vector<2x64xf32> to vector<64xf32>
    %274 = vector.shape_cast %273 : vector<64xf32> to vector<1x64xf32>
    %275 = vector.extract_strided_slice %268 {offsets = [4, 0], sizes = [2, 64], strides = [1, 1]} : vector<26x64xf32> to vector<2x64xf32>
    %cst_109 = arith.constant dense<0xFF800000> : vector<64xf32>
    %276 = vector.multi_reduction <maximumf>, %275, %cst_109 [0] : vector<2x64xf32> to vector<64xf32>
    %277 = vector.shape_cast %276 : vector<64xf32> to vector<1x64xf32>
    %278 = vector.extract_strided_slice %268 {offsets = [6, 0], sizes = [2, 64], strides = [1, 1]} : vector<26x64xf32> to vector<2x64xf32>
    %cst_110 = arith.constant dense<0xFF800000> : vector<64xf32>
    %279 = vector.multi_reduction <maximumf>, %278, %cst_110 [0] : vector<2x64xf32> to vector<64xf32>
    %280 = vector.shape_cast %279 : vector<64xf32> to vector<1x64xf32>
    %281 = vector.extract_strided_slice %268 {offsets = [8, 0], sizes = [2, 64], strides = [1, 1]} : vector<26x64xf32> to vector<2x64xf32>
    %cst_111 = arith.constant dense<0xFF800000> : vector<64xf32>
    %282 = vector.multi_reduction <maximumf>, %281, %cst_111 [0] : vector<2x64xf32> to vector<64xf32>
    %283 = vector.shape_cast %282 : vector<64xf32> to vector<1x64xf32>
    %284 = vector.extract_strided_slice %268 {offsets = [10, 0], sizes = [2, 64], strides = [1, 1]} : vector<26x64xf32> to vector<2x64xf32>
    %cst_112 = arith.constant dense<0xFF800000> : vector<64xf32>
    %285 = vector.multi_reduction <maximumf>, %284, %cst_112 [0] : vector<2x64xf32> to vector<64xf32>
    %286 = vector.shape_cast %285 : vector<64xf32> to vector<1x64xf32>
    %287 = vector.extract_strided_slice %268 {offsets = [12, 0], sizes = [2, 64], strides = [1, 1]} : vector<26x64xf32> to vector<2x64xf32>
    %cst_113 = arith.constant dense<0xFF800000> : vector<64xf32>
    %288 = vector.multi_reduction <maximumf>, %287, %cst_113 [0] : vector<2x64xf32> to vector<64xf32>
    %289 = vector.shape_cast %288 : vector<64xf32> to vector<1x64xf32>
    %290 = vector.extract_strided_slice %268 {offsets = [14, 0], sizes = [2, 64], strides = [1, 1]} : vector<26x64xf32> to vector<2x64xf32>
    %cst_114 = arith.constant dense<0xFF800000> : vector<64xf32>
    %291 = vector.multi_reduction <maximumf>, %290, %cst_114 [0] : vector<2x64xf32> to vector<64xf32>
    %292 = vector.shape_cast %291 : vector<64xf32> to vector<1x64xf32>
    %293 = vector.extract_strided_slice %268 {offsets = [16, 0], sizes = [2, 64], strides = [1, 1]} : vector<26x64xf32> to vector<2x64xf32>
    %cst_115 = arith.constant dense<0xFF800000> : vector<64xf32>
    %294 = vector.multi_reduction <maximumf>, %293, %cst_115 [0] : vector<2x64xf32> to vector<64xf32>
    %295 = vector.shape_cast %294 : vector<64xf32> to vector<1x64xf32>
    %296 = vector.extract_strided_slice %268 {offsets = [18, 0], sizes = [2, 64], strides = [1, 1]} : vector<26x64xf32> to vector<2x64xf32>
    %cst_116 = arith.constant dense<0xFF800000> : vector<64xf32>
    %297 = vector.multi_reduction <maximumf>, %296, %cst_116 [0] : vector<2x64xf32> to vector<64xf32>
    %298 = vector.shape_cast %297 : vector<64xf32> to vector<1x64xf32>
    %299 = vector.extract_strided_slice %268 {offsets = [20, 0], sizes = [2, 64], strides = [1, 1]} : vector<26x64xf32> to vector<2x64xf32>
    %cst_117 = arith.constant dense<0xFF800000> : vector<64xf32>
    %300 = vector.multi_reduction <maximumf>, %299, %cst_117 [0] : vector<2x64xf32> to vector<64xf32>
    %301 = vector.shape_cast %300 : vector<64xf32> to vector<1x64xf32>
    %302 = vector.extract_strided_slice %268 {offsets = [22, 0], sizes = [2, 64], strides = [1, 1]} : vector<26x64xf32> to vector<2x64xf32>
    %cst_118 = arith.constant dense<0xFF800000> : vector<64xf32>
    %303 = vector.multi_reduction <maximumf>, %302, %cst_118 [0] : vector<2x64xf32> to vector<64xf32>
    %304 = vector.shape_cast %303 : vector<64xf32> to vector<1x64xf32>
    %305 = vector.extract_strided_slice %268 {offsets = [24, 0], sizes = [2, 64], strides = [1, 1]} : vector<26x64xf32> to vector<2x64xf32>
    %cst_119 = arith.constant dense<0xFF800000> : vector<64xf32>
    %306 = vector.multi_reduction <maximumf>, %305, %cst_119 [0] : vector<2x64xf32> to vector<64xf32>
    %307 = vector.shape_cast %306 : vector<64xf32> to vector<1x64xf32>
    %308 = tpu.concatenate %271, %274, %277, %280, %283, %286, %289, %292, %295, %298, %301, %304, %307 in 0 : vector<1x64xf32>, vector<1x64xf32>, vector<1x64xf32>, vector<1x64xf32>, vector<1x64xf32>, vector<1x64xf32>, vector<1x64xf32>, vector<1x64xf32>, vector<1x64xf32>, vector<1x64xf32>, vector<1x64xf32>, vector<1x64xf32>, vector<1x64xf32> -> vector<13x64xf32>
    %c65 = arith.constant 65 : index
    %c0_120 = arith.constant 0 : index
    %309 = vector.load %arg11[%c65, %c0_120] : memref<176x64xf32, #tpu.memory_space<vmem>>, vector<13x64xf32>
    tpu.vector_store %arg11[%c65, %c0_120], %308 {strides = array<i32>} : memref<176x64xf32, #tpu.memory_space<vmem>>, vector<13x64xf32>,
    %c0_121 = arith.constant 0 : index
    %c312 = arith.constant 312 : index
    %c0_122 = arith.constant 0 : index
    %310 = vector.load %arg1[%c0_121, %c312, %c0_122] : memref<1x676x9xf32, #tpu.memory_space<vmem>>, vector<1x52x9xf32>
    %311 = vector.shape_cast %310 : vector<1x52x9xf32> to vector<52x9xf32>
    %cst_123 = arith.constant dense<0.000000e+00> : vector<52x64xf32>
    %312 = tpu.matmul %311, %0, %cst_123 {dimension_numbers = #tpu.dot_dimension_numbers<[1], [0], [0], [1], [0, 0, 1, 1], [], []>} : vector<52x9xf32>, vector<9x64xf32>, vector<52x64xf32> -> vector<52x64xf32>
    %313 = arith.addf %312, %3 : vector<52x64xf32>
    %cst_124 = arith.constant 0.000000e+00 : f32
    %314 = vector.broadcast %cst_124 : f32 to vector<52x64xf32>
    %315 = arith.maximumf %313, %314 : vector<52x64xf32>
    %316 = vector.extract_strided_slice %315 {offsets = [0, 0], sizes = [26, 64], strides = [1, 1]} : vector<52x64xf32> to vector<26x64xf32>
    %317 = vector.extract_strided_slice %315 {offsets = [26, 0], sizes = [26, 64], strides = [1, 1]} : vector<52x64xf32> to vector<26x64xf32>
    %318 = arith.maximumf %316, %317 : vector<26x64xf32>
    %319 = vector.extract_strided_slice %318 {offsets = [0, 0], sizes = [2, 64], strides = [1, 1]} : vector<26x64xf32> to vector<2x64xf32>
    %cst_125 = arith.constant dense<0xFF800000> : vector<64xf32>
    %320 = vector.multi_reduction <maximumf>, %319, %cst_125 [0] : vector<2x64xf32> to vector<64xf32>
    %321 = vector.shape_cast %320 : vector<64xf32> to vector<1x64xf32>
    %322 = vector.extract_strided_slice %318 {offsets = [2, 0], sizes = [2, 64], strides = [1, 1]} : vector<26x64xf32> to vector<2x64xf32>
    %cst_126 = arith.constant dense<0xFF800000> : vector<64xf32>
    %323 = vector.multi_reduction <maximumf>, %322, %cst_126 [0] : vector<2x64xf32> to vector<64xf32>
    %324 = vector.shape_cast %323 : vector<64xf32> to vector<1x64xf32>
    %325 = vector.extract_strided_slice %318 {offsets = [4, 0], sizes = [2, 64], strides = [1, 1]} : vector<26x64xf32> to vector<2x64xf32>
    %cst_127 = arith.constant dense<0xFF800000> : vector<64xf32>
    %326 = vector.multi_reduction <maximumf>, %325, %cst_127 [0] : vector<2x64xf32> to vector<64xf32>
    %327 = vector.shape_cast %326 : vector<64xf32> to vector<1x64xf32>
    %328 = vector.extract_strided_slice %318 {offsets = [6, 0], sizes = [2, 64], strides = [1, 1]} : vector<26x64xf32> to vector<2x64xf32>
    %cst_128 = arith.constant dense<0xFF800000> : vector<64xf32>
    %329 = vector.multi_reduction <maximumf>, %328, %cst_128 [0] : vector<2x64xf32> to vector<64xf32>
    %330 = vector.shape_cast %329 : vector<64xf32> to vector<1x64xf32>
    %331 = vector.extract_strided_slice %318 {offsets = [8, 0], sizes = [2, 64], strides = [1, 1]} : vector<26x64xf32> to vector<2x64xf32>
    %cst_129 = arith.constant dense<0xFF800000> : vector<64xf32>
    %332 = vector.multi_reduction <maximumf>, %331, %cst_129 [0] : vector<2x64xf32> to vector<64xf32>
    %333 = vector.shape_cast %332 : vector<64xf32> to vector<1x64xf32>
    %334 = vector.extract_strided_slice %318 {offsets = [10, 0], sizes = [2, 64], strides = [1, 1]} : vector<26x64xf32> to vector<2x64xf32>
    %cst_130 = arith.constant dense<0xFF800000> : vector<64xf32>
    %335 = vector.multi_reduction <maximumf>, %334, %cst_130 [0] : vector<2x64xf32> to vector<64xf32>
    %336 = vector.shape_cast %335 : vector<64xf32> to vector<1x64xf32>
    %337 = vector.extract_strided_slice %318 {offsets = [12, 0], sizes = [2, 64], strides = [1, 1]} : vector<26x64xf32> to vector<2x64xf32>
    %cst_131 = arith.constant dense<0xFF800000> : vector<64xf32>
    %338 = vector.multi_reduction <maximumf>, %337, %cst_131 [0] : vector<2x64xf32> to vector<64xf32>
    %339 = vector.shape_cast %338 : vector<64xf32> to vector<1x64xf32>
    %340 = vector.extract_strided_slice %318 {offsets = [14, 0], sizes = [2, 64], strides = [1, 1]} : vector<26x64xf32> to vector<2x64xf32>
    %cst_132 = arith.constant dense<0xFF800000> : vector<64xf32>
    %341 = vector.multi_reduction <maximumf>, %340, %cst_132 [0] : vector<2x64xf32> to vector<64xf32>
    %342 = vector.shape_cast %341 : vector<64xf32> to vector<1x64xf32>
    %343 = vector.extract_strided_slice %318 {offsets = [16, 0], sizes = [2, 64], strides = [1, 1]} : vector<26x64xf32> to vector<2x64xf32>
    %cst_133 = arith.constant dense<0xFF800000> : vector<64xf32>
    %344 = vector.multi_reduction <maximumf>, %343, %cst_133 [0] : vector<2x64xf32> to vector<64xf32>
    %345 = vector.shape_cast %344 : vector<64xf32> to vector<1x64xf32>
    %346 = vector.extract_strided_slice %318 {offsets = [18, 0], sizes = [2, 64], strides = [1, 1]} : vector<26x64xf32> to vector<2x64xf32>
    %cst_134 = arith.constant dense<0xFF800000> : vector<64xf32>
    %347 = vector.multi_reduction <maximumf>, %346, %cst_134 [0] : vector<2x64xf32> to vector<64xf32>
    %348 = vector.shape_cast %347 : vector<64xf32> to vector<1x64xf32>
    %349 = vector.extract_strided_slice %318 {offsets = [20, 0], sizes = [2, 64], strides = [1, 1]} : vector<26x64xf32> to vector<2x64xf32>
    %cst_135 = arith.constant dense<0xFF800000> : vector<64xf32>
    %350 = vector.multi_reduction <maximumf>, %349, %cst_135 [0] : vector<2x64xf32> to vector<64xf32>
    %351 = vector.shape_cast %350 : vector<64xf32> to vector<1x64xf32>
    %352 = vector.extract_strided_slice %318 {offsets = [22, 0], sizes = [2, 64], strides = [1, 1]} : vector<26x64xf32> to vector<2x64xf32>
    %cst_136 = arith.constant dense<0xFF800000> : vector<64xf32>
    %353 = vector.multi_reduction <maximumf>, %352, %cst_136 [0] : vector<2x64xf32> to vector<64xf32>
    %354 = vector.shape_cast %353 : vector<64xf32> to vector<1x64xf32>
    %355 = vector.extract_strided_slice %318 {offsets = [24, 0], sizes = [2, 64], strides = [1, 1]} : vector<26x64xf32> to vector<2x64xf32>
    %cst_137 = arith.constant dense<0xFF800000> : vector<64xf32>
    %356 = vector.multi_reduction <maximumf>, %355, %cst_137 [0] : vector<2x64xf32> to vector<64xf32>
    %357 = vector.shape_cast %356 : vector<64xf32> to vector<1x64xf32>
    %358 = tpu.concatenate %321, %324, %327, %330, %333, %336, %339, %342, %345, %348, %351, %354, %357 in 0 : vector<1x64xf32>, vector<1x64xf32>, vector<1x64xf32>, vector<1x64xf32>, vector<1x64xf32>, vector<1x64xf32>, vector<1x64xf32>, vector<1x64xf32>, vector<1x64xf32>, vector<1x64xf32>, vector<1x64xf32>, vector<1x64xf32>, vector<1x64xf32> -> vector<13x64xf32>
    %c78 = arith.constant 78 : index
    %c0_138 = arith.constant 0 : index
    %359 = vector.load %arg11[%c78, %c0_138] : memref<176x64xf32, #tpu.memory_space<vmem>>, vector<13x64xf32>
    tpu.vector_store %arg11[%c78, %c0_138], %358 {strides = array<i32>} : memref<176x64xf32, #tpu.memory_space<vmem>>, vector<13x64xf32>,
    %c0_139 = arith.constant 0 : index
    %c364 = arith.constant 364 : index
    %c0_140 = arith.constant 0 : index
    %360 = vector.load %arg1[%c0_139, %c364, %c0_140] : memref<1x676x9xf32, #tpu.memory_space<vmem>>, vector<1x52x9xf32>
    %361 = vector.shape_cast %360 : vector<1x52x9xf32> to vector<52x9xf32>
    %cst_141 = arith.constant dense<0.000000e+00> : vector<52x64xf32>
    %362 = tpu.matmul %361, %0, %cst_141 {dimension_numbers = #tpu.dot_dimension_numbers<[1], [0], [0], [1], [0, 0, 1, 1], [], []>} : vector<52x9xf32>, vector<9x64xf32>, vector<52x64xf32> -> vector<52x64xf32>
    %363 = arith.addf %362, %3 : vector<52x64xf32>
    %cst_142 = arith.constant 0.000000e+00 : f32
    %364 = vector.broadcast %cst_142 : f32 to vector<52x64xf32>
    %365 = arith.maximumf %363, %364 : vector<52x64xf32>
    %366 = vector.extract_strided_slice %365 {offsets = [0, 0], sizes = [26, 64], strides = [1, 1]} : vector<52x64xf32> to vector<26x64xf32>
    %367 = vector.extract_strided_slice %365 {offsets = [26, 0], sizes = [26, 64], strides = [1, 1]} : vector<52x64xf32> to vector<26x64xf32>
    %368 = arith.maximumf %366, %367 : vector<26x64xf32>
    %369 = vector.extract_strided_slice %368 {offsets = [0, 0], sizes = [2, 64], strides = [1, 1]} : vector<26x64xf32> to vector<2x64xf32>
    %cst_143 = arith.constant dense<0xFF800000> : vector<64xf32>
    %370 = vector.multi_reduction <maximumf>, %369, %cst_143 [0] : vector<2x64xf32> to vector<64xf32>
    %371 = vector.shape_cast %370 : vector<64xf32> to vector<1x64xf32>
    %372 = vector.extract_strided_slice %368 {offsets = [2, 0], sizes = [2, 64], strides = [1, 1]} : vector<26x64xf32> to vector<2x64xf32>
    %cst_144 = arith.constant dense<0xFF800000> : vector<64xf32>
    %373 = vector.multi_reduction <maximumf>, %372, %cst_144 [0] : vector<2x64xf32> to vector<64xf32>
    %374 = vector.shape_cast %373 : vector<64xf32> to vector<1x64xf32>
    %375 = vector.extract_strided_slice %368 {offsets = [4, 0], sizes = [2, 64], strides = [1, 1]} : vector<26x64xf32> to vector<2x64xf32>
    %cst_145 = arith.constant dense<0xFF800000> : vector<64xf32>
    %376 = vector.multi_reduction <maximumf>, %375, %cst_145 [0] : vector<2x64xf32> to vector<64xf32>
    %377 = vector.shape_cast %376 : vector<64xf32> to vector<1x64xf32>
    %378 = vector.extract_strided_slice %368 {offsets = [6, 0], sizes = [2, 64], strides = [1, 1]} : vector<26x64xf32> to vector<2x64xf32>
    %cst_146 = arith.constant dense<0xFF800000> : vector<64xf32>
    %379 = vector.multi_reduction <maximumf>, %378, %cst_146 [0] : vector<2x64xf32> to vector<64xf32>
    %380 = vector.shape_cast %379 : vector<64xf32> to vector<1x64xf32>
    %381 = vector.extract_strided_slice %368 {offsets = [8, 0], sizes = [2, 64], strides = [1, 1]} : vector<26x64xf32> to vector<2x64xf32>
    %cst_147 = arith.constant dense<0xFF800000> : vector<64xf32>
    %382 = vector.multi_reduction <maximumf>, %381, %cst_147 [0] : vector<2x64xf32> to vector<64xf32>
    %383 = vector.shape_cast %382 : vector<64xf32> to vector<1x64xf32>
    %384 = vector.extract_strided_slice %368 {offsets = [10, 0], sizes = [2, 64], strides = [1, 1]} : vector<26x64xf32> to vector<2x64xf32>
    %cst_148 = arith.constant dense<0xFF800000> : vector<64xf32>
    %385 = vector.multi_reduction <maximumf>, %384, %cst_148 [0] : vector<2x64xf32> to vector<64xf32>
    %386 = vector.shape_cast %385 : vector<64xf32> to vector<1x64xf32>
    %387 = vector.extract_strided_slice %368 {offsets = [12, 0], sizes = [2, 64], strides = [1, 1]} : vector<26x64xf32> to vector<2x64xf32>
    %cst_149 = arith.constant dense<0xFF800000> : vector<64xf32>
    %388 = vector.multi_reduction <maximumf>, %387, %cst_149 [0] : vector<2x64xf32> to vector<64xf32>
    %389 = vector.shape_cast %388 : vector<64xf32> to vector<1x64xf32>
    %390 = vector.extract_strided_slice %368 {offsets = [14, 0], sizes = [2, 64], strides = [1, 1]} : vector<26x64xf32> to vector<2x64xf32>
    %cst_150 = arith.constant dense<0xFF800000> : vector<64xf32>
    %391 = vector.multi_reduction <maximumf>, %390, %cst_150 [0] : vector<2x64xf32> to vector<64xf32>
    %392 = vector.shape_cast %391 : vector<64xf32> to vector<1x64xf32>
    %393 = vector.extract_strided_slice %368 {offsets = [16, 0], sizes = [2, 64], strides = [1, 1]} : vector<26x64xf32> to vector<2x64xf32>
    %cst_151 = arith.constant dense<0xFF800000> : vector<64xf32>
    %394 = vector.multi_reduction <maximumf>, %393, %cst_151 [0] : vector<2x64xf32> to vector<64xf32>
    %395 = vector.shape_cast %394 : vector<64xf32> to vector<1x64xf32>
    %396 = vector.extract_strided_slice %368 {offsets = [18, 0], sizes = [2, 64], strides = [1, 1]} : vector<26x64xf32> to vector<2x64xf32>
    %cst_152 = arith.constant dense<0xFF800000> : vector<64xf32>
    %397 = vector.multi_reduction <maximumf>, %396, %cst_152 [0] : vector<2x64xf32> to vector<64xf32>
    %398 = vector.shape_cast %397 : vector<64xf32> to vector<1x64xf32>
    %399 = vector.extract_strided_slice %368 {offsets = [20, 0], sizes = [2, 64], strides = [1, 1]} : vector<26x64xf32> to vector<2x64xf32>
    %cst_153 = arith.constant dense<0xFF800000> : vector<64xf32>
    %400 = vector.multi_reduction <maximumf>, %399, %cst_153 [0] : vector<2x64xf32> to vector<64xf32>
    %401 = vector.shape_cast %400 : vector<64xf32> to vector<1x64xf32>
    %402 = vector.extract_strided_slice %368 {offsets = [22, 0], sizes = [2, 64], strides = [1, 1]} : vector<26x64xf32> to vector<2x64xf32>
    %cst_154 = arith.constant dense<0xFF800000> : vector<64xf32>
    %403 = vector.multi_reduction <maximumf>, %402, %cst_154 [0] : vector<2x64xf32> to vector<64xf32>
    %404 = vector.shape_cast %403 : vector<64xf32> to vector<1x64xf32>
    %405 = vector.extract_strided_slice %368 {offsets = [24, 0], sizes = [2, 64], strides = [1, 1]} : vector<26x64xf32> to vector<2x64xf32>
    %cst_155 = arith.constant dense<0xFF800000> : vector<64xf32>
    %406 = vector.multi_reduction <maximumf>, %405, %cst_155 [0] : vector<2x64xf32> to vector<64xf32>
    %407 = vector.shape_cast %406 : vector<64xf32> to vector<1x64xf32>
    %408 = tpu.concatenate %371, %374, %377, %380, %383, %386, %389, %392, %395, %398, %401, %404, %407 in 0 : vector<1x64xf32>, vector<1x64xf32>, vector<1x64xf32>, vector<1x64xf32>, vector<1x64xf32>, vector<1x64xf32>, vector<1x64xf32>, vector<1x64xf32>, vector<1x64xf32>, vector<1x64xf32>, vector<1x64xf32>, vector<1x64xf32>, vector<1x64xf32> -> vector<13x64xf32>
    %c91 = arith.constant 91 : index
    %c0_156 = arith.constant 0 : index
    %409 = vector.load %arg11[%c91, %c0_156] : memref<176x64xf32, #tpu.memory_space<vmem>>, vector<13x64xf32>
    tpu.vector_store %arg11[%c91, %c0_156], %408 {strides = array<i32>} : memref<176x64xf32, #tpu.memory_space<vmem>>, vector<13x64xf32>,
    %c0_157 = arith.constant 0 : index
    %c416 = arith.constant 416 : index
    %c0_158 = arith.constant 0 : index
    %410 = vector.load %arg1[%c0_157, %c416, %c0_158] : memref<1x676x9xf32, #tpu.memory_space<vmem>>, vector<1x52x9xf32>
    %411 = vector.shape_cast %410 : vector<1x52x9xf32> to vector<52x9xf32>
    %cst_159 = arith.constant dense<0.000000e+00> : vector<52x64xf32>
    %412 = tpu.matmul %411, %0, %cst_159 {dimension_numbers = #tpu.dot_dimension_numbers<[1], [0], [0], [1], [0, 0, 1, 1], [], []>} : vector<52x9xf32>, vector<9x64xf32>, vector<52x64xf32> -> vector<52x64xf32>
    %413 = arith.addf %412, %3 : vector<52x64xf32>
    %cst_160 = arith.constant 0.000000e+00 : f32
    %414 = vector.broadcast %cst_160 : f32 to vector<52x64xf32>
    %415 = arith.maximumf %413, %414 : vector<52x64xf32>
    %416 = vector.extract_strided_slice %415 {offsets = [0, 0], sizes = [26, 64], strides = [1, 1]} : vector<52x64xf32> to vector<26x64xf32>
    %417 = vector.extract_strided_slice %415 {offsets = [26, 0], sizes = [26, 64], strides = [1, 1]} : vector<52x64xf32> to vector<26x64xf32>
    %418 = arith.maximumf %416, %417 : vector<26x64xf32>
    %419 = vector.extract_strided_slice %418 {offsets = [0, 0], sizes = [2, 64], strides = [1, 1]} : vector<26x64xf32> to vector<2x64xf32>
    %cst_161 = arith.constant dense<0xFF800000> : vector<64xf32>
    %420 = vector.multi_reduction <maximumf>, %419, %cst_161 [0] : vector<2x64xf32> to vector<64xf32>
    %421 = vector.shape_cast %420 : vector<64xf32> to vector<1x64xf32>
    %422 = vector.extract_strided_slice %418 {offsets = [2, 0], sizes = [2, 64], strides = [1, 1]} : vector<26x64xf32> to vector<2x64xf32>
    %cst_162 = arith.constant dense<0xFF800000> : vector<64xf32>
    %423 = vector.multi_reduction <maximumf>, %422, %cst_162 [0] : vector<2x64xf32> to vector<64xf32>
    %424 = vector.shape_cast %423 : vector<64xf32> to vector<1x64xf32>
    %425 = vector.extract_strided_slice %418 {offsets = [4, 0], sizes = [2, 64], strides = [1, 1]} : vector<26x64xf32> to vector<2x64xf32>
    %cst_163 = arith.constant dense<0xFF800000> : vector<64xf32>
    %426 = vector.multi_reduction <maximumf>, %425, %cst_163 [0] : vector<2x64xf32> to vector<64xf32>
    %427 = vector.shape_cast %426 : vector<64xf32> to vector<1x64xf32>
    %428 = vector.extract_strided_slice %418 {offsets = [6, 0], sizes = [2, 64], strides = [1, 1]} : vector<26x64xf32> to vector<2x64xf32>
    %cst_164 = arith.constant dense<0xFF800000> : vector<64xf32>
    %429 = vector.multi_reduction <maximumf>, %428, %cst_164 [0] : vector<2x64xf32> to vector<64xf32>
    %430 = vector.shape_cast %429 : vector<64xf32> to vector<1x64xf32>
    %431 = vector.extract_strided_slice %418 {offsets = [8, 0], sizes = [2, 64], strides = [1, 1]} : vector<26x64xf32> to vector<2x64xf32>
    %cst_165 = arith.constant dense<0xFF800000> : vector<64xf32>
    %432 = vector.multi_reduction <maximumf>, %431, %cst_165 [0] : vector<2x64xf32> to vector<64xf32>
    %433 = vector.shape_cast %432 : vector<64xf32> to vector<1x64xf32>
    %434 = vector.extract_strided_slice %418 {offsets = [10, 0], sizes = [2, 64], strides = [1, 1]} : vector<26x64xf32> to vector<2x64xf32>
    %cst_166 = arith.constant dense<0xFF800000> : vector<64xf32>
    %435 = vector.multi_reduction <maximumf>, %434, %cst_166 [0] : vector<2x64xf32> to vector<64xf32>
    %436 = vector.shape_cast %435 : vector<64xf32> to vector<1x64xf32>
    %437 = vector.extract_strided_slice %418 {offsets = [12, 0], sizes = [2, 64], strides = [1, 1]} : vector<26x64xf32> to vector<2x64xf32>
    %cst_167 = arith.constant dense<0xFF800000> : vector<64xf32>
    %438 = vector.multi_reduction <maximumf>, %437, %cst_167 [0] : vector<2x64xf32> to vector<64xf32>
    %439 = vector.shape_cast %438 : vector<64xf32> to vector<1x64xf32>
    %440 = vector.extract_strided_slice %418 {offsets = [14, 0], sizes = [2, 64], strides = [1, 1]} : vector<26x64xf32> to vector<2x64xf32>
    %cst_168 = arith.constant dense<0xFF800000> : vector<64xf32>
    %441 = vector.multi_reduction <maximumf>, %440, %cst_168 [0] : vector<2x64xf32> to vector<64xf32>
    %442 = vector.shape_cast %441 : vector<64xf32> to vector<1x64xf32>
    %443 = vector.extract_strided_slice %418 {offsets = [16, 0], sizes = [2, 64], strides = [1, 1]} : vector<26x64xf32> to vector<2x64xf32>
    %cst_169 = arith.constant dense<0xFF800000> : vector<64xf32>
    %444 = vector.multi_reduction <maximumf>, %443, %cst_169 [0] : vector<2x64xf32> to vector<64xf32>
    %445 = vector.shape_cast %444 : vector<64xf32> to vector<1x64xf32>
    %446 = vector.extract_strided_slice %418 {offsets = [18, 0], sizes = [2, 64], strides = [1, 1]} : vector<26x64xf32> to vector<2x64xf32>
    %cst_170 = arith.constant dense<0xFF800000> : vector<64xf32>
    %447 = vector.multi_reduction <maximumf>, %446, %cst_170 [0] : vector<2x64xf32> to vector<64xf32>
    %448 = vector.shape_cast %447 : vector<64xf32> to vector<1x64xf32>
    %449 = vector.extract_strided_slice %418 {offsets = [20, 0], sizes = [2, 64], strides = [1, 1]} : vector<26x64xf32> to vector<2x64xf32>
    %cst_171 = arith.constant dense<0xFF800000> : vector<64xf32>
    %450 = vector.multi_reduction <maximumf>, %449, %cst_171 [0] : vector<2x64xf32> to vector<64xf32>
    %451 = vector.shape_cast %450 : vector<64xf32> to vector<1x64xf32>
    %452 = vector.extract_strided_slice %418 {offsets = [22, 0], sizes = [2, 64], strides = [1, 1]} : vector<26x64xf32> to vector<2x64xf32>
    %cst_172 = arith.constant dense<0xFF800000> : vector<64xf32>
    %453 = vector.multi_reduction <maximumf>, %452, %cst_172 [0] : vector<2x64xf32> to vector<64xf32>
    %454 = vector.shape_cast %453 : vector<64xf32> to vector<1x64xf32>
    %455 = vector.extract_strided_slice %418 {offsets = [24, 0], sizes = [2, 64], strides = [1, 1]} : vector<26x64xf32> to vector<2x64xf32>
    %cst_173 = arith.constant dense<0xFF800000> : vector<64xf32>
    %456 = vector.multi_reduction <maximumf>, %455, %cst_173 [0] : vector<2x64xf32> to vector<64xf32>
    %457 = vector.shape_cast %456 : vector<64xf32> to vector<1x64xf32>
    %458 = tpu.concatenate %421, %424, %427, %430, %433, %436, %439, %442, %445, %448, %451, %454, %457 in 0 : vector<1x64xf32>, vector<1x64xf32>, vector<1x64xf32>, vector<1x64xf32>, vector<1x64xf32>, vector<1x64xf32>, vector<1x64xf32>, vector<1x64xf32>, vector<1x64xf32>, vector<1x64xf32>, vector<1x64xf32>, vector<1x64xf32>, vector<1x64xf32> -> vector<13x64xf32>
    %c104_174 = arith.constant 104 : index
    %c0_175 = arith.constant 0 : index
    %459 = vector.load %arg11[%c104_174, %c0_175] : memref<176x64xf32, #tpu.memory_space<vmem>>, vector<13x64xf32>
    tpu.vector_store %arg11[%c104_174, %c0_175], %458 {strides = array<i32>} : memref<176x64xf32, #tpu.memory_space<vmem>>, vector<13x64xf32>,
    %c0_176 = arith.constant 0 : index
    %c468 = arith.constant 468 : index
    %c0_177 = arith.constant 0 : index
    %460 = vector.load %arg1[%c0_176, %c468, %c0_177] : memref<1x676x9xf32, #tpu.memory_space<vmem>>, vector<1x52x9xf32>
    %461 = vector.shape_cast %460 : vector<1x52x9xf32> to vector<52x9xf32>
    %cst_178 = arith.constant dense<0.000000e+00> : vector<52x64xf32>
    %462 = tpu.matmul %461, %0, %cst_178 {dimension_numbers = #tpu.dot_dimension_numbers<[1], [0], [0], [1], [0, 0, 1, 1], [], []>} : vector<52x9xf32>, vector<9x64xf32>, vector<52x64xf32> -> vector<52x64xf32>
    %463 = arith.addf %462, %3 : vector<52x64xf32>
    %cst_179 = arith.constant 0.000000e+00 : f32
    %464 = vector.broadcast %cst_179 : f32 to vector<52x64xf32>
    %465 = arith.maximumf %463, %464 : vector<52x64xf32>
    %466 = vector.extract_strided_slice %465 {offsets = [0, 0], sizes = [26, 64], strides = [1, 1]} : vector<52x64xf32> to vector<26x64xf32>
    %467 = vector.extract_strided_slice %465 {offsets = [26, 0], sizes = [26, 64], strides = [1, 1]} : vector<52x64xf32> to vector<26x64xf32>
    %468 = arith.maximumf %466, %467 : vector<26x64xf32>
    %469 = vector.extract_strided_slice %468 {offsets = [0, 0], sizes = [2, 64], strides = [1, 1]} : vector<26x64xf32> to vector<2x64xf32>
    %cst_180 = arith.constant dense<0xFF800000> : vector<64xf32>
    %470 = vector.multi_reduction <maximumf>, %469, %cst_180 [0] : vector<2x64xf32> to vector<64xf32>
    %471 = vector.shape_cast %470 : vector<64xf32> to vector<1x64xf32>
    %472 = vector.extract_strided_slice %468 {offsets = [2, 0], sizes = [2, 64], strides = [1, 1]} : vector<26x64xf32> to vector<2x64xf32>
    %cst_181 = arith.constant dense<0xFF800000> : vector<64xf32>
    %473 = vector.multi_reduction <maximumf>, %472, %cst_181 [0] : vector<2x64xf32> to vector<64xf32>
    %474 = vector.shape_cast %473 : vector<64xf32> to vector<1x64xf32>
    %475 = vector.extract_strided_slice %468 {offsets = [4, 0], sizes = [2, 64], strides = [1, 1]} : vector<26x64xf32> to vector<2x64xf32>
    %cst_182 = arith.constant dense<0xFF800000> : vector<64xf32>
    %476 = vector.multi_reduction <maximumf>, %475, %cst_182 [0] : vector<2x64xf32> to vector<64xf32>
    %477 = vector.shape_cast %476 : vector<64xf32> to vector<1x64xf32>
    %478 = vector.extract_strided_slice %468 {offsets = [6, 0], sizes = [2, 64], strides = [1, 1]} : vector<26x64xf32> to vector<2x64xf32>
    %cst_183 = arith.constant dense<0xFF800000> : vector<64xf32>
    %479 = vector.multi_reduction <maximumf>, %478, %cst_183 [0] : vector<2x64xf32> to vector<64xf32>
    %480 = vector.shape_cast %479 : vector<64xf32> to vector<1x64xf32>
    %481 = vector.extract_strided_slice %468 {offsets = [8, 0], sizes = [2, 64], strides = [1, 1]} : vector<26x64xf32> to vector<2x64xf32>
    %cst_184 = arith.constant dense<0xFF800000> : vector<64xf32>
    %482 = vector.multi_reduction <maximumf>, %481, %cst_184 [0] : vector<2x64xf32> to vector<64xf32>
    %483 = vector.shape_cast %482 : vector<64xf32> to vector<1x64xf32>
    %484 = vector.extract_strided_slice %468 {offsets = [10, 0], sizes = [2, 64], strides = [1, 1]} : vector<26x64xf32> to vector<2x64xf32>
    %cst_185 = arith.constant dense<0xFF800000> : vector<64xf32>
    %485 = vector.multi_reduction <maximumf>, %484, %cst_185 [0] : vector<2x64xf32> to vector<64xf32>
    %486 = vector.shape_cast %485 : vector<64xf32> to vector<1x64xf32>
    %487 = vector.extract_strided_slice %468 {offsets = [12, 0], sizes = [2, 64], strides = [1, 1]} : vector<26x64xf32> to vector<2x64xf32>
    %cst_186 = arith.constant dense<0xFF800000> : vector<64xf32>
    %488 = vector.multi_reduction <maximumf>, %487, %cst_186 [0] : vector<2x64xf32> to vector<64xf32>
    %489 = vector.shape_cast %488 : vector<64xf32> to vector<1x64xf32>
    %490 = vector.extract_strided_slice %468 {offsets = [14, 0], sizes = [2, 64], strides = [1, 1]} : vector<26x64xf32> to vector<2x64xf32>
    %cst_187 = arith.constant dense<0xFF800000> : vector<64xf32>
    %491 = vector.multi_reduction <maximumf>, %490, %cst_187 [0] : vector<2x64xf32> to vector<64xf32>
    %492 = vector.shape_cast %491 : vector<64xf32> to vector<1x64xf32>
    %493 = vector.extract_strided_slice %468 {offsets = [16, 0], sizes = [2, 64], strides = [1, 1]} : vector<26x64xf32> to vector<2x64xf32>
    %cst_188 = arith.constant dense<0xFF800000> : vector<64xf32>
    %494 = vector.multi_reduction <maximumf>, %493, %cst_188 [0] : vector<2x64xf32> to vector<64xf32>
    %495 = vector.shape_cast %494 : vector<64xf32> to vector<1x64xf32>
    %496 = vector.extract_strided_slice %468 {offsets = [18, 0], sizes = [2, 64], strides = [1, 1]} : vector<26x64xf32> to vector<2x64xf32>
    %cst_189 = arith.constant dense<0xFF800000> : vector<64xf32>
    %497 = vector.multi_reduction <maximumf>, %496, %cst_189 [0] : vector<2x64xf32> to vector<64xf32>
    %498 = vector.shape_cast %497 : vector<64xf32> to vector<1x64xf32>
    %499 = vector.extract_strided_slice %468 {offsets = [20, 0], sizes = [2, 64], strides = [1, 1]} : vector<26x64xf32> to vector<2x64xf32>
    %cst_190 = arith.constant dense<0xFF800000> : vector<64xf32>
    %500 = vector.multi_reduction <maximumf>, %499, %cst_190 [0] : vector<2x64xf32> to vector<64xf32>
    %501 = vector.shape_cast %500 : vector<64xf32> to vector<1x64xf32>
    %502 = vector.extract_strided_slice %468 {offsets = [22, 0], sizes = [2, 64], strides = [1, 1]} : vector<26x64xf32> to vector<2x64xf32>
    %cst_191 = arith.constant dense<0xFF800000> : vector<64xf32>
    %503 = vector.multi_reduction <maximumf>, %502, %cst_191 [0] : vector<2x64xf32> to vector<64xf32>
    %504 = vector.shape_cast %503 : vector<64xf32> to vector<1x64xf32>
    %505 = vector.extract_strided_slice %468 {offsets = [24, 0], sizes = [2, 64], strides = [1, 1]} : vector<26x64xf32> to vector<2x64xf32>
    %cst_192 = arith.constant dense<0xFF800000> : vector<64xf32>
    %506 = vector.multi_reduction <maximumf>, %505, %cst_192 [0] : vector<2x64xf32> to vector<64xf32>
    %507 = vector.shape_cast %506 : vector<64xf32> to vector<1x64xf32>
    %508 = tpu.concatenate %471, %474, %477, %480, %483, %486, %489, %492, %495, %498, %501, %504, %507 in 0 : vector<1x64xf32>, vector<1x64xf32>, vector<1x64xf32>, vector<1x64xf32>, vector<1x64xf32>, vector<1x64xf32>, vector<1x64xf32>, vector<1x64xf32>, vector<1x64xf32>, vector<1x64xf32>, vector<1x64xf32>, vector<1x64xf32>, vector<1x64xf32> -> vector<13x64xf32>
    %c117 = arith.constant 117 : index
    %c0_193 = arith.constant 0 : index
    %509 = vector.load %arg11[%c117, %c0_193] : memref<176x64xf32, #tpu.memory_space<vmem>>, vector<13x64xf32>
    tpu.vector_store %arg11[%c117, %c0_193], %508 {strides = array<i32>} : memref<176x64xf32, #tpu.memory_space<vmem>>, vector<13x64xf32>,
    %c0_194 = arith.constant 0 : index
    %c520 = arith.constant 520 : index
    %c0_195 = arith.constant 0 : index
    %510 = vector.load %arg1[%c0_194, %c520, %c0_195] : memref<1x676x9xf32, #tpu.memory_space<vmem>>, vector<1x52x9xf32>
    %511 = vector.shape_cast %510 : vector<1x52x9xf32> to vector<52x9xf32>
    %cst_196 = arith.constant dense<0.000000e+00> : vector<52x64xf32>
    %512 = tpu.matmul %511, %0, %cst_196 {dimension_numbers = #tpu.dot_dimension_numbers<[1], [0], [0], [1], [0, 0, 1, 1], [], []>} : vector<52x9xf32>, vector<9x64xf32>, vector<52x64xf32> -> vector<52x64xf32>
    %513 = arith.addf %512, %3 : vector<52x64xf32>
    %cst_197 = arith.constant 0.000000e+00 : f32
    %514 = vector.broadcast %cst_197 : f32 to vector<52x64xf32>
    %515 = arith.maximumf %513, %514 : vector<52x64xf32>
    %516 = vector.extract_strided_slice %515 {offsets = [0, 0], sizes = [26, 64], strides = [1, 1]} : vector<52x64xf32> to vector<26x64xf32>
    %517 = vector.extract_strided_slice %515 {offsets = [26, 0], sizes = [26, 64], strides = [1, 1]} : vector<52x64xf32> to vector<26x64xf32>
    %518 = arith.maximumf %516, %517 : vector<26x64xf32>
    %519 = vector.extract_strided_slice %518 {offsets = [0, 0], sizes = [2, 64], strides = [1, 1]} : vector<26x64xf32> to vector<2x64xf32>
    %cst_198 = arith.constant dense<0xFF800000> : vector<64xf32>
    %520 = vector.multi_reduction <maximumf>, %519, %cst_198 [0] : vector<2x64xf32> to vector<64xf32>
    %521 = vector.shape_cast %520 : vector<64xf32> to vector<1x64xf32>
    %522 = vector.extract_strided_slice %518 {offsets = [2, 0], sizes = [2, 64], strides = [1, 1]} : vector<26x64xf32> to vector<2x64xf32>
    %cst_199 = arith.constant dense<0xFF800000> : vector<64xf32>
    %523 = vector.multi_reduction <maximumf>, %522, %cst_199 [0] : vector<2x64xf32> to vector<64xf32>
    %524 = vector.shape_cast %523 : vector<64xf32> to vector<1x64xf32>
    %525 = vector.extract_strided_slice %518 {offsets = [4, 0], sizes = [2, 64], strides = [1, 1]} : vector<26x64xf32> to vector<2x64xf32>
    %cst_200 = arith.constant dense<0xFF800000> : vector<64xf32>
    %526 = vector.multi_reduction <maximumf>, %525, %cst_200 [0] : vector<2x64xf32> to vector<64xf32>
    %527 = vector.shape_cast %526 : vector<64xf32> to vector<1x64xf32>
    %528 = vector.extract_strided_slice %518 {offsets = [6, 0], sizes = [2, 64], strides = [1, 1]} : vector<26x64xf32> to vector<2x64xf32>
    %cst_201 = arith.constant dense<0xFF800000> : vector<64xf32>
    %529 = vector.multi_reduction <maximumf>, %528, %cst_201 [0] : vector<2x64xf32> to vector<64xf32>
    %530 = vector.shape_cast %529 : vector<64xf32> to vector<1x64xf32>
    %531 = vector.extract_strided_slice %518 {offsets = [8, 0], sizes = [2, 64], strides = [1, 1]} : vector<26x64xf32> to vector<2x64xf32>
    %cst_202 = arith.constant dense<0xFF800000> : vector<64xf32>
    %532 = vector.multi_reduction <maximumf>, %531, %cst_202 [0] : vector<2x64xf32> to vector<64xf32>
    %533 = vector.shape_cast %532 : vector<64xf32> to vector<1x64xf32>
    %534 = vector.extract_strided_slice %518 {offsets = [10, 0], sizes = [2, 64], strides = [1, 1]} : vector<26x64xf32> to vector<2x64xf32>
    %cst_203 = arith.constant dense<0xFF800000> : vector<64xf32>
    %535 = vector.multi_reduction <maximumf>, %534, %cst_203 [0] : vector<2x64xf32> to vector<64xf32>
    %536 = vector.shape_cast %535 : vector<64xf32> to vector<1x64xf32>
    %537 = vector.extract_strided_slice %518 {offsets = [12, 0], sizes = [2, 64], strides = [1, 1]} : vector<26x64xf32> to vector<2x64xf32>
    %cst_204 = arith.constant dense<0xFF800000> : vector<64xf32>
    %538 = vector.multi_reduction <maximumf>, %537, %cst_204 [0] : vector<2x64xf32> to vector<64xf32>
    %539 = vector.shape_cast %538 : vector<64xf32> to vector<1x64xf32>
    %540 = vector.extract_strided_slice %518 {offsets = [14, 0], sizes = [2, 64], strides = [1, 1]} : vector<26x64xf32> to vector<2x64xf32>
    %cst_205 = arith.constant dense<0xFF800000> : vector<64xf32>
    %541 = vector.multi_reduction <maximumf>, %540, %cst_205 [0] : vector<2x64xf32> to vector<64xf32>
    %542 = vector.shape_cast %541 : vector<64xf32> to vector<1x64xf32>
    %543 = vector.extract_strided_slice %518 {offsets = [16, 0], sizes = [2, 64], strides = [1, 1]} : vector<26x64xf32> to vector<2x64xf32>
    %cst_206 = arith.constant dense<0xFF800000> : vector<64xf32>
    %544 = vector.multi_reduction <maximumf>, %543, %cst_206 [0] : vector<2x64xf32> to vector<64xf32>
    %545 = vector.shape_cast %544 : vector<64xf32> to vector<1x64xf32>
    %546 = vector.extract_strided_slice %518 {offsets = [18, 0], sizes = [2, 64], strides = [1, 1]} : vector<26x64xf32> to vector<2x64xf32>
    %cst_207 = arith.constant dense<0xFF800000> : vector<64xf32>
    %547 = vector.multi_reduction <maximumf>, %546, %cst_207 [0] : vector<2x64xf32> to vector<64xf32>
    %548 = vector.shape_cast %547 : vector<64xf32> to vector<1x64xf32>
    %549 = vector.extract_strided_slice %518 {offsets = [20, 0], sizes = [2, 64], strides = [1, 1]} : vector<26x64xf32> to vector<2x64xf32>
    %cst_208 = arith.constant dense<0xFF800000> : vector<64xf32>
    %550 = vector.multi_reduction <maximumf>, %549, %cst_208 [0] : vector<2x64xf32> to vector<64xf32>
    %551 = vector.shape_cast %550 : vector<64xf32> to vector<1x64xf32>
    %552 = vector.extract_strided_slice %518 {offsets = [22, 0], sizes = [2, 64], strides = [1, 1]} : vector<26x64xf32> to vector<2x64xf32>
    %cst_209 = arith.constant dense<0xFF800000> : vector<64xf32>
    %553 = vector.multi_reduction <maximumf>, %552, %cst_209 [0] : vector<2x64xf32> to vector<64xf32>
    %554 = vector.shape_cast %553 : vector<64xf32> to vector<1x64xf32>
    %555 = vector.extract_strided_slice %518 {offsets = [24, 0], sizes = [2, 64], strides = [1, 1]} : vector<26x64xf32> to vector<2x64xf32>
    %cst_210 = arith.constant dense<0xFF800000> : vector<64xf32>
    %556 = vector.multi_reduction <maximumf>, %555, %cst_210 [0] : vector<2x64xf32> to vector<64xf32>
    %557 = vector.shape_cast %556 : vector<64xf32> to vector<1x64xf32>
    %558 = tpu.concatenate %521, %524, %527, %530, %533, %536, %539, %542, %545, %548, %551, %554, %557 in 0 : vector<1x64xf32>, vector<1x64xf32>, vector<1x64xf32>, vector<1x64xf32>, vector<1x64xf32>, vector<1x64xf32>, vector<1x64xf32>, vector<1x64xf32>, vector<1x64xf32>, vector<1x64xf32>, vector<1x64xf32>, vector<1x64xf32>, vector<1x64xf32> -> vector<13x64xf32>
    %c130 = arith.constant 130 : index
    %c0_211 = arith.constant 0 : index
    %559 = vector.load %arg11[%c130, %c0_211] : memref<176x64xf32, #tpu.memory_space<vmem>>, vector<13x64xf32>
    tpu.vector_store %arg11[%c130, %c0_211], %558 {strides = array<i32>} : memref<176x64xf32, #tpu.memory_space<vmem>>, vector<13x64xf32>,
    %c0_212 = arith.constant 0 : index
    %c572 = arith.constant 572 : index
    %c0_213 = arith.constant 0 : index
    %560 = vector.load %arg1[%c0_212, %c572, %c0_213] : memref<1x676x9xf32, #tpu.memory_space<vmem>>, vector<1x52x9xf32>
    %561 = vector.shape_cast %560 : vector<1x52x9xf32> to vector<52x9xf32>
    %cst_214 = arith.constant dense<0.000000e+00> : vector<52x64xf32>
    %562 = tpu.matmul %561, %0, %cst_214 {dimension_numbers = #tpu.dot_dimension_numbers<[1], [0], [0], [1], [0, 0, 1, 1], [], []>} : vector<52x9xf32>, vector<9x64xf32>, vector<52x64xf32> -> vector<52x64xf32>
    %563 = arith.addf %562, %3 : vector<52x64xf32>
    %cst_215 = arith.constant 0.000000e+00 : f32
    %564 = vector.broadcast %cst_215 : f32 to vector<52x64xf32>
    %565 = arith.maximumf %563, %564 : vector<52x64xf32>
    %566 = vector.extract_strided_slice %565 {offsets = [0, 0], sizes = [26, 64], strides = [1, 1]} : vector<52x64xf32> to vector<26x64xf32>
    %567 = vector.extract_strided_slice %565 {offsets = [26, 0], sizes = [26, 64], strides = [1, 1]} : vector<52x64xf32> to vector<26x64xf32>
    %568 = arith.maximumf %566, %567 : vector<26x64xf32>
    %569 = vector.extract_strided_slice %568 {offsets = [0, 0], sizes = [2, 64], strides = [1, 1]} : vector<26x64xf32> to vector<2x64xf32>
    %cst_216 = arith.constant dense<0xFF800000> : vector<64xf32>
    %570 = vector.multi_reduction <maximumf>, %569, %cst_216 [0] : vector<2x64xf32> to vector<64xf32>
    %571 = vector.shape_cast %570 : vector<64xf32> to vector<1x64xf32>
    %572 = vector.extract_strided_slice %568 {offsets = [2, 0], sizes = [2, 64], strides = [1, 1]} : vector<26x64xf32> to vector<2x64xf32>
    %cst_217 = arith.constant dense<0xFF800000> : vector<64xf32>
    %573 = vector.multi_reduction <maximumf>, %572, %cst_217 [0] : vector<2x64xf32> to vector<64xf32>
    %574 = vector.shape_cast %573 : vector<64xf32> to vector<1x64xf32>
    %575 = vector.extract_strided_slice %568 {offsets = [4, 0], sizes = [2, 64], strides = [1, 1]} : vector<26x64xf32> to vector<2x64xf32>
    %cst_218 = arith.constant dense<0xFF800000> : vector<64xf32>
    %576 = vector.multi_reduction <maximumf>, %575, %cst_218 [0] : vector<2x64xf32> to vector<64xf32>
    %577 = vector.shape_cast %576 : vector<64xf32> to vector<1x64xf32>
    %578 = vector.extract_strided_slice %568 {offsets = [6, 0], sizes = [2, 64], strides = [1, 1]} : vector<26x64xf32> to vector<2x64xf32>
    %cst_219 = arith.constant dense<0xFF800000> : vector<64xf32>
    %579 = vector.multi_reduction <maximumf>, %578, %cst_219 [0] : vector<2x64xf32> to vector<64xf32>
    %580 = vector.shape_cast %579 : vector<64xf32> to vector<1x64xf32>
    %581 = vector.extract_strided_slice %568 {offsets = [8, 0], sizes = [2, 64], strides = [1, 1]} : vector<26x64xf32> to vector<2x64xf32>
    %cst_220 = arith.constant dense<0xFF800000> : vector<64xf32>
    %582 = vector.multi_reduction <maximumf>, %581, %cst_220 [0] : vector<2x64xf32> to vector<64xf32>
    %583 = vector.shape_cast %582 : vector<64xf32> to vector<1x64xf32>
    %584 = vector.extract_strided_slice %568 {offsets = [10, 0], sizes = [2, 64], strides = [1, 1]} : vector<26x64xf32> to vector<2x64xf32>
    %cst_221 = arith.constant dense<0xFF800000> : vector<64xf32>
    %585 = vector.multi_reduction <maximumf>, %584, %cst_221 [0] : vector<2x64xf32> to vector<64xf32>
    %586 = vector.shape_cast %585 : vector<64xf32> to vector<1x64xf32>
    %587 = vector.extract_strided_slice %568 {offsets = [12, 0], sizes = [2, 64], strides = [1, 1]} : vector<26x64xf32> to vector<2x64xf32>
    %cst_222 = arith.constant dense<0xFF800000> : vector<64xf32>
    %588 = vector.multi_reduction <maximumf>, %587, %cst_222 [0] : vector<2x64xf32> to vector<64xf32>
    %589 = vector.shape_cast %588 : vector<64xf32> to vector<1x64xf32>
    %590 = vector.extract_strided_slice %568 {offsets = [14, 0], sizes = [2, 64], strides = [1, 1]} : vector<26x64xf32> to vector<2x64xf32>
    %cst_223 = arith.constant dense<0xFF800000> : vector<64xf32>
    %591 = vector.multi_reduction <maximumf>, %590, %cst_223 [0] : vector<2x64xf32> to vector<64xf32>
    %592 = vector.shape_cast %591 : vector<64xf32> to vector<1x64xf32>
    %593 = vector.extract_strided_slice %568 {offsets = [16, 0], sizes = [2, 64], strides = [1, 1]} : vector<26x64xf32> to vector<2x64xf32>
    %cst_224 = arith.constant dense<0xFF800000> : vector<64xf32>
    %594 = vector.multi_reduction <maximumf>, %593, %cst_224 [0] : vector<2x64xf32> to vector<64xf32>
    %595 = vector.shape_cast %594 : vector<64xf32> to vector<1x64xf32>
    %596 = vector.extract_strided_slice %568 {offsets = [18, 0], sizes = [2, 64], strides = [1, 1]} : vector<26x64xf32> to vector<2x64xf32>
    %cst_225 = arith.constant dense<0xFF800000> : vector<64xf32>
    %597 = vector.multi_reduction <maximumf>, %596, %cst_225 [0] : vector<2x64xf32> to vector<64xf32>
    %598 = vector.shape_cast %597 : vector<64xf32> to vector<1x64xf32>
    %599 = vector.extract_strided_slice %568 {offsets = [20, 0], sizes = [2, 64], strides = [1, 1]} : vector<26x64xf32> to vector<2x64xf32>
    %cst_226 = arith.constant dense<0xFF800000> : vector<64xf32>
    %600 = vector.multi_reduction <maximumf>, %599, %cst_226 [0] : vector<2x64xf32> to vector<64xf32>
    %601 = vector.shape_cast %600 : vector<64xf32> to vector<1x64xf32>
    %602 = vector.extract_strided_slice %568 {offsets = [22, 0], sizes = [2, 64], strides = [1, 1]} : vector<26x64xf32> to vector<2x64xf32>
    %cst_227 = arith.constant dense<0xFF800000> : vector<64xf32>
    %603 = vector.multi_reduction <maximumf>, %602, %cst_227 [0] : vector<2x64xf32> to vector<64xf32>
    %604 = vector.shape_cast %603 : vector<64xf32> to vector<1x64xf32>
    %605 = vector.extract_strided_slice %568 {offsets = [24, 0], sizes = [2, 64], strides = [1, 1]} : vector<26x64xf32> to vector<2x64xf32>
    %cst_228 = arith.constant dense<0xFF800000> : vector<64xf32>
    %606 = vector.multi_reduction <maximumf>, %605, %cst_228 [0] : vector<2x64xf32> to vector<64xf32>
    %607 = vector.shape_cast %606 : vector<64xf32> to vector<1x64xf32>
    %608 = tpu.concatenate %571, %574, %577, %580, %583, %586, %589, %592, %595, %598, %601, %604, %607 in 0 : vector<1x64xf32>, vector<1x64xf32>, vector<1x64xf32>, vector<1x64xf32>, vector<1x64xf32>, vector<1x64xf32>, vector<1x64xf32>, vector<1x64xf32>, vector<1x64xf32>, vector<1x64xf32>, vector<1x64xf32>, vector<1x64xf32>, vector<1x64xf32> -> vector<13x64xf32>
    %c143 = arith.constant 143 : index
    %c0_229 = arith.constant 0 : index
    %609 = vector.load %arg11[%c143, %c0_229] : memref<176x64xf32, #tpu.memory_space<vmem>>, vector<13x64xf32>
    tpu.vector_store %arg11[%c143, %c0_229], %608 {strides = array<i32>} : memref<176x64xf32, #tpu.memory_space<vmem>>, vector<13x64xf32>,
    %c0_230 = arith.constant 0 : index
    %c624 = arith.constant 624 : index
    %c0_231 = arith.constant 0 : index
    %610 = vector.load %arg1[%c0_230, %c624, %c0_231] : memref<1x676x9xf32, #tpu.memory_space<vmem>>, vector<1x52x9xf32>
    %611 = vector.shape_cast %610 : vector<1x52x9xf32> to vector<52x9xf32>
    %cst_232 = arith.constant dense<0.000000e+00> : vector<52x64xf32>
    %612 = tpu.matmul %611, %0, %cst_232 {dimension_numbers = #tpu.dot_dimension_numbers<[1], [0], [0], [1], [0, 0, 1, 1], [], []>} : vector<52x9xf32>, vector<9x64xf32>, vector<52x64xf32> -> vector<52x64xf32>
    %613 = arith.addf %612, %3 : vector<52x64xf32>
    %cst_233 = arith.constant 0.000000e+00 : f32
    %614 = vector.broadcast %cst_233 : f32 to vector<52x64xf32>
    %615 = arith.maximumf %613, %614 : vector<52x64xf32>
    %616 = vector.extract_strided_slice %615 {offsets = [0, 0], sizes = [26, 64], strides = [1, 1]} : vector<52x64xf32> to vector<26x64xf32>
    %617 = vector.extract_strided_slice %615 {offsets = [26, 0], sizes = [26, 64], strides = [1, 1]} : vector<52x64xf32> to vector<26x64xf32>
    %618 = arith.maximumf %616, %617 : vector<26x64xf32>
    %619 = vector.extract_strided_slice %618 {offsets = [0, 0], sizes = [2, 64], strides = [1, 1]} : vector<26x64xf32> to vector<2x64xf32>
    %cst_234 = arith.constant dense<0xFF800000> : vector<64xf32>
    %620 = vector.multi_reduction <maximumf>, %619, %cst_234 [0] : vector<2x64xf32> to vector<64xf32>
    %621 = vector.shape_cast %620 : vector<64xf32> to vector<1x64xf32>
    %622 = vector.extract_strided_slice %618 {offsets = [2, 0], sizes = [2, 64], strides = [1, 1]} : vector<26x64xf32> to vector<2x64xf32>
    %cst_235 = arith.constant dense<0xFF800000> : vector<64xf32>
    %623 = vector.multi_reduction <maximumf>, %622, %cst_235 [0] : vector<2x64xf32> to vector<64xf32>
    %624 = vector.shape_cast %623 : vector<64xf32> to vector<1x64xf32>
    %625 = vector.extract_strided_slice %618 {offsets = [4, 0], sizes = [2, 64], strides = [1, 1]} : vector<26x64xf32> to vector<2x64xf32>
    %cst_236 = arith.constant dense<0xFF800000> : vector<64xf32>
    %626 = vector.multi_reduction <maximumf>, %625, %cst_236 [0] : vector<2x64xf32> to vector<64xf32>
    %627 = vector.shape_cast %626 : vector<64xf32> to vector<1x64xf32>
    %628 = vector.extract_strided_slice %618 {offsets = [6, 0], sizes = [2, 64], strides = [1, 1]} : vector<26x64xf32> to vector<2x64xf32>
    %cst_237 = arith.constant dense<0xFF800000> : vector<64xf32>
    %629 = vector.multi_reduction <maximumf>, %628, %cst_237 [0] : vector<2x64xf32> to vector<64xf32>
    %630 = vector.shape_cast %629 : vector<64xf32> to vector<1x64xf32>
    %631 = vector.extract_strided_slice %618 {offsets = [8, 0], sizes = [2, 64], strides = [1, 1]} : vector<26x64xf32> to vector<2x64xf32>
    %cst_238 = arith.constant dense<0xFF800000> : vector<64xf32>
    %632 = vector.multi_reduction <maximumf>, %631, %cst_238 [0] : vector<2x64xf32> to vector<64xf32>
    %633 = vector.shape_cast %632 : vector<64xf32> to vector<1x64xf32>
    %634 = vector.extract_strided_slice %618 {offsets = [10, 0], sizes = [2, 64], strides = [1, 1]} : vector<26x64xf32> to vector<2x64xf32>
    %cst_239 = arith.constant dense<0xFF800000> : vector<64xf32>
    %635 = vector.multi_reduction <maximumf>, %634, %cst_239 [0] : vector<2x64xf32> to vector<64xf32>
    %636 = vector.shape_cast %635 : vector<64xf32> to vector<1x64xf32>
    %637 = vector.extract_strided_slice %618 {offsets = [12, 0], sizes = [2, 64], strides = [1, 1]} : vector<26x64xf32> to vector<2x64xf32>
    %cst_240 = arith.constant dense<0xFF800000> : vector<64xf32>
    %638 = vector.multi_reduction <maximumf>, %637, %cst_240 [0] : vector<2x64xf32> to vector<64xf32>
    %639 = vector.shape_cast %638 : vector<64xf32> to vector<1x64xf32>
    %640 = vector.extract_strided_slice %618 {offsets = [14, 0], sizes = [2, 64], strides = [1, 1]} : vector<26x64xf32> to vector<2x64xf32>
    %cst_241 = arith.constant dense<0xFF800000> : vector<64xf32>
    %641 = vector.multi_reduction <maximumf>, %640, %cst_241 [0] : vector<2x64xf32> to vector<64xf32>
    %642 = vector.shape_cast %641 : vector<64xf32> to vector<1x64xf32>
    %643 = vector.extract_strided_slice %618 {offsets = [16, 0], sizes = [2, 64], strides = [1, 1]} : vector<26x64xf32> to vector<2x64xf32>
    %cst_242 = arith.constant dense<0xFF800000> : vector<64xf32>
    %644 = vector.multi_reduction <maximumf>, %643, %cst_242 [0] : vector<2x64xf32> to vector<64xf32>
    %645 = vector.shape_cast %644 : vector<64xf32> to vector<1x64xf32>
    %646 = vector.extract_strided_slice %618 {offsets = [18, 0], sizes = [2, 64], strides = [1, 1]} : vector<26x64xf32> to vector<2x64xf32>
    %cst_243 = arith.constant dense<0xFF800000> : vector<64xf32>
    %647 = vector.multi_reduction <maximumf>, %646, %cst_243 [0] : vector<2x64xf32> to vector<64xf32>
    %648 = vector.shape_cast %647 : vector<64xf32> to vector<1x64xf32>
    %649 = vector.extract_strided_slice %618 {offsets = [20, 0], sizes = [2, 64], strides = [1, 1]} : vector<26x64xf32> to vector<2x64xf32>
    %cst_244 = arith.constant dense<0xFF800000> : vector<64xf32>
    %650 = vector.multi_reduction <maximumf>, %649, %cst_244 [0] : vector<2x64xf32> to vector<64xf32>
    %651 = vector.shape_cast %650 : vector<64xf32> to vector<1x64xf32>
    %652 = vector.extract_strided_slice %618 {offsets = [22, 0], sizes = [2, 64], strides = [1, 1]} : vector<26x64xf32> to vector<2x64xf32>
    %cst_245 = arith.constant dense<0xFF800000> : vector<64xf32>
    %653 = vector.multi_reduction <maximumf>, %652, %cst_245 [0] : vector<2x64xf32> to vector<64xf32>
    %654 = vector.shape_cast %653 : vector<64xf32> to vector<1x64xf32>
    %655 = vector.extract_strided_slice %618 {offsets = [24, 0], sizes = [2, 64], strides = [1, 1]} : vector<26x64xf32> to vector<2x64xf32>
    %cst_246 = arith.constant dense<0xFF800000> : vector<64xf32>
    %656 = vector.multi_reduction <maximumf>, %655, %cst_246 [0] : vector<2x64xf32> to vector<64xf32>
    %657 = vector.shape_cast %656 : vector<64xf32> to vector<1x64xf32>
    %658 = tpu.concatenate %621, %624, %627, %630, %633, %636, %639, %642, %645, %648, %651, %654, %657 in 0 : vector<1x64xf32>, vector<1x64xf32>, vector<1x64xf32>, vector<1x64xf32>, vector<1x64xf32>, vector<1x64xf32>, vector<1x64xf32>, vector<1x64xf32>, vector<1x64xf32>, vector<1x64xf32>, vector<1x64xf32>, vector<1x64xf32>, vector<1x64xf32> -> vector<13x64xf32>
    %c156_247 = arith.constant 156 : index
    %c0_248 = arith.constant 0 : index
    %659 = vector.load %arg11[%c156_247, %c0_248] : memref<176x64xf32, #tpu.memory_space<vmem>>, vector<13x64xf32>
    tpu.vector_store %arg11[%c156_247, %c0_248], %658 {strides = array<i32>} : memref<176x64xf32, #tpu.memory_space<vmem>>, vector<13x64xf32>,
    %660 = vector.shape_cast %4 : vector<1x32xf32> to vector<1x32xf32>
    %661 = vector.broadcast %660 : vector<1x32xf32> to vector<144x32xf32>
    %c0_249 = arith.constant 0 : index
    %c0_250 = arith.constant 0 : index
    %662 = vector.load %arg11[%c0_249, %c0_250] : memref<176x64xf32, #tpu.memory_space<vmem>>, vector<144x64xf32>
    %c0_251 = arith.constant 0 : index
    %c0_252 = arith.constant 0 : index
    %c0_253 = arith.constant 0 : index
    %663 = vector.load %arg4[%c0_251, %c0_252, %c0_253] : memref<9x64x32xf32, #tpu.memory_space<vmem>>, vector<1x64x32xf32>
    %664 = vector.shape_cast %663 : vector<1x64x32xf32> to vector<64x32xf32>
    %cst_254 = arith.constant dense<0.000000e+00> : vector<144x32xf32>
    %665 = tpu.matmul %662, %664, %cst_254 {dimension_numbers = #tpu.dot_dimension_numbers<[1], [0], [0], [1], [0, 0, 1, 1], [], []>} : vector<144x64xf32>, vector<64x32xf32>, vector<144x32xf32> -> vector<144x32xf32>
    %666 = arith.addf %661, %665 : vector<144x32xf32>
    %c1 = arith.constant 1 : index
    %c0_255 = arith.constant 0 : index
    %667 = vector.load %arg11[%c1, %c0_255] : memref<176x64xf32, #tpu.memory_space<vmem>>, vector<144x64xf32>
    %c1_256 = arith.constant 1 : index
    %c0_257 = arith.constant 0 : index
    %c0_258 = arith.constant 0 : index
    %668 = vector.load %arg4[%c1_256, %c0_257, %c0_258] : memref<9x64x32xf32, #tpu.memory_space<vmem>>, vector<1x64x32xf32>
    %669 = vector.shape_cast %668 : vector<1x64x32xf32> to vector<64x32xf32>
    %cst_259 = arith.constant dense<0.000000e+00> : vector<144x32xf32>
    %670 = tpu.matmul %667, %669, %cst_259 {dimension_numbers = #tpu.dot_dimension_numbers<[1], [0], [0], [1], [0, 0, 1, 1], [], []>} : vector<144x64xf32>, vector<64x32xf32>, vector<144x32xf32> -> vector<144x32xf32>
    %671 = arith.addf %666, %670 : vector<144x32xf32>
    %c2 = arith.constant 2 : index
    %c0_260 = arith.constant 0 : index
    %672 = vector.load %arg11[%c2, %c0_260] : memref<176x64xf32, #tpu.memory_space<vmem>>, vector<144x64xf32>
    %c2_261 = arith.constant 2 : index
    %c0_262 = arith.constant 0 : index
    %c0_263 = arith.constant 0 : index
    %673 = vector.load %arg4[%c2_261, %c0_262, %c0_263] : memref<9x64x32xf32, #tpu.memory_space<vmem>>, vector<1x64x32xf32>
    %674 = vector.shape_cast %673 : vector<1x64x32xf32> to vector<64x32xf32>
    %cst_264 = arith.constant dense<0.000000e+00> : vector<144x32xf32>
    %675 = tpu.matmul %672, %674, %cst_264 {dimension_numbers = #tpu.dot_dimension_numbers<[1], [0], [0], [1], [0, 0, 1, 1], [], []>} : vector<144x64xf32>, vector<64x32xf32>, vector<144x32xf32> -> vector<144x32xf32>
    %676 = arith.addf %671, %675 : vector<144x32xf32>
    %c13_265 = arith.constant 13 : index
    %c0_266 = arith.constant 0 : index
    %677 = vector.load %arg11[%c13_265, %c0_266] : memref<176x64xf32, #tpu.memory_space<vmem>>, vector<144x64xf32>
    %c3 = arith.constant 3 : index
    %c0_267 = arith.constant 0 : index
    %c0_268 = arith.constant 0 : index
    %678 = vector.load %arg4[%c3, %c0_267, %c0_268] : memref<9x64x32xf32, #tpu.memory_space<vmem>>, vector<1x64x32xf32>
    %679 = vector.shape_cast %678 : vector<1x64x32xf32> to vector<64x32xf32>
    %cst_269 = arith.constant dense<0.000000e+00> : vector<144x32xf32>
    %680 = tpu.matmul %677, %679, %cst_269 {dimension_numbers = #tpu.dot_dimension_numbers<[1], [0], [0], [1], [0, 0, 1, 1], [], []>} : vector<144x64xf32>, vector<64x32xf32>, vector<144x32xf32> -> vector<144x32xf32>
    %681 = arith.addf %676, %680 : vector<144x32xf32>
    %c14 = arith.constant 14 : index
    %c0_270 = arith.constant 0 : index
    %682 = vector.load %arg11[%c14, %c0_270] : memref<176x64xf32, #tpu.memory_space<vmem>>, vector<144x64xf32>
    %c4 = arith.constant 4 : index
    %c0_271 = arith.constant 0 : index
    %c0_272 = arith.constant 0 : index
    %683 = vector.load %arg4[%c4, %c0_271, %c0_272] : memref<9x64x32xf32, #tpu.memory_space<vmem>>, vector<1x64x32xf32>
    %684 = vector.shape_cast %683 : vector<1x64x32xf32> to vector<64x32xf32>
    %cst_273 = arith.constant dense<0.000000e+00> : vector<144x32xf32>
    %685 = tpu.matmul %682, %684, %cst_273 {dimension_numbers = #tpu.dot_dimension_numbers<[1], [0], [0], [1], [0, 0, 1, 1], [], []>} : vector<144x64xf32>, vector<64x32xf32>, vector<144x32xf32> -> vector<144x32xf32>
    %686 = arith.addf %681, %685 : vector<144x32xf32>
    %c15 = arith.constant 15 : index
    %c0_274 = arith.constant 0 : index
    %687 = vector.load %arg11[%c15, %c0_274] : memref<176x64xf32, #tpu.memory_space<vmem>>, vector<144x64xf32>
    %c5 = arith.constant 5 : index
    %c0_275 = arith.constant 0 : index
    %c0_276 = arith.constant 0 : index
    %688 = vector.load %arg4[%c5, %c0_275, %c0_276] : memref<9x64x32xf32, #tpu.memory_space<vmem>>, vector<1x64x32xf32>
    %689 = vector.shape_cast %688 : vector<1x64x32xf32> to vector<64x32xf32>
    %cst_277 = arith.constant dense<0.000000e+00> : vector<144x32xf32>
    %690 = tpu.matmul %687, %689, %cst_277 {dimension_numbers = #tpu.dot_dimension_numbers<[1], [0], [0], [1], [0, 0, 1, 1], [], []>} : vector<144x64xf32>, vector<64x32xf32>, vector<144x32xf32> -> vector<144x32xf32>
    %691 = arith.addf %686, %690 : vector<144x32xf32>
    %c26_278 = arith.constant 26 : index
    %c0_279 = arith.constant 0 : index
    %692 = vector.load %arg11[%c26_278, %c0_279] : memref<176x64xf32, #tpu.memory_space<vmem>>, vector<144x64xf32>
    %c6 = arith.constant 6 : index
    %c0_280 = arith.constant 0 : index
    %c0_281 = arith.constant 0 : index
    %693 = vector.load %arg4[%c6, %c0_280, %c0_281] : memref<9x64x32xf32, #tpu.memory_space<vmem>>, vector<1x64x32xf32>
    %694 = vector.shape_cast %693 : vector<1x64x32xf32> to vector<64x32xf32>
    %cst_282 = arith.constant dense<0.000000e+00> : vector<144x32xf32>
    %695 = tpu.matmul %692, %694, %cst_282 {dimension_numbers = #tpu.dot_dimension_numbers<[1], [0], [0], [1], [0, 0, 1, 1], [], []>} : vector<144x64xf32>, vector<64x32xf32>, vector<144x32xf32> -> vector<144x32xf32>
    %696 = arith.addf %691, %695 : vector<144x32xf32>
    %c27 = arith.constant 27 : index
    %c0_283 = arith.constant 0 : index
    %697 = vector.load %arg11[%c27, %c0_283] : memref<176x64xf32, #tpu.memory_space<vmem>>, vector<144x64xf32>
    %c7 = arith.constant 7 : index
    %c0_284 = arith.constant 0 : index
    %c0_285 = arith.constant 0 : index
    %698 = vector.load %arg4[%c7, %c0_284, %c0_285] : memref<9x64x32xf32, #tpu.memory_space<vmem>>, vector<1x64x32xf32>
    %699 = vector.shape_cast %698 : vector<1x64x32xf32> to vector<64x32xf32>
    %cst_286 = arith.constant dense<0.000000e+00> : vector<144x32xf32>
    %700 = tpu.matmul %697, %699, %cst_286 {dimension_numbers = #tpu.dot_dimension_numbers<[1], [0], [0], [1], [0, 0, 1, 1], [], []>} : vector<144x64xf32>, vector<64x32xf32>, vector<144x32xf32> -> vector<144x32xf32>
    %701 = arith.addf %696, %700 : vector<144x32xf32>
    %c28 = arith.constant 28 : index
    %c0_287 = arith.constant 0 : index
    %702 = vector.load %arg11[%c28, %c0_287] : memref<176x64xf32, #tpu.memory_space<vmem>>, vector<144x64xf32>
    %c8 = arith.constant 8 : index
    %c0_288 = arith.constant 0 : index
    %c0_289 = arith.constant 0 : index
    %703 = vector.load %arg4[%c8, %c0_288, %c0_289] : memref<9x64x32xf32, #tpu.memory_space<vmem>>, vector<1x64x32xf32>
    %704 = vector.shape_cast %703 : vector<1x64x32xf32> to vector<64x32xf32>
    %cst_290 = arith.constant dense<0.000000e+00> : vector<144x32xf32>
    %705 = tpu.matmul %702, %704, %cst_290 {dimension_numbers = #tpu.dot_dimension_numbers<[1], [0], [0], [1], [0, 0, 1, 1], [], []>} : vector<144x64xf32>, vector<64x32xf32>, vector<144x32xf32> -> vector<144x32xf32>
    %706 = arith.addf %701, %705 : vector<144x32xf32>
    %cst_291 = arith.constant 0.000000e+00 : f32
    %707 = vector.broadcast %cst_291 : f32 to vector<144x32xf32>
    %708 = arith.maximumf %706, %707 : vector<144x32xf32>
    %709 = vector.extract_strided_slice %708 {offsets = [0, 0], sizes = [10, 32], strides = [1, 1]} : vector<144x32xf32> to vector<10x32xf32>
    %710 = vector.extract_strided_slice %708 {offsets = [13, 0], sizes = [10, 32], strides = [1, 1]} : vector<144x32xf32> to vector<10x32xf32>
    %711 = arith.maximumf %709, %710 : vector<10x32xf32>
    %712 = vector.extract_strided_slice %711 {offsets = [0, 0], sizes = [2, 32], strides = [1, 1]} : vector<10x32xf32> to vector<2x32xf32>
    %cst_292 = arith.constant dense<0xFF800000> : vector<32xf32>
    %713 = vector.multi_reduction <maximumf>, %712, %cst_292 [0] : vector<2x32xf32> to vector<32xf32>
    %714 = vector.shape_cast %713 : vector<32xf32> to vector<1x32xf32>
    %715 = vector.extract_strided_slice %711 {offsets = [2, 0], sizes = [2, 32], strides = [1, 1]} : vector<10x32xf32> to vector<2x32xf32>
    %cst_293 = arith.constant dense<0xFF800000> : vector<32xf32>
    %716 = vector.multi_reduction <maximumf>, %715, %cst_293 [0] : vector<2x32xf32> to vector<32xf32>
    %717 = vector.shape_cast %716 : vector<32xf32> to vector<1x32xf32>
    %718 = vector.extract_strided_slice %711 {offsets = [4, 0], sizes = [2, 32], strides = [1, 1]} : vector<10x32xf32> to vector<2x32xf32>
    %cst_294 = arith.constant dense<0xFF800000> : vector<32xf32>
    %719 = vector.multi_reduction <maximumf>, %718, %cst_294 [0] : vector<2x32xf32> to vector<32xf32>
    %720 = vector.shape_cast %719 : vector<32xf32> to vector<1x32xf32>
    %721 = vector.extract_strided_slice %711 {offsets = [6, 0], sizes = [2, 32], strides = [1, 1]} : vector<10x32xf32> to vector<2x32xf32>
    %cst_295 = arith.constant dense<0xFF800000> : vector<32xf32>
    %722 = vector.multi_reduction <maximumf>, %721, %cst_295 [0] : vector<2x32xf32> to vector<32xf32>
    %723 = vector.shape_cast %722 : vector<32xf32> to vector<1x32xf32>
    %724 = vector.extract_strided_slice %711 {offsets = [8, 0], sizes = [2, 32], strides = [1, 1]} : vector<10x32xf32> to vector<2x32xf32>
    %cst_296 = arith.constant dense<0xFF800000> : vector<32xf32>
    %725 = vector.multi_reduction <maximumf>, %724, %cst_296 [0] : vector<2x32xf32> to vector<32xf32>
    %726 = vector.shape_cast %725 : vector<32xf32> to vector<1x32xf32>
    %727 = tpu.concatenate %714, %717, %720, %723, %726 in 0 : vector<1x32xf32>, vector<1x32xf32>, vector<1x32xf32>, vector<1x32xf32>, vector<1x32xf32> -> vector<5x32xf32>
    %c0_297 = arith.constant 0 : index
    %c0_298 = arith.constant 0 : index
    %728 = vector.load %arg12[%c0_297, %c0_298] : memref<32x32xf32, #tpu.memory_space<vmem>>, vector<5x32xf32>
    tpu.vector_store %arg12[%c0_297, %c0_298], %727 {strides = array<i32>} : memref<32x32xf32, #tpu.memory_space<vmem>>, vector<5x32xf32>,
    %729 = vector.extract_strided_slice %708 {offsets = [26, 0], sizes = [10, 32], strides = [1, 1]} : vector<144x32xf32> to vector<10x32xf32>
    %730 = vector.extract_strided_slice %708 {offsets = [39, 0], sizes = [10, 32], strides = [1, 1]} : vector<144x32xf32> to vector<10x32xf32>
    %731 = arith.maximumf %729, %730 : vector<10x32xf32>
    %732 = vector.extract_strided_slice %731 {offsets = [0, 0], sizes = [2, 32], strides = [1, 1]} : vector<10x32xf32> to vector<2x32xf32>
    %cst_299 = arith.constant dense<0xFF800000> : vector<32xf32>
    %733 = vector.multi_reduction <maximumf>, %732, %cst_299 [0] : vector<2x32xf32> to vector<32xf32>
    %734 = vector.shape_cast %733 : vector<32xf32> to vector<1x32xf32>
    %735 = vector.extract_strided_slice %731 {offsets = [2, 0], sizes = [2, 32], strides = [1, 1]} : vector<10x32xf32> to vector<2x32xf32>
    %cst_300 = arith.constant dense<0xFF800000> : vector<32xf32>
    %736 = vector.multi_reduction <maximumf>, %735, %cst_300 [0] : vector<2x32xf32> to vector<32xf32>
    %737 = vector.shape_cast %736 : vector<32xf32> to vector<1x32xf32>
    %738 = vector.extract_strided_slice %731 {offsets = [4, 0], sizes = [2, 32], strides = [1, 1]} : vector<10x32xf32> to vector<2x32xf32>
    %cst_301 = arith.constant dense<0xFF800000> : vector<32xf32>
    %739 = vector.multi_reduction <maximumf>, %738, %cst_301 [0] : vector<2x32xf32> to vector<32xf32>
    %740 = vector.shape_cast %739 : vector<32xf32> to vector<1x32xf32>
    %741 = vector.extract_strided_slice %731 {offsets = [6, 0], sizes = [2, 32], strides = [1, 1]} : vector<10x32xf32> to vector<2x32xf32>
    %cst_302 = arith.constant dense<0xFF800000> : vector<32xf32>
    %742 = vector.multi_reduction <maximumf>, %741, %cst_302 [0] : vector<2x32xf32> to vector<32xf32>
    %743 = vector.shape_cast %742 : vector<32xf32> to vector<1x32xf32>
    %744 = vector.extract_strided_slice %731 {offsets = [8, 0], sizes = [2, 32], strides = [1, 1]} : vector<10x32xf32> to vector<2x32xf32>
    %cst_303 = arith.constant dense<0xFF800000> : vector<32xf32>
    %745 = vector.multi_reduction <maximumf>, %744, %cst_303 [0] : vector<2x32xf32> to vector<32xf32>
    %746 = vector.shape_cast %745 : vector<32xf32> to vector<1x32xf32>
    %747 = tpu.concatenate %734, %737, %740, %743, %746 in 0 : vector<1x32xf32>, vector<1x32xf32>, vector<1x32xf32>, vector<1x32xf32>, vector<1x32xf32> -> vector<5x32xf32>
    %c5_304 = arith.constant 5 : index
    %c0_305 = arith.constant 0 : index
    %748 = vector.load %arg12[%c5_304, %c0_305] : memref<32x32xf32, #tpu.memory_space<vmem>>, vector<5x32xf32>
    tpu.vector_store %arg12[%c5_304, %c0_305], %747 {strides = array<i32>} : memref<32x32xf32, #tpu.memory_space<vmem>>, vector<5x32xf32>,
    %749 = vector.extract_strided_slice %708 {offsets = [52, 0], sizes = [10, 32], strides = [1, 1]} : vector<144x32xf32> to vector<10x32xf32>
    %750 = vector.extract_strided_slice %708 {offsets = [65, 0], sizes = [10, 32], strides = [1, 1]} : vector<144x32xf32> to vector<10x32xf32>
    %751 = arith.maximumf %749, %750 : vector<10x32xf32>
    %752 = vector.extract_strided_slice %751 {offsets = [0, 0], sizes = [2, 32], strides = [1, 1]} : vector<10x32xf32> to vector<2x32xf32>
    %cst_306 = arith.constant dense<0xFF800000> : vector<32xf32>
    %753 = vector.multi_reduction <maximumf>, %752, %cst_306 [0] : vector<2x32xf32> to vector<32xf32>
    %754 = vector.shape_cast %753 : vector<32xf32> to vector<1x32xf32>
    %755 = vector.extract_strided_slice %751 {offsets = [2, 0], sizes = [2, 32], strides = [1, 1]} : vector<10x32xf32> to vector<2x32xf32>
    %cst_307 = arith.constant dense<0xFF800000> : vector<32xf32>
    %756 = vector.multi_reduction <maximumf>, %755, %cst_307 [0] : vector<2x32xf32> to vector<32xf32>
    %757 = vector.shape_cast %756 : vector<32xf32> to vector<1x32xf32>
    %758 = vector.extract_strided_slice %751 {offsets = [4, 0], sizes = [2, 32], strides = [1, 1]} : vector<10x32xf32> to vector<2x32xf32>
    %cst_308 = arith.constant dense<0xFF800000> : vector<32xf32>
    %759 = vector.multi_reduction <maximumf>, %758, %cst_308 [0] : vector<2x32xf32> to vector<32xf32>
    %760 = vector.shape_cast %759 : vector<32xf32> to vector<1x32xf32>
    %761 = vector.extract_strided_slice %751 {offsets = [6, 0], sizes = [2, 32], strides = [1, 1]} : vector<10x32xf32> to vector<2x32xf32>
    %cst_309 = arith.constant dense<0xFF800000> : vector<32xf32>
    %762 = vector.multi_reduction <maximumf>, %761, %cst_309 [0] : vector<2x32xf32> to vector<32xf32>
    %763 = vector.shape_cast %762 : vector<32xf32> to vector<1x32xf32>
    %764 = vector.extract_strided_slice %751 {offsets = [8, 0], sizes = [2, 32], strides = [1, 1]} : vector<10x32xf32> to vector<2x32xf32>
    %cst_310 = arith.constant dense<0xFF800000> : vector<32xf32>
    %765 = vector.multi_reduction <maximumf>, %764, %cst_310 [0] : vector<2x32xf32> to vector<32xf32>
    %766 = vector.shape_cast %765 : vector<32xf32> to vector<1x32xf32>
    %767 = tpu.concatenate %754, %757, %760, %763, %766 in 0 : vector<1x32xf32>, vector<1x32xf32>, vector<1x32xf32>, vector<1x32xf32>, vector<1x32xf32> -> vector<5x32xf32>
    %c10 = arith.constant 10 : index
    %c0_311 = arith.constant 0 : index
    %768 = vector.load %arg12[%c10, %c0_311] : memref<32x32xf32, #tpu.memory_space<vmem>>, vector<5x32xf32>
    tpu.vector_store %arg12[%c10, %c0_311], %767 {strides = array<i32>} : memref<32x32xf32, #tpu.memory_space<vmem>>, vector<5x32xf32>,
    %769 = vector.extract_strided_slice %708 {offsets = [78, 0], sizes = [10, 32], strides = [1, 1]} : vector<144x32xf32> to vector<10x32xf32>
    %770 = vector.extract_strided_slice %708 {offsets = [91, 0], sizes = [10, 32], strides = [1, 1]} : vector<144x32xf32> to vector<10x32xf32>
    %771 = arith.maximumf %769, %770 : vector<10x32xf32>
    %772 = vector.extract_strided_slice %771 {offsets = [0, 0], sizes = [2, 32], strides = [1, 1]} : vector<10x32xf32> to vector<2x32xf32>
    %cst_312 = arith.constant dense<0xFF800000> : vector<32xf32>
    %773 = vector.multi_reduction <maximumf>, %772, %cst_312 [0] : vector<2x32xf32> to vector<32xf32>
    %774 = vector.shape_cast %773 : vector<32xf32> to vector<1x32xf32>
    %775 = vector.extract_strided_slice %771 {offsets = [2, 0], sizes = [2, 32], strides = [1, 1]} : vector<10x32xf32> to vector<2x32xf32>
    %cst_313 = arith.constant dense<0xFF800000> : vector<32xf32>
    %776 = vector.multi_reduction <maximumf>, %775, %cst_313 [0] : vector<2x32xf32> to vector<32xf32>
    %777 = vector.shape_cast %776 : vector<32xf32> to vector<1x32xf32>
    %778 = vector.extract_strided_slice %771 {offsets = [4, 0], sizes = [2, 32], strides = [1, 1]} : vector<10x32xf32> to vector<2x32xf32>
    %cst_314 = arith.constant dense<0xFF800000> : vector<32xf32>
    %779 = vector.multi_reduction <maximumf>, %778, %cst_314 [0] : vector<2x32xf32> to vector<32xf32>
    %780 = vector.shape_cast %779 : vector<32xf32> to vector<1x32xf32>
    %781 = vector.extract_strided_slice %771 {offsets = [6, 0], sizes = [2, 32], strides = [1, 1]} : vector<10x32xf32> to vector<2x32xf32>
    %cst_315 = arith.constant dense<0xFF800000> : vector<32xf32>
    %782 = vector.multi_reduction <maximumf>, %781, %cst_315 [0] : vector<2x32xf32> to vector<32xf32>
    %783 = vector.shape_cast %782 : vector<32xf32> to vector<1x32xf32>
    %784 = vector.extract_strided_slice %771 {offsets = [8, 0], sizes = [2, 32], strides = [1, 1]} : vector<10x32xf32> to vector<2x32xf32>
    %cst_316 = arith.constant dense<0xFF800000> : vector<32xf32>
    %785 = vector.multi_reduction <maximumf>, %784, %cst_316 [0] : vector<2x32xf32> to vector<32xf32>
    %786 = vector.shape_cast %785 : vector<32xf32> to vector<1x32xf32>
    %787 = tpu.concatenate %774, %777, %780, %783, %786 in 0 : vector<1x32xf32>, vector<1x32xf32>, vector<1x32xf32>, vector<1x32xf32>, vector<1x32xf32> -> vector<5x32xf32>
    %c15_317 = arith.constant 15 : index
    %c0_318 = arith.constant 0 : index
    %788 = vector.load %arg12[%c15_317, %c0_318] : memref<32x32xf32, #tpu.memory_space<vmem>>, vector<5x32xf32>
    tpu.vector_store %arg12[%c15_317, %c0_318], %787 {strides = array<i32>} : memref<32x32xf32, #tpu.memory_space<vmem>>, vector<5x32xf32>,
    %789 = vector.extract_strided_slice %708 {offsets = [104, 0], sizes = [10, 32], strides = [1, 1]} : vector<144x32xf32> to vector<10x32xf32>
    %790 = vector.extract_strided_slice %708 {offsets = [117, 0], sizes = [10, 32], strides = [1, 1]} : vector<144x32xf32> to vector<10x32xf32>
    %791 = arith.maximumf %789, %790 : vector<10x32xf32>
    %792 = vector.extract_strided_slice %791 {offsets = [0, 0], sizes = [2, 32], strides = [1, 1]} : vector<10x32xf32> to vector<2x32xf32>
    %cst_319 = arith.constant dense<0xFF800000> : vector<32xf32>
    %793 = vector.multi_reduction <maximumf>, %792, %cst_319 [0] : vector<2x32xf32> to vector<32xf32>
    %794 = vector.shape_cast %793 : vector<32xf32> to vector<1x32xf32>
    %795 = vector.extract_strided_slice %791 {offsets = [2, 0], sizes = [2, 32], strides = [1, 1]} : vector<10x32xf32> to vector<2x32xf32>
    %cst_320 = arith.constant dense<0xFF800000> : vector<32xf32>
    %796 = vector.multi_reduction <maximumf>, %795, %cst_320 [0] : vector<2x32xf32> to vector<32xf32>
    %797 = vector.shape_cast %796 : vector<32xf32> to vector<1x32xf32>
    %798 = vector.extract_strided_slice %791 {offsets = [4, 0], sizes = [2, 32], strides = [1, 1]} : vector<10x32xf32> to vector<2x32xf32>
    %cst_321 = arith.constant dense<0xFF800000> : vector<32xf32>
    %799 = vector.multi_reduction <maximumf>, %798, %cst_321 [0] : vector<2x32xf32> to vector<32xf32>
    %800 = vector.shape_cast %799 : vector<32xf32> to vector<1x32xf32>
    %801 = vector.extract_strided_slice %791 {offsets = [6, 0], sizes = [2, 32], strides = [1, 1]} : vector<10x32xf32> to vector<2x32xf32>
    %cst_322 = arith.constant dense<0xFF800000> : vector<32xf32>
    %802 = vector.multi_reduction <maximumf>, %801, %cst_322 [0] : vector<2x32xf32> to vector<32xf32>
    %803 = vector.shape_cast %802 : vector<32xf32> to vector<1x32xf32>
    %804 = vector.extract_strided_slice %791 {offsets = [8, 0], sizes = [2, 32], strides = [1, 1]} : vector<10x32xf32> to vector<2x32xf32>
    %cst_323 = arith.constant dense<0xFF800000> : vector<32xf32>
    %805 = vector.multi_reduction <maximumf>, %804, %cst_323 [0] : vector<2x32xf32> to vector<32xf32>
    %806 = vector.shape_cast %805 : vector<32xf32> to vector<1x32xf32>
    %807 = tpu.concatenate %794, %797, %800, %803, %806 in 0 : vector<1x32xf32>, vector<1x32xf32>, vector<1x32xf32>, vector<1x32xf32>, vector<1x32xf32> -> vector<5x32xf32>
    %c20 = arith.constant 20 : index
    %c0_324 = arith.constant 0 : index
    %808 = vector.load %arg12[%c20, %c0_324] : memref<32x32xf32, #tpu.memory_space<vmem>>, vector<5x32xf32>
    tpu.vector_store %arg12[%c20, %c0_324], %807 {strides = array<i32>} : memref<32x32xf32, #tpu.memory_space<vmem>>, vector<5x32xf32>,
    %809 = vector.shape_cast %5 : vector<1x16xf32> to vector<1x16xf32>
    %810 = vector.broadcast %809 : vector<1x16xf32> to vector<16x16xf32>
    %c0_325 = arith.constant 0 : index
    %c0_326 = arith.constant 0 : index
    %811 = vector.load %arg12[%c0_325, %c0_326] : memref<32x32xf32, #tpu.memory_space<vmem>>, vector<16x32xf32>
    %c0_327 = arith.constant 0 : index
    %c0_328 = arith.constant 0 : index
    %c0_329 = arith.constant 0 : index
    %812 = vector.load %arg6[%c0_327, %c0_328, %c0_329] : memref<9x32x16xf32, #tpu.memory_space<vmem>>, vector<1x32x16xf32>
    %813 = vector.shape_cast %812 : vector<1x32x16xf32> to vector<32x16xf32>
    %cst_330 = arith.constant dense<0.000000e+00> : vector<16x16xf32>
    %814 = tpu.matmul %811, %813, %cst_330 {dimension_numbers = #tpu.dot_dimension_numbers<[1], [0], [0], [1], [0, 0, 1, 1], [], []>} : vector<16x32xf32>, vector<32x16xf32>, vector<16x16xf32> -> vector<16x16xf32>
    %815 = arith.addf %810, %814 : vector<16x16xf32>
    %c1_331 = arith.constant 1 : index
    %c0_332 = arith.constant 0 : index
    %816 = vector.load %arg12[%c1_331, %c0_332] : memref<32x32xf32, #tpu.memory_space<vmem>>, vector<16x32xf32>
    %c1_333 = arith.constant 1 : index
    %c0_334 = arith.constant 0 : index
    %c0_335 = arith.constant 0 : index
    %817 = vector.load %arg6[%c1_333, %c0_334, %c0_335] : memref<9x32x16xf32, #tpu.memory_space<vmem>>, vector<1x32x16xf32>
    %818 = vector.shape_cast %817 : vector<1x32x16xf32> to vector<32x16xf32>
    %cst_336 = arith.constant dense<0.000000e+00> : vector<16x16xf32>
    %819 = tpu.matmul %816, %818, %cst_336 {dimension_numbers = #tpu.dot_dimension_numbers<[1], [0], [0], [1], [0, 0, 1, 1], [], []>} : vector<16x32xf32>, vector<32x16xf32>, vector<16x16xf32> -> vector<16x16xf32>
    %820 = arith.addf %815, %819 : vector<16x16xf32>
    %c2_337 = arith.constant 2 : index
    %c0_338 = arith.constant 0 : index
    %821 = vector.load %arg12[%c2_337, %c0_338] : memref<32x32xf32, #tpu.memory_space<vmem>>, vector<16x32xf32>
    %c2_339 = arith.constant 2 : index
    %c0_340 = arith.constant 0 : index
    %c0_341 = arith.constant 0 : index
    %822 = vector.load %arg6[%c2_339, %c0_340, %c0_341] : memref<9x32x16xf32, #tpu.memory_space<vmem>>, vector<1x32x16xf32>
    %823 = vector.shape_cast %822 : vector<1x32x16xf32> to vector<32x16xf32>
    %cst_342 = arith.constant dense<0.000000e+00> : vector<16x16xf32>
    %824 = tpu.matmul %821, %823, %cst_342 {dimension_numbers = #tpu.dot_dimension_numbers<[1], [0], [0], [1], [0, 0, 1, 1], [], []>} : vector<16x32xf32>, vector<32x16xf32>, vector<16x16xf32> -> vector<16x16xf32>
    %825 = arith.addf %820, %824 : vector<16x16xf32>
    %c5_343 = arith.constant 5 : index
    %c0_344 = arith.constant 0 : index
    %826 = vector.load %arg12[%c5_343, %c0_344] : memref<32x32xf32, #tpu.memory_space<vmem>>, vector<16x32xf32>
    %c3_345 = arith.constant 3 : index
    %c0_346 = arith.constant 0 : index
    %c0_347 = arith.constant 0 : index
    %827 = vector.load %arg6[%c3_345, %c0_346, %c0_347] : memref<9x32x16xf32, #tpu.memory_space<vmem>>, vector<1x32x16xf32>
    %828 = vector.shape_cast %827 : vector<1x32x16xf32> to vector<32x16xf32>
    %cst_348 = arith.constant dense<0.000000e+00> : vector<16x16xf32>
    %829 = tpu.matmul %826, %828, %cst_348 {dimension_numbers = #tpu.dot_dimension_numbers<[1], [0], [0], [1], [0, 0, 1, 1], [], []>} : vector<16x32xf32>, vector<32x16xf32>, vector<16x16xf32> -> vector<16x16xf32>
    %830 = arith.addf %825, %829 : vector<16x16xf32>
    %c6_349 = arith.constant 6 : index
    %c0_350 = arith.constant 0 : index
    %831 = vector.load %arg12[%c6_349, %c0_350] : memref<32x32xf32, #tpu.memory_space<vmem>>, vector<16x32xf32>
    %c4_351 = arith.constant 4 : index
    %c0_352 = arith.constant 0 : index
    %c0_353 = arith.constant 0 : index
    %832 = vector.load %arg6[%c4_351, %c0_352, %c0_353] : memref<9x32x16xf32, #tpu.memory_space<vmem>>, vector<1x32x16xf32>
    %833 = vector.shape_cast %832 : vector<1x32x16xf32> to vector<32x16xf32>
    %cst_354 = arith.constant dense<0.000000e+00> : vector<16x16xf32>
    %834 = tpu.matmul %831, %833, %cst_354 {dimension_numbers = #tpu.dot_dimension_numbers<[1], [0], [0], [1], [0, 0, 1, 1], [], []>} : vector<16x32xf32>, vector<32x16xf32>, vector<16x16xf32> -> vector<16x16xf32>
    %835 = arith.addf %830, %834 : vector<16x16xf32>
    %c7_355 = arith.constant 7 : index
    %c0_356 = arith.constant 0 : index
    %836 = vector.load %arg12[%c7_355, %c0_356] : memref<32x32xf32, #tpu.memory_space<vmem>>, vector<16x32xf32>
    %c5_357 = arith.constant 5 : index
    %c0_358 = arith.constant 0 : index
    %c0_359 = arith.constant 0 : index
    %837 = vector.load %arg6[%c5_357, %c0_358, %c0_359] : memref<9x32x16xf32, #tpu.memory_space<vmem>>, vector<1x32x16xf32>
    %838 = vector.shape_cast %837 : vector<1x32x16xf32> to vector<32x16xf32>
    %cst_360 = arith.constant dense<0.000000e+00> : vector<16x16xf32>
    %839 = tpu.matmul %836, %838, %cst_360 {dimension_numbers = #tpu.dot_dimension_numbers<[1], [0], [0], [1], [0, 0, 1, 1], [], []>} : vector<16x32xf32>, vector<32x16xf32>, vector<16x16xf32> -> vector<16x16xf32>
    %840 = arith.addf %835, %839 : vector<16x16xf32>
    %c10_361 = arith.constant 10 : index
    %c0_362 = arith.constant 0 : index
    %841 = vector.load %arg12[%c10_361, %c0_362] : memref<32x32xf32, #tpu.memory_space<vmem>>, vector<16x32xf32>
    %c6_363 = arith.constant 6 : index
    %c0_364 = arith.constant 0 : index
    %c0_365 = arith.constant 0 : index
    %842 = vector.load %arg6[%c6_363, %c0_364, %c0_365] : memref<9x32x16xf32, #tpu.memory_space<vmem>>, vector<1x32x16xf32>
    %843 = vector.shape_cast %842 : vector<1x32x16xf32> to vector<32x16xf32>
    %cst_366 = arith.constant dense<0.000000e+00> : vector<16x16xf32>
    %844 = tpu.matmul %841, %843, %cst_366 {dimension_numbers = #tpu.dot_dimension_numbers<[1], [0], [0], [1], [0, 0, 1, 1], [], []>} : vector<16x32xf32>, vector<32x16xf32>, vector<16x16xf32> -> vector<16x16xf32>
    %845 = arith.addf %840, %844 : vector<16x16xf32>
    %c11 = arith.constant 11 : index
    %c0_367 = arith.constant 0 : index
    %846 = vector.load %arg12[%c11, %c0_367] : memref<32x32xf32, #tpu.memory_space<vmem>>, vector<16x32xf32>
    %c7_368 = arith.constant 7 : index
    %c0_369 = arith.constant 0 : index
    %c0_370 = arith.constant 0 : index
    %847 = vector.load %arg6[%c7_368, %c0_369, %c0_370] : memref<9x32x16xf32, #tpu.memory_space<vmem>>, vector<1x32x16xf32>
    %848 = vector.shape_cast %847 : vector<1x32x16xf32> to vector<32x16xf32>
    %cst_371 = arith.constant dense<0.000000e+00> : vector<16x16xf32>
    %849 = tpu.matmul %846, %848, %cst_371 {dimension_numbers = #tpu.dot_dimension_numbers<[1], [0], [0], [1], [0, 0, 1, 1], [], []>} : vector<16x32xf32>, vector<32x16xf32>, vector<16x16xf32> -> vector<16x16xf32>
    %850 = arith.addf %845, %849 : vector<16x16xf32>
    %c12 = arith.constant 12 : index
    %c0_372 = arith.constant 0 : index
    %851 = vector.load %arg12[%c12, %c0_372] : memref<32x32xf32, #tpu.memory_space<vmem>>, vector<16x32xf32>
    %c8_373 = arith.constant 8 : index
    %c0_374 = arith.constant 0 : index
    %c0_375 = arith.constant 0 : index
    %852 = vector.load %arg6[%c8_373, %c0_374, %c0_375] : memref<9x32x16xf32, #tpu.memory_space<vmem>>, vector<1x32x16xf32>
    %853 = vector.shape_cast %852 : vector<1x32x16xf32> to vector<32x16xf32>
    %cst_376 = arith.constant dense<0.000000e+00> : vector<16x16xf32>
    %854 = tpu.matmul %851, %853, %cst_376 {dimension_numbers = #tpu.dot_dimension_numbers<[1], [0], [0], [1], [0, 0, 1, 1], [], []>} : vector<16x32xf32>, vector<32x16xf32>, vector<16x16xf32> -> vector<16x16xf32>
    %855 = arith.addf %850, %854 : vector<16x16xf32>
    %c0_377 = arith.constant 0 : index
    %c0_378 = arith.constant 0 : index
    %856 = vector.load %arg9[%c0_377, %c0_378] : memref<1x10xf32, #tpu.memory_space<vmem>>, vector<1x10xf32>
    %857 = vector.extract_strided_slice %855 {offsets = [0, 0], sizes = [1, 16], strides = [1, 1]} : vector<16x16xf32> to vector<1x16xf32>
    %c0_379 = arith.constant 0 : index
    %c0_380 = arith.constant 0 : index
    %c0_381 = arith.constant 0 : index
    %858 = vector.load %arg8[%c0_379, %c0_380, %c0_381] : memref<9x16x10xf32, #tpu.memory_space<vmem>>, vector<1x16x10xf32>
    %859 = vector.shape_cast %858 : vector<1x16x10xf32> to vector<16x10xf32>
    %cst_382 = arith.constant dense<0.000000e+00> : vector<1x10xf32>
    %860 = tpu.matmul %857, %859, %cst_382 {dimension_numbers = #tpu.dot_dimension_numbers<[1], [0], [0], [1], [0, 0, 1, 1], [], []>} : vector<1x16xf32>, vector<16x10xf32>, vector<1x10xf32> -> vector<1x10xf32>
    %861 = arith.addf %856, %860 : vector<1x10xf32>
    %862 = vector.extract_strided_slice %855 {offsets = [1, 0], sizes = [1, 16], strides = [1, 1]} : vector<16x16xf32> to vector<1x16xf32>
    %c1_383 = arith.constant 1 : index
    %c0_384 = arith.constant 0 : index
    %c0_385 = arith.constant 0 : index
    %863 = vector.load %arg8[%c1_383, %c0_384, %c0_385] : memref<9x16x10xf32, #tpu.memory_space<vmem>>, vector<1x16x10xf32>
    %864 = vector.shape_cast %863 : vector<1x16x10xf32> to vector<16x10xf32>
    %cst_386 = arith.constant dense<0.000000e+00> : vector<1x10xf32>
    %865 = tpu.matmul %862, %864, %cst_386 {dimension_numbers = #tpu.dot_dimension_numbers<[1], [0], [0], [1], [0, 0, 1, 1], [], []>} : vector<1x16xf32>, vector<16x10xf32>, vector<1x10xf32> -> vector<1x10xf32>
    %866 = arith.addf %861, %865 : vector<1x10xf32>
    %867 = vector.extract_strided_slice %855 {offsets = [2, 0], sizes = [1, 16], strides = [1, 1]} : vector<16x16xf32> to vector<1x16xf32>
    %c2_387 = arith.constant 2 : index
    %c0_388 = arith.constant 0 : index
    %c0_389 = arith.constant 0 : index
    %868 = vector.load %arg8[%c2_387, %c0_388, %c0_389] : memref<9x16x10xf32, #tpu.memory_space<vmem>>, vector<1x16x10xf32>
    %869 = vector.shape_cast %868 : vector<1x16x10xf32> to vector<16x10xf32>
    %cst_390 = arith.constant dense<0.000000e+00> : vector<1x10xf32>
    %870 = tpu.matmul %867, %869, %cst_390 {dimension_numbers = #tpu.dot_dimension_numbers<[1], [0], [0], [1], [0, 0, 1, 1], [], []>} : vector<1x16xf32>, vector<16x10xf32>, vector<1x10xf32> -> vector<1x10xf32>
    %871 = arith.addf %866, %870 : vector<1x10xf32>
    %872 = vector.extract_strided_slice %855 {offsets = [5, 0], sizes = [1, 16], strides = [1, 1]} : vector<16x16xf32> to vector<1x16xf32>
    %c3_391 = arith.constant 3 : index
    %c0_392 = arith.constant 0 : index
    %c0_393 = arith.constant 0 : index
    %873 = vector.load %arg8[%c3_391, %c0_392, %c0_393] : memref<9x16x10xf32, #tpu.memory_space<vmem>>, vector<1x16x10xf32>
    %874 = vector.shape_cast %873 : vector<1x16x10xf32> to vector<16x10xf32>
    %cst_394 = arith.constant dense<0.000000e+00> : vector<1x10xf32>
    %875 = tpu.matmul %872, %874, %cst_394 {dimension_numbers = #tpu.dot_dimension_numbers<[1], [0], [0], [1], [0, 0, 1, 1], [], []>} : vector<1x16xf32>, vector<16x10xf32>, vector<1x10xf32> -> vector<1x10xf32>
    %876 = arith.addf %871, %875 : vector<1x10xf32>
    %877 = vector.extract_strided_slice %855 {offsets = [6, 0], sizes = [1, 16], strides = [1, 1]} : vector<16x16xf32> to vector<1x16xf32>
    %c4_395 = arith.constant 4 : index
    %c0_396 = arith.constant 0 : index
    %c0_397 = arith.constant 0 : index
    %878 = vector.load %arg8[%c4_395, %c0_396, %c0_397] : memref<9x16x10xf32, #tpu.memory_space<vmem>>, vector<1x16x10xf32>
    %879 = vector.shape_cast %878 : vector<1x16x10xf32> to vector<16x10xf32>
    %cst_398 = arith.constant dense<0.000000e+00> : vector<1x10xf32>
    %880 = tpu.matmul %877, %879, %cst_398 {dimension_numbers = #tpu.dot_dimension_numbers<[1], [0], [0], [1], [0, 0, 1, 1], [], []>} : vector<1x16xf32>, vector<16x10xf32>, vector<1x10xf32> -> vector<1x10xf32>
    %881 = arith.addf %876, %880 : vector<1x10xf32>
    %882 = vector.extract_strided_slice %855 {offsets = [7, 0], sizes = [1, 16], strides = [1, 1]} : vector<16x16xf32> to vector<1x16xf32>
    %c5_399 = arith.constant 5 : index
    %c0_400 = arith.constant 0 : index
    %c0_401 = arith.constant 0 : index
    %883 = vector.load %arg8[%c5_399, %c0_400, %c0_401] : memref<9x16x10xf32, #tpu.memory_space<vmem>>, vector<1x16x10xf32>
    %884 = vector.shape_cast %883 : vector<1x16x10xf32> to vector<16x10xf32>
    %cst_402 = arith.constant dense<0.000000e+00> : vector<1x10xf32>
    %885 = tpu.matmul %882, %884, %cst_402 {dimension_numbers = #tpu.dot_dimension_numbers<[1], [0], [0], [1], [0, 0, 1, 1], [], []>} : vector<1x16xf32>, vector<16x10xf32>, vector<1x10xf32> -> vector<1x10xf32>
    %886 = arith.addf %881, %885 : vector<1x10xf32>
    %887 = vector.extract_strided_slice %855 {offsets = [10, 0], sizes = [1, 16], strides = [1, 1]} : vector<16x16xf32> to vector<1x16xf32>
    %c6_403 = arith.constant 6 : index
    %c0_404 = arith.constant 0 : index
    %c0_405 = arith.constant 0 : index
    %888 = vector.load %arg8[%c6_403, %c0_404, %c0_405] : memref<9x16x10xf32, #tpu.memory_space<vmem>>, vector<1x16x10xf32>
    %889 = vector.shape_cast %888 : vector<1x16x10xf32> to vector<16x10xf32>
    %cst_406 = arith.constant dense<0.000000e+00> : vector<1x10xf32>
    %890 = tpu.matmul %887, %889, %cst_406 {dimension_numbers = #tpu.dot_dimension_numbers<[1], [0], [0], [1], [0, 0, 1, 1], [], []>} : vector<1x16xf32>, vector<16x10xf32>, vector<1x10xf32> -> vector<1x10xf32>
    %891 = arith.addf %886, %890 : vector<1x10xf32>
    %892 = vector.extract_strided_slice %855 {offsets = [11, 0], sizes = [1, 16], strides = [1, 1]} : vector<16x16xf32> to vector<1x16xf32>
    %c7_407 = arith.constant 7 : index
    %c0_408 = arith.constant 0 : index
    %c0_409 = arith.constant 0 : index
    %893 = vector.load %arg8[%c7_407, %c0_408, %c0_409] : memref<9x16x10xf32, #tpu.memory_space<vmem>>, vector<1x16x10xf32>
    %894 = vector.shape_cast %893 : vector<1x16x10xf32> to vector<16x10xf32>
    %cst_410 = arith.constant dense<0.000000e+00> : vector<1x10xf32>
    %895 = tpu.matmul %892, %894, %cst_410 {dimension_numbers = #tpu.dot_dimension_numbers<[1], [0], [0], [1], [0, 0, 1, 1], [], []>} : vector<1x16xf32>, vector<16x10xf32>, vector<1x10xf32> -> vector<1x10xf32>
    %896 = arith.addf %891, %895 : vector<1x10xf32>
    %897 = vector.extract_strided_slice %855 {offsets = [12, 0], sizes = [1, 16], strides = [1, 1]} : vector<16x16xf32> to vector<1x16xf32>
    %c8_411 = arith.constant 8 : index
    %c0_412 = arith.constant 0 : index
    %c0_413 = arith.constant 0 : index
    %898 = vector.load %arg8[%c8_411, %c0_412, %c0_413] : memref<9x16x10xf32, #tpu.memory_space<vmem>>, vector<1x16x10xf32>
    %899 = vector.shape_cast %898 : vector<1x16x10xf32> to vector<16x10xf32>
    %cst_414 = arith.constant dense<0.000000e+00> : vector<1x10xf32>
    %900 = tpu.matmul %897, %899, %cst_414 {dimension_numbers = #tpu.dot_dimension_numbers<[1], [0], [0], [1], [0, 0, 1, 1], [], []>} : vector<1x16xf32>, vector<16x10xf32>, vector<1x10xf32> -> vector<1x10xf32>
    %901 = arith.addf %896, %900 : vector<1x10xf32>
    %902 = vector.shape_cast %901 : vector<1x10xf32> to vector<1x1x10xf32>
    %c0_415 = arith.constant 0 : index
    %c0_416 = arith.constant 0 : index
    %c0_417 = arith.constant 0 : index
    %903 = vector.load %arg10[%c0_415, %c0_416, %c0_417] : memref<1x1x10xf32, #tpu.memory_space<vmem>>, vector<1x1x10xf32>
    tpu.vector_store %arg10[%c0_415, %c0_416, %c0_417], %902 {strides = array<i32>} : memref<1x1x10xf32, #tpu.memory_space<vmem>>, vector<1x1x10xf32>,
    return
  }
  func.func @transform_0(%arg0: i32) -> (i32, i32, i32) {
    %c0_i32 = arith.constant 0 : i32
    %c0_i32_0 = arith.constant 0 : i32
    %c0_i32_1 = arith.constant 0 : i32
    return %arg0, %c0_i32, %c0_i32_0 : i32, i32, i32
  }
  func.func @transform_1(%arg0: i32) -> (i32, i32) {
    %c0_i32 = arith.constant 0 : i32
    %c0_i32_0 = arith.constant 0 : i32
    %c0_i32_1 = arith.constant 0 : i32
    return %c0_i32, %c0_i32_0 : i32, i32
  }
  func.func @transform_2(%arg0: i32) -> (i32, i32) {
    %c0_i32 = arith.constant 0 : i32
    %c0_i32_0 = arith.constant 0 : i32
    %c0_i32_1 = arith.constant 0 : i32
    return %c0_i32, %c0_i32_0 : i32, i32
  }
  func.func @transform_3(%arg0: i32) -> (i32, i32, i32) {
    %c0_i32 = arith.constant 0 : i32
    %c0_i32_0 = arith.constant 0 : i32
    %c0_i32_1 = arith.constant 0 : i32
    %c0_i32_2 = arith.constant 0 : i32
    return %c0_i32, %c0_i32_0, %c0_i32_1 : i32, i32, i32
  }
  func.func @transform_4(%arg0: i32) -> (i32, i32) {
    %c0_i32 = arith.constant 0 : i32
    %c0_i32_0 = arith.constant 0 : i32
    %c0_i32_1 = arith.constant 0 : i32
    return %c0_i32, %c0_i32_0 : i32, i32
  }
  func.func @transform_5(%arg0: i32) -> (i32, i32, i32) {
    %c0_i32 = arith.constant 0 : i32
    %c0_i32_0 = arith.constant 0 : i32
    %c0_i32_1 = arith.constant 0 : i32
    %c0_i32_2 = arith.constant 0 : i32
    return %c0_i32, %c0_i32_0, %c0_i32_1 : i32, i32, i32
  }
  func.func @transform_6(%arg0: i32) -> (i32, i32) {
    %c0_i32 = arith.constant 0 : i32
    %c0_i32_0 = arith.constant 0 : i32
    %c0_i32_1 = arith.constant 0 : i32
    return %c0_i32, %c0_i32_0 : i32, i32
  }
  func.func @transform_7(%arg0: i32) -> (i32, i32, i32) {
    %c0_i32 = arith.constant 0 : i32
    %c0_i32_0 = arith.constant 0 : i32
    %c0_i32_1 = arith.constant 0 : i32
    %c0_i32_2 = arith.constant 0 : i32
    return %c0_i32, %c0_i32_0, %c0_i32_1 : i32, i32, i32
  }
  func.func @transform_8(%arg0: i32) -> (i32, i32) {
    %c0_i32 = arith.constant 0 : i32
    %c0_i32_0 = arith.constant 0 : i32
    %c0_i32_1 = arith.constant 0 : i32
    return %c0_i32, %c0_i32_0 : i32, i32
  }
  func.func @transform_9(%arg0: i32) -> (i32, i32, i32) {
    %c0_i32 = arith.constant 0 : i32
    %c0_i32_0 = arith.constant 0 : i32
    %c0_i32_1 = arith.constant 0 : i32
    return %arg0, %c0_i32, %c0_i32_0 : i32, i32, i32
  }
}

</mosaic_0001>

<bundles_post_ra>
// kernel: cnn_forward.1
= control target key start
LH: loop header
LB: loop body
LE: loop exit
PB: predicated region body
PF: predicated region fallthrough
CT: control target
= control target key end

     0   :  { %14 = vsyncpa [#allocation5], 0  ;;  %s12399_s0 = inlined_call_operand.vmem [shape: f32[2,676,9], index: 0, kind: input, shape index: {}]   ;;  %s12400_s1 = inlined_call_operand.vmem [shape: f32[9,64], index: 1, kind: input, shape index: {}]   ;;  %s12401_s2 = inlined_call_operand.vmem [shape: f32[1,64], index: 2, kind: input, shape index: {}]   ;;  %s12402_s3 = inlined_call_operand.vmem [shape: f32[9,64,32], index: 3, kind: input, shape index: {}]   ;;  %s12403_s4 = inlined_call_operand.vmem [shape: f32[1,32], index: 4, kind: input, shape index: {}]   ;;  %s12404_s5 = inlined_call_operand.vmem [shape: f32[9,32,16], index: 5, kind: input, shape index: {}]   ;;  %s12405_s6 = inlined_call_operand.vmem [shape: f32[1,16], index: 6, kind: input, shape index: {}]   ;;  %s12406_s7 = inlined_call_operand.vmem [shape: f32[9,16,10], index: 7, kind: input, shape index: {}]   ;;  %s12407_s8 = inlined_call_operand.vmem [shape: f32[1,10], index: 8, kind: input, shape index: {}]   ;;  %s12408_s9 = inlined_call_operand.hbm [shape: f32[2,1,10], index: 9, kind: output, shape index: {}]  }
   0x1   :  { %16 = vsyncpa [#allocation5 + $0x1], 0  ;;  %s9703_s30 = smov 0   ;;  %s9705_s10 = smov 0  }
   0x2   :  { %s9707_s11 = smov 0   ;;  %s9709_s12 = smov 0  }
   0x3 LB: > { %s9724_s13 = sadd.s32 4294967295, %s9648_s12   ;;  %s7820_s14 = sadd.s32 4294967294, %s9648_s12   ;;  %s9648_s12 = sphi %s9709_s12, %s12478_s12   ;;  %s9644_s11 = sphi %s9707_s11, %s12477_s11   ;;  %s9640_s10 = sphi %s9705_s10, %s12476_s10   ;;  %s9636_s30 = sphi %s9703_s30, %s12475_s30  }
   0x4   : > { %s9728_s15 = sadd.s32 1, %s9648_s12   ;;  %s223_s16 = sadd.s32 1, %s9644_s11 }
   0x5   : > { %s220_s17 = ssub.s32 %s9648_s12, %s9728_s15  ;;  %p233_p0 = scmp.ne.s32.totalorder %s9644_s11, %s9640_s10 }
   0x6   : > { %p221_p1 = scmp.eq.s32.totalorder %s220_s17, 0  ;;  %p234_p2 = scmp.eq.s32.totalorder %s9724_s13, 1 }
   0x7   : > { %p239_p3 = scmp.ne.s32.totalorder %s9640_s10, %s9636_s30  ;;  %p240_p4 = scmp.eq.s32.totalorder %s7820_s14, 1 }
   0x8   : > { %s9739_s18 = scalar_select %p221_p1, %s9644_s11, %s223_s16  }
   0x9   : > { %p9741_p5 = por %p234_p2, %p233_p0  ;;  %p9745_p6 = por %p240_p4, %p239_p3 }
   0xa   : > { %p7823_p7 = scmp.ge.s32.totalorder %s9648_s12, 1  ;;  %p290_p8 = scmp.lt.s32.totalorder %s9648_s12, 3 }
   0xc   : > { %p291_p9 = pnand %p7823_p7, %p290_p8 }
   0xe   : > { %294 = sbr.rel (%p291_p9) target bundleno = 1480 (0x5c8), region = 56 }
  0x13   : > { %v9754_v0 = vld [vmem:[%s12400_s1 + $0x8] sm:$0x1]  ;;  %vm375_vm0 = vcmask 1040384   ;;  %v12409_v1 = vmov 0.0   ;;  %v9761_v2 = vld [vmem:[%s12400_s1] sm:$0xff]  ;;  %p325_p10 = scmp.lt.s32.totalorder %s9724_s13, 1 }
  0x14   : > { %8668 = vmatprep.subr.mxu0 %v12409_v1  ;;  %8693 = vmatprep.subr.mxu1 %v12409_v1  ;;  %vm9651_vm1 = vmmov 0   ;;  %vm353_vm2 = vcmask 72704   ;;  %vm341_vm3 = vcmask 523264   ;;  %vm490_vm4 = vcmask 1045504   ;;  %s323_s23 = sand.u32 1, %s9640_s10   ;;  %s8233_s24 = sshll.u32 %s9724_s13, 4 }
  0x15   : > { %8669 = vmatpush3.msk.msra.mxu0 %vm375_vm0, %v9754_v0  ;;  %8694 = vmatpush3.msk.msra.mxu1 %vm375_vm0, %v9754_v0  ;;  %s326_s25 = scalar_select %p325_p10, %s9724_s13, 1  ;;  %342 = vst.msk [vmem:[#allocation2 + $0xa0] sm:$0xff] %vm341_vm3, %v12409_v1  ;;  %343 = vst.msk [vmem:[#allocation2 + $0xa8] sm:$0xff] %vm341_vm3, %v12409_v1  ;;  %vm506_vm5 = vcmask 517120   ;;  %vm514_vm6 = vcmask 519170   ;;  %vm522_vm7 = vcmask 521220  }
  0x16   : > { %8670 = vmatprep.subr.mxu0 %v12409_v1  ;;  %8695 = vmatprep.subr.mxu1 %v12409_v1  ;;  %vm530_vm8 = vcmask 523270   ;;  %vm602_vm9 = vcmask 1041408   ;;  %vm604_vm10 = vcmask 1042432   ;;  %vm606_vm11 = vcmask 1043456   ;;  %s12364_s14 = scalar_lea.hbm %s12408_s9, %s8233_s24  ;;  %s7753_s16 = scalar_lea.sflag [#allocation5], %s323_s23 }
  0x17   : > { %8671 = vmatpush3.msra.mxu0 %v9761_v2  ;;  %8672 = vmatprep.mubr.msk.f32.mxu0 %vm9651_vm1, %v12409_v1  ;;  %s9542_s26 = smul.u32 680, %s326_s25  ;;  %vm608_vm12 = vcmask 1044480   ;;  %vm611_vm13 = vcmask 1046528   ;;  %vm618_vm14 = vcmask 520192   ;;  %vm344_vm15 = vcmask 261120   ;;  %s324_s25 = scalar_lea.vmem [#allocation4], %s323_s23 }
  0x18   : > { %8696 = vmatpush3.msra.mxu1 %v9761_v2  ;;  %8697 = vmatprep.mubr.msk.f32.mxu1 %vm9651_vm1, %v12409_v1  ;;  %s9652_s13 = smov [#allocation4]  }
  0x19   : > { %8718 = vmatprep.subr.mxu0 %v12409_v1  ;;  %8743 = vmatprep.subr.mxu1 %v12409_v1  ;;  %s9782_s29 = scalar_lea.vmem %s12399_s0, %s9542_s26  ;;  %s7765_s26 = sshll.u32 %s324_s25, 4  ;;  %s7766_s26 = int_to_ptr.vmem [resolvable:$true] %s7765_s26 }
  0x1a   : > { %v346_v3 = vld [vmem:[%s9782_s29] sm:$0xff]  ;;  %v620_v4 = vld [vmem:[%s9782_s29 + $0x34] sm:$0xff]  ;;  %v347_v5 = vld [vmem:[%s9782_s29 + $0x8] sm:$0xff]  ;;  %s9592_s17 = sshll.u32 %s9652_s13, 4  ;;  %s9593_s17 = int_to_ptr.vmem [resolvable:$false] %s9592_s17 }
  0x1b   : > { %8673 = vmatmul.mubr.msk.f32.vlgmr.msra.gmra.mxu0 %vm353_vm2, %v346_v3  ;;  %8698 = vmatmul.mubr.msk.f32.vlgmr.msra.gmra.mxu1 %vm353_vm2, %v620_v4  ;;  %v621_v6 = vld [vmem:[%s9782_s29 + $0x3c] sm:$0xff]  ;;  %v348_v7 = vld [vmem:[%s9782_s29 + $0x10] sm:$0xff]  ;;  %v622_v8 = vld [vmem:[%s9782_s29 + $0x44] sm:$0xff]  ;;  %s9594_s21 = scalar_lea.vmem %s9593_s17, 32  ;;  %p9595_p0 = scmp.lt.s32.totalorder %s7766_s26, %s9593_s17 }
  0x1c   : > { %8719 = vmatpush3.msk.msra.mxu0 %vm375_vm0, %v9754_v0  ;;  %8675 = vmatprep.mubr.msk.f32.mxu0 %vm9651_vm1, %v12409_v1  ;;  %v349_v9 = vld [vmem:[%s9782_s29 + $0x18] sm:$0xff]  ;;  %v623_v10 = vld [vmem:[%s9782_s29 + $0x4c] sm:$0xff]  ;;  %v350_v11 = vld [vmem:[%s9782_s29 + $0x20] sm:$0xff] }
  0x1d   : > { %8700 = vmatprep.mubr.msk.f32.mxu1 %vm9651_vm1, %v12409_v1  ;;  %8744 = vmatpush3.msk.msra.mxu1 %vm375_vm0, %v9754_v0  ;;  %v624_v12 = vld [vmem:[%s9782_s29 + $0x54] sm:$0xff]  ;;  %v351_v13 = vld [vmem:[%s9782_s29 + $0x28] sm:$0xff]  ;;  %v625_v14 = vld [vmem:[%s9782_s29 + $0x5c] sm:$0xff] }
  0x1e   : > { %8720 = vmatprep.subr.mxu0 %v12409_v1  ;;  %8745 = vmatprep.subr.mxu1 %v12409_v1  ;;  %v352_v15 = vld [vmem:[%s9782_s29 + $0x30] sm:$0xf]  ;;  %v626_v16 = vld [vmem:[%s9782_s29 + $0x64] sm:$0xf]  ;;  %v878_v17 = vld [vmem:[%s9782_s29 + $0x68] sm:$0xff] }
  0x1f   : > { %8676 = vmatmul.mubr.msk.f32.gmra.mxu0 %vm353_vm2, %v347_v5  ;;  %8701 = vmatmul.mubr.msk.f32.gmra.mxu1 %vm353_vm2, %v621_v6  ;;  %v1136_v18 = vld [vmem:[%s9782_s29 + $0x9c] sm:$0xff]  ;;  %v879_v19 = vld [vmem:[%s9782_s29 + $0x70] sm:$0xff]  ;;  %v1137_v20 = vld [vmem:[%s9782_s29 + $0xa4] sm:$0xff] }
  0x20   : > { %8678 = vmatprep.mubr.msk.f32.mxu0 %vm9651_vm1, %v12409_v1  ;;  %8703 = vmatprep.mubr.msk.f32.mxu1 %vm9651_vm1, %v12409_v1  ;;  %v880_v21 = vld [vmem:[%s9782_s29 + $0x78] sm:$0xff]  ;;  %v1138_v22 = vld [vmem:[%s9782_s29 + $0xac] sm:$0xff]  ;;  %v881_v23 = vld [vmem:[%s9782_s29 + $0x80] sm:$0xff] }
  0x21   : > { %8721 = vmatpush3.msra.mxu0 %v9761_v2  ;;  %8746 = vmatpush3.msra.mxu1 %v9761_v2  ;;  %v1139_v24 = vld [vmem:[%s9782_s29 + $0xb4] sm:$0xff]  ;;  %v882_v25 = vld [vmem:[%s9782_s29 + $0x88] sm:$0xff]  ;;  %v1140_v26 = vld [vmem:[%s9782_s29 + $0xbc] sm:$0xff] }
  0x22   : > { %8768 = vmatprep.subr.mxu0 %v12409_v1  ;;  %8793 = vmatprep.subr.mxu1 %v12409_v1  ;;  %v883_v27 = vld [vmem:[%s9782_s29 + $0x90] sm:$0xff]  ;;  %v1141_v28 = vld [vmem:[%s9782_s29 + $0xc4] sm:$0xff]  ;;  %v884_v29 = vld [vmem:[%s9782_s29 + $0x98] sm:$0xf] }
  0x23   : > { %8679 = vmatmul.mubr.msk.f32.gmra.mxu0 %vm353_vm2, %v348_v7  ;;  %8704 = vmatmul.mubr.msk.f32.gmra.mxu1 %vm353_vm2, %v622_v8  ;;  %v1142_v30 = vld [vmem:[%s9782_s29 + $0xcc] sm:$0xf]  ;;  %v1394_v31 = vld [vmem:[%s9782_s29 + $0xd0] sm:$0xff]  ;;  %v1652_v32 = vld [vmem:[%s9782_s29 + $0x104] sm:$0xff] }
  0x24   : > { %8681 = vmatprep.mubr.msk.f32.mxu0 %vm9651_vm1, %v12409_v1  ;;  %8706 = vmatprep.mubr.msk.f32.mxu1 %vm9651_vm1, %v12409_v1  ;;  %v1395_v33 = vld [vmem:[%s9782_s29 + $0xd8] sm:$0xff]  ;;  %v1653_v34 = vld [vmem:[%s9782_s29 + $0x10c] sm:$0xff]  ;;  %v1396_v35 = vld [vmem:[%s9782_s29 + $0xe0] sm:$0xff] }
  0x25   : > { %v1654_v36 = vld [vmem:[%s9782_s29 + $0x114] sm:$0xff]  ;;  %v1397_v37 = vld [vmem:[%s9782_s29 + $0xe8] sm:$0xff]  ;;  %v1655_v38 = vld [vmem:[%s9782_s29 + $0x11c] sm:$0xff] }
  0x26   : > { %v1398_v39 = vld [vmem:[%s9782_s29 + $0xf0] sm:$0xff]  ;;  %v1656_v40 = vld [vmem:[%s9782_s29 + $0x124] sm:$0xff]  ;;  %v1399_v41 = vld [vmem:[%s9782_s29 + $0xf8] sm:$0xff] }
  0x27   : > { %8682 = vmatmul.mubr.msk.f32.gmra.mxu0 %vm353_vm2, %v349_v9  ;;  %8707 = vmatmul.mubr.msk.f32.gmra.mxu1 %vm353_vm2, %v623_v10  ;;  %v1657_v42 = vld [vmem:[%s9782_s29 + $0x12c] sm:$0xff]  ;;  %v1400_v43 = vld [vmem:[%s9782_s29 + $0x100] sm:$0xf]  ;;  %v1658_v44 = vld [vmem:[%s9782_s29 + $0x134] sm:$0xf] }
  0x28   : > { %8684 = vmatprep.mubr.msk.f32.mxu0 %vm9651_vm1, %v12409_v1  ;;  %8709 = vmatprep.mubr.msk.f32.mxu1 %vm9651_vm1, %v12409_v1  ;;  %v1910_v45 = vld [vmem:[%s9782_s29 + $0x138] sm:$0xff]  ;;  %v2168_v46 = vld [vmem:[%s9782_s29 + $0x16c] sm:$0xff]  ;;  %v1911_v47 = vld [vmem:[%s9782_s29 + $0x140] sm:$0xff] }
  0x29   : > { %v2169_v48 = vld [vmem:[%s9782_s29 + $0x174] sm:$0xff]  ;;  %v1912_v49 = vld [vmem:[%s9782_s29 + $0x148] sm:$0xff]  ;;  %v2170_v50 = vld [vmem:[%s9782_s29 + $0x17c] sm:$0xff] }
  0x2a   : > { %v1913_v51 = vld [vmem:[%s9782_s29 + $0x150] sm:$0xff]  ;;  %v2171_v52 = vld [vmem:[%s9782_s29 + $0x184] sm:$0xff]  ;;  %v1914_v53 = vld [vmem:[%s9782_s29 + $0x158] sm:$0xff] }
  0x2b   : > { %8685 = vmatmul.mubr.msk.f32.gmra.mxu0 %vm353_vm2, %v350_v11  ;;  %8710 = vmatmul.mubr.msk.f32.gmra.mxu1 %vm353_vm2, %v624_v12  ;;  %v2172_v54 = vld [vmem:[%s9782_s29 + $0x18c] sm:$0xff]  ;;  %v1915_v55 = vld [vmem:[%s9782_s29 + $0x160] sm:$0xff]  ;;  %v2173_v56 = vld [vmem:[%s9782_s29 + $0x194] sm:$0xff] }
  0x2c   : > { %8687 = vmatprep.mubr.msk.f32.mxu0 %vm9651_vm1, %v12409_v1  ;;  %8712 = vmatprep.mubr.msk.f32.mxu1 %vm9651_vm1, %v12409_v1  ;;  %v1916_v57 = vld [vmem:[%s9782_s29 + $0x168] sm:$0xf]  ;;  %v2174_v58 = vld [vmem:[%s9782_s29 + $0x19c] sm:$0xf]  ;;  %v2426_v59 = vld [vmem:[%s9782_s29 + $0x1a0] sm:$0xff] }
  0x2d   : > { %v2684_v60 = vld [vmem:[%s9782_s29 + $0x1d4] sm:$0xff]  ;;  %v2427_v61 = vld [vmem:[%s9782_s29 + $0x1a8] sm:$0xff]  ;;  %v2685_v62 = vld [vmem:[%s9782_s29 + $0x1dc] sm:$0xff] }
  0x2e   : > { %v2428_v63 = vld [vmem:[%s9782_s29 + $0x1b0] sm:$0xff]  ;;  %v2686_v3 = vld [vmem:[%s9782_s29 + $0x1e4] sm:$0xff]  ;;  %v2429_v4 = vld [vmem:[%s9782_s29 + $0x1b8] sm:$0xff] }
  0x2f   : > { %8688 = vmatmul.mubr.msk.f32.gmra.mxu0 %vm353_vm2, %v351_v13  ;;  %8713 = vmatmul.mubr.msk.f32.gmra.mxu1 %vm353_vm2, %v625_v14  ;;  %v2687_v5 = vld [vmem:[%s9782_s29 + $0x1ec] sm:$0xff]  ;;  %v2430_v6 = vld [vmem:[%s9782_s29 + $0x1c0] sm:$0xff]  ;;  %v2688_v7 = vld [vmem:[%s9782_s29 + $0x1f4] sm:$0xff] }
  0x30   : > { %8690 = vmatprep.mubr.msk.f32.mxu0 %vm9651_vm1, %v12409_v1  ;;  %8715 = vmatprep.mubr.msk.f32.mxu1 %vm9651_vm1, %v12409_v1  ;;  %v2431_v8 = vld [vmem:[%s9782_s29 + $0x1c8] sm:$0xff]  ;;  %v2689_v9 = vld [vmem:[%s9782_s29 + $0x1fc] sm:$0xff]  ;;  %v2432_v10 = vld [vmem:[%s9782_s29 + $0x1d0] sm:$0xf] }
  0x31   : > { %v2690_v11 = vld [vmem:[%s9782_s29 + $0x204] sm:$0xf]  ;;  %v2942_v12 = vld [vmem:[%s9782_s29 + $0x208] sm:$0xff]  ;;  %v3200_v13 = vld [vmem:[%s9782_s29 + $0x23c] sm:$0xff] }
  0x32   : > { %v2943_v14 = vld [vmem:[%s9782_s29 + $0x210] sm:$0xff] }
  0x33   : > { %8691 = vmatmul.mubr.msk.f32.gmra.mxu0 %vm353_vm2, %v352_v15  ;;  %8716 = vmatmul.mubr.msk.f32.gmra.mxu1 %vm353_vm2, %v626_v16  ;;  %v3201_v15 = vld [vmem:[%s9782_s29 + $0x244] sm:$0xff]  ;;  %v2944_v16 = vld [vmem:[%s9782_s29 + $0x218] sm:$0xff] }
  0x34   : > { %8722 = vmatprep.mubr.msk.f32.mxu0 %vm9651_vm1, %v12409_v1  ;;  %8747 = vmatprep.mubr.msk.f32.mxu1 %vm9651_vm1, %v12409_v1 }
  0x37   : > { %8723 = vmatmul.mubr.msk.f32.vlgmr.msra.gmra.mxu0 %vm353_vm2, %v878_v17  ;;  %8748 = vmatmul.mubr.msk.f32.vlgmr.msra.gmra.mxu1 %vm353_vm2, %v1136_v18  ;;  %v3202_v17 = vld [vmem:[%s9782_s29 + $0x24c] sm:$0xff]  ;;  %v3203_v18 = vld [vmem:[%s9782_s29 + $0x254] sm:$0xff] }
  0x38   : > { %8769 = vmatpush3.msk.msra.mxu0 %vm375_vm0, %v9754_v0  ;;  %8725 = vmatprep.mubr.msk.f32.mxu0 %vm9651_vm1, %v12409_v1 }
  0x39   : > { %8750 = vmatprep.mubr.msk.f32.mxu1 %vm9651_vm1, %v12409_v1  ;;  %8794 = vmatpush3.msk.msra.mxu1 %vm375_vm0, %v9754_v0 }
  0x3a   : > { %8770 = vmatprep.subr.mxu0 %v12409_v1  ;;  %8795 = vmatprep.subr.mxu1 %v12409_v1 }
  0x3b   : > { %8726 = vmatmul.mubr.msk.f32.gmra.mxu0 %vm353_vm2, %v879_v19  ;;  %8751 = vmatmul.mubr.msk.f32.gmra.mxu1 %vm353_vm2, %v1137_v20  ;;  %v3747_v19 = vld [vmem:[%s12402_s3 + $0x38] sm:$0xff]  ;;  %v3746_v20 = vld [vmem:[%s12402_s3 + $0x30] sm:$0xff] }
  0x3c   : > { %8728 = vmatprep.mubr.msk.f32.mxu0 %vm9651_vm1, %v12409_v1  ;;  %8753 = vmatprep.mubr.msk.f32.mxu1 %vm9651_vm1, %v12409_v1 }
  0x3d   : > { %8771 = vmatpush3.msra.mxu0 %v9761_v2  ;;  %8796 = vmatpush3.msra.mxu1 %v9761_v2 }
  0x3e   : > { %8818 = vmatprep.subr.mxu0 %v12409_v1  ;;  %8843 = vmatprep.subr.mxu1 %v12409_v1 }
  0x3f   : > { %8729 = vmatmul.mubr.msk.f32.gmra.mxu0 %vm353_vm2, %v880_v21  ;;  %8754 = vmatmul.mubr.msk.f32.gmra.mxu1 %vm353_vm2, %v1138_v22  ;;  %v2946_v21 = vld [vmem:[%s9782_s29 + $0x228] sm:$0xff]  ;;  %v3204_v22 = vld [vmem:[%s9782_s29 + $0x25c] sm:$0xff] }
  0x40   : > { %8731 = vmatprep.mubr.msk.f32.mxu0 %vm9651_vm1, %v12409_v1  ;;  %8756 = vmatprep.mubr.msk.f32.mxu1 %vm9651_vm1, %v12409_v1 }
  0x43   : > { %8732 = vmatmul.mubr.msk.f32.gmra.mxu0 %vm353_vm2, %v881_v23  ;;  %8757 = vmatmul.mubr.msk.f32.gmra.mxu1 %vm353_vm2, %v1139_v24  ;;  %v3745_v23 = vld [vmem:[%s12402_s3 + $0x28] sm:$0xff]  ;;  %v2947_v24 = vld [vmem:[%s9782_s29 + $0x230] sm:$0xff] }
  0x44   : > { %8734 = vmatprep.mubr.msk.f32.mxu0 %vm9651_vm1, %v12409_v1  ;;  %8759 = vmatprep.mubr.msk.f32.mxu1 %vm9651_vm1, %v12409_v1 }
  0x47   : > { %8735 = vmatmul.mubr.msk.f32.gmra.mxu0 %vm353_vm2, %v882_v25  ;;  %8760 = vmatmul.mubr.msk.f32.gmra.mxu1 %vm353_vm2, %v1140_v26  ;;  %v3205_v25 = vld [vmem:[%s9782_s29 + $0x264] sm:$0xff]  ;;  %v2948_v26 = vld [vmem:[%s9782_s29 + $0x238] sm:$0xf] }
  0x48   : > { %8737 = vmatprep.mubr.msk.f32.mxu0 %vm9651_vm1, %v12409_v1  ;;  %8762 = vmatprep.mubr.msk.f32.mxu1 %vm9651_vm1, %v12409_v1 }
  0x4b   : > { %8738 = vmatmul.mubr.msk.f32.gmra.mxu0 %vm353_vm2, %v883_v27  ;;  %8763 = vmatmul.mubr.msk.f32.gmra.mxu1 %vm353_vm2, %v1141_v28  ;;  %v3206_v27 = vld [vmem:[%s9782_s29 + $0x26c] sm:$0xf]  ;;  %v3458_v28 = vld [vmem:[%s9782_s29 + $0x270] sm:$0xff] }
  0x4c   : > { %8740 = vmatprep.mubr.msk.f32.mxu0 %vm9651_vm1, %v12409_v1  ;;  %8765 = vmatprep.mubr.msk.f32.mxu1 %vm9651_vm1, %v12409_v1 }
  0x4f   : > { %8741 = vmatmul.mubr.msk.f32.gmra.mxu0 %vm353_vm2, %v884_v29  ;;  %8766 = vmatmul.mubr.msk.f32.gmra.mxu1 %vm353_vm2, %v1142_v30  ;;  %v7955_v29 = vld [vmem:[%s12402_s3 + $0x70] sm:$0xff]  ;;  %v3744_v30 = vld [vmem:[%s12402_s3 + $0x20] sm:$0xff] }
  0x50   : > { %8772 = vmatprep.mubr.msk.f32.mxu0 %vm9651_vm1, %v12409_v1  ;;  %8797 = vmatprep.mubr.msk.f32.mxu1 %vm9651_vm1, %v12409_v1 }
  0x53   : > { %8773 = vmatmul.mubr.msk.f32.vlgmr.msra.gmra.mxu0 %vm353_vm2, %v1394_v31  ;;  %8798 = vmatmul.mubr.msk.f32.vlgmr.msra.gmra.mxu1 %vm353_vm2, %v1652_v32  ;;  %v3459_v31 = vld [vmem:[%s9782_s29 + $0x278] sm:$0xff]  ;;  %v7954_v32 = vld [vmem:[%s12402_s3 + $0x68] sm:$0xff] }
  0x54   : > { %8819 = vmatpush3.msk.msra.mxu0 %vm375_vm0, %v9754_v0  ;;  %8775 = vmatprep.mubr.msk.f32.mxu0 %vm9651_vm1, %v12409_v1 }
  0x55   : > { %8800 = vmatprep.mubr.msk.f32.mxu1 %vm9651_vm1, %v12409_v1  ;;  %8844 = vmatpush3.msk.msra.mxu1 %vm375_vm0, %v9754_v0 }
  0x56   : > { %8820 = vmatprep.subr.mxu0 %v12409_v1  ;;  %8845 = vmatprep.subr.mxu1 %v12409_v1 }
  0x57   : > { %8776 = vmatmul.mubr.msk.f32.gmra.mxu0 %vm353_vm2, %v1395_v33  ;;  %8801 = vmatmul.mubr.msk.f32.gmra.mxu1 %vm353_vm2, %v1653_v34  ;;  %v3743_v33 = vld [vmem:[%s12402_s3 + $0x18] sm:$0xff]  ;;  %v7953_v34 = vld [vmem:[%s12402_s3 + $0x60] sm:$0xff] }
  0x58   : > { %8778 = vmatprep.mubr.msk.f32.mxu0 %vm9651_vm1, %v12409_v1  ;;  %8803 = vmatprep.mubr.msk.f32.mxu1 %vm9651_vm1, %v12409_v1 }
  0x59   : > { %8821 = vmatpush3.msra.mxu0 %v9761_v2  ;;  %8846 = vmatpush3.msra.mxu1 %v9761_v2 }
  0x5a   : > { %8868 = vmatprep.subr.mxu0 %v12409_v1  ;;  %8893 = vmatprep.subr.mxu1 %v12409_v1 }
  0x5b   : > { %8779 = vmatmul.mubr.msk.f32.gmra.mxu0 %vm353_vm2, %v1396_v35  ;;  %8804 = vmatmul.mubr.msk.f32.gmra.mxu1 %vm353_vm2, %v1654_v36  ;;  %v3460_v35 = vld [vmem:[%s9782_s29 + $0x280] sm:$0xff]  ;;  %v3461_v36 = vld [vmem:[%s9782_s29 + $0x288] sm:$0xff] }
  0x5c   : > { %8781 = vmatprep.mubr.msk.f32.mxu0 %vm9651_vm1, %v12409_v1  ;;  %8806 = vmatprep.mubr.msk.f32.mxu1 %vm9651_vm1, %v12409_v1 }
  0x5f   : > { %8782 = vmatmul.mubr.msk.f32.gmra.mxu0 %vm353_vm2, %v1397_v37  ;;  %8807 = vmatmul.mubr.msk.f32.gmra.mxu1 %vm353_vm2, %v1655_v38  ;;  %v3462_v37 = vld [vmem:[%s9782_s29 + $0x290] sm:$0xff]  ;;  %v3463_v38 = vld [vmem:[%s9782_s29 + $0x298] sm:$0xff] }
  0x60   : > { %8784 = vmatprep.mubr.msk.f32.mxu0 %vm9651_vm1, %v12409_v1  ;;  %8809 = vmatprep.mubr.msk.f32.mxu1 %vm9651_vm1, %v12409_v1 }
  0x63   : > { %8785 = vmatmul.mubr.msk.f32.gmra.mxu0 %vm353_vm2, %v1398_v39  ;;  %8810 = vmatmul.mubr.msk.f32.gmra.mxu1 %vm353_vm2, %v1656_v40  ;;  %v3464_v39 = vld [vmem:[%s9782_s29 + $0x2a0] sm:$0xf]  ;;  %v7952_v40 = vld [vmem:[%s12402_s3 + $0x58] sm:$0xff] }
  0x64   : > { %8787 = vmatprep.mubr.msk.f32.mxu0 %vm9651_vm1, %v12409_v1  ;;  %8812 = vmatprep.mubr.msk.f32.mxu1 %vm9651_vm1, %v12409_v1 }
  0x67   : > { %8788 = vmatmul.mubr.msk.f32.gmra.mxu0 %vm353_vm2, %v1399_v41  ;;  %8813 = vmatmul.mubr.msk.f32.gmra.mxu1 %vm353_vm2, %v1657_v42 }
  0x68   : > { %8790 = vmatprep.mubr.msk.f32.mxu0 %vm9651_vm1, %v12409_v1  ;;  %8815 = vmatprep.mubr.msk.f32.mxu1 %vm9651_vm1, %v12409_v1 }
  0x6b   : > { %8791 = vmatmul.mubr.msk.f32.gmra.mxu0 %vm353_vm2, %v1400_v43  ;;  %8816 = vmatmul.mubr.msk.f32.gmra.mxu1 %vm353_vm2, %v1658_v44  ;;  %v3742_v43 = vld [vmem:[%s12402_s3 + $0x10] sm:$0xff] }
  0x6c   : > { %8822 = vmatprep.mubr.msk.f32.mxu0 %vm9651_vm1, %v12409_v1  ;;  %8847 = vmatprep.mubr.msk.f32.mxu1 %vm9651_vm1, %v12409_v1  ;;  %v7951_v44 = vld [vmem:[%s12402_s3 + $0x50] sm:$0xff] }
  0x6f   : > { %8823 = vmatmul.mubr.msk.f32.vlgmr.msra.gmra.mxu0 %vm353_vm2, %v1910_v45  ;;  %8848 = vmatmul.mubr.msk.f32.vlgmr.msra.gmra.mxu1 %vm353_vm2, %v2168_v46 }
  0x70   : > { %8869 = vmatpush3.msk.msra.mxu0 %vm375_vm0, %v9754_v0  ;;  %8825 = vmatprep.mubr.msk.f32.mxu0 %vm9651_vm1, %v12409_v1 }
  0x71   : > { %8850 = vmatprep.mubr.msk.f32.mxu1 %vm9651_vm1, %v12409_v1  ;;  %8894 = vmatpush3.msk.msra.mxu1 %vm375_vm0, %v9754_v0 }
  0x72   : > { %8870 = vmatprep.subr.mxu0 %v12409_v1  ;;  %8895 = vmatprep.subr.mxu1 %v12409_v1 }
  0x73   : > { %8826 = vmatmul.mubr.msk.f32.gmra.mxu0 %vm353_vm2, %v1911_v47  ;;  %8851 = vmatmul.mubr.msk.f32.gmra.mxu1 %vm353_vm2, %v2169_v48  ;;  %v3741_v47 = vld [vmem:[%s12402_s3 + $0x8] sm:$0xff] }
  0x74   : > { %8828 = vmatprep.mubr.msk.f32.mxu0 %vm9651_vm1, %v12409_v1  ;;  %8853 = vmatprep.mubr.msk.f32.mxu1 %vm9651_vm1, %v12409_v1  ;;  %v7950_v48 = vld [vmem:[%s12402_s3 + $0x48] sm:$0xff] }
  0x75   : > { %8871 = vmatpush3.msra.mxu0 %v9761_v2  ;;  %8896 = vmatpush3.msra.mxu1 %v9761_v2 }
  0x76   : > { %8918 = vmatprep.subr.mxu0 %v12409_v1  ;;  %8943 = vmatprep.subr.mxu1 %v12409_v1 }
  0x77   : > { %8829 = vmatmul.mubr.msk.f32.gmra.mxu0 %vm353_vm2, %v1912_v49  ;;  %8854 = vmatmul.mubr.msk.f32.gmra.mxu1 %vm353_vm2, %v2170_v50 }
  0x78   : > { %8831 = vmatprep.mubr.msk.f32.mxu0 %vm9651_vm1, %v12409_v1  ;;  %8856 = vmatprep.mubr.msk.f32.mxu1 %vm9651_vm1, %v12409_v1 }
  0x7b   : > { %8832 = vmatmul.mubr.msk.f32.gmra.mxu0 %vm353_vm2, %v1913_v51  ;;  %8857 = vmatmul.mubr.msk.f32.gmra.mxu1 %vm353_vm2, %v2171_v52  ;;  %v3740_v51 = vld [vmem:[%s12402_s3] sm:$0xff] }
  0x7c   : > { %8834 = vmatprep.mubr.msk.f32.mxu0 %vm9651_vm1, %v12409_v1  ;;  %8859 = vmatprep.mubr.msk.f32.mxu1 %vm9651_vm1, %v12409_v1  ;;  %v7949_v52 = vld [vmem:[%s12402_s3 + $0x40] sm:$0xff] }
  0x7f   : > { %8835 = vmatmul.mubr.msk.f32.gmra.mxu0 %vm353_vm2, %v1914_v53  ;;  %8860 = vmatmul.mubr.msk.f32.gmra.mxu1 %vm353_vm2, %v2172_v54 }
  0x80   : > { %8837 = vmatprep.mubr.msk.f32.mxu0 %vm9651_vm1, %v12409_v1  ;;  %8862 = vmatprep.mubr.msk.f32.mxu1 %vm9651_vm1, %v12409_v1 }
  0x83   : > { %8838 = vmatmul.mubr.msk.f32.gmra.mxu0 %vm353_vm2, %v1915_v55  ;;  %8863 = vmatmul.mubr.msk.f32.gmra.mxu1 %vm353_vm2, %v2173_v56 }
  0x84   : > { %8840 = vmatprep.mubr.msk.f32.mxu0 %vm9651_vm1, %v12409_v1  ;;  %8865 = vmatprep.mubr.msk.f32.mxu1 %vm9651_vm1, %v12409_v1 }
  0x87   : > { %8841 = vmatmul.mubr.msk.f32.gmra.mxu0 %vm353_vm2, %v1916_v57  ;;  %8866 = vmatmul.mubr.msk.f32.gmra.mxu1 %vm353_vm2, %v2174_v58 }
  0x88   : > { %8872 = vmatprep.mubr.msk.f32.mxu0 %vm9651_vm1, %v12409_v1  ;;  %8897 = vmatprep.mubr.msk.f32.mxu1 %vm9651_vm1, %v12409_v1 }
  0x8b   : > { %8873 = vmatmul.mubr.msk.f32.vlgmr.msra.gmra.mxu0 %vm353_vm2, %v2426_v59  ;;  %8898 = vmatmul.mubr.msk.f32.vlgmr.msra.gmra.mxu1 %vm353_vm2, %v2684_v60  ;;  %v10252_v59 = vld [vmem:[%s12401_s2] ss:$0 sm:$0xff] }
  0x8c   : > { %8919 = vmatpush3.msk.msra.mxu0 %vm375_vm0, %v9754_v0  ;;  %8875 = vmatprep.mubr.msk.f32.mxu0 %vm9651_vm1, %v12409_v1 }
  0x8d   : > { %8900 = vmatprep.mubr.msk.f32.mxu1 %vm9651_vm1, %v12409_v1  ;;  %8944 = vmatpush3.msk.msra.mxu1 %vm375_vm0, %v9754_v0 }
  0x8e   : > { %8920 = vmatprep.subr.mxu0 %v12409_v1  ;;  %8945 = vmatprep.subr.mxu1 %v12409_v1 }
  0x8f   : > { %8876 = vmatmul.mubr.msk.f32.gmra.mxu0 %vm353_vm2, %v2427_v61  ;;  %8901 = vmatmul.mubr.msk.f32.gmra.mxu1 %vm353_vm2, %v2685_v62 }
  0x90   : > { %8878 = vmatprep.mubr.msk.f32.mxu0 %vm9651_vm1, %v12409_v1  ;;  %8903 = vmatprep.mubr.msk.f32.mxu1 %vm9651_vm1, %v12409_v1 }
  0x91   : > { %8921 = vmatpush3.msra.mxu0 %v9761_v2  ;;  %8946 = vmatpush3.msra.mxu1 %v9761_v2 }
  0x92   : > { %8968 = vmatprep.subr.mxu0 %v12409_v1  ;;  %8993 = vmatprep.subr.mxu1 %v3747_v19 }
  0x93   : > { %8879 = vmatmul.mubr.msk.f32.gmra.mxu0 %vm353_vm2, %v2428_v63  ;;  %8904 = vmatmul.mubr.msk.f32.gmra.mxu1 %vm353_vm2, %v2686_v3 }
  0x94   : > { %8881 = vmatprep.mubr.msk.f32.mxu0 %vm9651_vm1, %v12409_v1  ;;  %8906 = vmatprep.mubr.msk.f32.mxu1 %vm9651_vm1, %v12409_v1 }
  0x97   : > { %8882 = vmatmul.mubr.msk.f32.gmra.mxu0 %vm353_vm2, %v2429_v4  ;;  %8907 = vmatmul.mubr.msk.f32.gmra.mxu1 %vm353_vm2, %v2687_v5 }
  0x98   : > { %8884 = vmatprep.mubr.msk.f32.mxu0 %vm9651_vm1, %v12409_v1  ;;  %8909 = vmatprep.mubr.msk.f32.mxu1 %vm9651_vm1, %v12409_v1 }
  0x9b   : > { %8885 = vmatmul.mubr.msk.f32.gmra.mxu0 %vm353_vm2, %v2430_v6  ;;  %8910 = vmatmul.mubr.msk.f32.gmra.mxu1 %vm353_vm2, %v2688_v7 }
  0x9c   : > { %8887 = vmatprep.mubr.msk.f32.mxu0 %vm9651_vm1, %v12409_v1  ;;  %8912 = vmatprep.mubr.msk.f32.mxu1 %vm9651_vm1, %v12409_v1 }
  0x9f   : > { %8888 = vmatmul.mubr.msk.f32.gmra.mxu0 %vm353_vm2, %v2431_v8  ;;  %8913 = vmatmul.mubr.msk.f32.gmra.mxu1 %vm353_vm2, %v2689_v9 }
  0xa0   : > { %8890 = vmatprep.mubr.msk.f32.mxu0 %vm9651_vm1, %v12409_v1  ;;  %8915 = vmatprep.mubr.msk.f32.mxu1 %vm9651_vm1, %v12409_v1 }
  0xa3   : > { %8891 = vmatmul.mubr.msk.f32.gmra.mxu0 %vm353_vm2, %v2432_v10  ;;  %8916 = vmatmul.mubr.msk.f32.gmra.mxu1 %vm353_vm2, %v2690_v11 }
  0xa4   : > { %8922 = vmatprep.mubr.msk.f32.mxu0 %vm9651_vm1, %v12409_v1  ;;  %8947 = vmatprep.mubr.msk.f32.mxu1 %vm9651_vm1, %v12409_v1 }
  0xa7   : > { %8923 = vmatmul.mubr.msk.f32.vlgmr.msra.gmra.mxu0 %vm353_vm2, %v2942_v12  ;;  %8948 = vmatmul.mubr.msk.f32.vlgmr.msra.gmra.mxu1 %vm353_vm2, %v3200_v13 }
  0xa8   : > { %8925 = vmatprep.mubr.msk.f32.mxu0 %vm9651_vm1, %v12409_v1  ;;  %8950 = vmatprep.mubr.msk.f32.mxu1 %vm9651_vm1, %v12409_v1 }
  0xa9   : > { %8969 = vmatpush3.msk.msra.mxu0 %vm375_vm0, %v9754_v0  ;;  %v2945_v0 = vld [vmem:[%s9782_s29 + $0x220] sm:$0xff]  ;;  %8994 = vmatpush3.msra.mxu1 %v3747_v19  ;;  %s9588_s29 = scalar_lea.vmem %s7766_s26, 16 }
  0xaa   : > { %8970 = vmatprep.subr.mxu0 %v12409_v1  ;;  %8995 = vmatprep.subr.mxu1 %v3746_v20  ;;  %p9589_p11 = scmp.ne.s32.totalorder %s7766_s26, %s9588_s29  ;;  %p9596_p1 = scmp.lt.s32.totalorder %s9594_s21, %s9588_s29 }
  0xab   : > { %8926 = vmatmul.mubr.msk.f32.gmra.mxu0 %vm353_vm2, %v2943_v14  ;;  %8951 = vmatmul.mubr.msk.f32.gmra.mxu1 %vm353_vm2, %v3201_v15 }
  0xac   : > { %8928 = vmatprep.mubr.msk.f32.mxu0 %vm9651_vm1, %v12409_v1  ;;  %8953 = vmatprep.mubr.msk.f32.mxu1 %vm9651_vm1, %v12409_v1  ;;  %p9590_p12 = pnand %p9589_p11, %p9741_p5  ;;  %p9597_p2 = por %p9596_p1, %p9595_p0 }
  0xad   : > { %8971 = vmatpush3.msra.mxu0 %v9761_v2  ;;  %v7956_v2 = vld [vmem:[%s12402_s3 + $0x78] sm:$0xff]  ;;  %8996 = vmatpush3.msra.mxu1 %v3746_v20 }
  0xae   : > { %9036 = vmatprep.subr.mxu0 %v7956_v2  ;;  %8997 = vmatprep.subr.mxu1 %v3745_v23  ;;  %p9591_p13 = pneg %p9590_p12 }
  0xaf   : > { %8929 = vmatmul.mubr.msk.f32.gmra.mxu0 %vm353_vm2, %v2944_v16  ;;  %8954 = vmatmul.mubr.msk.f32.gmra.mxu1 %vm353_vm2, %v3202_v17 }
  0xb0   : > { %8931 = vmatprep.mubr.msk.f32.mxu0 %vm9651_vm1, %v12409_v1  ;;  %8956 = vmatprep.mubr.msk.f32.mxu1 %vm9651_vm1, %v12409_v1  ;;  %p9598_p3 = pnand %p9597_p2, %p9591_p13 }
  0xb1   : > { %8998 = vmatpush3.msra.mxu1 %v3745_v23 }
  0xb2   : > { %8999 = vmatprep.subr.mxu1 %v3744_v30 }
  0xb3   : > { %8932 = vmatmul.mubr.msk.f32.gmra.mxu0 %vm353_vm2, %v2945_v0  ;;  %8957 = vmatmul.mubr.msk.f32.gmra.mxu1 %vm353_vm2, %v3203_v18 }
  0xb4   : > { %8934 = vmatprep.mubr.msk.f32.mxu0 %vm9651_vm1, %v12409_v1  ;;  %8959 = vmatprep.mubr.msk.f32.mxu1 %vm9651_vm1, %v12409_v1 }
  0xb5   : > { %9000 = vmatpush3.msra.mxu1 %v3744_v30 }
  0xb6   : > { %9001 = vmatprep.subr.mxu1 %v3743_v33 }
  0xb7   : > { %8935 = vmatmul.mubr.msk.f32.gmra.mxu0 %vm353_vm2, %v2946_v21  ;;  %8960 = vmatmul.mubr.msk.f32.gmra.mxu1 %vm353_vm2, %v3204_v22 }
  0xb8   : > { %8937 = vmatprep.mubr.msk.f32.mxu0 %vm9651_vm1, %v12409_v1  ;;  %8962 = vmatprep.mubr.msk.f32.mxu1 %vm9651_vm1, %v12409_v1 }
  0xb9   : > { %9002 = vmatpush3.msra.mxu1 %v3743_v33 }
  0xba   : > { %9003 = vmatprep.subr.mxu1 %v3742_v43 }
  0xbb   : > { %8938 = vmatmul.mubr.msk.f32.gmra.mxu0 %vm353_vm2, %v2947_v24  ;;  %8963 = vmatmul.mubr.msk.f32.gmra.mxu1 %vm353_vm2, %v3205_v25 }
  0xbc   : > { %8940 = vmatprep.mubr.msk.f32.mxu0 %vm9651_vm1, %v12409_v1  ;;  %8965 = vmatprep.mubr.msk.f32.mxu1 %vm9651_vm1, %v12409_v1 }
  0xbd   : > { %9004 = vmatpush3.msra.mxu1 %v3742_v43 }
  0xbe   : > { %9005 = vmatprep.subr.mxu1 %v3741_v47 }
  0xbf   : > { %8941 = vmatmul.mubr.msk.f32.gmra.mxu0 %vm353_vm2, %v2948_v26  ;;  %8966 = vmatmul.mubr.msk.f32.gmra.mxu1 %vm353_vm2, %v3206_v27 }
  0xc0   : > { %8972 = vmatprep.mubr.msk.f32.mxu0 %vm9651_vm1, %v12409_v1  ;;  %9006 = vmatpush3.msra.mxu1 %v3741_v47 }
  0xc1   : > { %9007 = vmatprep.subr.mxu1 %v3740_v51 }
  0xc2   : > { %9008 = vmatpush3.msra.mxu1 %v3740_v51 }
  0xc3   : > { %8973 = vmatmul.mubr.msk.f32.vlgmr.msra.gmra.mxu0 %vm353_vm2, %v3458_v28 }
  0xc4   : > { %8975 = vmatprep.mubr.msk.f32.mxu0 %vm9651_vm1, %v12409_v1  ;;  %9037 = vmatpush3.msra.mxu0 %v7956_v2 }
  0xc5   : > { %9038 = vmatprep.subr.mxu0 %v7955_v29 }
  0xc6   : > { %9039 = vmatpush3.msra.mxu0 %v7955_v29 }
  0xc7   : > { %8976 = vmatmul.mubr.msk.f32.gmra.mxu0 %vm353_vm2, %v3459_v31  ;;  %9040 = vmatprep.subr.mxu0 %v7954_v32 }
  0xc8   : > { %8978 = vmatprep.mubr.msk.f32.mxu0 %vm9651_vm1, %v12409_v1  ;;  %9041 = vmatpush3.msra.mxu0 %v7954_v32 }
  0xc9   : > { %9042 = vmatprep.subr.mxu0 %v7953_v34 }
  0xca   : > { %9043 = vmatpush3.msra.mxu0 %v7953_v34 }
  0xcb   : > { %8979 = vmatmul.mubr.msk.f32.gmra.mxu0 %vm353_vm2, %v3460_v35  ;;  %9044 = vmatprep.subr.mxu0 %v7952_v40 }
  0xcc   : > { %8981 = vmatprep.mubr.msk.f32.mxu0 %vm9651_vm1, %v12409_v1  ;;  %9045 = vmatpush3.msra.mxu0 %v7952_v40 }
  0xcd   : > { %9046 = vmatprep.subr.mxu0 %v7951_v44 }
  0xce   : > { %9047 = vmatpush3.msra.mxu0 %v7951_v44 }
  0xcf   : > { %8982 = vmatmul.mubr.msk.f32.gmra.mxu0 %vm353_vm2, %v3461_v36  ;;  %9048 = vmatprep.subr.mxu0 %v7950_v48 }
  0xd0   : > { %8984 = vmatprep.mubr.msk.f32.mxu0 %vm9651_vm1, %v12409_v1  ;;  %9049 = vmatpush3.msra.mxu0 %v7950_v48 }
  0xd1   : > { %9050 = vmatprep.subr.mxu0 %v7949_v52 }
  0xd2   : > { %9051 = vmatpush3.msra.mxu0 %v7949_v52 }
  0xd3   : > { %8985 = vmatmul.mubr.msk.f32.gmra.mxu0 %vm353_vm2, %v3462_v37 }
  0xd4   : > { %8987 = vmatprep.mubr.msk.f32.mxu0 %vm9651_vm1, %v12409_v1 }
  0xd7   : > { %8988 = vmatmul.mubr.msk.f32.gmra.mxu0 %vm353_vm2, %v3463_v38 }
  0xd8   : > { %8990 = vmatprep.mubr.msk.f32.mxu0 %vm9651_vm1, %v12409_v1 }
  0xdb   : > { %v445_v41 = vpop.f32.mrf.mxu0  ;;  %v714_v42 = vpop.f32.mrf.mxu1  ;;  %8991 = vmatmul.mubr.msk.f32.gmra.mxu0 %vm353_vm2, %v3464_v39  ;;  %vm5996_vm2 = vcmask 254976  }
  0xdc   : > { %v446_v11 = vadd.f32 %v10252_v59, %v445_v41  ;;  %v715_v12 = vadd.f32 %v10252_v59, %v714_v42 }
  0xdd   : > { %v8674_v45 = vpop.f32.mrf.mxu0  ;;  %v8699_v46 = vpop.f32.mrf.mxu1 }
  0xde   : > { %v479_v26 = vmax.f32 %v446_v11, 0.0  ;;  %v748_v27 = vmax.f32 %v715_v12, 0.0 }
  0xdf   : > { %v450_v49 = vpop.f32.mrf.mxu0  ;;  %v719_v50 = vpop.f32.mrf.mxu1 }
  0xe0   : > { %v10267_v13 = vadd.f32 %v10252_v59, %v450_v49  ;;  %v10270_v14 = vadd.f32 %v10252_v59, %v719_v50 }
  0xe1   : > { %v8677_v53 = vpop.f32.mrf.mxu0  ;;  %v8702_v54 = vpop.f32.mrf.mxu1 }
  0xe2   : > { %v480_v28 = vmax.f32 %v10267_v13, 0.0  ;;  %v749_v29 = vmax.f32 %v10270_v14, 0.0 }
  0xe3   : > { %v455_v55 = vpop.f32.mrf.mxu0  ;;  %v724_v56 = vpop.f32.mrf.mxu1 }
  0xe4   : > { %v10275_v19 = vadd.f32 %v10252_v59, %v455_v55  ;;  %v10293_v37 = vadd.f32 %v10252_v59, %v724_v56 }
  0xe5   : > { %v8680_v57 = vpop.f32.mrf.mxu0  ;;  %v8705_v58 = vpop.f32.mrf.mxu1 }
  0xe6   : > { %v481_v36 = vmax.f32 %v10275_v19, 0.0 }
  0xe7   : > { %v460_v60 = vpop.f32.mrf.mxu0  ;;  %v729_v61 = vpop.f32.mrf.mxu1 }
  0xe8   : > { %v10255_v62 = vadd.f32 %v10252_v59, %v460_v60  ;;  %v10258_v63 = vadd.f32 %v10252_v59, %v729_v61 }
  0xe9   : > { %v8683_v3 = vpop.f32.mrf.mxu0  ;;  %v8708_v4 = vpop.f32.mrf.mxu1 }
  0xea   : > { %v751_v5 = vmax.f32 %v10258_v63, 0.0  ;;  %v482_v6 = vmax.f32 %v10255_v62, 0.0 }
  0xeb   : > { %v465_v7 = vpop.f32.mrf.mxu0  ;;  %v734_v8 = vpop.f32.mrf.mxu1 }
  0xec   : > { %v466_v9 = vadd.f32 %v10252_v59, %v465_v7  ;;  %v735_v10 = vadd.f32 %v10252_v59, %v734_v8  ;;  %v759_v17 = vrot.slane %v751_v5, 2  ;;  %v491_v2 = vrot.slane %v482_v6, 2 }
  0xed   : > { %v8686_v15 = vpop.f32.mrf.mxu0  ;;  %v8711_v16 = vpop.f32.mrf.mxu1 }
  0xee   : > { %v483_v0 = vmax.f32 %v466_v9, 0.0  ;;  %v752_v18 = vmax.f32 %v735_v10, 0.0 }
  0xef   : > { %v470_v20 = vpop.f32.mrf.mxu0  ;;  %v739_v21 = vpop.f32.mrf.mxu1 }
  0xf0   : > { %v10279_v22 = vrot.slane %v483_v0, 2  ;;  %v10281_v23 = vrot.slane %v752_v18, 2  ;;  %v471_v24 = vadd.f32 %v10252_v59, %v470_v20  ;;  %v740_v25 = vadd.f32 %v10252_v59, %v739_v21 }
  0xf1   : > { %v8689_v30 = vpop.f32.mrf.mxu0  ;;  %v8714_v31 = vpop.f32.mrf.mxu1 }
  0xf2   : > { %v493_v32 = vsel %vm490_vm4, %v491_v2, %v10279_v22  ;;  %v761_v33 = vsel %vm490_vm4, %v759_v17, %v10281_v23  ;;  %v484_v34 = vmax.f32 %v471_v24, 0.0  ;;  %v753_v35 = vmax.f32 %v740_v25, 0.0 }
  0xf3   : > { %v502_v38 = vmax.f32 %v479_v26, %v493_v32  ;;  %v770_v39 = vmax.f32 %v748_v27, %v761_v33  ;;  %v475_v40 = vpop.f32.mrf.mxu0  ;;  %v744_v41 = vpop.f32.mrf.mxu1 }
  0xf4   : > { %v10295_v42 = vrot.slane %v484_v34, 2  ;;  %v10297_v43 = vrot.slane %v753_v35, 2  ;;  %v10300_v44 = vadd.f32 %v10252_v59, %v475_v40  ;;  %v10303_v45 = vadd.f32 %v10252_v59, %v744_v41 }
  0xf5   : > { %v507_v46 = vsel %vm506_vm5, %v502_v38, -inf  ;;  %v515_v47 = vsel %vm514_vm6, %v502_v38, -inf  ;;  %v523_v48 = vsel %vm522_vm7, %v502_v38, -inf  ;;  %v531_v49 = vsel %vm530_vm8, %v502_v38, -inf  ;;  %v8692_v50 = vpop.f32.mrf.mxu0  ;;  %v8717_v51 = vpop.f32.mrf.mxu1 }
  0xf6   : > { %v508_v52 = vrot.slane %v507_v46, 4  ;;  %v516_v53 = vrot.slane %v515_v47, 4  ;;  %v524_v54 = vrot.slane %v523_v48, 4  ;;  %v532_v55 = vrot.slane %v531_v49, 4 }
  0xf7   : > { %v774_v56 = vsel %vm506_vm5, %v770_v39, -inf  ;;  %v781_v57 = vsel %vm514_vm6, %v770_v39, -inf  ;;  %v788_v58 = vsel %vm522_vm7, %v770_v39, -inf  ;;  %v795_v60 = vsel %vm530_vm8, %v770_v39, -inf  ;;  %v10313_v61 = vpop.f32.mrf.mxu0  ;;  %v10315_v3 = vpop.f32.mrf.mxu1 }
  0xf8   : > { %v509_v4 = vmax.f32 %v507_v46, %v508_v52  ;;  %v517_v7 = vmax.f32 %v515_v47, %v516_v53  ;;  %v525_v8 = vmax.f32 %v523_v48, %v524_v54  ;;  %v533_v9 = vmax.f32 %v531_v49, %v532_v55 }
  0xf9   : > { %v775_v10 = vrot.slane %v774_v56, 4  ;;  %v782_v11 = vrot.slane %v781_v57, 4  ;;  %v789_v12 = vrot.slane %v788_v58, 4  ;;  %v796_v15 = vrot.slane %v795_v60, 4  ;;  %v8724_v16 = vpop.f32.mrf.mxu0  ;;  %v8749_v17 = vpop.f32.mrf.mxu1 }
  0xfa   : > { %v510_v0 = vrot.slane %v509_v4, 2  ;;  %v518_v18 = vrot.slane %v517_v7, 2  ;;  %v526_v2 = vrot.slane %v525_v8, 2  ;;  %v534_v20 = vrot.slane %v533_v9, 2 }
  0xfb   : > { %v776_v21 = vmax.f32 %v774_v56, %v775_v10  ;;  %v783_v24 = vmax.f32 %v781_v57, %v782_v11  ;;  %v790_v25 = vmax.f32 %v788_v58, %v789_v12  ;;  %v797_v26 = vmax.f32 %v795_v60, %v796_v15  ;;  %v10317_v27 = vpop.f32.mrf.mxu0  ;;  %v10319_v30 = vpop.f32.mrf.mxu1 }
  0xfc   : > { %v511_v31 = vmax.f32 %v509_v4, %v510_v0  ;;  %v519_v32 = vmax.f32 %v517_v7, %v518_v18  ;;  %v527_v33 = vmax.f32 %v525_v8, %v526_v2  ;;  %v535_v34 = vmax.f32 %v533_v9, %v534_v20 }
  0xfd   : > { %v777_v35 = vrot.slane %v776_v21, 2  ;;  %v784_v38 = vrot.slane %v783_v24, 2  ;;  %v791_v39 = vrot.slane %v790_v25, 2  ;;  %v798_v40 = vrot.slane %v797_v26, 2  ;;  %v8727_v41 = vpop.f32.mrf.mxu0  ;;  %v8752_v46 = vpop.f32.mrf.mxu1 }
  0xfe   : > { %v512_v47 = vrot.slane %v511_v31, 1  ;;  %v520_v48 = vrot.slane %v519_v32, 1  ;;  %v528_v49 = vrot.slane %v527_v33, 1  ;;  %v536_v50 = vrot.slane %v535_v34, 1 }
  0xff   : > { %v778_v51 = vmax.f32 %v776_v21, %v777_v35  ;;  %v785_v52 = vmax.f32 %v783_v24, %v784_v38  ;;  %v792_v53 = vmax.f32 %v790_v25, %v791_v39  ;;  %v799_v54 = vmax.f32 %v797_v26, %v798_v40  ;;  %v10321_v55 = vpop.f32.mrf.mxu0  ;;  %v10323_v56 = vpop.f32.mrf.mxu1 }
 0x100   : > { %v513_v57 = vmax.f32 %v511_v31, %v512_v47  ;;  %v521_v58 = vmax.f32 %v519_v32, %v520_v48  ;;  %v529_v60 = vmax.f32 %v527_v33, %v528_v49  ;;  %v537_v4 = vmax.f32 %v535_v34, %v536_v50 }
 0x101   : > { %v779_v7 = vrot.slane %v778_v51, 1  ;;  %v786_v8 = vrot.slane %v785_v52, 1  ;;  %v793_v9 = vrot.slane %v792_v53, 1  ;;  %v800_v10 = vrot.slane %v799_v54, 1  ;;  %v8730_v11 = vpop.f32.mrf.mxu0  ;;  %v8755_v12 = vpop.f32.mrf.mxu1 }
 0x102   : > { %v601_v15 = vsel %vm375_vm0, %v513_v57, %v521_v58  ;;  %v495_v16 = vsel %vm490_vm4, %v10279_v22, %v10295_v42  ;;  %v763_v17 = vsel %vm490_vm4, %v10281_v23, %v10297_v43  ;;  %v485_v0 = vmax.f32 %v10300_v44, 0.0 }
 0x103   : > { %v603_v18 = vsel %vm602_vm9, %v601_v15, %v529_v60  ;;  %v780_v2 = vmax.f32 %v778_v51, %v779_v7  ;;  %v787_v20 = vmax.f32 %v785_v52, %v786_v8  ;;  %v794_v21 = vmax.f32 %v792_v53, %v793_v9  ;;  %v10334_v24 = vpop.f32.mrf.mxu0  ;;  %v10336_v25 = vpop.f32.mrf.mxu1 }
 0x104   : > { %v750_v26 = vmax.f32 %v10293_v37, 0.0  ;;  %v10340_v31 = vsel %vm604_vm10, %v603_v18, %v537_v4  ;;  %v503_v22 = vmax.f32 %v480_v28, %v495_v16  ;;  %v771_v23 = vmax.f32 %v749_v29, %v763_v17 }
 0x105   : > { %v801_v44 = vmax.f32 %v799_v54, %v800_v10  ;;  %v865_v32 = vsel %vm375_vm0, %v780_v2, %v787_v20  ;;  %v10347_v33 = vrot.slane %v485_v0, 2  ;;  %v754_v34 = vmax.f32 %v10303_v45, 0.0  ;;  %v8733_v35 = vpop.f32.mrf.mxu0  ;;  %v8758_v38 = vpop.f32.mrf.mxu1 }
 0x106   : > { %v866_v39 = vsel %vm602_vm9, %v865_v32, %v794_v21  ;;  %v538_v40 = vsel %vm506_vm5, %v503_v22, -inf  ;;  %v545_v41 = vsel %vm514_vm6, %v503_v22, -inf  ;;  %v552_v13 = vsel %vm522_vm7, %v503_v22, -inf }
 0x107   : > { %v10355_v14 = vsel %vm604_vm10, %v866_v39, %v801_v44  ;;  %v539_v28 = vrot.slane %v538_v40, 4  ;;  %v546_v29 = vrot.slane %v545_v41, 4  ;;  %v553_v46 = vrot.slane %v552_v13, 4  ;;  %v10357_v47 = vpop.f32.mrf.mxu0  ;;  %v10359_v48 = vpop.f32.mrf.mxu1 }
 0x108   : > { %v559_v49 = vsel %vm530_vm8, %v503_v22, -inf  ;;  %v802_v50 = vsel %vm506_vm5, %v771_v23, -inf  ;;  %v809_v51 = vsel %vm514_vm6, %v771_v23, -inf  ;;  %v816_v52 = vsel %vm522_vm7, %v771_v23, -inf }
 0x109   : > { %v540_v53 = vmax.f32 %v538_v40, %v539_v28  ;;  %v547_v54 = vmax.f32 %v545_v41, %v546_v29  ;;  %v554_v57 = vmax.f32 %v552_v13, %v553_v46  ;;  %v560_v58 = vrot.slane %v559_v49, 4  ;;  %v8736_v60 = vpop.f32.mrf.mxu0  ;;  %v8761_v4 = vpop.f32.mrf.mxu1 }
 0x10a   : > { %v803_v7 = vrot.slane %v802_v50, 4  ;;  %v810_v8 = vrot.slane %v809_v51, 4  ;;  %v817_v9 = vrot.slane %v816_v52, 4  ;;  %v823_v10 = vsel %vm530_vm8, %v771_v23, -inf }
 0x10b   : > { %v541_v11 = vrot.slane %v540_v53, 2  ;;  %v548_v12 = vrot.slane %v547_v54, 2  ;;  %v555_v15 = vrot.slane %v554_v57, 2  ;;  %v561_v16 = vmax.f32 %v559_v49, %v560_v58  ;;  %v10366_v17 = vpop.f32.mrf.mxu0  ;;  %v10368_v0 = vpop.f32.mrf.mxu1 }
 0x10c   : > { %v804_v18 = vmax.f32 %v802_v50, %v803_v7  ;;  %v811_v2 = vmax.f32 %v809_v51, %v810_v8  ;;  %v818_v20 = vmax.f32 %v816_v52, %v817_v9  ;;  %v824_v21 = vrot.slane %v823_v10, 4 }
 0x10d   : > { %v542_v22 = vmax.f32 %v540_v53, %v541_v11  ;;  %v549_v44 = vmax.f32 %v547_v54, %v548_v12  ;;  %v556_v32 = vmax.f32 %v554_v57, %v555_v15  ;;  %v562_v35 = vrot.slane %v561_v16, 2  ;;  %v8739_v38 = vpop.f32.mrf.mxu0  ;;  %v8764_v39 = vpop.f32.mrf.mxu1 }
 0x10e   : > { %v805_v23 = vrot.slane %v804_v18, 2  ;;  %v812_v40 = vrot.slane %v811_v2, 2  ;;  %v819_v41 = vrot.slane %v818_v20, 2  ;;  %v825_v13 = vmax.f32 %v823_v10, %v824_v21 }
 0x10f   : > { %v543_v28 = vrot.slane %v542_v22, 1  ;;  %v550_v29 = vrot.slane %v549_v44, 1  ;;  %v557_v46 = vrot.slane %v556_v32, 1  ;;  %v563_v49 = vmax.f32 %v561_v16, %v562_v35  ;;  %v10370_v58 = vpop.f32.mrf.mxu0  ;;  %v10372_v50 = vpop.f32.mrf.mxu1 }
 0x110   : > { %v806_v51 = vmax.f32 %v804_v18, %v805_v23  ;;  %v813_v52 = vmax.f32 %v811_v2, %v812_v40  ;;  %v820_v53 = vmax.f32 %v818_v20, %v819_v41  ;;  %v826_v54 = vrot.slane %v825_v13, 2 }
 0x111   : > { %v544_v57 = vmax.f32 %v542_v22, %v543_v28  ;;  %v551_v60 = vmax.f32 %v549_v44, %v550_v29  ;;  %v558_v4 = vmax.f32 %v556_v32, %v557_v46  ;;  %v564_v7 = vrot.slane %v563_v49, 1  ;;  %v8742_v8 = vpop.f32.mrf.mxu0  ;;  %v8767_v9 = vpop.f32.mrf.mxu1 }
 0x112   : > { %v807_v11 = vrot.slane %v806_v51, 1  ;;  %v814_v10 = vrot.slane %v813_v52, 1  ;;  %v821_v12 = vrot.slane %v820_v53, 1  ;;  %v827_v15 = vmax.f32 %v825_v13, %v826_v54 }
 0x113   : > { %v565_v21 = vmax.f32 %v563_v49, %v564_v7  ;;  %v607_v16 = vsel %vm606_vm11, %v10340_v31, %v544_v57  ;;  %v497_v18 = vsel %vm490_vm4, %v10295_v42, %v10347_v33  ;;  %v505_v2 = vmax.f32 %v482_v6, %v10347_v33  ;;  %v10382_v20 = vpop.f32.mrf.mxu0  ;;  %v10384_v22 = vpop.f32.mrf.mxu1 }
 0x114   : > { %v609_v44 = vsel %vm608_vm12, %v607_v16, %v551_v60  ;;  %v808_v32 = vmax.f32 %v806_v51, %v807_v11  ;;  %v815_v35 = vmax.f32 %v813_v52, %v814_v10  ;;  %v822_v38 = vmax.f32 %v820_v53, %v821_v12 }
 0x115   : > { %v610_v39 = vsel %vm490_vm4, %v609_v44, %v558_v4  ;;  %v828_v31 = vrot.slane %v827_v15, 1  ;;  %v504_v23 = vmax.f32 %v481_v36, %v497_v18  ;;  %v594_v42 = vsel %vm506_vm5, %v505_v2, -inf  ;;  %v8774_v40 = vpop.f32.mrf.mxu0  ;;  %v8799_v62 = vpop.f32.mrf.mxu1 }
 0x116   : > { %v612_v6 = vsel %vm611_vm13, %v610_v39, %v565_v21  ;;  %v868_v33 = vsel %vm606_vm11, %v10355_v14, %v808_v32  ;;  %v595_v41 = vrot.slane %v594_v42, 4  ;;  %v764_v13 = vrot.slane %v754_v34, 2 }
 0x117   : > { %617 = vst.msk [vmem:[#allocation2] sm:$0xff] %vm341_vm3, %v612_v6  ;;  %v829_v28 = vmax.f32 %v827_v15, %v828_v31  ;;  %v869_v29 = vsel %vm608_vm12, %v868_v33, %v815_v35  ;;  %v566_v19 = vsel %vm506_vm5, %v504_v23, -inf  ;;  %v573_v36 = vsel %vm514_vm6, %v504_v23, -inf  ;;  %v10400_v46 = vpop.f32.mrf.mxu0  ;;  %v10402_v49 = vpop.f32.mrf.mxu1 }
 0x118   : > { %v870_v51 = vsel %vm490_vm4, %v869_v29, %v822_v38  ;;  %v567_v14 = vrot.slane %v566_v19, 4  ;;  %v574_v52 = vrot.slane %v573_v36, 4  ;;  %v580_v45 = vsel %vm522_vm7, %v504_v23, -inf }
 0x119   : > { %v871_v34 = vsel %vm611_vm13, %v870_v51, %v829_v28  ;;  %v581_v53 = vrot.slane %v580_v45, 4  ;;  %v587_v54 = vsel %vm530_vm8, %v504_v23, -inf  ;;  %v596_v57 = vmax.f32 %v594_v42, %v595_v41  ;;  %v8777_v60 = vpop.f32.mrf.mxu0  ;;  %v8802_v4 = vpop.f32.mrf.mxu1 }
 0x11a   : > { %876 = vst.msk [vmem:[#allocation2 + $0xd] sm:$0xff] %vm341_vm3, %v871_v34  ;;  %v568_v7 = vmax.f32 %v566_v19, %v567_v14  ;;  %v575_v8 = vmax.f32 %v573_v36, %v574_v52  ;;  %v588_v9 = vrot.slane %v587_v54, 4  ;;  %v765_v11 = vsel %vm490_vm4, %v10297_v43, %v764_v13 }
 0x11b   : > { %v582_v10 = vmax.f32 %v580_v45, %v581_v53  ;;  %v597_v12 = vrot.slane %v596_v57, 2  ;;  %v772_v15 = vmax.f32 %v750_v26, %v765_v11  ;;  %v10415_v21 = vadd.f32 %v10252_v59, %v10313_v61  ;;  %v10417_v16 = vpop.f32.mrf.mxu0  ;;  %v10419_v18 = vpop.f32.mrf.mxu1 }
 0x11c   : > { %v569_v2 = vrot.slane %v568_v7, 2  ;;  %v576_v44 = vrot.slane %v575_v8, 2  ;;  %v589_v32 = vmax.f32 %v587_v54, %v588_v9  ;;  %v773_v35 = vmax.f32 %v751_v5, %v764_v13 }
 0x11d   : > { %v583_v43 = vrot.slane %v582_v10, 2  ;;  %v598_v38 = vmax.f32 %v596_v57, %v597_v12  ;;  %v830_v37 = vsel %vm506_vm5, %v772_v15, -inf  ;;  %v837_v26 = vsel %vm514_vm6, %v772_v15, -inf  ;;  %v8780_v39 = vpop.f32.mrf.mxu0  ;;  %v8805_v61 = vpop.f32.mrf.mxu1 }
 0x11e   : > { %v570_v31 = vmax.f32 %v568_v7, %v569_v2  ;;  %v577_v23 = vmax.f32 %v575_v8, %v576_v44  ;;  %v590_v42 = vrot.slane %v589_v32, 2  ;;  %v831_v40 = vrot.slane %v830_v37, 4  ;;  %v3722_v62 = vld [vmem:[#allocation2] sm:$0xff] }
 0x11f   : > { %v584_v6 = vmax.f32 %v582_v10, %v583_v43  ;;  %v599_v33 = vrot.slane %v598_v38, 1  ;;  %v838_v41 = vrot.slane %v837_v26, 4  ;;  %v844_v63 = vsel %vm522_vm7, %v772_v15, -inf  ;;  %9009 = vmatprep.mubr.msk.f32.mxu1 %vm341_vm3, %v3722_v62  ;;  %v10427_v5 = vpop.f32.mrf.mxu0  ;;  %v10429_v13 = vpop.f32.mrf.mxu1 }
 0x120   : > { %v571_v28 = vrot.slane %v570_v31, 1  ;;  %v578_v29 = vrot.slane %v577_v23, 1  ;;  %v591_v19 = vmax.f32 %v589_v32, %v590_v42  ;;  %v832_v36 = vmax.f32 %v830_v37, %v831_v40 }
 0x121   : > { %v585_v51 = vrot.slane %v584_v6, 1  ;;  %v600_v14 = vmax.f32 %v598_v38, %v599_v33  ;;  %v839_v52 = vmax.f32 %v837_v26, %v838_v41  ;;  %v845_v45 = vrot.slane %v844_v63, 4  ;;  %v8783_v34 = vpop.f32.mrf.mxu0  ;;  %v8808_v53 = vpop.f32.mrf.mxu1 }
 0x122   : > { %v572_v54 = vmax.f32 %v570_v31, %v571_v28  ;;  %v579_v57 = vmax.f32 %v577_v23, %v578_v29  ;;  %v592_v60 = vrot.slane %v591_v19, 1  ;;  %v833_v4 = vrot.slane %v832_v36, 2 }
 0x123   : > { %v586_v7 = vmax.f32 %v584_v6, %v585_v51  ;;  %v840_v8 = vrot.slane %v839_v52, 2  ;;  %v846_v9 = vmax.f32 %v844_v63, %v845_v45  ;;  %v851_v11 = vsel %vm530_vm8, %v772_v15, -inf  ;;  %v10432_v10 = vpop.f32.mrf.mxu0  ;;  %v10434_v12 = vpop.f32.mrf.mxu1 }
 0x124   : > { %v593_v2 = vmax.f32 %v591_v19, %v592_v60  ;;  %v613_v44 = vsel %vm375_vm0, %v572_v54, %v579_v57  ;;  %v834_v32 = vmax.f32 %v832_v36, %v833_v4  ;;  %v852_v43 = vrot.slane %v851_v11, 4 }
 0x125   : > { %v614_v38 = vsel %vm602_vm9, %v613_v44, %v586_v7  ;;  %v841_v37 = vmax.f32 %v839_v52, %v840_v8  ;;  %v847_v26 = vrot.slane %v846_v9, 2  ;;  %v858_v39 = vsel %vm506_vm5, %v773_v35, -inf  ;;  %v8786_v61 = vpop.f32.mrf.mxu0  ;;  %v8811_v31 = vpop.f32.mrf.mxu1 }
 0x126   : > { %v615_v23 = vsel %vm604_vm10, %v614_v38, %v593_v2  ;;  %v835_v15 = vrot.slane %v834_v32, 1  ;;  %v853_v42 = vmax.f32 %v851_v11, %v852_v43  ;;  %v859_v40 = vrot.slane %v858_v39, 4 }
 0x127   : > { %v616_v62 = vsel %vm606_vm11, %v615_v23, %v600_v14  ;;  %v842_v6 = vrot.slane %v841_v37, 1  ;;  %v848_v33 = vmax.f32 %v846_v9, %v847_v26  ;;  %v10443_v41 = vadd.f32 %v10252_v59, %v10315_v3  ;;  %v10445_v63 = vpop.f32.mrf.mxu0  ;;  %v10447_v28 = vpop.f32.mrf.mxu1 }
 0x128   : > { %619 = vst.msk [vmem:[#allocation2 + $0x8] sm:$0x1f] %vm618_vm14, %v616_v62  ;;  %v836_v35 = vmax.f32 %v834_v32, %v835_v15  ;;  %v854_v29 = vrot.slane %v853_v42, 2  ;;  %v860_v19 = vmax.f32 %v858_v39, %v859_v40  ;;  %v10452_v36 = vadd.f32 %v10252_v59, %v10317_v27 }
 0x129   : > { %v843_v51 = vmax.f32 %v841_v37, %v842_v6  ;;  %v849_v14 = vrot.slane %v848_v33, 1  ;;  %v1006_v52 = vmax.f32 %v10415_v21, 0.0  ;;  %v10457_v3 = vadd.f32 %v10252_v59, %v10319_v30  ;;  %v8789_v45 = vpop.f32.mrf.mxu0  ;;  %v8814_v34 = vpop.f32.mrf.mxu1 }
 0x12a   : > { %v855_v53 = vmax.f32 %v853_v42, %v854_v29  ;;  %v861_v54 = vrot.slane %v860_v19, 2  ;;  %v1264_v57 = vmax.f32 %v10443_v41, 0.0  ;;  %v10462_v60 = vadd.f32 %v10252_v59, %v10321_v55 }
 0x12b   : > { %v850_v27 = vmax.f32 %v848_v33, %v849_v14  ;;  %v872_v4 = vsel %vm375_vm0, %v836_v35, %v843_v51  ;;  %v10467_v8 = vpop.f32.mrf.mxu0  ;;  %v10469_v30 = vpop.f32.mrf.mxu1  ;;  %v10473_v2 = vadd.f32 %v10252_v59, %v10323_v56  ;;  %v10477_v55 = vadd.f32 %v10252_v59, %v10334_v24 }
 0x12c   : > { %v856_v9 = vrot.slane %v855_v53, 1  ;;  %v862_v11 = vmax.f32 %v860_v19, %v861_v54  ;;  %v10483_v43 = vadd.f32 %v10252_v59, %v10336_v25  ;;  %v993_v38 = vadd.f32 %v10252_v59, %v10357_v47 }
 0x12d   : > { %v873_v44 = vsel %vm602_vm9, %v872_v4, %v850_v27  ;;  %v8792_v37 = vpop.f32.mrf.mxu0  ;;  %v8817_v26 = vpop.f32.mrf.mxu1  ;;  %v12412_v61 = vmax.f32 %v10477_v55, 0.0  ;;  %v1251_v24 = vadd.f32 %v10252_v59, %v10359_v48  ;;  %v998_v15 = vadd.f32 %v10252_v59, %v10366_v17 }
 0x12e   : > { %v857_v39 = vmax.f32 %v855_v53, %v856_v9  ;;  %v863_v56 = vrot.slane %v862_v11, 1  ;;  %v12411_v31 = vmax.f32 %v10483_v43, 0.0  ;;  %v1010_v23 = vmax.f32 %v993_v38, 0.0 }
 0x12f   : > { %v1256_v25 = vadd.f32 %v10252_v59, %v10368_v0  ;;  %v3723_v42 = vld [vmem:[#allocation2 + $0x8] sm:$0xff]  ;;  %v10495_v62 = vpop.f32.mrf.mxu0  ;;  %v10497_v6 = vpop.f32.mrf.mxu1  ;;  %v1017_v48 = vrot.slane %v12412_v61, 2  ;;  %v1268_v35 = vmax.f32 %v1251_v24, 0.0  ;;  %v1011_v29 = vmax.f32 %v998_v15, 0.0 }
 0x130   : > { %v3971_v47 = vld [vmem:[#allocation2 + $0x1] sm:$0xff]  ;;  %v3972_v40 = vld [vmem:[#allocation2 + $0x9] sm:$0xff]  ;;  %v864_v33 = vmax.f32 %v862_v11, %v863_v56  ;;  %v874_v41 = vsel %vm604_vm10, %v873_v44, %v857_v39  ;;  %9010 = vmatmul.mubr.msk.f32.vlgmr.msra.gmra.mxu1 %vm341_vm3, %v3723_v42  ;;  %v1275_v17 = vrot.slane %v12411_v31, 2  ;;  %v1018_v0 = vrot.slane %v1010_v23, 2 }
 0x131   : > { %9052 = vmatprep.mubr.msk.f32.mxu0 %vm341_vm3, %v3971_v47  ;;  %v1269_v19 = vmax.f32 %v1256_v25, 0.0  ;;  %v8824_v51 = vpop.f32.mrf.mxu0  ;;  %v8849_v14 = vpop.f32.mrf.mxu1  ;;  %v1276_v34 = vrot.slane %v1268_v35, 2  ;;  %v10510_v53 = vadd.f32 %v10252_v59, %v10370_v58  ;;  %v10514_v54 = vadd.f32 %v10252_v59, %v10372_v50 }
 0x132   : > { %9053 = vmatmul.mubr.msk.f32.vlgmr.msra.gmra.mxu0 %vm341_vm3, %v3972_v40  ;;  %v875_v45 = vsel %vm606_vm11, %v874_v41, %v864_v33  ;;  %v1019_v4 = vsel %vm490_vm4, %v1017_v48, %v1018_v0  ;;  %v10519_v9 = vrot.slane %v1011_v29, 2  ;;  %v10531_v26 = vadd.f32 %v10252_v59, %v10382_v20 }
 0x133   : > { %877 = vst.msk [vmem:[#allocation2 + $0x15] sm:$0x1f] %vm618_vm14, %v875_v45  ;;  %v10521_v11 = vrot.slane %v1269_v19, 2  ;;  %v10523_v44 = vpop.f32.mrf.mxu0  ;;  %v10525_v38 = vpop.f32.mrf.mxu1  ;;  %v1028_v58 = vmax.f32 %v1006_v52, %v1019_v4  ;;  %v1277_v37 = vsel %vm490_vm4, %v1275_v17, %v1276_v34 }
 0x134   : > { %12420 = vst [vmem:[#allocation7_spill] sm:$0xff] %v10523_v44  ;;  %12421 = vst [vmem:[#allocation8_spill] sm:$0xff] %v10525_v38  ;;  %v1286_v39 = vmax.f32 %v1264_v57, %v1277_v37  ;;  %v10535_v56 = vsel %vm490_vm4, %v1018_v0, %v10519_v9 }
 0x135   : > { %v10539_v24 = vsel %vm490_vm4, %v1276_v34, %v10521_v11  ;;  %v8827_v52 = vpop.f32.mrf.mxu0  ;;  %v8852_v15 = vpop.f32.mrf.mxu1  ;;  %v1032_v25 = vsel %vm506_vm5, %v1028_v58, -inf  ;;  %v1039_v42 = vsel %vm514_vm6, %v1028_v58, -inf  ;;  %v1046_v59 = vsel %vm522_vm7, %v1028_v58, -inf }
 0x136   : > { %v1053_v20 = vsel %vm530_vm8, %v1028_v58, -inf  ;;  %v1033_v57 = vrot.slane %v1032_v25, 4  ;;  %v1040_v47 = vrot.slane %v1039_v42, 4  ;;  %v1047_v40 = vrot.slane %v1046_v59, 4 }
 0x137   : > { %v1054_v33 = vrot.slane %v1053_v20, 4  ;;  %v10546_v41 = vpop.f32.mrf.mxu0  ;;  %v10548_v48 = vpop.f32.mrf.mxu1  ;;  %v1290_v35 = vsel %vm506_vm5, %v1286_v39, -inf  ;;  %v1297_v17 = vsel %vm514_vm6, %v1286_v39, -inf  ;;  %v1304_v0 = vsel %vm522_vm7, %v1286_v39, -inf }
 0x138   : > { %12422 = vst [vmem:[#allocation9_spill] sm:$0xff] %v10546_v41  ;;  %12423 = vst [vmem:[#allocation10_spill] sm:$0xff] %v10548_v48  ;;  %v1311_v29 = vsel %vm530_vm8, %v1286_v39, -inf  ;;  %v1034_v19 = vmax.f32 %v1032_v25, %v1033_v57  ;;  %v1041_v51 = vmax.f32 %v1039_v42, %v1040_v47  ;;  %v1048_v14 = vmax.f32 %v1046_v59, %v1047_v40 }
 0x139   : > { %v1055_v45 = vmax.f32 %v1053_v20, %v1054_v33  ;;  %v8830_v34 = vpop.f32.mrf.mxu0  ;;  %v8855_v4 = vpop.f32.mrf.mxu1  ;;  %v1291_v58 = vrot.slane %v1290_v35, 4  ;;  %v1298_v37 = vrot.slane %v1297_v17, 4  ;;  %v1305_v52 = vrot.slane %v1304_v0, 4 }
 0x13a   : > { %v1312_v15 = vrot.slane %v1311_v29, 4  ;;  %v3724_v1 = vld [vmem:[#allocation2 + $0x10] sm:$0xff]  ;;  %v1035_v31 = vrot.slane %v1034_v19, 2  ;;  %v1042_v23 = vrot.slane %v1041_v51, 2  ;;  %v1049_v61 = vrot.slane %v1048_v14, 2 }
 0x13b   : > { %v3973_v27 = vld [vmem:[#allocation2 + $0x11] sm:$0xff]  ;;  %v1056_v32 = vrot.slane %v1055_v45, 2  ;;  %9012 = vmatprep.mubr.msk.f32.mxu1 %vm341_vm3, %v3724_v1  ;;  %v10556_v39 = vpop.f32.mrf.mxu0  ;;  %v10558_v25 = vpop.f32.mrf.mxu1  ;;  %v1292_v42 = vmax.f32 %v1290_v35, %v1291_v58  ;;  %v1299_v59 = vmax.f32 %v1297_v17, %v1298_v37  ;;  %v1306_v20 = vmax.f32 %v1304_v0, %v1305_v52 }
 0x13c   : > { %9055 = vmatprep.mubr.msk.f32.mxu0 %vm341_vm3, %v3973_v27  ;;  %12424 = vst [vmem:[#allocation11_spill] sm:$0xff] %v10556_v39  ;;  %v1313_v57 = vmax.f32 %v1311_v29, %v1312_v15  ;;  %v1036_v47 = vmax.f32 %v1034_v19, %v1035_v31  ;;  %v1043_v40 = vmax.f32 %v1041_v51, %v1042_v23  ;;  %v12425_v15 = vmax.f32 %v10452_v36, 0.0 }
 0x13d   : > { %v1050_v33 = vmax.f32 %v1048_v14, %v1049_v61  ;;  %v1057_v34 = vmax.f32 %v1055_v45, %v1056_v32  ;;  %v8833_v4 = vpop.f32.mrf.mxu0  ;;  %v8858_v50 = vpop.f32.mrf.mxu1  ;;  %v1293_v21 = vrot.slane %v1292_v42, 2  ;;  %v1300_v7 = vrot.slane %v1299_v59, 2 }
 0x13e   : > { %v1307_v48 = vrot.slane %v1306_v20, 2  ;;  %v1314_v1 = vrot.slane %v1313_v57, 2  ;;  %v1037_v41 = vrot.slane %v1036_v47, 1  ;;  %v1044_v27 = vrot.slane %v1043_v40, 1 }
 0x13f   : > { %v1051_v38 = vrot.slane %v1050_v33, 1  ;;  %v1058_v39 = vrot.slane %v1057_v34, 1  ;;  %v10560_v44 = vpop.f32.mrf.mxu0  ;;  %v10562_v35 = vpop.f32.mrf.mxu1  ;;  %v1294_v17 = vmax.f32 %v1292_v42, %v1293_v21  ;;  %v1301_v0 = vmax.f32 %v1299_v59, %v1300_v7 }
 0x140   : > { %v1308_v31 = vmax.f32 %v1306_v20, %v1307_v48  ;;  %v1315_v23 = vmax.f32 %v1313_v57, %v1314_v1  ;;  %v1038_v61 = vmax.f32 %v1036_v47, %v1037_v41  ;;  %v1045_v32 = vmax.f32 %v1043_v40, %v1044_v27 }
 0x141   : > { %v1052_v29 = vmax.f32 %v1050_v33, %v1051_v38  ;;  %v1059_v50 = vmax.f32 %v1057_v34, %v1058_v39  ;;  %v8836_v19 = vpop.f32.mrf.mxu0  ;;  %v8861_v51 = vpop.f32.mrf.mxu1  ;;  %v1295_v14 = vrot.slane %v1294_v17, 1  ;;  %v1302_v45 = vrot.slane %v1301_v0, 1 }
 0x142   : > { %v1309_v58 = vrot.slane %v1308_v31, 1  ;;  %v1316_v37 = vrot.slane %v1315_v23, 1  ;;  %v1123_v52 = vsel %vm375_vm0, %v1038_v61, %v1045_v32  ;;  %v1029_v4 = vmax.f32 %v12425_v15, %v10535_v56 }
 0x143   : > { %v12426_v7 = vmax.f32 %v10457_v3, 0.0  ;;  %v12427_v41 = vmax.f32 %v10510_v53, 0.0  ;;  %v10575_v48 = vpop.f32.mrf.mxu0  ;;  %v10577_v39 = vpop.f32.mrf.mxu1  ;;  %v1124_v42 = vsel %vm602_vm9, %v1123_v52, %v1052_v29  ;;  %v1296_v59 = vmax.f32 %v1294_v17, %v1295_v14 }
 0x144   : > { %v1303_v20 = vmax.f32 %v1301_v0, %v1302_v45  ;;  %v1310_v57 = vmax.f32 %v1308_v31, %v1309_v58  ;;  %v1125_v36 = vsel %vm604_vm10, %v1124_v42, %v1059_v50  ;;  %v1317_v56 = vmax.f32 %v1315_v23, %v1316_v37 }
 0x145   : > { %v1287_v21 = vmax.f32 %v12426_v7, %v10539_v24  ;;  %v10573_v38 = vrot.slane %v12427_v41, 2  ;;  %v1060_v47 = vsel %vm506_vm5, %v1029_v4, -inf  ;;  %v1067_v3 = vsel %vm514_vm6, %v1029_v4, -inf  ;;  %v8839_v24 = vpop.f32.mrf.mxu0  ;;  %v8864_v53 = vpop.f32.mrf.mxu1 }
 0x146   : > { %v1381_v40 = vsel %vm375_vm0, %v1296_v59, %v1303_v20  ;;  %v1061_v33 = vrot.slane %v1060_v47, 4  ;;  %v1068_v34 = vrot.slane %v1067_v3, 4  ;;  %v1074_v1 = vsel %vm522_vm7, %v1029_v4, -inf }
 0x147   : > { %v1382_v27 = vsel %vm602_vm9, %v1381_v40, %v1310_v57  ;;  %v1075_v17 = vrot.slane %v1074_v1, 4  ;;  %v1081_v0 = vsel %vm530_vm8, %v1029_v4, -inf  ;;  %v1318_v31 = vsel %vm506_vm5, %v1287_v21, -inf  ;;  %v10588_v23 = vpop.f32.mrf.mxu0 }
 0x148   : > { %v1383_v61 = vsel %vm604_vm10, %v1382_v27, %v1317_v56  ;;  %v1062_v32 = vmax.f32 %v1060_v47, %v1061_v33  ;;  %v1069_v29 = vmax.f32 %v1067_v3, %v1068_v34  ;;  %v1082_v50 = vrot.slane %v1081_v0, 4 }
 0x149   : > { %v1076_v19 = vmax.f32 %v1074_v1, %v1075_v17  ;;  %v1319_v51 = vrot.slane %v1318_v31, 4  ;;  %v1325_v14 = vsel %vm514_vm6, %v1287_v21, -inf  ;;  %v1332_v45 = vsel %vm522_vm7, %v1287_v21, -inf  ;;  %v8842_v58 = vpop.f32.mrf.mxu0 }
 0x14a   : > { %v1063_v37 = vrot.slane %v1062_v32, 2  ;;  %v1070_v52 = vrot.slane %v1069_v29, 2  ;;  %v1083_v15 = vmax.f32 %v1081_v0, %v1082_v50  ;;  %v1326_v4 = vrot.slane %v1325_v14, 4 }
 0x14b   : > { %v1077_v7 = vrot.slane %v1076_v19, 2  ;;  %v1320_v41 = vmax.f32 %v1318_v31, %v1319_v51  ;;  %v1333_v42 = vrot.slane %v1332_v45, 4  ;;  %v1339_v59 = vsel %vm530_vm8, %v1287_v21, -inf  ;;  %v10594_v31 = vpop.f32.mrf.mxu1 }
 0x14c   : > { %v1064_v20 = vmax.f32 %v1062_v32, %v1063_v37  ;;  %v1071_v57 = vmax.f32 %v1069_v29, %v1070_v52  ;;  %v1084_v56 = vrot.slane %v1083_v15, 2  ;;  %v1327_v47 = vmax.f32 %v1325_v14, %v1326_v4 }
 0x14d   : > { %v1078_v3 = vmax.f32 %v1076_v19, %v1077_v7  ;;  %v1321_v24 = vrot.slane %v1320_v41, 2  ;;  %v1334_v53 = vmax.f32 %v1332_v45, %v1333_v42  ;;  %v1340_v40 = vrot.slane %v1339_v59, 4  ;;  %v8867_v45 = vpop.f32.mrf.mxu1 }
 0x14e   : > { %v1065_v33 = vrot.slane %v1064_v20, 1  ;;  %v1072_v34 = vrot.slane %v1071_v57, 1  ;;  %v1085_v1 = vmax.f32 %v1083_v15, %v1084_v56  ;;  %v1328_v27 = vrot.slane %v1327_v47, 2 }
 0x14f   : > { %v1079_v17 = vrot.slane %v1078_v3, 1  ;;  %v1322_v0 = vmax.f32 %v1320_v41, %v1321_v24  ;;  %v1335_v50 = vrot.slane %v1334_v53, 2  ;;  %v1341_v58 = vmax.f32 %v1339_v59, %v1340_v40 }
 0x150   : > { %v1066_v51 = vmax.f32 %v1064_v20, %v1065_v33  ;;  %v1073_v21 = vmax.f32 %v1071_v57, %v1072_v34  ;;  %v1086_v32 = vrot.slane %v1085_v1, 1  ;;  %v1329_v29 = vmax.f32 %v1327_v47, %v1328_v27 }
 0x151   : > { %v1080_v37 = vmax.f32 %v1078_v3, %v1079_v17  ;;  %v1323_v14 = vrot.slane %v1322_v0, 1  ;;  %v1336_v19 = vmax.f32 %v1334_v53, %v1335_v50  ;;  %v1342_v52 = vrot.slane %v1341_v58, 2 }
 0x152   : > { %v1087_v4 = vmax.f32 %v1085_v1, %v1086_v32  ;;  %v1126_v7 = vsel %vm606_vm11, %v1125_v36, %v1066_v51  ;;  %v1330_v15 = vrot.slane %v1329_v29, 1  ;;  %v1023_v41 = vsel %vm490_vm4, %v10519_v9, %v10573_v38 }
 0x153   : > { %v1127_v42 = vsel %vm608_vm12, %v1126_v7, %v1073_v21  ;;  %v1324_v59 = vmax.f32 %v1322_v0, %v1323_v14  ;;  %v1337_v20 = vrot.slane %v1336_v19, 1  ;;  %v1343_v57 = vmax.f32 %v1341_v58, %v1342_v52 }
 0x154   : > { %v1128_v56 = vsel %vm490_vm4, %v1127_v42, %v1080_v37  ;;  %v1331_v47 = vmax.f32 %v1329_v29, %v1330_v15  ;;  %v12428_v3 = vmax.f32 %v10462_v60, 0.0  ;;  %v12429_v53 = vmax.f32 %v10477_v55, 0.0 }
 0x155   : > { %v1129_v40 = vsel %vm611_vm13, %v1128_v56, %v1087_v4  ;;  %v1338_v33 = vmax.f32 %v1336_v19, %v1337_v20  ;;  %v1344_v34 = vrot.slane %v1343_v57, 1  ;;  %v1384_v9 = vsel %vm606_vm11, %v1383_v61, %v1324_v59 }
 0x156   : > { %v1030_v24 = vmax.f32 %v12428_v3, %v1023_v41  ;;  %v1031_v36 = vmax.f32 %v12429_v53, %v10573_v38  ;;  %1134 = vst.msk [vmem:[#allocation2 + $0x1a] sm:$0xff] %vm341_vm3, %v1129_v40  ;;  %v1385_v1 = vsel %vm608_vm12, %v1384_v9, %v1331_v47  ;;  %v12430_v21 = vmax.f32 %v10514_v54, 0.0  ;;  %v10631_v3 = vld [vmem:[%s12401_s2] ss:$0 sm:$0xff] }
 0x157   : > { %v1345_v0 = vmax.f32 %v1343_v57, %v1344_v34  ;;  %v1386_v55 = vsel %vm490_vm4, %v1385_v1, %v1338_v33  ;;  %v12431_v7 = vmax.f32 %v10483_v43, 0.0  ;;  %v12432_v54 = vmax.f32 %v10473_v2, 0.0 }
 0x158   : > { %v1088_v27 = vsel %vm506_vm5, %v1030_v24, -inf  ;;  %v1095_v17 = vsel %vm514_vm6, %v1030_v24, -inf  ;;  %v1102_v60 = vsel %vm522_vm7, %v1030_v24, -inf  ;;  %v1109_v51 = vsel %vm530_vm8, %v1030_v24, -inf }
 0x159   : > { %v1089_v38 = vrot.slane %v1088_v27, 4  ;;  %v1096_v50 = vrot.slane %v1095_v17, 4  ;;  %v1103_v58 = vrot.slane %v1102_v60, 4  ;;  %v1116_v61 = vsel %vm506_vm5, %v1031_v36, -inf }
 0x15a   : > { %v1280_v32 = vrot.slane %v12430_v21, 2  ;;  %v1387_v29 = vsel %vm611_vm13, %v1386_v55, %v1345_v0  ;;  %v1110_v19 = vrot.slane %v1109_v51, 4  ;;  %v1117_v45 = vrot.slane %v1116_v61, 4 }
 0x15b   : > { %v1090_v37 = vmax.f32 %v1088_v27, %v1089_v38  ;;  %v1097_v14 = vmax.f32 %v1095_v17, %v1096_v50  ;;  %1392 = vst.msk [vmem:[#allocation2 + $0x27] sm:$0xff] %vm341_vm3, %v1387_v29  ;;  %v1104_v52 = vmax.f32 %v1102_v60, %v1103_v58  ;;  %v10641_v27 = vpop.f32.mrf.mxu0 }
 0x15c   : > { %v1281_v4 = vsel %vm490_vm4, %v10521_v11, %v1280_v32  ;;  %v1289_v15 = vmax.f32 %v12431_v7, %v1280_v32  ;;  %v1111_v59 = vmax.f32 %v1109_v51, %v1110_v19  ;;  %v1118_v56 = vmax.f32 %v1116_v61, %v1117_v45 }
 0x15d   : > { %v1091_v41 = vrot.slane %v1090_v37, 2  ;;  %v1098_v42 = vrot.slane %v1097_v14, 2  ;;  %v1288_v20 = vmax.f32 %v12432_v54, %v1281_v4  ;;  %v1105_v57 = vrot.slane %v1104_v52, 2  ;;  %v3725_v2 = vld [vmem:[#allocation2 + $0x18] sm:$0xff]  ;;  %v8874_v61 = vpop.f32.mrf.mxu0 }
 0x15e   : > { %v1374_v47 = vsel %vm506_vm5, %v1289_v15, -inf  ;;  %v10635_v11 = vadd.f32 %v10631_v3, %v10384_v22  ;;  %v1112_v53 = vrot.slane %v1111_v59, 2  ;;  %v3974_v40 = vld [vmem:[#allocation2 + $0x19] sm:$0xff]  ;;  %v1119_v34 = vrot.slane %v1118_v56, 2  ;;  %9013 = vmatmul.mubr.msk.f32.gmra.mxu1 %vm341_vm3, %v3725_v2  ;;  %v10643_v22 = vpop.f32.mrf.mxu1 }
 0x15f   : > { %v1092_v43 = vmax.f32 %v1090_v37, %v1091_v41  ;;  %v1099_v24 = vmax.f32 %v1097_v14, %v1098_v42  ;;  %v1346_v36 = vsel %vm506_vm5, %v1288_v20, -inf  ;;  %v1106_v33 = vmax.f32 %v1104_v52, %v1105_v57  ;;  %9056 = vmatmul.mubr.msk.f32.gmra.mxu0 %vm341_vm3, %v3974_v40  ;;  %v10646_v7 = vpop.f32.mrf.mxu0 }
 0x160   : > { %v1347_v9 = vrot.slane %v1346_v36, 4  ;;  %v1353_v1 = vsel %vm514_vm6, %v1288_v20, -inf  ;;  %v1113_v0 = vmax.f32 %v1111_v59, %v1112_v53  ;;  %v1120_v50 = vmax.f32 %v1118_v56, %v1119_v34  ;;  %v8899_v21 = vpop.f32.mrf.mxu1 }
 0x161   : > { %v1093_v17 = vrot.slane %v1092_v43, 1  ;;  %v1100_v60 = vrot.slane %v1099_v24, 1  ;;  %v1354_v55 = vrot.slane %v1353_v1, 4  ;;  %v1107_v38 = vrot.slane %v1106_v33, 1  ;;  %v8877_v53 = vpop.f32.mrf.mxu0 }
 0x162   : > { %v1348_v58 = vmax.f32 %v1346_v36, %v1347_v9  ;;  %v1360_v51 = vsel %vm522_vm7, %v1288_v20, -inf  ;;  %v1114_v37 = vrot.slane %v1113_v0, 1  ;;  %v1121_v52 = vrot.slane %v1120_v50, 1  ;;  %v10648_v15 = vpop.f32.mrf.mxu1 }
 0x163   : > { %v1094_v32 = vmax.f32 %v1092_v43, %v1093_v17  ;;  %v1101_v29 = vmax.f32 %v1099_v24, %v1100_v60  ;;  %v1355_v14 = vmax.f32 %v1353_v1, %v1354_v55  ;;  %v1108_v19 = vmax.f32 %v1106_v33, %v1107_v38 }
 0x164   : > { %v1349_v45 = vrot.slane %v1348_v58, 2  ;;  %v1361_v4 = vrot.slane %v1360_v51, 4  ;;  %v1115_v41 = vmax.f32 %v1113_v0, %v1114_v37  ;;  %v1367_v54 = vsel %vm530_vm8, %v1288_v20, -inf  ;;  %v8902_v36 = vpop.f32.mrf.mxu1  ;;  %v10656_v0 = vpop.f32.mrf.mxu0 }
 0x165   : > { %v1130_v42 = vsel %vm375_vm0, %v1094_v32, %v1101_v29  ;;  %v1356_v59 = vrot.slane %v1355_v14, 2  ;;  %v1122_v57 = vmax.f32 %v1120_v50, %v1121_v52  ;;  %v1368_v33 = vrot.slane %v1367_v54, 4 }
 0x166   : > { %v1131_v56 = vsel %vm602_vm9, %v1130_v42, %v1108_v19  ;;  %v1350_v43 = vmax.f32 %v1348_v58, %v1349_v45  ;;  %v1362_v24 = vmax.f32 %v1360_v51, %v1361_v4  ;;  %v1375_v34 = vrot.slane %v1374_v47, 4  ;;  %v10658_v20 = vpop.f32.mrf.mxu1  ;;  %v8880_v29 = vpop.f32.mrf.mxu0 }
 0x167   : > { %v1132_v2 = vsel %vm604_vm10, %v1131_v56, %v1115_v41  ;;  %v1357_v40 = vmax.f32 %v1355_v14, %v1356_v59  ;;  %v1522_v60 = vmax.f32 %v10531_v26, 0.0  ;;  %v1369_v38 = vmax.f32 %v1367_v54, %v1368_v33 }
 0x168   : > { %v1133_v9 = vsel %vm606_vm11, %v1132_v2, %v1122_v57  ;;  %v1351_v1 = vrot.slane %v1350_v43, 1  ;;  %v1363_v17 = vrot.slane %v1362_v24, 2  ;;  %v1376_v50 = vmax.f32 %v1374_v47, %v1375_v34  ;;  %v8905_v37 = vpop.f32.mrf.mxu1 }
 0x169   : > { %1135 = vst.msk [vmem:[#allocation2 + $0x22] sm:$0x1f] %vm618_vm14, %v1133_v9  ;;  %v1358_v55 = vrot.slane %v1357_v40, 1  ;;  %v10663_v58 = vadd.f32 %v10631_v3, %v10400_v46  ;;  %v10667_v21 = vadd.f32 %v10631_v3, %v10402_v49  ;;  %v10671_v32 = vadd.f32 %v10631_v3, %v10417_v16  ;;  %v10677_v49 = vpop.f32.mrf.mxu0 }
 0x16a   : > { %v1352_v51 = vmax.f32 %v1350_v43, %v1351_v1  ;;  %v1364_v61 = vmax.f32 %v1362_v24, %v1363_v17  ;;  %v1370_v19 = vrot.slane %v1369_v38, 2  ;;  %v1377_v52 = vrot.slane %v1376_v50, 2  ;;  %v10679_v42 = vpop.f32.mrf.mxu1 }
 0x16b   : > { %v1359_v14 = vmax.f32 %v1357_v40, %v1358_v55  ;;  %v1780_v47 = vmax.f32 %v10635_v11, 0.0  ;;  %v10684_v57 = vadd.f32 %v10631_v3, %v10427_v5  ;;  %v10688_v56 = vadd.f32 %v10631_v3, %v10419_v18  ;;  %v8883_v53 = vpop.f32.mrf.mxu0 }
 0x16c   : > { %v1365_v45 = vrot.slane %v1364_v61, 1  ;;  %v1371_v16 = vmax.f32 %v1369_v38, %v1370_v19  ;;  %v1378_v59 = vmax.f32 %v1376_v50, %v1377_v52  ;;  %v10692_v43 = vadd.f32 %v10631_v3, %v10429_v13  ;;  %v8908_v36 = vpop.f32.mrf.mxu1 }
 0x16d   : > { %v1388_v54 = vsel %vm375_vm0, %v1352_v51, %v1359_v14  ;;  %v1509_v24 = vadd.f32 %v10631_v3, %v10432_v10  ;;  %v12414_v33 = vmax.f32 %v10684_v57, 0.0  ;;  %v1767_v5 = vadd.f32 %v10631_v3, %v10434_v12  ;;  %v10703_v10 = vpop.f32.mrf.mxu0 }
 0x16e   : > { %v1366_v11 = vmax.f32 %v1364_v61, %v1365_v45  ;;  %v1372_v2 = vrot.slane %v1371_v16, 1  ;;  %v1379_v40 = vrot.slane %v1378_v59, 1  ;;  %v12413_v18 = vmax.f32 %v10692_v43, 0.0  ;;  %v10705_v55 = vpop.f32.mrf.mxu1 }
 0x16f   : > { %v1526_v9 = vmax.f32 %v1509_v24, 0.0  ;;  %v1514_v13 = vadd.f32 %v10631_v3, %v10445_v63  ;;  %12433 = vst [vmem:[#allocation12_spill] sm:$0xff] %v10705_v55  ;;  %v1533_v51 = vrot.slane %v12414_v33, 2  ;;  %v1784_v12 = vmax.f32 %v1767_v5, 0.0  ;;  %v8886_v14 = vpop.f32.mrf.mxu0 }
 0x170   : > { %v1389_v34 = vsel %vm602_vm9, %v1388_v54, %v1366_v11  ;;  %v3726_v1 = vld [vmem:[#allocation2 + $0x20] sm:$0xff]  ;;  %v1373_v38 = vmax.f32 %v1371_v16, %v1372_v2  ;;  %v1380_v50 = vmax.f32 %v1378_v59, %v1379_v40  ;;  %v1791_v61 = vrot.slane %v12413_v18, 2  ;;  %v8911_v19 = vpop.f32.mrf.mxu1 }
 0x171   : > { %v3975_v17 = vld [vmem:[#allocation2 + $0x21] sm:$0xff]  ;;  %9015 = vmatprep.mubr.msk.f32.mxu1 %vm341_vm3, %v3726_v1  ;;  %v1534_v63 = vrot.slane %v1526_v9, 2  ;;  %v1527_v29 = vmax.f32 %v1514_v13, 0.0  ;;  %v1772_v37 = vadd.f32 %v10631_v3, %v10447_v28  ;;  %v10716_v45 = vrot.slane %v1784_v12, 2  ;;  %v10730_v53 = vpop.f32.mrf.mxu0 }
 0x172   : > { %9058 = vmatprep.mubr.msk.f32.mxu0 %vm341_vm3, %v3975_v17  ;;  %v1390_v52 = vsel %vm604_vm10, %v1389_v34, %v1373_v38  ;;  %v10720_v16 = vadd.f32 %v10631_v3, %v10467_v8  ;;  %v10724_v59 = vadd.f32 %v10631_v3, %v10469_v30  ;;  %12434 = vst [vmem:[#allocation13_spill] sm:$0xff] %v10730_v53 }
 0x173   : > { %v1391_v54 = vsel %vm606_vm11, %v1390_v52, %v1380_v50  ;;  %v1535_v11 = vsel %vm490_vm4, %v1533_v51, %v1534_v63  ;;  %v10728_v24 = vrot.slane %v1527_v29, 2  ;;  %v1785_v28 = vmax.f32 %v1772_v37, 0.0  ;;  %v8889_v26 = vpop.f32.mrf.mxu0 }
 0x174   : > { %1393 = vst.msk [vmem:[#allocation2 + $0x2f] sm:$0x1f] %vm618_vm14, %v1391_v54  ;;  %v1544_v36 = vmax.f32 %v1522_v60, %v1535_v11  ;;  %v1793_v8 = vsel %vm490_vm4, %v1791_v61, %v10716_v45  ;;  %v10747_v9 = vadd.f32 %v10631_v3, %v10495_v62 }
 0x175   : > { %v1802_v40 = vmax.f32 %v1780_v47, %v1793_v8  ;;  %v10741_v5 = vsel %vm490_vm4, %v1534_v63, %v10728_v24  ;;  %v10743_v34 = vrot.slane %v1785_v28, 2 }
 0x176   : > { %v1548_v60 = vsel %vm506_vm5, %v1544_v36, -inf  ;;  %v1555_v13 = vsel %vm514_vm6, %v1544_v36, -inf  ;;  %v1562_v1 = vsel %vm522_vm7, %v1544_v36, -inf  ;;  %v1569_v17 = vsel %vm530_vm8, %v1544_v36, -inf }
 0x177   : > { %v1549_v47 = vrot.slane %v1548_v60, 4  ;;  %v1556_v38 = vrot.slane %v1555_v13, 4  ;;  %v1563_v50 = vrot.slane %v1562_v1, 4  ;;  %v1570_v51 = vrot.slane %v1569_v17, 4 }
 0x178   : > { %v1806_v12 = vsel %vm506_vm5, %v1802_v40, -inf  ;;  %v1813_v61 = vsel %vm514_vm6, %v1802_v40, -inf  ;;  %v1820_v62 = vsel %vm522_vm7, %v1802_v40, -inf  ;;  %v1827_v63 = vsel %vm530_vm8, %v1802_v40, -inf }
 0x179   : > { %v1550_v29 = vmax.f32 %v1548_v60, %v1549_v47  ;;  %v1557_v37 = vmax.f32 %v1555_v13, %v1556_v38  ;;  %v1564_v14 = vmax.f32 %v1562_v1, %v1563_v50  ;;  %v1571_v19 = vmax.f32 %v1569_v17, %v1570_v51  ;;  %v10759_v51 = vpop.f32.mrf.mxu1 }
 0x17a   : > { %v1807_v52 = vrot.slane %v1806_v12, 4  ;;  %v1814_v54 = vrot.slane %v1813_v61, 4  ;;  %v1821_v11 = vrot.slane %v1820_v62, 4  ;;  %v1828_v28 = vrot.slane %v1827_v63, 4 }
 0x17b   : > { %v1551_v36 = vrot.slane %v1550_v29, 2  ;;  %v1558_v8 = vrot.slane %v1557_v37, 2  ;;  %v1565_v26 = vrot.slane %v1564_v14, 2  ;;  %v1572_v18 = vrot.slane %v1571_v19, 2  ;;  %v3727_v2 = vld [vmem:[#allocation2 + $0x28] sm:$0xff] }
 0x17c   : > { %v3976_v33 = vld [vmem:[#allocation2 + $0x29] sm:$0xff]  ;;  %v1808_v41 = vmax.f32 %v1806_v12, %v1807_v52  ;;  %v1815_v4 = vmax.f32 %v1813_v61, %v1814_v54  ;;  %v1822_v30 = vmax.f32 %v1820_v62, %v1821_v11  ;;  %v1829_v46 = vmax.f32 %v1827_v63, %v1828_v28  ;;  %9016 = vmatmul.mubr.msk.f32.gmra.mxu1 %vm341_vm3, %v3727_v2 }
 0x17d   : > { %v1552_v40 = vmax.f32 %v1550_v29, %v1551_v36  ;;  %v1559_v60 = vmax.f32 %v1557_v37, %v1558_v8  ;;  %v1566_v13 = vmax.f32 %v1564_v14, %v1565_v26  ;;  %v1573_v1 = vmax.f32 %v1571_v19, %v1572_v18  ;;  %9059 = vmatmul.mubr.msk.f32.gmra.mxu0 %vm341_vm3, %v3976_v33  ;;  %v8914_v29 = vpop.f32.mrf.mxu1 }
 0x17e   : > { %v1809_v17 = vrot.slane %v1808_v41, 2  ;;  %v1816_v47 = vrot.slane %v1815_v4, 2  ;;  %v1823_v38 = vrot.slane %v1822_v30, 2  ;;  %v1830_v50 = vrot.slane %v1829_v46, 2 }
 0x17f   : > { %v1553_v53 = vrot.slane %v1552_v40, 1  ;;  %v1560_v55 = vrot.slane %v1559_v60, 1  ;;  %v1567_v12 = vrot.slane %v1566_v13, 1  ;;  %v1574_v61 = vrot.slane %v1573_v1, 1 }
 0x180   : > { %v1810_v62 = vmax.f32 %v1808_v41, %v1809_v17  ;;  %v1817_v63 = vmax.f32 %v1815_v4, %v1816_v47  ;;  %v1824_v52 = vmax.f32 %v1822_v30, %v1823_v38  ;;  %v1831_v2 = vmax.f32 %v1829_v46, %v1830_v50  ;;  %v10778_v47 = vpop.f32.mrf.mxu0 }
 0x181   : > { %v1554_v37 = vmax.f32 %v1552_v40, %v1553_v53  ;;  %v1561_v14 = vmax.f32 %v1559_v60, %v1560_v55  ;;  %v1568_v18 = vmax.f32 %v1566_v13, %v1567_v12  ;;  %v1575_v19 = vmax.f32 %v1573_v1, %v1574_v61 }
 0x182   : > { %v1811_v33 = vrot.slane %v1810_v62, 1  ;;  %v1818_v54 = vrot.slane %v1817_v63, 1  ;;  %v1825_v11 = vrot.slane %v1824_v52, 1  ;;  %v1832_v28 = vrot.slane %v1831_v2, 1 }
 0x183   : > { %v1639_v36 = vsel %vm375_vm0, %v1554_v37, %v1561_v14  ;;  %v12435_v8 = vmax.f32 %v10663_v58, 0.0  ;;  %v1795_v4 = vsel %vm490_vm4, %v10716_v45, %v10743_v34  ;;  %v12436_v46 = vmax.f32 %v10720_v16, 0.0  ;;  %v8892_v37 = vpop.f32.mrf.mxu0 }
 0x184   : > { %v1640_v55 = vsel %vm602_vm9, %v1639_v36, %v1568_v18  ;;  %v1812_v53 = vmax.f32 %v1810_v62, %v1811_v33  ;;  %v1819_v30 = vmax.f32 %v1817_v63, %v1818_v54  ;;  %v1826_v40 = vmax.f32 %v1824_v52, %v1825_v11 }
 0x185   : > { %v1545_v26 = vmax.f32 %v12435_v8, %v10741_v5  ;;  %v10770_v41 = vrot.slane %v12436_v46, 2  ;;  %v1641_v60 = vsel %vm604_vm10, %v1640_v55, %v1575_v19  ;;  %v1833_v13 = vmax.f32 %v1831_v2, %v1832_v28 }
 0x186   : > { %v1897_v5 = vsel %vm375_vm0, %v1812_v53, %v1819_v30  ;;  %v12437_v61 = vmax.f32 %v10667_v21, 0.0 }
 0x187   : > { %v1576_v1 = vsel %vm506_vm5, %v1545_v26, -inf  ;;  %v1583_v58 = vsel %vm514_vm6, %v1545_v26, -inf  ;;  %v1590_v16 = vsel %vm522_vm7, %v1545_v26, -inf  ;;  %v1898_v38 = vsel %vm602_vm9, %v1897_v5, %v1826_v40 }
 0x188   : > { %v1577_v17 = vrot.slane %v1576_v1, 4  ;;  %v1584_v45 = vrot.slane %v1583_v58, 4  ;;  %v1591_v50 = vrot.slane %v1590_v16, 4  ;;  %v1597_v12 = vsel %vm530_vm8, %v1545_v26, -inf }
 0x189   : > { %v1803_v62 = vmax.f32 %v12437_v61, %v1795_v4  ;;  %v1899_v63 = vsel %vm604_vm10, %v1898_v38, %v1833_v13  ;;  %v1598_v29 = vrot.slane %v1597_v12, 4 }
 0x18a   : > { %v1578_v52 = vmax.f32 %v1576_v1, %v1577_v17  ;;  %v1585_v2 = vmax.f32 %v1583_v58, %v1584_v45  ;;  %v1592_v14 = vmax.f32 %v1590_v16, %v1591_v50 }
 0x18b   : > { %v1834_v18 = vsel %vm506_vm5, %v1803_v62, -inf  ;;  %v1841_v19 = vsel %vm514_vm6, %v1803_v62, -inf  ;;  %v1848_v33 = vsel %vm522_vm7, %v1803_v62, -inf  ;;  %v1599_v28 = vmax.f32 %v1597_v12, %v1598_v29  ;;  %v10789_v29 = vpop.f32.mrf.mxu1 }
 0x18c   : > { %v1579_v54 = vrot.slane %v1578_v52, 2  ;;  %v1586_v11 = vrot.slane %v1585_v2, 2  ;;  %v1835_v36 = vrot.slane %v1834_v18, 4  ;;  %v1593_v8 = vrot.slane %v1592_v14, 2 }
 0x18d   : > { %v1842_v21 = vrot.slane %v1841_v19, 4  ;;  %v1849_v26 = vrot.slane %v1848_v33, 4  ;;  %v1855_v4 = vsel %vm530_vm8, %v1803_v62, -inf  ;;  %v1600_v53 = vrot.slane %v1599_v28, 2 }
 0x18e   : > { %v1580_v46 = vmax.f32 %v1578_v52, %v1579_v54  ;;  %v1587_v55 = vmax.f32 %v1585_v2, %v1586_v11  ;;  %v1836_v30 = vmax.f32 %v1834_v18, %v1835_v36  ;;  %v1594_v40 = vmax.f32 %v1592_v14, %v1593_v8 }
 0x18f   : > { %v1843_v13 = vmax.f32 %v1841_v19, %v1842_v21  ;;  %v1850_v1 = vmax.f32 %v1848_v33, %v1849_v26  ;;  %v1856_v58 = vrot.slane %v1855_v4, 4  ;;  %v1601_v45 = vmax.f32 %v1599_v28, %v1600_v53  ;;  %v8917_v33 = vpop.f32.mrf.mxu1 }
 0x190   : > { %v1581_v5 = vrot.slane %v1580_v46, 1  ;;  %v1588_v17 = vrot.slane %v1587_v55, 1  ;;  %v1837_v16 = vrot.slane %v1836_v30, 2  ;;  %v1595_v38 = vrot.slane %v1594_v40, 1 }
 0x191   : > { %v1844_v50 = vrot.slane %v1843_v13, 2  ;;  %v1851_v12 = vrot.slane %v1850_v1, 2  ;;  %v1857_v61 = vmax.f32 %v1855_v4, %v1856_v58  ;;  %v1602_v52 = vrot.slane %v1601_v45, 1 }
 0x192   : > { %v1582_v37 = vmax.f32 %v1580_v46, %v1581_v5  ;;  %v1589_v62 = vmax.f32 %v1587_v55, %v1588_v17  ;;  %v1838_v2 = vmax.f32 %v1836_v30, %v1837_v16  ;;  %v1596_v54 = vmax.f32 %v1594_v40, %v1595_v38 }
 0x193   : > { %v1845_v18 = vmax.f32 %v1843_v13, %v1844_v50  ;;  %v1852_v14 = vmax.f32 %v1850_v1, %v1851_v12  ;;  %v1858_v19 = vrot.slane %v1857_v61, 2  ;;  %v1603_v11 = vmax.f32 %v1601_v45, %v1602_v52 }
 0x194   : > { %v1642_v36 = vsel %vm606_vm11, %v1641_v60, %v1582_v37  ;;  %v1839_v28 = vrot.slane %v1838_v2, 1  ;;  %v1539_v8 = vsel %vm490_vm4, %v10728_v24, %v10770_v41  ;;  %v12438_v30 = vmax.f32 %v10671_v32, 0.0 }
 0x195   : > { %v1643_v21 = vsel %vm608_vm12, %v1642_v36, %v1589_v62  ;;  %v1846_v26 = vrot.slane %v1845_v18, 1  ;;  %v1853_v4 = vrot.slane %v1852_v14, 1  ;;  %v1859_v46 = vmax.f32 %v1857_v61, %v1858_v19 }
 0x196   : > { %v1644_v55 = vsel %vm490_vm4, %v1643_v21, %v1596_v54  ;;  %v1840_v53 = vmax.f32 %v1838_v2, %v1839_v28  ;;  %v1546_v40 = vmax.f32 %v12438_v30, %v1539_v8  ;;  %v12439_v13 = vmax.f32 %v10684_v57, 0.0 }
 0x197   : > { %v1645_v1 = vsel %vm611_vm13, %v1644_v55, %v1603_v11  ;;  %v1847_v58 = vmax.f32 %v1845_v18, %v1846_v26  ;;  %v1854_v5 = vmax.f32 %v1852_v14, %v1853_v4  ;;  %v1860_v24 = vrot.slane %v1859_v46, 1 }
 0x198   : > { %v1547_v60 = vmax.f32 %v12439_v13, %v10770_v41  ;;  %1650 = vst.msk [vmem:[#allocation2 + $0x34] sm:$0xff] %vm341_vm3, %v1645_v1  ;;  %v1900_v17 = vsel %vm606_vm11, %v1899_v63, %v1840_v53  ;;  %v1604_v45 = vsel %vm506_vm5, %v1546_v40, -inf  ;;  %v1611_v16 = vsel %vm514_vm6, %v1546_v40, -inf }
 0x199   : > { %v1618_v32 = vsel %vm522_vm7, %v1546_v40, -inf  ;;  %v1861_v38 = vmax.f32 %v1859_v46, %v1860_v24  ;;  %v1901_v50 = vsel %vm608_vm12, %v1900_v17, %v1847_v58  ;;  %v1605_v57 = vrot.slane %v1604_v45, 4 }
 0x19a   : > { %v1612_v41 = vrot.slane %v1611_v16, 4  ;;  %v1902_v12 = vsel %vm490_vm4, %v1901_v50, %v1854_v5  ;;  %v1619_v61 = vrot.slane %v1618_v32, 4  ;;  %v1625_v37 = vsel %vm530_vm8, %v1546_v40, -inf }
 0x19b   : > { %v1632_v62 = vsel %vm506_vm5, %v1547_v60, -inf  ;;  %v1903_v63 = vsel %vm611_vm13, %v1902_v12, %v1861_v38  ;;  %v1606_v52 = vmax.f32 %v1604_v45, %v1605_v57  ;;  %v1626_v54 = vrot.slane %v1625_v37, 4 }
 0x19c   : > { %v1613_v2 = vmax.f32 %v1611_v16, %v1612_v41  ;;  %v1782_v18 = vmax.f32 %v10688_v56, 0.0  ;;  %1908 = vst.msk [vmem:[#allocation2 + $0x41] sm:$0xff] %vm341_vm3, %v1903_v63  ;;  %v1620_v14 = vmax.f32 %v1618_v32, %v1619_v61  ;;  %v1633_v19 = vrot.slane %v1632_v62, 4  ;;  %v10830_v16 = vpop.f32.mrf.mxu0  ;;  %v10832_v32 = vpop.f32.mrf.mxu1 }
 0x19d   : > { %v12440_v33 = vmax.f32 %v10724_v59, 0.0  ;;  %v1607_v36 = vrot.slane %v1606_v52, 2  ;;  %v1627_v8 = vmax.f32 %v1625_v37, %v1626_v54  ;;  %v2038_v21 = vmax.f32 %v10747_v9, 0.0 }
 0x19e   : > { %v1614_v28 = vrot.slane %v1613_v2, 2  ;;  %v1621_v26 = vrot.slane %v1620_v14, 2  ;;  %v1634_v4 = vmax.f32 %v1632_v62, %v1633_v19  ;;  %v12441_v55 = vmax.f32 %v10692_v43, 0.0  ;;  %v8924_v62 = vpop.f32.mrf.mxu0  ;;  %v8949_v63 = vpop.f32.mrf.mxu1 }
 0x19f   : > { %v1796_v11 = vrot.slane %v12440_v33, 2  ;;  %v1608_v53 = vmax.f32 %v1606_v52, %v1607_v36  ;;  %v1628_v40 = vrot.slane %v1627_v8, 2  ;;  %v3728_v60 = vld [vmem:[#allocation2 + $0x30] sm:$0xff]  ;;  %v10825_v24 = vadd.f32 %v10631_v3, %v10497_v6 }
 0x1a0   : > { %v1615_v30 = vmax.f32 %v1613_v2, %v1614_v28  ;;  %v3977_v59 = vld [vmem:[#allocation2 + $0x31] sm:$0xff]  ;;  %v1622_v1 = vmax.f32 %v1620_v14, %v1621_v26  ;;  %v1635_v58 = vrot.slane %v1634_v4, 2  ;;  %9018 = vmatprep.mubr.msk.f32.mxu1 %vm341_vm3, %v3728_v60  ;;  %v10837_v36 = vpop.f32.mrf.mxu0 }
 0x1a1   : > { %v1797_v46 = vsel %vm490_vm4, %v10743_v34, %v1796_v11  ;;  %v1805_v56 = vmax.f32 %v12441_v55, %v1796_v11  ;;  %9061 = vmatprep.mubr.msk.f32.mxu0 %vm341_vm3, %v3977_v59  ;;  %v1609_v43 = vrot.slane %v1608_v53, 1  ;;  %v1629_v17 = vmax.f32 %v1627_v8, %v1628_v40 }
 0x1a2   : > { %v1804_v13 = vmax.f32 %v1782_v18, %v1797_v46  ;;  %v1616_v34 = vrot.slane %v1615_v30, 1  ;;  %v1623_v38 = vrot.slane %v1622_v1, 1  ;;  %v1636_v50 = vmax.f32 %v1634_v4, %v1635_v58 }
 0x1a3   : > { %v1890_v5 = vsel %vm506_vm5, %v1805_v56, -inf  ;;  %v1610_v6 = vmax.f32 %v1608_v53, %v1609_v43  ;;  %v1630_v61 = vrot.slane %v1629_v17, 1  ;;  %v10847_v43 = vpop.f32.mrf.mxu1 }
 0x1a4   : > { %v1862_v45 = vsel %vm506_vm5, %v1804_v13, -inf  ;;  %v1869_v41 = vsel %vm514_vm6, %v1804_v13, -inf  ;;  %v1617_v12 = vmax.f32 %v1615_v30, %v1616_v34  ;;  %v1624_v52 = vmax.f32 %v1622_v1, %v1623_v38  ;;  %v8927_v30 = vpop.f32.mrf.mxu0  ;;  %v12442_v1 = vld [vmem:[#allocation7_spill] sm:$0xff] }
 0x1a5   : > { %v1863_v57 = vrot.slane %v1862_v45, 4  ;;  %v1870_v37 = vrot.slane %v1869_v41, 4  ;;  %v1637_v2 = vrot.slane %v1636_v50, 1  ;;  %v1876_v18 = vsel %vm522_vm7, %v1804_v13, -inf }
 0x1a6   : > { %v1631_v14 = vmax.f32 %v1629_v17, %v1630_v61  ;;  %v1646_v19 = vsel %vm375_vm0, %v1610_v6, %v1617_v12  ;;  %v1877_v11 = vrot.slane %v1876_v18, 4  ;;  %v1883_v4 = vsel %vm530_vm8, %v1804_v13, -inf  ;;  %v12444_v6 = vld [vmem:[#allocation9_spill] sm:$0xff]  ;;  %v8952_v61 = vpop.f32.mrf.mxu1 }
 0x1a7   : > { %v1864_v54 = vmax.f32 %v1862_v45, %v1863_v57  ;;  %v1871_v33 = vmax.f32 %v1869_v41, %v1870_v37  ;;  %v1638_v28 = vmax.f32 %v1636_v50, %v1637_v2  ;;  %v1647_v8 = vsel %vm602_vm9, %v1646_v19, %v1624_v52  ;;  %v12443_v45 = vld [vmem:[#allocation8_spill] sm:$0xff]  ;;  %v10862_v19 = vpop.f32.mrf.mxu0 }
 0x1a8   : > { %v1648_v46 = vsel %vm604_vm10, %v1647_v8, %v1631_v14  ;;  %v1878_v56 = vmax.f32 %v1876_v18, %v1877_v11  ;;  %v1884_v53 = vrot.slane %v1883_v4, 4  ;;  %v1891_v59 = vrot.slane %v1890_v5, 4  ;;  %12445 = vst [vmem:[#allocation7_spill] sm:$0xff] %v10862_v19  ;;  %v12447_v8 = vld [vmem:[#allocation11_spill] sm:$0xff] }
 0x1a9   : > { %v1865_v26 = vrot.slane %v1864_v54, 2  ;;  %v1872_v55 = vrot.slane %v1871_v33, 2  ;;  %v1649_v40 = vsel %vm606_vm11, %v1648_v46, %v1638_v28  ;;  %v10845_v58 = vadd.f32 %v10631_v3, %v12442_v1  ;;  %v12448_v46 = vld [vmem:[#allocation10_spill] sm:$0xff]  ;;  %v8930_v30 = vpop.f32.mrf.mxu0 }
 0x1aa   : > { %1651 = vst.msk [vmem:[#allocation2 + $0x3c] sm:$0x1f] %vm618_vm14, %v1649_v40  ;;  %v1879_v13 = vrot.slane %v1878_v56, 2  ;;  %v1885_v17 = vmax.f32 %v1883_v4, %v1884_v53  ;;  %v10852_v38 = vadd.f32 %v10631_v3, %v12443_v45  ;;  %v1892_v57 = vmax.f32 %v1890_v5, %v1891_v59  ;;  %v10864_v5 = vpop.f32.mrf.mxu1 }
 0x1ab   : > { %v1866_v60 = vmax.f32 %v1864_v54, %v1865_v26  ;;  %v1873_v34 = vmax.f32 %v1871_v33, %v1872_v55  ;;  %v2296_v41 = vmax.f32 %v10825_v24, 0.0  ;;  %v10857_v12 = vadd.f32 %v10631_v3, %v12444_v6  ;;  %12446 = vst [vmem:[#allocation8_spill] sm:$0xff] %v10864_v5  ;;  %v10885_v61 = vpop.f32.mrf.mxu0 }
 0x1ac   : > { %v1880_v62 = vmax.f32 %v1878_v56, %v1879_v13  ;;  %v1886_v63 = vrot.slane %v1885_v17, 2  ;;  %v1893_v54 = vrot.slane %v1892_v57, 2  ;;  %v10868_v26 = vadd.f32 %v10631_v3, %v12447_v8  ;;  %v8955_v40 = vpop.f32.mrf.mxu1  ;;  %12449 = vst [vmem:[#allocation9_spill] sm:$0xff] %v10885_v61 }
 0x1ad   : > { %v1867_v50 = vrot.slane %v1866_v60, 1  ;;  %v1874_v37 = vrot.slane %v1873_v34, 1  ;;  %v10872_v55 = vadd.f32 %v10631_v3, %v12448_v46  ;;  %v10876_v56 = vadd.f32 %v10631_v3, %v10558_v25 }
 0x1ae   : > { %v1881_v11 = vrot.slane %v1880_v62, 1  ;;  %v1887_v28 = vmax.f32 %v1885_v17, %v1886_v63  ;;  %v1894_v4 = vmax.f32 %v1892_v57, %v1893_v54  ;;  %v2025_v53 = vadd.f32 %v10631_v3, %v10560_v44  ;;  %v10887_v44 = vpop.f32.mrf.mxu1 }
 0x1af   : > { %v1868_v2 = vmax.f32 %v1866_v60, %v1867_v50  ;;  %v1875_v33 = vmax.f32 %v1873_v34, %v1874_v37  ;;  %v12416_v34 = vmax.f32 %v10868_v26, 0.0  ;;  %v12415_v17 = vmax.f32 %v10876_v56, 0.0  ;;  %12450 = vst [vmem:[#allocation11_spill] sm:$0xff] %v10887_v44 }
 0x1b0   : > { %v1882_v60 = vmax.f32 %v1880_v62, %v1881_v11  ;;  %v1888_v59 = vrot.slane %v1887_v28, 1  ;;  %v1895_v13 = vrot.slane %v1894_v4, 1  ;;  %v2042_v45 = vmax.f32 %v2025_v53, 0.0  ;;  %v8958_v46 = vpop.f32.mrf.mxu1 }
 0x1b1   : > { %v1904_v1 = vsel %vm375_vm0, %v1868_v2, %v1875_v33  ;;  %v2283_v50 = vadd.f32 %v10631_v3, %v10562_v35  ;;  %v3729_v25 = vld [vmem:[#allocation2 + $0x38] sm:$0xff]  ;;  %v3730_v6 = vld [vmem:[#allocation2 + $0x40] sm:$0xff]  ;;  %v2049_v63 = vrot.slane %v12416_v34, 2  ;;  %v2030_v2 = vadd.f32 %v10631_v3, %v10575_v48 }
 0x1b2   : > { %v3978_v57 = vld [vmem:[#allocation2 + $0x39] sm:$0xff]  ;;  %v1889_v37 = vmax.f32 %v1887_v28, %v1888_v59  ;;  %v1905_v62 = vsel %vm602_vm9, %v1904_v1, %v1882_v60  ;;  %9019 = vmatmul.mubr.msk.f32.gmra.mxu1 %vm341_vm3, %v3729_v25  ;;  %v3979_v35 = vld [vmem:[#allocation2 + $0x41] sm:$0xff]  ;;  %v1896_v54 = vmax.f32 %v1894_v4, %v1895_v13  ;;  %v2307_v33 = vrot.slane %v12415_v17, 2  ;;  %v8933_v28 = vpop.f32.mrf.mxu0 }
 0x1b3   : > { %9062 = vmatmul.mubr.msk.f32.gmra.mxu0 %vm341_vm3, %v3978_v57  ;;  %v2050_v11 = vrot.slane %v2042_v45, 2  ;;  %v2300_v8 = vmax.f32 %v2283_v50, 0.0  ;;  %9021 = vmatprep.mubr.msk.f32.mxu1 %vm341_vm3, %v3730_v6  ;;  %v2043_v48 = vmax.f32 %v2030_v2, 0.0  ;;  %v2288_v30 = vadd.f32 %v10631_v3, %v10577_v39  ;;  %v10915_v45 = vpop.f32.mrf.mxu1 }
 0x1b4   : > { %9064 = vmatprep.mubr.msk.f32.mxu0 %vm341_vm3, %v3979_v35  ;;  %v1906_v53 = vsel %vm604_vm10, %v1905_v62, %v1889_v37  ;;  %v2035_v4 = vadd.f32 %v10631_v3, %v10588_v23  ;;  %v10911_v1 = vadd.f32 %v10631_v3, %v10594_v31  ;;  %v10913_v13 = vpop.f32.mrf.mxu0  ;;  %12452 = vst [vmem:[#allocation14_spill] sm:$0xff] %v10915_v45 }
 0x1b5   : > { %v1907_v40 = vsel %vm606_vm11, %v1906_v53, %v1896_v54  ;;  %v2051_v60 = vsel %vm490_vm4, %v2049_v63, %v2050_v11  ;;  %v10907_v59 = vrot.slane %v2300_v8, 2  ;;  %12451 = vst [vmem:[#allocation10_spill] sm:$0xff] %v10913_v13  ;;  %v10920_v23 = vrot.slane %v2043_v48, 2  ;;  %v8961_v63 = vpop.f32.mrf.mxu1 }
 0x1b6   : > { %1909 = vst.msk [vmem:[#allocation2 + $0x49] sm:$0x1f] %vm618_vm14, %v1907_v40  ;;  %v2060_v39 = vmax.f32 %v2038_v21, %v2051_v60  ;;  %v2301_v50 = vmax.f32 %v2288_v30, 0.0  ;;  %v2044_v25 = vmax.f32 %v2035_v4, 0.0  ;;  %v10928_v37 = vadd.f32 %v10631_v3, %v10641_v27  ;;  %v8936_v62 = vpop.f32.mrf.mxu0 }
 0x1b7   : > { %v2309_v6 = vsel %vm490_vm4, %v2307_v33, %v10907_v59  ;;  %v2053_v27 = vsel %vm490_vm4, %v2050_v11, %v10920_v23 }
 0x1b8   : > { %v2064_v9 = vsel %vm506_vm5, %v2060_v39, -inf  ;;  %v2071_v21 = vsel %vm514_vm6, %v2060_v39, -inf  ;;  %v2078_v2 = vsel %vm522_vm7, %v2060_v39, -inf  ;;  %v2085_v35 = vsel %vm530_vm8, %v2060_v39, -inf  ;;  %v10934_v46 = vpop.f32.mrf.mxu0 }
 0x1b9   : > { %v2065_v54 = vrot.slane %v2064_v9, 4  ;;  %v2072_v8 = vrot.slane %v2071_v21, 4  ;;  %v2079_v28 = vrot.slane %v2078_v2, 4  ;;  %v2086_v33 = vrot.slane %v2085_v35, 4  ;;  %12453 = vst [vmem:[#allocation15_spill] sm:$0xff] %v10934_v46 }
 0x1ba   : > { %v2318_v3 = vmax.f32 %v2296_v41, %v2309_v6  ;;  %v10940_v53 = vrot.slane %v2301_v50, 2  ;;  %v10942_v48 = vrot.slane %v2044_v25, 2  ;;  %v8939_v39 = vpop.f32.mrf.mxu0 }
 0x1bb   : > { %v2066_v30 = vmax.f32 %v2064_v9, %v2065_v54  ;;  %v2073_v4 = vmax.f32 %v2071_v21, %v2072_v8  ;;  %v2080_v40 = vmax.f32 %v2078_v2, %v2079_v28  ;;  %v2087_v60 = vmax.f32 %v2085_v35, %v2086_v33  ;;  %v10948_v21 = vpop.f32.mrf.mxu1 }
 0x1bc   : > { %v2322_v62 = vsel %vm506_vm5, %v2318_v3, -inf  ;;  %v2329_v63 = vsel %vm514_vm6, %v2318_v3, -inf  ;;  %v2336_v57 = vsel %vm522_vm7, %v2318_v3, -inf  ;;  %v2343_v24 = vsel %vm530_vm8, %v2318_v3, -inf  ;;  %12454 = vst [vmem:[#allocation16_spill] sm:$0xff] %v10948_v21 }
 0x1bd   : > { %v2067_v41 = vrot.slane %v2066_v30, 2  ;;  %v2074_v6 = vrot.slane %v2073_v4, 2  ;;  %v2081_v11 = vrot.slane %v2080_v40, 2  ;;  %v2088_v50 = vrot.slane %v2087_v60, 2  ;;  %v8964_v14 = vpop.f32.mrf.mxu1 }
 0x1be   : > { %v2323_v17 = vrot.slane %v2322_v62, 4  ;;  %v2330_v25 = vrot.slane %v2329_v63, 4  ;;  %v2337_v31 = vrot.slane %v2336_v57, 4  ;;  %v2344_v9 = vrot.slane %v2343_v24, 4 }
 0x1bf   : > { %v2068_v2 = vmax.f32 %v2066_v30, %v2067_v41  ;;  %v2075_v35 = vmax.f32 %v2073_v4, %v2074_v6  ;;  %v2082_v54 = vmax.f32 %v2080_v40, %v2081_v11  ;;  %v2089_v8 = vmax.f32 %v2087_v60, %v2088_v50  ;;  %v10965_v6 = vpop.f32.mrf.mxu0 }
 0x1c0   : > { %v2324_v28 = vmax.f32 %v2322_v62, %v2323_v17  ;;  %v2331_v33 = vmax.f32 %v2329_v63, %v2330_v25  ;;  %v2338_v39 = vmax.f32 %v2336_v57, %v2337_v31  ;;  %v2345_v34 = vmax.f32 %v2343_v24, %v2344_v9 }
 0x1c1   : > { %v2069_v3 = vrot.slane %v2068_v2, 1  ;;  %v2076_v18 = vrot.slane %v2075_v35, 1  ;;  %v2083_v52 = vrot.slane %v2082_v54, 1  ;;  %v2090_v46 = vrot.slane %v2089_v8, 1 }
 0x1c2   : > { %v2325_v45 = vrot.slane %v2324_v28, 2  ;;  %v2332_v13 = vrot.slane %v2331_v33, 2  ;;  %v2339_v44 = vrot.slane %v2338_v39, 2  ;;  %v2346_v61 = vrot.slane %v2345_v34, 2 }
 0x1c3   : > { %v2070_v5 = vmax.f32 %v2068_v2, %v2069_v3  ;;  %v2077_v19 = vmax.f32 %v2075_v35, %v2076_v18  ;;  %v2084_v21 = vmax.f32 %v2082_v54, %v2083_v52  ;;  %v2091_v30 = vmax.f32 %v2089_v8, %v2090_v46 }
 0x1c4   : > { %v2326_v4 = vmax.f32 %v2324_v28, %v2325_v45  ;;  %v2333_v40 = vmax.f32 %v2331_v33, %v2332_v13  ;;  %v2340_v60 = vmax.f32 %v2338_v39, %v2339_v44  ;;  %v2347_v17 = vmax.f32 %v2345_v34, %v2346_v61  ;;  %v8942_v33 = vpop.f32.mrf.mxu0 }
 0x1c5   : > { %v2155_v57 = vsel %vm375_vm0, %v2070_v5, %v2077_v19  ;;  %v12455_v14 = vmax.f32 %v10845_v58, 0.0  ;;  %v2311_v62 = vsel %vm490_vm4, %v10907_v59, %v10940_v53  ;;  %v2055_v63 = vsel %vm490_vm4, %v10920_v23, %v10942_v48 }
 0x1c6   : > { %v2156_v52 = vsel %vm602_vm9, %v2155_v57, %v2084_v21  ;;  %v2327_v18 = vrot.slane %v2326_v4, 1  ;;  %v2334_v45 = vrot.slane %v2333_v40, 1  ;;  %v2341_v13 = vrot.slane %v2340_v60, 1 }
 0x1c7   : > { %v2061_v31 = vmax.f32 %v12455_v14, %v2053_v27  ;;  %v2157_v34 = vsel %vm604_vm10, %v2156_v52, %v2091_v30  ;;  %v2348_v61 = vrot.slane %v2347_v17, 1  ;;  %v12456_v35 = vmax.f32 %v10852_v38, 0.0 }
 0x1c8   : > { %v2328_v5 = vmax.f32 %v2326_v4, %v2327_v18  ;;  %v2335_v44 = vmax.f32 %v2333_v40, %v2334_v45  ;;  %v2342_v46 = vmax.f32 %v2340_v60, %v2341_v13  ;;  %v12457_v8 = vmax.f32 %v10857_v12, 0.0 }
 0x1c9   : > { %v2092_v19 = vsel %vm506_vm5, %v2061_v31, -inf  ;;  %v2099_v58 = vsel %vm514_vm6, %v2061_v31, -inf  ;;  %v2349_v27 = vmax.f32 %v2347_v17, %v2348_v61  ;;  %v2106_v23 = vsel %vm522_vm7, %v2061_v31, -inf }
 0x1ca   : > { %v2093_v59 = vrot.slane %v2092_v19, 4  ;;  %v2100_v24 = vrot.slane %v2099_v58, 4  ;;  %v2113_v41 = vsel %vm530_vm8, %v2061_v31, -inf  ;;  %v2413_v11 = vsel %vm375_vm0, %v2328_v5, %v2335_v44 }
 0x1cb   : > { %v2107_v25 = vrot.slane %v2106_v23, 4  ;;  %v2114_v9 = vrot.slane %v2113_v41, 4  ;;  %v2414_v21 = vsel %vm602_vm9, %v2413_v11, %v2342_v46  ;;  %v2319_v54 = vmax.f32 %v12456_v35, %v2311_v62 }
 0x1cc   : > { %v2094_v50 = vmax.f32 %v2092_v19, %v2093_v59  ;;  %v2101_v2 = vmax.f32 %v2099_v58, %v2100_v24  ;;  %v10973_v28 = vmax.f32 %v12457_v8, %v2055_v63  ;;  %v2415_v39 = vsel %vm604_vm10, %v2414_v21, %v2349_v27 }
 0x1cd   : > { %v2108_v30 = vmax.f32 %v2106_v23, %v2107_v25  ;;  %v2115_v4 = vmax.f32 %v2113_v41, %v2114_v9  ;;  %v2350_v60 = vsel %vm506_vm5, %v2319_v54, -inf  ;;  %v2357_v17 = vsel %vm514_vm6, %v2319_v54, -inf  ;;  %v10980_v41 = vpop.f32.mrf.mxu1 }
 0x1ce   : > { %v2095_v3 = vrot.slane %v2094_v50, 2  ;;  %v2102_v40 = vrot.slane %v2101_v2, 2  ;;  %v2364_v57 = vsel %vm522_vm7, %v2319_v54, -inf  ;;  %v2351_v62 = vrot.slane %v2350_v60, 4 }
 0x1cf   : > { %v2109_v38 = vrot.slane %v2108_v30, 2  ;;  %v2116_v31 = vrot.slane %v2115_v4, 2  ;;  %v2358_v63 = vrot.slane %v2357_v17, 4  ;;  %v2365_v52 = vrot.slane %v2364_v57, 4  ;;  %v8967_v8 = vpop.f32.mrf.mxu1 }
 0x1d0   : > { %v2096_v14 = vmax.f32 %v2094_v50, %v2095_v3  ;;  %v2103_v12 = vmax.f32 %v2101_v2, %v2102_v40  ;;  %v2371_v18 = vsel %vm530_vm8, %v2319_v54, -inf  ;;  %v2352_v19 = vmax.f32 %v2350_v60, %v2351_v62  ;;  %v11009_v8 = vld [vmem:[%s12401_s2] ss:$0 sm:$0xff] }
 0x1d1   : > { %v2110_v13 = vmax.f32 %v2108_v30, %v2109_v38  ;;  %v2117_v61 = vmax.f32 %v2115_v4, %v2116_v31  ;;  %v2359_v5 = vmax.f32 %v2357_v17, %v2358_v63  ;;  %v2366_v44 = vmax.f32 %v2364_v57, %v2365_v52 }
 0x1d2   : > { %v2097_v45 = vrot.slane %v2096_v14, 1  ;;  %v2104_v58 = vrot.slane %v2103_v12, 1  ;;  %v2372_v46 = vrot.slane %v2371_v18, 4  ;;  %v2353_v23 = vrot.slane %v2352_v19, 2 }
 0x1d3   : > { %v2111_v27 = vrot.slane %v2110_v13, 1  ;;  %v2118_v24 = vrot.slane %v2117_v61, 1  ;;  %v2360_v50 = vrot.slane %v2359_v5, 2  ;;  %v2367_v25 = vrot.slane %v2366_v44, 2 }
 0x1d4   : > { %v2098_v59 = vmax.f32 %v2096_v14, %v2097_v45  ;;  %v2105_v11 = vmax.f32 %v2103_v12, %v2104_v58  ;;  %v2373_v9 = vmax.f32 %v2371_v18, %v2372_v46  ;;  %v2354_v54 = vmax.f32 %v2352_v19, %v2353_v23 }
 0x1d5   : > { %v2112_v21 = vmax.f32 %v2110_v13, %v2111_v27  ;;  %v2119_v2 = vmax.f32 %v2117_v61, %v2118_v24  ;;  %v2361_v3 = vmax.f32 %v2359_v5, %v2360_v50  ;;  %v2368_v30 = vmax.f32 %v2366_v44, %v2367_v25 }
 0x1d6   : > { %v2158_v35 = vsel %vm606_vm11, %v2157_v34, %v2098_v59  ;;  %v2374_v4 = vrot.slane %v2373_v9, 2  ;;  %v2355_v60 = vrot.slane %v2354_v54, 1  ;;  %v12458_v17 = vmax.f32 %v10868_v26, 0.0 }
 0x1d7   : > { %v2159_v33 = vsel %vm608_vm12, %v2158_v35, %v2105_v11  ;;  %v2120_v14 = vsel %vm506_vm5, %v10973_v28, -inf  ;;  %v2362_v34 = vrot.slane %v2361_v3, 1  ;;  %v2369_v31 = vrot.slane %v2368_v30, 1 }
 0x1d8   : > { %v2160_v40 = vsel %vm490_vm4, %v2159_v33, %v2112_v21  ;;  %v2063_v57 = vmax.f32 %v12458_v17, %v10942_v48  ;;  %v2375_v62 = vmax.f32 %v2373_v9, %v2374_v4  ;;  %v2356_v12 = vmax.f32 %v2354_v54, %v2355_v60 }
 0x1d9   : > { %v2161_v38 = vsel %vm611_vm13, %v2160_v40, %v2119_v2  ;;  %v2121_v63 = vrot.slane %v2120_v14, 4  ;;  %v2127_v52 = vsel %vm514_vm6, %v10973_v28, -inf  ;;  %v2134_v18 = vsel %vm522_vm7, %v10973_v28, -inf }
 0x1da   : > { %2166 = vst.msk [vmem:[#allocation2 + $0x4e] sm:$0xff] %vm341_vm3, %v2161_v38  ;;  %v2363_v26 = vmax.f32 %v2361_v3, %v2362_v34  ;;  %v2370_v48 = vmax.f32 %v2368_v30, %v2369_v31  ;;  %v2376_v45 = vrot.slane %v2375_v62, 1  ;;  %v2128_v13 = vrot.slane %v2127_v52, 4 }
 0x1db   : > { %v2416_v61 = vsel %vm606_vm11, %v2415_v39, %v2356_v12  ;;  %v2122_v19 = vmax.f32 %v2120_v14, %v2121_v63  ;;  %v2135_v58 = vrot.slane %v2134_v18, 4  ;;  %v2141_v5 = vsel %vm530_vm8, %v10973_v28, -inf }
 0x1dc   : > { %v2377_v44 = vmax.f32 %v2375_v62, %v2376_v45  ;;  %v2417_v46 = vsel %vm608_vm12, %v2416_v61, %v2363_v26  ;;  %v2129_v59 = vmax.f32 %v2127_v52, %v2128_v13  ;;  %v2142_v27 = vrot.slane %v2141_v5, 4 }
 0x1dd   : > { %v2418_v24 = vsel %vm490_vm4, %v2417_v46, %v2370_v48  ;;  %v2123_v23 = vrot.slane %v2122_v19, 2  ;;  %v2136_v11 = vmax.f32 %v2134_v18, %v2135_v58  ;;  %v2148_v50 = vsel %vm506_vm5, %v2063_v57, -inf }
 0x1de   : > { %v2419_v25 = vsel %vm611_vm13, %v2418_v24, %v2377_v44  ;;  %v2130_v9 = vrot.slane %v2129_v59, 2  ;;  %v2143_v39 = vmax.f32 %v2141_v5, %v2142_v27  ;;  %v2149_v21 = vrot.slane %v2148_v50, 4 }
 0x1df   : > { %2424 = vst.msk [vmem:[#allocation2 + $0x5b] sm:$0xff] %vm341_vm3, %v2419_v25  ;;  %v2124_v2 = vmax.f32 %v2122_v19, %v2123_v23  ;;  %v2137_v28 = vrot.slane %v2136_v11, 2  ;;  %v12459_v35 = vmax.f32 %v10911_v1, 0.0  ;;  %v11013_v33 = vadd.f32 %v11009_v8, %v10643_v22  ;;  %v11022_v22 = vpop.f32.mrf.mxu0 }
 0x1e0   : > { %v2131_v3 = vmax.f32 %v2129_v59, %v2130_v9  ;;  %v2144_v30 = vrot.slane %v2143_v39, 2  ;;  %v2150_v4 = vmax.f32 %v2148_v50, %v2149_v21  ;;  %v2554_v40 = vmax.f32 %v10928_v37, 0.0 }
 0x1e1   : > { %v2312_v54 = vrot.slane %v12459_v35, 2  ;;  %v3731_v60 = vld [vmem:[#allocation2 + $0x48] sm:$0xff]  ;;  %v2125_v57 = vrot.slane %v2124_v2, 1  ;;  %v2138_v14 = vmax.f32 %v2136_v11, %v2137_v28  ;;  %v12460_v38 = vmax.f32 %v10876_v56, 0.0 }
 0x1e2   : > { %v3980_v17 = vld [vmem:[#allocation2 + $0x49] sm:$0xff]  ;;  %9022 = vmatmul.mubr.msk.f32.gmra.mxu1 %vm341_vm3, %v3731_v60  ;;  %v2132_v31 = vrot.slane %v2131_v3, 1  ;;  %v2145_v62 = vmax.f32 %v2143_v39, %v2144_v30  ;;  %v2151_v12 = vrot.slane %v2150_v4, 2  ;;  %v12461_v63 = vmax.f32 %v10872_v55, 0.0 }
 0x1e3   : > { %v2313_v1 = vsel %vm490_vm4, %v10940_v53, %v2312_v54  ;;  %v2321_v34 = vmax.f32 %v12460_v38, %v2312_v54  ;;  %9065 = vmatmul.mubr.msk.f32.gmra.mxu0 %vm341_vm3, %v3980_v17  ;;  %v2126_v18 = vmax.f32 %v2124_v2, %v2125_v57  ;;  %v2139_v26 = vrot.slane %v2138_v14, 1  ;;  %v8974_v53 = vpop.f32.mrf.mxu0 }
 0x1e4   : > { %v2320_v52 = vmax.f32 %v12461_v63, %v2313_v1  ;;  %v11029_v56 = vadd.f32 %v11009_v8, %v10646_v7  ;;  %v2133_v45 = vmax.f32 %v2131_v3, %v2132_v31  ;;  %v2146_v13 = vrot.slane %v2145_v62, 1 }
 0x1e5   : > { %v2406_v48 = vsel %vm506_vm5, %v2321_v34, -inf  ;;  %v2152_v61 = vmax.f32 %v2150_v4, %v2151_v12  ;;  %v2140_v58 = vmax.f32 %v2138_v14, %v2139_v26  ;;  %v11034_v46 = vpop.f32.mrf.mxu0  ;;  %v2812_v30 = vmax.f32 %v11013_v33, 0.0 }
 0x1e6   : > { %v2378_v19 = vsel %vm506_vm5, %v2320_v52, -inf  ;;  %v2385_v44 = vsel %vm514_vm6, %v2320_v52, -inf  ;;  %v2392_v55 = vsel %vm522_vm7, %v2320_v52, -inf  ;;  %v2147_v59 = vmax.f32 %v2145_v62, %v2146_v13 }
 0x1e7   : > { %v2379_v5 = vrot.slane %v2378_v19, 4  ;;  %v2153_v27 = vrot.slane %v2152_v61, 1  ;;  %v2162_v24 = vsel %vm375_vm0, %v2126_v18, %v2133_v45  ;;  %v2386_v7 = vrot.slane %v2385_v44, 4  ;;  %v8977_v9 = vpop.f32.mrf.mxu0 }
 0x1e8   : > { %v2163_v23 = vsel %vm602_vm9, %v2162_v24, %v2140_v58  ;;  %v2393_v50 = vrot.slane %v2392_v55, 4  ;;  %v2399_v25 = vsel %vm530_vm8, %v2320_v52, -inf  ;;  %v2407_v3 = vrot.slane %v2406_v48, 4 }
 0x1e9   : > { %v2380_v11 = vmax.f32 %v2378_v19, %v2379_v5  ;;  %v2154_v39 = vmax.f32 %v2152_v61, %v2153_v27  ;;  %v2164_v21 = vsel %vm604_vm10, %v2163_v23, %v2147_v59  ;;  %v2387_v2 = vmax.f32 %v2385_v44, %v2386_v7  ;;  %v11041_v4 = vpop.f32.mrf.mxu0 }
 0x1ea   : > { %v2400_v28 = vrot.slane %v2399_v25, 4  ;;  %v2394_v54 = vmax.f32 %v2392_v55, %v2393_v50  ;;  %v11046_v14 = vadd.f32 %v11009_v8, %v10648_v15  ;;  %v2408_v34 = vmax.f32 %v2406_v48, %v2407_v3  ;;  %v12462_v50 = vld [vmem:[#allocation12_spill] sm:$0xff] }
 0x1eb   : > { %v2381_v35 = vrot.slane %v2380_v11, 2  ;;  %v2165_v60 = vsel %vm606_vm11, %v2164_v21, %v2154_v39  ;;  %v2388_v17 = vrot.slane %v2387_v2, 2  ;;  %v11051_v31 = vadd.f32 %v11009_v8, %v10656_v0  ;;  %v8980_v62 = vpop.f32.mrf.mxu0 }
 0x1ec   : > { %v2401_v57 = vmax.f32 %v2399_v25, %v2400_v28  ;;  %2167 = vst.msk [vmem:[#allocation2 + $0x56] sm:$0x1f] %vm618_vm14, %v2165_v60  ;;  %v2395_v38 = vrot.slane %v2394_v54, 2  ;;  %v2555_v52 = vmax.f32 %v11029_v56, 0.0  ;;  %v2813_v18 = vmax.f32 %v11046_v14, 0.0 }
 0x1ed   : > { %v2382_v1 = vmax.f32 %v2380_v11, %v2381_v35  ;;  %v2389_v12 = vmax.f32 %v2387_v2, %v2388_v17  ;;  %v2409_v15 = vrot.slane %v2408_v34, 2  ;;  %v11057_v45 = vadd.f32 %v11009_v8, %v10658_v20  ;;  %v11059_v13 = vpop.f32.mrf.mxu0 }
 0x1ee   : > { %v2402_v63 = vrot.slane %v2401_v57, 2  ;;  %v2396_v53 = vmax.f32 %v2394_v54, %v2395_v38  ;;  %v2556_v0 = vmax.f32 %v11051_v31, 0.0  ;;  %v11064_v19 = vadd.f32 %v11009_v8, %v10677_v49 }
 0x1ef   : > { %v2383_v26 = vrot.slane %v2382_v1, 1  ;;  %v2390_v48 = vrot.slane %v2389_v12, 1  ;;  %v2410_v44 = vmax.f32 %v2408_v34, %v2409_v15  ;;  %v11068_v55 = vadd.f32 %v11009_v8, %v10679_v42  ;;  %v8983_v59 = vpop.f32.mrf.mxu0  ;;  %v8008_v34 = vld [vmem:[%s12402_s3 + $0xf8] sm:$0xff] }
 0x1f0   : > { %v2403_v61 = vmax.f32 %v2401_v57, %v2402_v63  ;;  %v2397_v5 = vrot.slane %v2396_v53, 1  ;;  %v2557_v24 = vmax.f32 %v11064_v19, 0.0  ;;  %v2541_v7 = vadd.f32 %v11009_v8, %v10703_v10  ;;  %v12463_v63 = vld [vmem:[#allocation13_spill] sm:$0xff]  ;;  %9122 = vmatprep.subr.mxu0 %v8008_v34 }
 0x1f1   : > { %v2384_v58 = vmax.f32 %v2382_v1, %v2383_v26  ;;  %v2391_v20 = vmax.f32 %v2389_v12, %v2390_v48  ;;  %v2411_v11 = vrot.slane %v2410_v44, 1  ;;  %v12417_v49 = vmax.f32 %v11068_v55, 0.0  ;;  %v11076_v9 = vpop.f32.mrf.mxu0  ;;  %v7982_v1 = vld [vmem:[%s12402_s3 + $0xb8] sm:$0xff]  ;;  %9123 = vmatpush3.msra.mxu0 %v8008_v34 }
 0x1f2   : > { %v2404_v27 = vrot.slane %v2403_v61, 1  ;;  %v2398_v23 = vmax.f32 %v2396_v53, %v2397_v5  ;;  %v2799_v25 = vadd.f32 %v11009_v8, %v12462_v50  ;;  %v2565_v21 = vrot.slane %v2557_v24, 2  ;;  %9079 = vmatprep.subr.mxu1 %v7982_v1  ;;  %v7978_v34 = vld [vmem:[%s12402_s3 + $0x98] sm:$0xff] }
 0x1f3   : > { %v2420_v42 = vsel %vm375_vm0, %v2384_v58, %v2391_v20  ;;  %v2558_v2 = vmax.f32 %v2541_v7, 0.0  ;;  %v3732_v28 = vld [vmem:[#allocation2 + $0x50] sm:$0xff]  ;;  %v3733_v54 = vld [vmem:[#allocation2 + $0x58] sm:$0xff]  ;;  %v2412_v10 = vmax.f32 %v2410_v44, %v2411_v11  ;;  %v2823_v60 = vrot.slane %v12417_v49, 2  ;;  %v8986_v38 = vpop.f32.mrf.mxu0  ;;  %9080 = vmatpush3.msra.mxu1 %v7982_v1 }
 0x1f4   : > { %v2405_v39 = vmax.f32 %v2403_v61, %v2404_v27  ;;  %v3981_v35 = vld [vmem:[#allocation2 + $0x51] sm:$0xff]  ;;  %v2421_v3 = vsel %vm602_vm9, %v2420_v42, %v2398_v23  ;;  %v2816_v17 = vmax.f32 %v2799_v25, 0.0  ;;  %9024 = vmatprep.mubr.msk.f32.mxu1 %vm341_vm3, %v3732_v28  ;;  %v3982_v57 = vld [vmem:[#allocation2 + $0x59] sm:$0xff]  ;;  %v2546_v26 = vadd.f32 %v11009_v8, %v12463_v63  ;;  %v7980_v27 = vld [vmem:[%s12402_s3 + $0xa8] sm:$0xff] }
 0x1f5   : > { %9067 = vmatprep.mubr.msk.f32.mxu0 %vm341_vm3, %v3981_v35  ;;  %v11093_v12 = vrot.slane %v2558_v2, 2  ;;  %v2804_v53 = vadd.f32 %v11009_v8, %v10759_v51  ;;  %9025 = vmatmul.mubr.msk.f32.gmra.mxu1 %vm341_vm3, %v3733_v54  ;;  %v11106_v61 = vadd.f32 %v11009_v8, %v10778_v47  ;;  %v11110_v58 = vadd.f32 %v11009_v8, %v10789_v29  ;;  %v7981_v51 = vld [vmem:[%s12402_s3 + $0xb0] sm:$0xff]  ;;  %v11115_v5 = vpop.f32.mrf.mxu0  ;;  %v8006_v25 = vld [vmem:[%s12402_s3 + $0xe8] sm:$0xff] }
 0x1f6   : > { %v2422_v62 = vsel %vm604_vm10, %v2421_v3, %v2405_v39  ;;  %9068 = vmatmul.mubr.msk.f32.gmra.mxu0 %vm341_vm3, %v3982_v57  ;;  %v11102_v48 = vrot.slane %v2816_v17, 2  ;;  %v8007_v44 = vld [vmem:[%s12402_s3 + $0xf0] sm:$0xff]  ;;  %v2559_v59 = vmax.f32 %v2546_v26, 0.0  ;;  %v11134_v50 = vadd.f32 %v11009_v8, %v10830_v16  ;;  %9081 = vmatprep.subr.mxu1 %v7981_v51  ;;  %v7979_v16 = vld [vmem:[%s12402_s3 + $0xa0] sm:$0xff] }
 0x1f7   : > { %v2423_v15 = vsel %vm606_vm11, %v2422_v62, %v2412_v10  ;;  %v2567_v29 = vsel %vm490_vm4, %v2565_v21, %v11093_v12  ;;  %v2817_v20 = vmax.f32 %v2804_v53, 0.0  ;;  %v2560_v11 = vmax.f32 %v11106_v61, 0.0  ;;  %9124 = vmatprep.subr.mxu0 %v8007_v44  ;;  %v8989_v39 = vpop.f32.mrf.mxu0  ;;  %9082 = vmatpush3.msra.mxu1 %v7981_v51 }
 0x1f8   : > { %2425 = vst.msk [vmem:[#allocation2 + $0x63] sm:$0x1f] %vm618_vm14, %v2423_v15  ;;  %v2576_v7 = vmax.f32 %v2554_v40, %v2567_v29  ;;  %v2825_v23 = vsel %vm490_vm4, %v2823_v60, %v11102_v48  ;;  %v11141_v40 = vrot.slane %v2559_v59, 2  ;;  %v2818_v21 = vmax.f32 %v11110_v58, 0.0  ;;  %9125 = vmatpush3.msra.mxu0 %v8007_v44  ;;  %9083 = vmatprep.subr.mxu1 %v7980_v27  ;;  %v8004_v39 = vld [vmem:[%s12402_s3 + $0xd8] sm:$0xff] }
 0x1f9   : > { %v2834_v37 = vmax.f32 %v2812_v30, %v2825_v23  ;;  %v11143_v42 = vrot.slane %v2817_v20, 2  ;;  %9126 = vmatprep.subr.mxu0 %v8006_v25  ;;  %v8005_v30 = vld [vmem:[%s12402_s3 + $0xe0] sm:$0xff]  ;;  %9084 = vmatpush3.msra.mxu1 %v7980_v27  ;;  %v7977_v20 = vld [vmem:[%s12402_s3 + $0x90] sm:$0xff] }
 0x1fa   : > { %v2580_v2 = vsel %vm506_vm5, %v2576_v7, -inf  ;;  %v2587_v28 = vsel %vm514_vm6, %v2576_v7, -inf  ;;  %v2594_v35 = vsel %vm522_vm7, %v2576_v7, -inf  ;;  %v2601_v33 = vsel %vm530_vm8, %v2576_v7, -inf  ;;  %9127 = vmatpush3.msra.mxu0 %v8006_v25  ;;  %9085 = vmatprep.subr.mxu1 %v7979_v16 }
 0x1fb   : > { %v2581_v54 = vrot.slane %v2580_v2, 4  ;;  %v2588_v10 = vrot.slane %v2587_v28, 4  ;;  %v2595_v3 = vrot.slane %v2594_v35, 4  ;;  %v2602_v60 = vrot.slane %v2601_v33, 4  ;;  %9128 = vmatprep.subr.mxu0 %v8005_v30  ;;  %9086 = vmatpush3.msra.mxu1 %v7979_v16 }
 0x1fc   : > { %v2838_v17 = vsel %vm506_vm5, %v2834_v37, -inf  ;;  %v2845_v57 = vsel %vm514_vm6, %v2834_v37, -inf  ;;  %v2852_v1 = vsel %vm522_vm7, %v2834_v37, -inf  ;;  %v2859_v38 = vsel %vm530_vm8, %v2834_v37, -inf  ;;  %9087 = vmatprep.subr.mxu1 %v7978_v34  ;;  %9129 = vmatpush3.msra.mxu0 %v8005_v30 }
 0x1fd   : > { %v2582_v62 = vmax.f32 %v2580_v2, %v2581_v54  ;;  %v2589_v63 = vmax.f32 %v2587_v28, %v2588_v10  ;;  %v2596_v26 = vmax.f32 %v2594_v35, %v2595_v3  ;;  %v2603_v53 = vmax.f32 %v2601_v33, %v2602_v60  ;;  %9088 = vmatpush3.msra.mxu1 %v7978_v34  ;;  %v7976_v35 = vld [vmem:[%s12402_s3 + $0x88] sm:$0xff]  ;;  %v8003_v3 = vld [vmem:[%s12402_s3 + $0xd0] sm:$0xff] }
 0x1fe   : > { %v2839_v15 = vrot.slane %v2838_v17, 4  ;;  %v2846_v51 = vrot.slane %v2845_v57, 4  ;;  %v2853_v44 = vrot.slane %v2852_v1, 4  ;;  %v2860_v29 = vrot.slane %v2859_v38, 4  ;;  %9089 = vmatprep.subr.mxu1 %v7977_v20  ;;  %9130 = vmatprep.subr.mxu0 %v8004_v39 }
 0x1ff   : > { %v3734_v59 = vld [vmem:[#allocation2 + $0x60] sm:$0xff]  ;;  %v2583_v27 = vrot.slane %v2582_v62, 2  ;;  %v2590_v7 = vrot.slane %v2589_v63, 2  ;;  %v2597_v23 = vrot.slane %v2596_v26, 2  ;;  %v2604_v25 = vrot.slane %v2603_v53, 2  ;;  %9090 = vmatpush3.msra.mxu1 %v7977_v20  ;;  %9131 = vmatpush3.msra.mxu0 %v8004_v39 }
 0x200   : > { %9027 = vmatprep.mubr.msk.f32.mxu1 %vm341_vm3, %v3734_v59  ;;  %v2840_v37 = vmax.f32 %v2838_v17, %v2839_v15  ;;  %v2847_v16 = vmax.f32 %v2845_v57, %v2846_v51  ;;  %v2854_v2 = vmax.f32 %v2852_v1, %v2853_v44  ;;  %v2861_v28 = vmax.f32 %v2859_v38, %v2860_v29  ;;  %v7975_v1 = vld [vmem:[%s12402_s3 + $0x80] sm:$0xff]  ;;  %v8002_v29 = vld [vmem:[%s12402_s3 + $0xc8] sm:$0xff] }
 0x201   : > { %v2584_v33 = vmax.f32 %v2582_v62, %v2583_v27  ;;  %v2591_v30 = vmax.f32 %v2589_v63, %v2590_v7  ;;  %v2598_v54 = vmax.f32 %v2596_v26, %v2597_v23  ;;  %v2605_v10 = vmax.f32 %v2603_v53, %v2604_v25  ;;  %9091 = vmatprep.subr.mxu1 %v7976_v35  ;;  %v8001_v39 = vld [vmem:[%s12402_s3 + $0xc0] sm:$0xff] }
 0x202   : > { %v2841_v60 = vrot.slane %v2840_v37, 2  ;;  %v2848_v34 = vrot.slane %v2847_v16, 2  ;;  %v2855_v17 = vrot.slane %v2854_v2, 2  ;;  %v2862_v57 = vrot.slane %v2861_v28, 2  ;;  %9092 = vmatpush3.msra.mxu1 %v7976_v35  ;;  %9132 = vmatprep.subr.mxu0 %v8003_v3 }
 0x203   : > { %v2585_v38 = vrot.slane %v2584_v33, 1  ;;  %v2592_v62 = vrot.slane %v2591_v30, 1  ;;  %v2599_v63 = vrot.slane %v2598_v54, 1  ;;  %v2606_v26 = vrot.slane %v2605_v10, 1  ;;  %9093 = vmatprep.subr.mxu1 %v7975_v1  ;;  %9133 = vmatpush3.msra.mxu0 %v8003_v3 }
 0x204   : > { %v2842_v53 = vmax.f32 %v2840_v37, %v2841_v60  ;;  %v2849_v15 = vmax.f32 %v2847_v16, %v2848_v34  ;;  %v2856_v51 = vmax.f32 %v2854_v2, %v2855_v17  ;;  %v2863_v44 = vmax.f32 %v2861_v28, %v2862_v57  ;;  %9094 = vmatpush3.msra.mxu1 %v7975_v1 }
 0x205   : > { %v2586_v59 = vmax.f32 %v2584_v33, %v2585_v38  ;;  %v2593_v20 = vmax.f32 %v2591_v30, %v2592_v62  ;;  %v2600_v27 = vmax.f32 %v2598_v54, %v2599_v63  ;;  %v2607_v7 = vmax.f32 %v2605_v10, %v2606_v26  ;;  %9134 = vmatprep.subr.mxu0 %v8002_v29  ;;  %v11195_v10 = vpop.f32.mrf.mxu0  ;;  %v11227_v38 = vld [vmem:[%s12402_s3 + $0x138] sm:$0xff] }
 0x206   : > { %v2843_v23 = vrot.slane %v2842_v53, 1  ;;  %v2850_v25 = vrot.slane %v2849_v15, 1  ;;  %v2857_v49 = vrot.slane %v2856_v51, 1  ;;  %v2864_v47 = vrot.slane %v2863_v44, 1  ;;  %9135 = vmatpush3.msra.mxu0 %v8002_v29  ;;  %9165 = vmatprep.subr.mxu1 %v11227_v38 }
 0x207   : > { %v2671_v37 = vsel %vm375_vm0, %v2586_v59, %v2593_v20  ;;  %v2569_v16 = vsel %vm490_vm4, %v11093_v12, %v11141_v40  ;;  %v2827_v2 = vsel %vm490_vm4, %v11102_v48, %v11143_v42  ;;  %v2570_v28 = vrot.slane %v2560_v11, 2  ;;  %9136 = vmatprep.subr.mxu0 %v8001_v39 }
 0x208   : > { %v2672_v35 = vsel %vm602_vm9, %v2671_v37, %v2600_v27  ;;  %v2844_v33 = vmax.f32 %v2842_v53, %v2843_v23  ;;  %v2851_v30 = vmax.f32 %v2849_v15, %v2850_v25  ;;  %v2858_v54 = vmax.f32 %v2856_v51, %v2857_v49  ;;  %9137 = vmatpush3.msra.mxu0 %v8001_v39 }
 0x209   : > { %v11198_v3 = vsel %vm604_vm10, %v2672_v35, %v2607_v7  ;;  %v2865_v12 = vmax.f32 %v2863_v44, %v2864_v47  ;;  %v2577_v60 = vmax.f32 %v2555_v52, %v2569_v16  ;;  %v2835_v48 = vmax.f32 %v2813_v18, %v2827_v2  ;;  %v8992_v47 = vpop.f32.mrf.mxu0 }
 0x20a   : > { %v2929_v61 = vsel %vm375_vm0, %v2844_v33, %v2851_v30  ;;  %v2571_v11 = vsel %vm490_vm4, %v11141_v40, %v2570_v28  ;;  %v2579_v49 = vmax.f32 %v2557_v24, %v2570_v28  ;;  %v11211_v34 = vrot.slane %v2818_v21, 2 }
 0x20b   : > { %v2930_v56 = vsel %vm602_vm9, %v2929_v61, %v2858_v54  ;;  %v2608_v14 = vsel %vm506_vm5, %v2577_v60, -inf  ;;  %v2615_v52 = vsel %vm514_vm6, %v2577_v60, -inf  ;;  %v2622_v18 = vsel %vm522_vm7, %v2577_v60, -inf }
 0x20c   : > { %v11218_v17 = vsel %vm604_vm10, %v2930_v56, %v2865_v12  ;;  %v2609_v40 = vrot.slane %v2608_v14, 4  ;;  %v2616_v19 = vrot.slane %v2615_v52, 4  ;;  %v2623_v24 = vrot.slane %v2622_v18, 4 }
 0x20d   : > { %v2629_v58 = vsel %vm530_vm8, %v2577_v60, -inf  ;;  %v2866_v21 = vsel %vm506_vm5, %v2835_v48, -inf  ;;  %v2873_v57 = vsel %vm514_vm6, %v2835_v48, -inf  ;;  %v2880_v1 = vsel %vm522_vm7, %v2835_v48, -inf }
 0x20e   : > { %v2610_v62 = vmax.f32 %v2608_v14, %v2609_v40  ;;  %v2617_v63 = vmax.f32 %v2615_v52, %v2616_v19  ;;  %v2624_v26 = vmax.f32 %v2622_v18, %v2623_v24  ;;  %v2630_v53 = vrot.slane %v2629_v58, 4 }
 0x20f   : > { %v2867_v15 = vrot.slane %v2866_v21, 4  ;;  %v2874_v51 = vrot.slane %v2873_v57, 4  ;;  %v2881_v44 = vrot.slane %v2880_v1, 4  ;;  %v2887_v29 = vsel %vm530_vm8, %v2835_v48, -inf }
 0x210   : > { %v2611_v59 = vrot.slane %v2610_v62, 2  ;;  %v2618_v20 = vrot.slane %v2617_v63, 2  ;;  %v2625_v27 = vrot.slane %v2624_v26, 2  ;;  %v2631_v7 = vmax.f32 %v2629_v58, %v2630_v53 }
 0x211   : > { %v2868_v23 = vmax.f32 %v2866_v21, %v2867_v15  ;;  %v2875_v25 = vmax.f32 %v2873_v57, %v2874_v51  ;;  %v2882_v39 = vmax.f32 %v2880_v1, %v2881_v44  ;;  %v2888_v37 = vrot.slane %v2887_v29, 4  ;;  %v11239_v51 = vld [vmem:[%s12402_s3 + $0x178] sm:$0xff] }
 0x212   : > { %v2612_v16 = vmax.f32 %v2610_v62, %v2611_v59  ;;  %v2619_v2 = vmax.f32 %v2617_v63, %v2618_v20  ;;  %v2626_v28 = vmax.f32 %v2624_v26, %v2625_v27  ;;  %v2632_v35 = vrot.slane %v2631_v7, 2  ;;  %9208 = vmatprep.subr.mxu0 %v11239_v51 }
 0x213   : > { %v2869_v33 = vrot.slane %v2868_v23, 2  ;;  %v2876_v30 = vrot.slane %v2875_v25, 2  ;;  %v2883_v54 = vrot.slane %v2882_v39, 2  ;;  %v2889_v12 = vmax.f32 %v2887_v29, %v2888_v37 }
 0x214   : > { %v2613_v60 = vrot.slane %v2612_v16, 1  ;;  %v2620_v61 = vrot.slane %v2619_v2, 1  ;;  %v2627_v47 = vrot.slane %v2626_v28, 1  ;;  %v2633_v48 = vmax.f32 %v2631_v7, %v2632_v35 }
 0x215   : > { %v2870_v56 = vmax.f32 %v2868_v23, %v2869_v33  ;;  %v2877_v14 = vmax.f32 %v2875_v25, %v2876_v30  ;;  %v2884_v52 = vmax.f32 %v2882_v39, %v2883_v54  ;;  %v2890_v18 = vrot.slane %v2889_v12, 2 }
 0x216   : > { %v2614_v40 = vmax.f32 %v2612_v16, %v2613_v60  ;;  %v2621_v19 = vmax.f32 %v2619_v2, %v2620_v61  ;;  %v2628_v24 = vmax.f32 %v2626_v28, %v2627_v47  ;;  %v2634_v58 = vrot.slane %v2633_v48, 1 }
 0x217   : > { %v2871_v21 = vrot.slane %v2870_v56, 1  ;;  %v2878_v57 = vrot.slane %v2877_v14, 1  ;;  %v2885_v1 = vrot.slane %v2884_v52, 1  ;;  %v2891_v62 = vmax.f32 %v2889_v12, %v2890_v18 }
 0x218   : > { %v2635_v63 = vmax.f32 %v2633_v48, %v2634_v58  ;;  %v2674_v26 = vsel %vm606_vm11, %v11198_v3, %v2614_v40  ;;  %v2578_v53 = vmax.f32 %v2556_v0, %v2571_v11  ;;  %v2664_v15 = vsel %vm506_vm5, %v2579_v49, -inf }
 0x219   : > { %v2675_v44 = vsel %vm608_vm12, %v2674_v26, %v2621_v19  ;;  %v2872_v29 = vmax.f32 %v2870_v56, %v2871_v21  ;;  %v2879_v59 = vmax.f32 %v2877_v14, %v2878_v57  ;;  %v2886_v20 = vmax.f32 %v2884_v52, %v2885_v1 }
 0x21a   : > { %v2676_v27 = vsel %vm490_vm4, %v2675_v44, %v2628_v24  ;;  %v2892_v3 = vrot.slane %v2891_v62, 1  ;;  %v2636_v31 = vsel %vm506_vm5, %v2578_v53, -inf  ;;  %v2643_v0 = vsel %vm514_vm6, %v2578_v53, -inf }
 0x21b   : > { %v2677_v11 = vsel %vm611_vm13, %v2676_v27, %v2635_v63  ;;  %v2932_v49 = vsel %vm606_vm11, %v11218_v17, %v2872_v29  ;;  %v2637_v7 = vrot.slane %v2636_v31, 4  ;;  %v2644_v23 = vrot.slane %v2643_v0, 4 }
 0x21c   : > { %2682 = vst.msk [vmem:[#allocation2 + $0x68] sm:$0xff] %vm341_vm3, %v2677_v11  ;;  %v2893_v25 = vmax.f32 %v2891_v62, %v2892_v3  ;;  %v2933_v39 = vsel %vm608_vm12, %v2932_v49, %v2879_v59  ;;  %v2650_v37 = vsel %vm522_vm7, %v2578_v53, -inf  ;;  %v2657_v16 = vsel %vm530_vm8, %v2578_v53, -inf }
 0x21d   : > { %v2934_v2 = vsel %vm490_vm4, %v2933_v39, %v2886_v20  ;;  %v2638_v28 = vmax.f32 %v2636_v31, %v2637_v7  ;;  %v2645_v35 = vmax.f32 %v2643_v0, %v2644_v23  ;;  %v2651_v33 = vrot.slane %v2650_v37, 4 }
 0x21e   : > { %v2935_v30 = vsel %vm611_vm13, %v2934_v2, %v2893_v25  ;;  %v2658_v54 = vrot.slane %v2657_v16, 4  ;;  %v2665_v17 = vrot.slane %v2664_v15, 4  ;;  %v2829_v12 = vsel %vm490_vm4, %v11143_v42, %v11211_v34 }
 0x21f   : > { %2940 = vst.msk [vmem:[#allocation2 + $0x75] sm:$0xff] %vm341_vm3, %v2935_v30  ;;  %v2639_v60 = vrot.slane %v2638_v28, 2  ;;  %v2646_v61 = vrot.slane %v2645_v35, 2  ;;  %v2652_v47 = vmax.f32 %v2650_v37, %v2651_v33  ;;  %v12464_v48 = vmax.f32 %v11057_v45, 0.0 }
 0x220   : > { %v2659_v14 = vmax.f32 %v2657_v16, %v2658_v54  ;;  %v2666_v52 = vmax.f32 %v2664_v15, %v2665_v17  ;;  %v12465_v18 = vmax.f32 %v11068_v55, 0.0  ;;  %v11266_v19 = vadd.f32 %v11009_v8, %v10832_v32 }
 0x221   : > { %v2836_v56 = vmax.f32 %v12464_v48, %v2829_v12  ;;  %v2640_v24 = vmax.f32 %v2638_v28, %v2639_v60  ;;  %v2647_v42 = vmax.f32 %v2645_v35, %v2646_v61  ;;  %v2653_v58 = vrot.slane %v2652_v47, 2 }
 0x222   : > { %v2837_v40 = vmax.f32 %v12465_v18, %v11211_v34  ;;  %v2660_v57 = vrot.slane %v2659_v14, 2  ;;  %v2667_v1 = vrot.slane %v2666_v52, 2 }
 0x223   : > { %v2894_v21 = vsel %vm506_vm5, %v2836_v56, -inf  ;;  %v2901_v45 = vsel %vm514_vm6, %v2836_v56, -inf  ;;  %v2641_v63 = vrot.slane %v2640_v24, 1  ;;  %v2648_v26 = vrot.slane %v2647_v42, 1  ;;  %v3735_v55 = vld [vmem:[#allocation2 + $0x68] sm:$0xff] }
 0x224   : > { %v2895_v62 = vrot.slane %v2894_v21, 4  ;;  %v2654_v53 = vmax.f32 %v2652_v47, %v2653_v58  ;;  %v2902_v15 = vrot.slane %v2901_v45, 4  ;;  %v3983_v34 = vld [vmem:[#allocation2 + $0x61] sm:$0xff]  ;;  %v2661_v44 = vmax.f32 %v2659_v14, %v2660_v57  ;;  %9028 = vmatmul.mubr.msk.f32.gmra.mxu1 %vm341_vm3, %v3735_v55 }
 0x225   : > { %v2668_v29 = vmax.f32 %v2666_v52, %v2667_v1  ;;  %v2908_v59 = vsel %vm522_vm7, %v2836_v56, -inf  ;;  %9070 = vmatprep.mubr.msk.f32.mxu0 %vm341_vm3, %v3983_v34  ;;  %v2642_v20 = vmax.f32 %v2640_v24, %v2641_v63  ;;  %v2649_v27 = vmax.f32 %v2647_v42, %v2648_v26  ;;  %v12466_v63 = vld [vmem:[#allocation7_spill] sm:$0xff]  ;;  %v12467_v55 = vld [vmem:[#allocation8_spill] sm:$0xff] }
 0x226   : > { %v2896_v32 = vmax.f32 %v2894_v21, %v2895_v62  ;;  %v2655_v3 = vrot.slane %v2654_v53, 1  ;;  %v2903_v31 = vmax.f32 %v2901_v45, %v2902_v15  ;;  %v2662_v0 = vrot.slane %v2661_v44, 1 }
 0x227   : > { %v2669_v11 = vrot.slane %v2668_v29, 1  ;;  %v2909_v7 = vrot.slane %v2908_v59, 4  ;;  %v2678_v25 = vsel %vm375_vm0, %v2642_v20, %v2649_v27  ;;  %v2915_v37 = vsel %vm530_vm8, %v2836_v56, -inf  ;;  %v12470_v27 = vld [vmem:[#allocation10_spill] sm:$0xff] }
 0x228   : > { %v2897_v49 = vrot.slane %v2896_v32, 2  ;;  %v2656_v23 = vmax.f32 %v2654_v53, %v2655_v3  ;;  %v2904_v39 = vrot.slane %v2903_v31, 2  ;;  %v2663_v16 = vmax.f32 %v2661_v44, %v2662_v0 }
 0x229   : > { %v2670_v2 = vmax.f32 %v2668_v29, %v2669_v11  ;;  %v2910_v35 = vmax.f32 %v2908_v59, %v2909_v7  ;;  %v2916_v54 = vrot.slane %v2915_v37, 4  ;;  %v2922_v17 = vsel %vm506_vm5, %v2837_v40, -inf  ;;  %v12468_v29 = vld [vmem:[#allocation9_spill] sm:$0xff]  ;;  %v12469_v59 = vld [vmem:[#allocation11_spill] sm:$0xff] }
 0x22a   : > { %v2898_v28 = vmax.f32 %v2896_v32, %v2897_v49  ;;  %v2679_v33 = vsel %vm602_vm9, %v2678_v25, %v2656_v23  ;;  %v2905_v30 = vmax.f32 %v2903_v31, %v2904_v39  ;;  %v2923_v47 = vrot.slane %v2922_v17, 4  ;;  %v12471_v31 = vld [vmem:[#allocation14_spill] sm:$0xff]  ;;  %v12472_v23 = vld [vmem:[#allocation15_spill] sm:$0xff] }
 0x22b   : > { %v2680_v12 = vsel %vm604_vm10, %v2679_v33, %v2663_v16  ;;  %v2911_v61 = vrot.slane %v2910_v35, 2  ;;  %v2917_v52 = vmax.f32 %v2915_v37, %v2916_v54  ;;  %v3042_v42 = vadd.f32 %v11009_v8, %v10837_v36 }
 0x22c   : > { %v2899_v60 = vrot.slane %v2898_v28, 1  ;;  %v2681_v48 = vsel %vm606_vm11, %v2680_v12, %v2670_v2  ;;  %v2906_v14 = vrot.slane %v2905_v30, 1  ;;  %v2924_v24 = vmax.f32 %v2922_v17, %v2923_v47  ;;  %v12473_v12 = vld [vmem:[#allocation16_spill] sm:$0xff] }
 0x22d   : > { %2683 = vst.msk [vmem:[#allocation2 + $0x70] sm:$0x1f] %vm618_vm14, %v2681_v48  ;;  %v2912_v18 = vmax.f32 %v2910_v35, %v2911_v61  ;;  %v2918_v21 = vrot.slane %v2917_v52, 2  ;;  %v3070_v40 = vmax.f32 %v11134_v50, 0.0  ;;  %v11285_v57 = vadd.f32 %v11009_v8, %v10847_v43 }
 0x22e   : > { %v2900_v56 = vmax.f32 %v2898_v28, %v2899_v60  ;;  %v2907_v58 = vmax.f32 %v2905_v30, %v2906_v14  ;;  %v2925_v62 = vrot.slane %v2924_v24, 2  ;;  %v3328_v45 = vmax.f32 %v11266_v19, 0.0 }
 0x22f   : > { %v2913_v1 = vrot.slane %v2912_v18, 1  ;;  %v11290_v26 = vadd.f32 %v11009_v8, %v12466_v63  ;;  %v2919_v53 = vmax.f32 %v2917_v52, %v2918_v21  ;;  %v3071_v36 = vmax.f32 %v3042_v42, 0.0 }
 0x230   : > { %v2936_v15 = vsel %vm375_vm0, %v2900_v56, %v2907_v58  ;;  %v11295_v34 = vadd.f32 %v11009_v8, %v12467_v55  ;;  %v2926_v44 = vmax.f32 %v2924_v24, %v2925_v62  ;;  %v3329_v43 = vmax.f32 %v11285_v57, 0.0 }
 0x231   : > { %v2914_v50 = vmax.f32 %v2912_v18, %v2913_v1  ;;  %v11300_v32 = vadd.f32 %v11009_v8, %v12468_v29  ;;  %v2920_v19 = vrot.slane %v2919_v53, 1  ;;  %v11304_v20 = vadd.f32 %v11009_v8, %v12469_v59 }
 0x232   : > { %v3057_v3 = vadd.f32 %v11009_v8, %v12470_v27  ;;  %v3315_v0 = vadd.f32 %v11009_v8, %v12471_v31  ;;  %v2927_v11 = vrot.slane %v2926_v44, 1  ;;  %v3062_v25 = vadd.f32 %v11009_v8, %v12472_v23 }
 0x233   : > { %v2937_v49 = vsel %vm602_vm9, %v2936_v15, %v2914_v50  ;;  %v3073_v7 = vmax.f32 %v11300_v32, 0.0  ;;  %v2921_v39 = vmax.f32 %v2919_v53, %v2920_v19  ;;  %v3331_v37 = vmax.f32 %v11304_v20, 0.0 }
 0x234   : > { %v3074_v16 = vmax.f32 %v3057_v3, 0.0  ;;  %v3332_v2 = vmax.f32 %v3315_v0, 0.0  ;;  %v3736_v28 = vld [vmem:[#allocation2 + $0x70] sm:$0xff]  ;;  %v2928_v30 = vmax.f32 %v2926_v44, %v2927_v11  ;;  %v3075_v17 = vmax.f32 %v3062_v25, 0.0 }
 0x235   : > { %v3984_v35 = vld [vmem:[#allocation2 + $0x69] sm:$0xff]  ;;  %v3985_v33 = vld [vmem:[#allocation2 + $0x71] sm:$0xff]  ;;  %v3081_v54 = vrot.slane %v3073_v7, 2  ;;  %v3320_v60 = vadd.f32 %v11009_v8, %v12473_v12  ;;  %9030 = vmatprep.mubr.msk.f32.mxu1 %vm341_vm3, %v3736_v28  ;;  %v2938_v61 = vsel %vm604_vm10, %v2937_v49, %v2921_v39  ;;  %v3339_v47 = vrot.slane %v3331_v37, 2 }
 0x236   : > { %9071 = vmatmul.mubr.msk.f32.gmra.mxu0 %vm341_vm3, %v3984_v35  ;;  %v3082_v48 = vrot.slane %v3074_v16, 2  ;;  %v11324_v14 = vrot.slane %v3332_v2, 2  ;;  %v2939_v52 = vsel %vm606_vm11, %v2938_v61, %v2928_v30  ;;  %v11328_v56 = vrot.slane %v3075_v17, 2 }
 0x237   : > { %9073 = vmatprep.mubr.msk.f32.mxu0 %vm341_vm3, %v3985_v33  ;;  %v3333_v18 = vmax.f32 %v3320_v60, 0.0  ;;  %v11332_v24 = vadd.f32 %v11009_v8, %v10965_v6  ;;  %2941 = vst.msk [vmem:[#allocation2 + $0x7d] sm:$0x1f] %vm618_vm14, %v2939_v52  ;;  %v3072_v42 = vmax.f32 %v11290_v26, 0.0  ;;  %v11341_v1 = vadd.f32 %v11009_v8, %v10980_v41 }
 0x238   : > { %v3083_v58 = vsel %vm490_vm4, %v3081_v54, %v3082_v48  ;;  %v3341_v21 = vsel %vm490_vm4, %v3339_v47, %v11324_v14  ;;  %v3330_v62 = vmax.f32 %v11295_v34, 0.0  ;;  %v3085_v6 = vsel %vm490_vm4, %v3082_v48, %v11328_v56 }
 0x239   : > { %v3092_v63 = vmax.f32 %v3070_v40, %v3083_v58  ;;  %v3350_v53 = vmax.f32 %v3328_v45, %v3341_v21  ;;  %v11346_v15 = vmax.f32 %v3071_v36, %v3085_v6  ;;  %v11348_v55 = vrot.slane %v3333_v18, 2 }
 0x23a   : > { %v3076_v50 = vmax.f32 %v11332_v24, 0.0  ;;  %v3334_v44 = vmax.f32 %v11341_v1, 0.0 }
 0x23b   : > { %v3096_v29 = vsel %vm506_vm5, %v3092_v63, -inf  ;;  %v3103_v41 = vsel %vm514_vm6, %v3092_v63, -inf  ;;  %v3110_v8 = vsel %vm522_vm7, %v3092_v63, -inf  ;;  %v3117_v40 = vsel %vm530_vm8, %v3092_v63, -inf }
 0x23c   : > { %v3097_v45 = vrot.slane %v3096_v29, 4  ;;  %v3104_v19 = vrot.slane %v3103_v41, 4  ;;  %v3111_v59 = vrot.slane %v3110_v8, 4  ;;  %v3118_v27 = vrot.slane %v3117_v40, 4 }
 0x23d   : > { %v3354_v36 = vsel %vm506_vm5, %v3350_v53, -inf  ;;  %v3361_v3 = vsel %vm514_vm6, %v3350_v53, -inf  ;;  %v3368_v31 = vsel %vm522_vm7, %v3350_v53, -inf  ;;  %v3375_v0 = vsel %vm530_vm8, %v3350_v53, -inf }
 0x23e   : > { %v3098_v11 = vmax.f32 %v3096_v29, %v3097_v45  ;;  %v3105_v49 = vmax.f32 %v3103_v41, %v3104_v19  ;;  %v3112_v23 = vmax.f32 %v3110_v8, %v3111_v59  ;;  %v3119_v25 = vmax.f32 %v3117_v40, %v3118_v27  ;;  %v3737_v35 = vld [vmem:[#allocation2 + $0x78] sm:$0xff] }
 0x23f   : > { %v3355_v39 = vrot.slane %v3354_v36, 4  ;;  %v3362_v16 = vrot.slane %v3361_v3, 4  ;;  %v3369_v2 = vrot.slane %v3368_v31, 4  ;;  %v3376_v28 = vrot.slane %v3375_v0, 4  ;;  %v3986_v33 = vld [vmem:[#allocation2 + $0x79] sm:$0xff]  ;;  %9031 = vmatmul.mubr.msk.f32.gmra.mxu1 %vm341_vm3, %v3737_v35 }
 0x240   : > { %v3099_v30 = vrot.slane %v3098_v11, 2  ;;  %v3106_v54 = vrot.slane %v3105_v49, 2  ;;  %v3113_v17 = vrot.slane %v3112_v23, 2  ;;  %v3120_v12 = vrot.slane %v3119_v25, 2  ;;  %9074 = vmatmul.mubr.msk.f32.gmra.mxu0 %vm341_vm3, %v3986_v33 }
 0x241   : > { %v3356_v60 = vmax.f32 %v3354_v36, %v3355_v39  ;;  %v3363_v61 = vmax.f32 %v3361_v3, %v3362_v16  ;;  %v3370_v47 = vmax.f32 %v3368_v31, %v3369_v2  ;;  %v3377_v48 = vmax.f32 %v3375_v0, %v3376_v28 }
 0x242   : > { %v3100_v52 = vmax.f32 %v3098_v11, %v3099_v30  ;;  %v3107_v18 = vmax.f32 %v3105_v49, %v3106_v54  ;;  %v3114_v58 = vmax.f32 %v3112_v23, %v3113_v17  ;;  %v3121_v21 = vmax.f32 %v3119_v25, %v3120_v12 }
 0x243   : > { %v3357_v63 = vrot.slane %v3356_v60, 2  ;;  %v3364_v53 = vrot.slane %v3363_v61, 2  ;;  %v3371_v6 = vrot.slane %v3370_v47, 2  ;;  %v3378_v29 = vrot.slane %v3377_v48, 2 }
 0x244   : > { %v3101_v41 = vrot.slane %v3100_v52, 1  ;;  %v3108_v8 = vrot.slane %v3107_v18, 1  ;;  %v3115_v40 = vrot.slane %v3114_v58, 1  ;;  %v3122_v45 = vrot.slane %v3121_v21, 1 }
 0x245   : > { %v3358_v19 = vmax.f32 %v3356_v60, %v3357_v63  ;;  %v3365_v59 = vmax.f32 %v3363_v61, %v3364_v53  ;;  %v3372_v27 = vmax.f32 %v3370_v47, %v3371_v6  ;;  %v3379_v35 = vmax.f32 %v3377_v48, %v3378_v29 }
 0x246   : > { %v3102_v36 = vmax.f32 %v3100_v52, %v3101_v41  ;;  %v3109_v3 = vmax.f32 %v3107_v18, %v3108_v8  ;;  %v3116_v31 = vmax.f32 %v3114_v58, %v3115_v40  ;;  %v3123_v0 = vmax.f32 %v3121_v21, %v3122_v45 }
 0x247   : > { %v3359_v11 = vrot.slane %v3358_v19, 1  ;;  %v3366_v49 = vrot.slane %v3365_v59, 1  ;;  %v3373_v23 = vrot.slane %v3372_v27, 1  ;;  %v3380_v25 = vrot.slane %v3379_v35, 1 }
 0x248   : > { %v3187_v39 = vsel %vm375_vm0, %v3102_v36, %v3109_v3  ;;  %v3124_v16 = vsel %vm506_vm5, %v11346_v15, -inf  ;;  %v3131_v2 = vsel %vm514_vm6, %v11346_v15, -inf  ;;  %v3138_v28 = vsel %vm522_vm7, %v11346_v15, -inf }
 0x249   : > { %v3188_v33 = vsel %vm602_vm9, %v3187_v39, %v3116_v31  ;;  %v3360_v30 = vmax.f32 %v3358_v19, %v3359_v11  ;;  %v3367_v54 = vmax.f32 %v3365_v59, %v3366_v49  ;;  %v3374_v17 = vmax.f32 %v3372_v27, %v3373_v23 }
 0x24a   : > { %v3189_v12 = vsel %vm604_vm10, %v3188_v33, %v3123_v0  ;;  %v3381_v60 = vmax.f32 %v3379_v35, %v3380_v25  ;;  %v3125_v61 = vrot.slane %v3124_v16, 4  ;;  %v3132_v47 = vrot.slane %v3131_v2, 4 }
 0x24b   : > { %v3445_v48 = vsel %vm375_vm0, %v3360_v30, %v3367_v54  ;;  %v3139_v52 = vrot.slane %v3138_v28, 4  ;;  %v3145_v18 = vsel %vm530_vm8, %v11346_v15, -inf  ;;  %v3343_v58 = vsel %vm490_vm4, %v11324_v14, %v11348_v55 }
 0x24c   : > { %v3446_v21 = vsel %vm602_vm9, %v3445_v48, %v3374_v17  ;;  %v3126_v63 = vmax.f32 %v3124_v16, %v3125_v61  ;;  %v3133_v53 = vmax.f32 %v3131_v2, %v3132_v47  ;;  %v3146_v6 = vrot.slane %v3145_v18, 4 }
 0x24d   : > { %v3447_v29 = vsel %vm604_vm10, %v3446_v21, %v3381_v60  ;;  %v3140_v41 = vmax.f32 %v3138_v28, %v3139_v52  ;;  %v3351_v8 = vmax.f32 %v3329_v43, %v3343_v58  ;;  %v3086_v40 = vrot.slane %v3076_v50, 2 }
 0x24e   : > { %v3127_v45 = vrot.slane %v3126_v63, 2  ;;  %v3134_v15 = vrot.slane %v3133_v53, 2  ;;  %v3147_v19 = vmax.f32 %v3145_v18, %v3146_v6  ;;  %v11385_v14 = vrot.slane %v3334_v44, 2 }
 0x24f   : > { %v3141_v59 = vrot.slane %v3140_v41, 2  ;;  %v3382_v27 = vsel %vm506_vm5, %v3351_v8, -inf  ;;  %v3389_v35 = vsel %vm514_vm6, %v3351_v8, -inf  ;;  %v3396_v36 = vsel %vm522_vm7, %v3351_v8, -inf }
 0x250   : > { %v3128_v3 = vmax.f32 %v3126_v63, %v3127_v45  ;;  %v3135_v57 = vmax.f32 %v3133_v53, %v3134_v15  ;;  %v3148_v43 = vrot.slane %v3147_v19, 2  ;;  %v3383_v31 = vrot.slane %v3382_v27, 4 }
 0x251   : > { %v3142_v24 = vmax.f32 %v3140_v41, %v3141_v59  ;;  %v3390_v50 = vrot.slane %v3389_v35, 4  ;;  %v3397_v0 = vrot.slane %v3396_v36, 4  ;;  %v3403_v11 = vsel %vm530_vm8, %v3351_v8, -inf }
 0x252   : > { %v3129_v49 = vrot.slane %v3128_v3, 1  ;;  %v3136_v1 = vrot.slane %v3135_v57, 1  ;;  %v3149_v44 = vmax.f32 %v3147_v19, %v3148_v43  ;;  %v3384_v23 = vmax.f32 %v3382_v27, %v3383_v31 }
 0x253   : > { %v3143_v25 = vrot.slane %v3142_v24, 1  ;;  %v3391_v39 = vmax.f32 %v3389_v35, %v3390_v50  ;;  %v3398_v16 = vmax.f32 %v3396_v36, %v3397_v0  ;;  %v3404_v2 = vrot.slane %v3403_v11, 4 }
 0x254   : > { %v3130_v28 = vmax.f32 %v3128_v3, %v3129_v49  ;;  %v3137_v33 = vmax.f32 %v3135_v57, %v3136_v1  ;;  %v3150_v30 = vrot.slane %v3149_v44, 1  ;;  %v3385_v54 = vrot.slane %v3384_v23, 2 }
 0x255   : > { %v3144_v17 = vmax.f32 %v3142_v24, %v3143_v25  ;;  %v3392_v60 = vrot.slane %v3391_v39, 2  ;;  %v3399_v61 = vrot.slane %v3398_v16, 2  ;;  %v3405_v47 = vmax.f32 %v3403_v11, %v3404_v2 }
 0x256   : > { %v3151_v48 = vmax.f32 %v3149_v44, %v3150_v30  ;;  %v3190_v52 = vsel %vm606_vm11, %v3189_v12, %v3130_v28  ;;  %v3386_v18 = vmax.f32 %v3384_v23, %v3385_v54  ;;  %v3087_v58 = vsel %vm490_vm4, %v11328_v56, %v3086_v40 }
 0x257   : > { %v3191_v21 = vsel %vm608_vm12, %v3190_v52, %v3137_v33  ;;  %v3393_v63 = vmax.f32 %v3391_v39, %v3392_v60  ;;  %v3400_v53 = vmax.f32 %v3398_v16, %v3399_v61  ;;  %v3406_v6 = vrot.slane %v3405_v47, 2 }
 0x258   : > { %v3192_v41 = vsel %vm490_vm4, %v3191_v21, %v3144_v17  ;;  %v3387_v8 = vrot.slane %v3386_v18, 1  ;;  %v3094_v45 = vmax.f32 %v3072_v42, %v3087_v58  ;;  %v3095_v15 = vmax.f32 %v3073_v7, %v3086_v40 }
 0x259   : > { %v3193_v12 = vsel %vm611_vm13, %v3192_v41, %v3151_v48  ;;  %v3394_v19 = vrot.slane %v3393_v63, 1  ;;  %v3401_v59 = vrot.slane %v3400_v53, 1  ;;  %v3407_v27 = vmax.f32 %v3405_v47, %v3406_v6 }
 0x25a   : > { %3198 = vst.msk [vmem:[#allocation2 + $0x82] sm:$0xff] %vm341_vm3, %v3193_v12  ;;  %v3388_v56 = vmax.f32 %v3386_v18, %v3387_v8  ;;  %v3152_v35 = vsel %vm506_vm5, %v3094_v45, -inf  ;;  %v3159_v36 = vsel %vm514_vm6, %v3094_v45, -inf  ;;  %v3166_v3 = vsel %vm522_vm7, %v3094_v45, -inf }
 0x25b   : > { %v3395_v57 = vmax.f32 %v3393_v63, %v3394_v19  ;;  %v3402_v26 = vmax.f32 %v3400_v53, %v3401_v59  ;;  %v3408_v42 = vrot.slane %v3407_v27, 1  ;;  %v3153_v43 = vrot.slane %v3152_v35, 4 }
 0x25c   : > { %v3448_v32 = vsel %vm606_vm11, %v3447_v29, %v3388_v56  ;;  %v3160_v7 = vrot.slane %v3159_v36, 4  ;;  %v3167_v40 = vrot.slane %v3166_v3, 4  ;;  %v3173_v31 = vsel %vm530_vm8, %v3094_v45, -inf }
 0x25d   : > { %v3409_v24 = vmax.f32 %v3407_v27, %v3408_v42  ;;  %v3449_v50 = vsel %vm608_vm12, %v3448_v32, %v3395_v57  ;;  %v3154_v0 = vmax.f32 %v3152_v35, %v3153_v43  ;;  %v3174_v11 = vrot.slane %v3173_v31, 4 }
 0x25e   : > { %v3450_v49 = vsel %vm490_vm4, %v3449_v50, %v3402_v26  ;;  %v3161_v1 = vmax.f32 %v3159_v36, %v3160_v7  ;;  %v3168_v44 = vmax.f32 %v3166_v3, %v3167_v40  ;;  %v3180_v23 = vsel %vm506_vm5, %v3095_v15, -inf }
 0x25f   : > { %v3451_v25 = vsel %vm611_vm13, %v3450_v49, %v3409_v24  ;;  %v3155_v39 = vrot.slane %v3154_v0, 2  ;;  %v3175_v16 = vmax.f32 %v3173_v31, %v3174_v11  ;;  %v3181_v29 = vrot.slane %v3180_v23, 4 }
 0x260   : > { %3456 = vst.msk [vmem:[#allocation2 + $0x8f] sm:$0xff] %vm341_vm3, %v3451_v25  ;;  %v3162_v2 = vrot.slane %v3161_v1, 2  ;;  %v3169_v28 = vrot.slane %v3168_v44, 2  ;;  %v3345_v33 = vsel %vm490_vm4, %v11348_v55, %v11385_v14  ;;  %v3353_v30 = vmax.f32 %v3331_v37, %v11385_v14  ;;  %v9586_v55 = vld [vmem:[%s12401_s2] ss:$0 sm:$0xff] }
 0x261   : > { %v3156_v54 = vmax.f32 %v3154_v0, %v3155_v39  ;;  %v3176_v17 = vrot.slane %v3175_v16, 2  ;;  %v3182_v60 = vmax.f32 %v3180_v23, %v3181_v29  ;;  %v3352_v61 = vmax.f32 %v3330_v62, %v3345_v33  ;;  %v3738_v47 = vld [vmem:[#allocation2 + $0x80] sm:$0xff]  ;;  %v11442_v29 = vpop.f32.mrf.mxu1 }
 0x262   : > { %v3987_v48 = vld [vmem:[#allocation2 + $0x81] sm:$0xff]  ;;  %v3163_v52 = vmax.f32 %v3161_v1, %v3162_v2  ;;  %v3170_v18 = vmax.f32 %v3168_v44, %v3169_v28  ;;  %v3438_v58 = vsel %vm506_vm5, %v3353_v30, -inf  ;;  %v11425_v21 = vadd.f32 %v9586_v55, %v11022_v22  ;;  %9033 = vmatprep.mubr.msk.f32.mxu1 %vm341_vm3, %v3738_v47  ;;  %v11451_v47 = vpop.f32.mrf.mxu0 }
 0x263   : > { %9076 = vmatprep.mubr.msk.f32.mxu0 %vm341_vm3, %v3987_v48  ;;  %v3157_v20 = vrot.slane %v3156_v54, 1  ;;  %v3177_v34 = vmax.f32 %v3175_v16, %v3176_v17  ;;  %v3183_v37 = vrot.slane %v3182_v60, 2  ;;  %v3410_v62 = vsel %vm506_vm5, %v3352_v61, -inf }
 0x264   : > { %v3164_v14 = vrot.slane %v3163_v52, 1  ;;  %v3171_v63 = vrot.slane %v3170_v18, 1  ;;  %v3411_v53 = vrot.slane %v3410_v62, 4  ;;  %v3417_v6 = vsel %vm514_vm6, %v3352_v61, -inf }
 0x265   : > { %v3158_v41 = vmax.f32 %v3156_v54, %v3157_v20  ;;  %v3178_v8 = vrot.slane %v3177_v34, 1  ;;  %v3184_v45 = vmax.f32 %v3182_v60, %v3183_v37  ;;  %v3418_v15 = vrot.slane %v3417_v6, 4 }
 0x266   : > { %v3165_v22 = vmax.f32 %v3163_v52, %v3164_v14  ;;  %v3172_v12 = vmax.f32 %v3170_v18, %v3171_v63  ;;  %v3412_v19 = vmax.f32 %v3410_v62, %v3411_v53  ;;  %v3424_v59 = vsel %vm522_vm7, %v3352_v61, -inf }
 0x267   : > { %v3179_v27 = vmax.f32 %v3177_v34, %v3178_v8  ;;  %v3185_v56 = vrot.slane %v3184_v45, 1  ;;  %v3419_v35 = vmax.f32 %v3417_v6, %v3418_v15  ;;  %v3425_v36 = vrot.slane %v3424_v59, 4  ;;  %v11460_v6 = vld [vmem:[%s12403_s4] ss:$0 sm:$0xff] }
 0x268   : > { %v3194_v3 = vsel %vm375_vm0, %v3158_v41, %v3165_v22  ;;  %v3413_v57 = vrot.slane %v3412_v19, 2  ;;  %v3431_v26 = vsel %vm530_vm8, %v3352_v61, -inf  ;;  %v3439_v42 = vrot.slane %v3438_v58, 4  ;;  %v4118_v41 = vpop.f32.mrf.mxu0 }
 0x269   : > { %v3186_v43 = vmax.f32 %v3184_v45, %v3185_v56  ;;  %v3195_v32 = vsel %vm602_vm9, %v3194_v3, %v3172_v12  ;;  %v3420_v7 = vrot.slane %v3419_v35, 2  ;;  %v3426_v40 = vmax.f32 %v3424_v59, %v3425_v36  ;;  %v4471_v56 = vld [vmem:[#allocation2 + $0xd] sm:$0xff] }
 0x26a   : > { %v3196_v31 = vsel %vm604_vm10, %v3195_v32, %v3179_v27  ;;  %v3414_v24 = vmax.f32 %v3412_v19, %v3413_v57  ;;  %v3432_v50 = vrot.slane %v3431_v26, 4  ;;  %v3440_v0 = vmax.f32 %v3438_v58, %v3439_v42  ;;  %v4221_v27 = vld [vmem:[#allocation2 + $0x2] sm:$0xff] }
 0x26b   : > { %v3197_v11 = vsel %vm606_vm11, %v3196_v31, %v3186_v43  ;;  %v3421_v49 = vmax.f32 %v3419_v35, %v3420_v7  ;;  %v3427_v1 = vrot.slane %v3426_v40, 2  ;;  %v3586_v44 = vmax.f32 %v11425_v21, 0.0 }
 0x26c   : > { %3199 = vst.msk [vmem:[#allocation2 + $0x8a] sm:$0x1f] %vm618_vm14, %v3197_v11  ;;  %v3415_v23 = vrot.slane %v3414_v24, 1  ;;  %v3433_v25 = vmax.f32 %v3431_v26, %v3432_v50  ;;  %v3441_v39 = vrot.slane %v3440_v0, 2  ;;  %v11440_v16 = vadd.f32 %v9586_v55, %v11034_v46  ;;  %v4472_v11 = vld [vmem:[#allocation2 + $0x15] sm:$0xff] }
 0x26d   : > { %v3422_v2 = vrot.slane %v3421_v49, 1  ;;  %v3428_v28 = vmax.f32 %v3426_v40, %v3427_v1  ;;  %v11445_v33 = vadd.f32 %v9586_v55, %v11059_v13  ;;  %v3573_v30 = vadd.f32 %v9586_v55, %v11076_v9  ;;  %v3868_v9 = vpop.f32.mrf.mxu1 }
 0x26e   : > { %v3416_v54 = vmax.f32 %v3414_v24, %v3415_v23  ;;  %v3434_v17 = vrot.slane %v3433_v25, 2  ;;  %v3442_v60 = vmax.f32 %v3440_v0, %v3441_v39  ;;  %v11449_v61 = vadd.f32 %v9586_v55, %v11041_v4  ;;  %v4222_v0 = vld [vmem:[#allocation2 + $0xa] sm:$0xff]  ;;  %v4223_v23 = vld [vmem:[#allocation2 + $0x12] sm:$0xff] }
 0x26f   : > { %v3423_v48 = vmax.f32 %v3421_v49, %v3422_v2  ;;  %v3429_v46 = vrot.slane %v3428_v28, 1  ;;  %v3589_v52 = vmax.f32 %v11445_v33, 0.0  ;;  %v3590_v18 = vmax.f32 %v3573_v30, 0.0  ;;  %v9014_v8 = vpop.f32.mrf.mxu1  ;;  %v8033_v49 = vld [vmem:[%s12402_s3 + $0x130] sm:$0xff]  ;;  %v4473_v30 = vld [vmem:[#allocation2 + $0x1d] sm:$0xff] }
 0x270   : > { %v3435_v58 = vmax.f32 %v3433_v25, %v3434_v17  ;;  %v3443_v21 = vrot.slane %v3442_v60, 1  ;;  %v3578_v13 = vadd.f32 %v9586_v55, %v11115_v5  ;;  %v3583_v20 = vadd.f32 %v9586_v55, %v11195_v10 }
 0x271   : > { %v3430_v34 = vmax.f32 %v3428_v28, %v3429_v46  ;;  %v3452_v37 = vsel %vm375_vm0, %v3416_v54, %v3423_v48  ;;  %v3597_v62 = vrot.slane %v3589_v52, 2  ;;  %v3598_v4 = vrot.slane %v3590_v18, 2  ;;  %v9057_v54 = vpop.f32.mrf.mxu0  ;;  %v11496_v48 = vld [vmem:[#allocation2 + $0x1a] sm:$0xff] }
 0x272   : > { %v3436_v14 = vrot.slane %v3435_v58, 1  ;;  %v3591_v63 = vmax.f32 %v3578_v13, 0.0  ;;  %v3592_v53 = vmax.f32 %v3583_v20, 0.0  ;;  %v3587_v10 = vmax.f32 %v11440_v16, 0.0  ;;  %v8032_v13 = vld [vmem:[%s12402_s3 + $0x128] sm:$0xff]  ;;  %v8059_v20 = vld [vmem:[%s12402_s3 + $0x170] sm:$0xff] }
 0x273   : > { %v3453_v5 = vsel %vm602_vm9, %v3452_v37, %v3430_v34  ;;  %v3599_v55 = vsel %vm490_vm4, %v3597_v62, %v3598_v4  ;;  %v3739_v45 = vld [vmem:[#allocation2 + $0x88] sm:$0xff]  ;;  %v3955_v22 = vadd.f32 %v11460_v6, %v3868_v9  ;;  %v3444_v36 = vmax.f32 %v3442_v60, %v3443_v21 }
 0x274   : > { %v3988_v15 = vld [vmem:[#allocation2 + $0x89] sm:$0xff]  ;;  %v3437_v12 = vmax.f32 %v3435_v58, %v3436_v14  ;;  %v3608_v19 = vmax.f32 %v3586_v44, %v3599_v55  ;;  %v3600_v59 = vrot.slane %v3591_v63, 2  ;;  %9034 = vmatmul.mubr.msk.f32.gmra.mxu1 %vm341_vm3, %v3739_v45  ;;  %v3602_v35 = vrot.slane %v3592_v53, 2 }
 0x275   : > { %9077 = vmatmul.mubr.msk.f32.gmra.mxu0 %vm341_vm3, %v3988_v15  ;;  %v3588_v3 = vmax.f32 %v11449_v61, 0.0  ;;  %9095 = vmatprep.mubr.msk.f32.mxu1 %vm341_vm3, %v4221_v27  ;;  %v11471_v57 = vadd.f32 %v4118_v41, %v3955_v22  ;;  %v3958_v26 = vadd.f32 %v9014_v8, %v11460_v6  ;;  %v4474_v21 = vld [vmem:[#allocation2 + $0x25] sm:$0xff] }
 0x276   : > { %9138 = vmatprep.mubr.msk.f32.mxu0 %vm341_vm3, %v4471_v56  ;;  %v3454_v42 = vsel %vm604_vm10, %v3453_v5, %v3437_v12  ;;  %v3612_v43 = vsel %vm506_vm5, %v3608_v19, -inf  ;;  %v3619_v32 = vsel %vm514_vm6, %v3608_v19, -inf  ;;  %v3626_v7 = vsel %vm522_vm7, %v3608_v19, -inf }
 0x277   : > { %v3455_v40 = vsel %vm606_vm11, %v3454_v42, %v3444_v36  ;;  %v3613_v31 = vrot.slane %v3612_v43, 4  ;;  %v3620_v24 = vrot.slane %v3619_v32, 4  ;;  %v3627_v50 = vrot.slane %v3626_v7, 4  ;;  %v8058_v42 = vld [vmem:[%s12402_s3 + $0x168] sm:$0xff] }
 0x278   : > { %3457 = vst.msk [vmem:[#allocation2 + $0x97] sm:$0x1f] %vm618_vm14, %v3455_v40  ;;  %v3633_v1 = vsel %vm530_vm8, %v3608_v19, -inf  ;;  %v3601_v44 = vsel %vm490_vm4, %v3598_v4, %v3600_v59  ;;  %9096 = vmatmul.mubr.msk.f32.vlgmr.msra.gmra.mxu1 %vm341_vm3, %v4222_v0  ;;  %v3603_v25 = vsel %vm490_vm4, %v3600_v59, %v3602_v35  ;;  %v3611_v39 = vmax.f32 %v3589_v52, %v3602_v35  ;;  %v11514_v4 = vld [vmem:[#allocation2 + $0x22] sm:$0xff]  ;;  %v11519_v19 = vld [vmem:[#allocation2 + $0x2a] sm:$0xff] }
 0x279   : > { %9139 = vmatmul.mubr.msk.f32.vlgmr.msra.gmra.mxu0 %vm341_vm3, %v4472_v11  ;;  %v3614_v16 = vmax.f32 %v3612_v43, %v3613_v31  ;;  %v3621_v2 = vmax.f32 %v3619_v32, %v3620_v24  ;;  %v3628_v28 = vmax.f32 %v3626_v7, %v3627_v50  ;;  %v3634_v33 = vrot.slane %v3633_v1, 4  ;;  %9166 = vmatpush3.msra.mxu1 %v11227_v38  ;;  %v8031_v59 = vld [vmem:[%s12402_s3 + $0x120] sm:$0xff]  ;;  %v11534_v24 = vpop.f32.mrf.mxu1 }
 0x27a   : > { %9098 = vmatprep.mubr.msk.f32.mxu1 %vm341_vm3, %v4223_v23  ;;  %v3609_v17 = vmax.f32 %v3587_v10, %v3601_v44  ;;  %9141 = vmatprep.mubr.msk.f32.mxu0 %vm341_vm3, %v4473_v30  ;;  %v11491_v60 = vmax.f32 %v3588_v3, %v3603_v25  ;;  %v11494_v61 = vsel %vm506_vm5, %v3611_v39, -inf  ;;  %v11498_v46 = vadd.f32 %v9057_v54, %v3958_v26  ;;  %v4476_v3 = vld [vmem:[#allocation2 + $0x35] sm:$0xff]  ;;  %v4477_v31 = vld [vmem:[#allocation2 + $0x3d] sm:$0xff]  ;;  %v4478_v54 = vld [vmem:[#allocation2 + $0x45] sm:$0xff] }
 0x27b   : > { %9167 = vmatprep.subr.mxu1 %v8033_v49  ;;  %v3615_v52 = vrot.slane %v3614_v16, 2  ;;  %v3622_v18 = vrot.slane %v3621_v2, 2  ;;  %v3629_v38 = vrot.slane %v3628_v28, 2  ;;  %v3635_v58 = vmax.f32 %v3633_v1, %v3634_v33  ;;  %9209 = vmatpush3.msra.mxu0 %v11239_v51  ;;  %v4475_v51 = vld [vmem:[#allocation2 + $0x2d] sm:$0xff]  ;;  %v11542_v39 = vld [vmem:[#allocation2 + $0x3a] sm:$0xff] }
 0x27c   : > { %9168 = vmatpush3.msra.mxu1 %v8033_v49  ;;  %v3640_v9 = vsel %vm506_vm5, %v3609_v17, -inf  ;;  %v3647_v34 = vsel %vm514_vm6, %v3609_v17, -inf  ;;  %v3654_v37 = vsel %vm522_vm7, %v3609_v17, -inf  ;;  %v3661_v62 = vsel %vm530_vm8, %v3609_v17, -inf  ;;  %9210 = vmatprep.subr.mxu0 %v8059_v20  ;;  %v11526_v26 = vld [vmem:[#allocation2 + $0x32] sm:$0xff]  ;;  %v11550_v17 = vld [vmem:[#allocation2 + $0x42] sm:$0xff] }
 0x27d   : > { %9099 = vmatmul.mubr.msk.f32.gmra.mxu1 %vm341_vm3, %v11496_v48  ;;  %9142 = vmatmul.mubr.msk.f32.gmra.mxu0 %vm341_vm3, %v4474_v21  ;;  %v3616_v14 = vmax.f32 %v3614_v16, %v3615_v52  ;;  %v3623_v63 = vmax.f32 %v3621_v2, %v3622_v18  ;;  %v3630_v53 = vmax.f32 %v3628_v28, %v3629_v38  ;;  %v3636_v41 = vrot.slane %v3635_v58, 2  ;;  %v8030_v16 = vld [vmem:[%s12402_s3 + $0x118] sm:$0xff]  ;;  %v4479_v21 = vld [vmem:[#allocation2 + $0x4d] sm:$0xff] }
 0x27e   : > { %9101 = vmatprep.mubr.msk.f32.mxu1 %vm341_vm3, %v11514_v4  ;;  %9144 = vmatprep.mubr.msk.f32.mxu0 %vm341_vm3, %v4475_v51  ;;  %v3641_v8 = vrot.slane %v3640_v9, 4  ;;  %v3648_v5 = vrot.slane %v3647_v34, 4  ;;  %v3655_v10 = vrot.slane %v3654_v37, 4  ;;  %v3662_v55 = vrot.slane %v3661_v62, 4  ;;  %v11564_v51 = vpop.f32.mrf.mxu0 }
 0x27f   : > { %9169 = vmatprep.subr.mxu1 %v8032_v13  ;;  %v3617_v45 = vrot.slane %v3616_v14, 1  ;;  %v3624_v15 = vrot.slane %v3623_v63, 1  ;;  %v3631_v22 = vrot.slane %v3630_v53, 1  ;;  %v3637_v12 = vmax.f32 %v3635_v58, %v3636_v41  ;;  %9211 = vmatpush3.msra.mxu0 %v8059_v20  ;;  %v11559_v20 = vpop.f32.mrf.mxu1 }
 0x280   : > { %9170 = vmatpush3.msra.mxu1 %v8032_v13  ;;  %v3642_v27 = vmax.f32 %v3640_v9, %v3641_v8  ;;  %v3649_v56 = vmax.f32 %v3647_v34, %v3648_v5  ;;  %v3656_v35 = vmax.f32 %v3654_v37, %v3655_v10  ;;  %v3663_v36 = vmax.f32 %v3661_v62, %v3662_v55  ;;  %v8029_v13 = vld [vmem:[%s12402_s3 + $0x110] sm:$0xff] }
 0x281   : > { %9102 = vmatmul.mubr.msk.f32.gmra.mxu1 %vm341_vm3, %v11519_v19  ;;  %v3618_v43 = vmax.f32 %v3616_v14, %v3617_v45  ;;  %v3625_v32 = vmax.f32 %v3623_v63, %v3624_v15  ;;  %v3632_v7 = vmax.f32 %v3630_v53, %v3631_v22  ;;  %v3638_v40 = vrot.slane %v3637_v12, 1  ;;  %9145 = vmatmul.mubr.msk.f32.gmra.mxu0 %vm341_vm3, %v4476_v3  ;;  %v11566_v8 = vld [vmem:[#allocation2 + $0x4a] sm:$0xff]  ;;  %v4480_v5 = vld [vmem:[#allocation2 + $0x55] sm:$0xff]  ;;  %v3888_v3 = vpop.f32.mrf.mxu1 }
 0x282   : > { %9104 = vmatprep.mubr.msk.f32.mxu1 %vm341_vm3, %v11526_v26  ;;  %v3643_v50 = vrot.slane %v3642_v27, 2  ;;  %v3650_v0 = vrot.slane %v3649_v56, 2  ;;  %v3657_v11 = vrot.slane %v3656_v35, 2  ;;  %v3664_v49 = vrot.slane %v3663_v36, 2  ;;  %9147 = vmatprep.mubr.msk.f32.mxu0 %vm341_vm3, %v4477_v31  ;;  %v11572_v22 = vld [vmem:[#allocation2 + $0x52] sm:$0xff] }
 0x283   : > { %9171 = vmatprep.subr.mxu1 %v8031_v59  ;;  %v3639_v1 = vmax.f32 %v3637_v12, %v3638_v40  ;;  %v3703_v44 = vsel %vm375_vm0, %v3618_v43, %v3625_v32  ;;  %v3668_v23 = vsel %vm506_vm5, %v11491_v60, -inf  ;;  %v3675_v25 = vsel %vm514_vm6, %v11491_v60, -inf  ;;  %9212 = vmatprep.subr.mxu0 %v8058_v42  ;;  %v8028_v12 = vld [vmem:[%s12402_s3 + $0x108] sm:$0xff] }
 0x284   : > { %9172 = vmatpush3.msra.mxu1 %v8031_v59  ;;  %v3704_v2 = vsel %vm602_vm9, %v3703_v44, %v3632_v7  ;;  %v3644_v28 = vmax.f32 %v3642_v27, %v3643_v50  ;;  %v3651_v33 = vmax.f32 %v3649_v56, %v3650_v0  ;;  %v3658_v30 = vmax.f32 %v3656_v35, %v3657_v11  ;;  %v8057_v59 = vld [vmem:[%s12402_s3 + $0x160] sm:$0xff]  ;;  %v11586_v7 = vpop.f32.mrf.mxu0 }
 0x285   : > { %9105 = vmatmul.mubr.msk.f32.gmra.mxu1 %vm341_vm3, %v11542_v39  ;;  %v3705_v52 = vsel %vm604_vm10, %v3704_v2, %v3639_v1  ;;  %v3665_v18 = vmax.f32 %v3663_v36, %v3664_v49  ;;  %v3669_v38 = vrot.slane %v3668_v23, 4  ;;  %v3676_v58 = vrot.slane %v3675_v25, 4  ;;  %9148 = vmatmul.mubr.msk.f32.gmra.mxu0 %vm341_vm3, %v4478_v54  ;;  %v11589_v11 = vld [vmem:[#allocation2 + $0x5a] sm:$0xff]  ;;  %v9020_v1 = vpop.f32.mrf.mxu1  ;;  %v11598_v2 = vld [vmem:[#allocation2 + $0x62] sm:$0xff] }
 0x286   : > { %9107 = vmatprep.mubr.msk.f32.mxu1 %vm341_vm3, %v11550_v17  ;;  %v3645_v9 = vrot.slane %v3644_v28, 1  ;;  %v3652_v34 = vrot.slane %v3651_v33, 1  ;;  %v3659_v37 = vrot.slane %v3658_v30, 1  ;;  %v3682_v62 = vsel %vm522_vm7, %v11491_v60, -inf  ;;  %9150 = vmatprep.mubr.msk.f32.mxu0 %vm341_vm3, %v4479_v21  ;;  %v8056_v49 = vld [vmem:[%s12402_s3 + $0x158] sm:$0xff] }
 0x287   : > { %9173 = vmatprep.subr.mxu1 %v8030_v16  ;;  %v3666_v14 = vrot.slane %v3665_v18, 1  ;;  %v3670_v63 = vmax.f32 %v3668_v23, %v3669_v38  ;;  %v3677_v53 = vmax.f32 %v3675_v25, %v3676_v58  ;;  %v3683_v41 = vrot.slane %v3682_v62, 4  ;;  %9213 = vmatpush3.msra.mxu0 %v8058_v42  ;;  %v4138_v58 = vpop.f32.mrf.mxu0 }
 0x288   : > { %9174 = vmatpush3.msra.mxu1 %v8030_v16  ;;  %v3646_v10 = vmax.f32 %v3644_v28, %v3645_v9  ;;  %v3653_v55 = vmax.f32 %v3651_v33, %v3652_v34  ;;  %v3660_v45 = vmax.f32 %v3658_v30, %v3659_v37  ;;  %v3689_v15 = vsel %vm530_vm8, %v11491_v60, -inf  ;;  %v4481_v60 = vld [vmem:[#allocation2 + $0x5d] sm:$0xff]  ;;  %9214 = vmatprep.subr.mxu0 %v8057_v59  ;;  %v4482_v16 = vld [vmem:[#allocation2 + $0x65] sm:$0xff]  ;;  %v8055_v37 = vld [vmem:[%s12402_s3 + $0x150] sm:$0xff] }
 0x289   : > { %9108 = vmatmul.mubr.msk.f32.gmra.mxu1 %vm341_vm3, %v11566_v8  ;;  %9175 = vmatprep.subr.mxu1 %v8029_v13  ;;  %v3667_v27 = vmax.f32 %v3665_v18, %v3666_v14  ;;  %v3671_v56 = vrot.slane %v3670_v63, 2  ;;  %v3678_v35 = vrot.slane %v3677_v53, 2  ;;  %v3684_v36 = vmax.f32 %v3682_v62, %v3683_v41  ;;  %v8027_v28 = vld [vmem:[%s12402_s3 + $0x100] sm:$0xff]  ;;  %v11609_v34 = vld [vmem:[#allocation2 + $0x6a] sm:$0xff]  ;;  %v3898_v14 = vpop.f32.mrf.mxu1  ;;  %v4484_v41 = vld [vmem:[#allocation2 + $0x75] sm:$0xff] }
 0x28a   : > { %9151 = vmatmul.mubr.msk.f32.gmra.mxu0 %vm341_vm3, %v4480_v5  ;;  %9110 = vmatprep.mubr.msk.f32.mxu1 %vm341_vm3, %v11572_v22  ;;  %v3706_v42 = vsel %vm606_vm11, %v3705_v52, %v3646_v10  ;;  %v3690_v43 = vrot.slane %v3689_v15, 4  ;;  %v3697_v32 = vrot.slane %v11494_v61, 4  ;;  %v3959_v62 = vadd.f32 %v11460_v6, %v3888_v3  ;;  %v11617_v5 = vld [vmem:[#allocation2 + $0x72] sm:$0xff]  ;;  %v9063_v10 = vpop.f32.mrf.mxu0  ;;  %v11632_v3 = vld [vmem:[#allocation2 + $0x7a] sm:$0xff] }
 0x28b   : > { %9153 = vmatprep.mubr.msk.f32.mxu0 %vm341_vm3, %v4481_v60  ;;  %9176 = vmatpush3.msra.mxu1 %v8029_v13  ;;  %v3707_v40 = vsel %vm608_vm12, %v3706_v42, %v3653_v55  ;;  %v3672_v31 = vmax.f32 %v3670_v63, %v3671_v56  ;;  %v3679_v50 = vmax.f32 %v3677_v53, %v3678_v35  ;;  %v3685_v0 = vrot.slane %v3684_v36, 2  ;;  %v8053_v42 = vld [vmem:[%s12402_s3 + $0x140] sm:$0xff] }
 0x28c   : > { %9177 = vmatprep.subr.mxu1 %v8028_v12  ;;  %v3708_v44 = vsel %vm490_vm4, %v3707_v40, %v3660_v45  ;;  %v3691_v23 = vmax.f32 %v3689_v15, %v3690_v43  ;;  %v3698_v25 = vmax.f32 %v11494_v61, %v3697_v32  ;;  %9215 = vmatpush3.msra.mxu0 %v8057_v59  ;;  %v4483_v61 = vld [vmem:[#allocation2 + $0x6d] sm:$0xff]  ;;  %v4485_v15 = vld [vmem:[#allocation2 + $0x7d] sm:$0xff]  ;;  %v4486_v40 = vld [vmem:[#allocation2 + $0x85] sm:$0xff]  ;;  %vm6012_vm4 = vcmask 259076  }
 0x28d   : > { %9111 = vmatmul.mubr.msk.f32.gmra.mxu1 %vm341_vm3, %v11589_v11  ;;  %v3709_v33 = vsel %vm611_vm13, %v3708_v44, %v3667_v27  ;;  %v3673_v30 = vrot.slane %v3672_v31, 1  ;;  %v3680_v54 = vrot.slane %v3679_v50, 1  ;;  %v3686_v52 = vmax.f32 %v3684_v36, %v3685_v0  ;;  %9216 = vmatprep.subr.mxu0 %v8056_v49 }
 0x28e   : > { %9154 = vmatmul.mubr.msk.f32.gmra.mxu0 %vm341_vm3, %v4482_v16  ;;  %9113 = vmatprep.mubr.msk.f32.mxu1 %vm341_vm3, %v11598_v2  ;;  %3714 = vst.msk [vmem:[#allocation2 + $0x9c] sm:$0xff] %vm341_vm3, %v3709_v33  ;;  %v3692_v18 = vrot.slane %v3691_v23, 2  ;;  %v3699_v38 = vrot.slane %v3698_v25, 2  ;;  %v11626_v59 = vadd.f32 %v4138_v58, %v3959_v62  ;;  %v3962_v35 = vadd.f32 %v9020_v1, %v11460_v6  ;;  %v4487_v1 = vld [vmem:[#allocation2 + $0x8d] sm:$0xff]  ;;  %v4973_v58 = vld [vmem:[#allocation2 + $0x1f] sm:$0xff] }
 0x28f   : > { %9156 = vmatprep.mubr.msk.f32.mxu0 %vm341_vm3, %v4483_v61  ;;  %9178 = vmatpush3.msra.mxu1 %v8028_v12  ;;  %v3674_v21 = vmax.f32 %v3672_v31, %v3673_v30  ;;  %v3681_v13 = vmax.f32 %v3679_v50, %v3680_v54  ;;  %v3687_v9 = vrot.slane %v3686_v52, 1  ;;  %v8054_v12 = vld [vmem:[%s12402_s3 + $0x148] sm:$0xff]  ;;  %v3961_v36 = vadd.f32 %v11460_v6, %v3898_v14  ;;  %v8086_v50 = vld [vmem:[%s12402_s3 + $0x1b8] sm:$0xff] }
 0x290   : > { %9179 = vmatprep.subr.mxu1 %v8027_v28  ;;  %v3693_v63 = vmax.f32 %v3691_v23, %v3692_v18  ;;  %v3700_v53 = vmax.f32 %v3698_v25, %v3699_v38  ;;  %9217 = vmatpush3.msra.mxu0 %v8056_v49  ;;  %v11639_v31 = vld [vmem:[#allocation2 + $0x82] sm:$0xff]  ;;  %v11644_v0 = vadd.f32 %v9063_v10, %v3962_v35  ;;  %v4148_v49 = vpop.f32.mrf.mxu0  ;;  %v11654_v16 = vld [vmem:[#allocation2 + $0x8a] sm:$0xff]  ;;  %v4972_v61 = vld [vmem:[#allocation2 + $0x17] sm:$0xff]  ;;  %vm6020_vm5 = vcmask 261126  }
 0x291   : > { %9114 = vmatmul.mubr.msk.f32.gmra.mxu1 %vm341_vm3, %v11609_v34  ;;  %v3688_v55 = vmax.f32 %v3686_v52, %v3687_v9  ;;  %v3710_v45 = vsel %vm375_vm0, %v3674_v21, %v3681_v13  ;;  %9218 = vmatprep.subr.mxu0 %v8055_v37  ;;  %v11649_v44 = vadd.f32 %v4148_v49, %v3961_v36  ;;  %v4721_v30 = vld [vmem:[#allocation2 + $0xe] sm:$0xff]  ;;  %v4722_v52 = vld [vmem:[#allocation2 + $0x16] sm:$0xff]  ;;  %v4723_v38 = vld [vmem:[#allocation2 + $0x1e] sm:$0xff]  ;;  %vm6039_vm6 = vcmask 258048  }
 0x292   : > { %9157 = vmatmul.mubr.msk.f32.gmra.mxu0 %vm341_vm3, %v4484_v41  ;;  %9116 = vmatprep.mubr.msk.f32.mxu1 %vm341_vm3, %v11617_v5  ;;  %v3694_v27 = vrot.slane %v3693_v63, 1  ;;  %v3701_v56 = vrot.slane %v3700_v53, 1  ;;  %v4971_v54 = vld [vmem:[#allocation2 + $0xf] sm:$0xff]  ;;  %v4724_v13 = vld [vmem:[#allocation2 + $0x26] sm:$0xff] }
 0x293   : > { %9159 = vmatprep.mubr.msk.f32.mxu0 %vm341_vm3, %v4485_v15  ;;  %v3711_v60 = vsel %vm602_vm9, %v3710_v45, %v3688_v55  ;;  %9219 = vmatpush3.msra.mxu0 %v8055_v37  ;;  %v8085_v18 = vld [vmem:[%s12402_s3 + $0x1b0] sm:$0xff]  ;;  %v4974_v9 = vld [vmem:[#allocation2 + $0x27] sm:$0xff]  ;;  %v4727_v45 = vld [vmem:[#allocation2 + $0x3e] sm:$0xff] }
 0x294   : > { %9180 = vmatpush3.msra.mxu1 %v8027_v28  ;;  %v3695_v43 = vmax.f32 %v3693_v63, %v3694_v27  ;;  %v3702_v32 = vmax.f32 %v3700_v53, %v3701_v56  ;;  %9220 = vmatprep.subr.mxu0 %v8054_v12  ;;  %v8112_v28 = vld [vmem:[%s12402_s3 + $0x1f8] sm:$0xff]  ;;  %v8111_v21 = vld [vmem:[%s12402_s3 + $0x1f0] sm:$0xff]  ;;  %v8084_v62 = vld [vmem:[%s12402_s3 + $0x1a8] sm:$0xff] }
 0x295   : > { %9117 = vmatmul.mubr.msk.f32.gmra.mxu1 %vm341_vm3, %v11632_v3  ;;  %9221 = vmatpush3.msra.mxu0 %v8054_v12  ;;  %v4488_v33 = vld [vmem:[#allocation2 + $0x95] sm:$0xff]  ;;  %v8110_v63 = vld [vmem:[%s12402_s3 + $0x1e8] sm:$0xff]  ;;  %v8083_v15 = vld [vmem:[%s12402_s3 + $0x1a0] sm:$0xff] }
 0x296   : > { %9160 = vmatmul.mubr.msk.f32.gmra.mxu0 %vm341_vm3, %v4486_v40  ;;  %9119 = vmatprep.mubr.msk.f32.mxu1 %vm341_vm3, %v11639_v31  ;;  %v3712_v23 = vsel %vm604_vm10, %v3711_v60, %v3695_v43  ;;  %v4725_v37 = vld [vmem:[#allocation2 + $0x2e] sm:$0xff]  ;;  %v4726_v53 = vld [vmem:[#allocation2 + $0x36] sm:$0xff]  ;;  %v4977_v27 = vld [vmem:[#allocation2 + $0x3f] sm:$0xff] }
 0x297   : > { %9162 = vmatprep.mubr.msk.f32.mxu0 %vm341_vm3, %v4487_v1  ;;  %v3713_v25 = vsel %vm606_vm11, %v3712_v23, %v3702_v32  ;;  %9222 = vmatprep.subr.mxu0 %v8053_v42  ;;  %v4975_v14 = vld [vmem:[#allocation2 + $0x2f] sm:$0xff]  ;;  %v4976_v55 = vld [vmem:[#allocation2 + $0x37] sm:$0xff]  ;;  %v8109_v56 = vld [vmem:[%s12402_s3 + $0x1e0] sm:$0xff] }
 0x298   : > { %9251 = vmatprep.subr.mxu1 %v8086_v50  ;;  %3715 = vst.msk [vmem:[#allocation2 + $0xa4] sm:$0x1f] %vm618_vm14, %v3713_v25  ;;  %9223 = vmatpush3.msra.mxu0 %v8053_v42  ;;  %v4728_v42 = vld [vmem:[#allocation2 + $0x46] sm:$0xff]  ;;  %v4729_v40 = vld [vmem:[#allocation2 + $0x4e] sm:$0xff]  ;;  %v8108_v23 = vld [vmem:[%s12402_s3 + $0x1d8] sm:$0xff] }
 0x299   : > { %9120 = vmatmul.mubr.msk.f32.gmra.mxu1 %vm341_vm3, %v11654_v16  ;;  %9294 = vmatprep.subr.mxu0 %v8112_v28  ;;  %v4978_v32 = vld [vmem:[#allocation2 + $0x47] sm:$0xff]  ;;  %v4979_v1 = vld [vmem:[#allocation2 + $0x4f] sm:$0xff] }
 0x29a   : > { %9163 = vmatmul.mubr.msk.f32.gmra.mxu0 %vm341_vm3, %v4488_v33  ;;  %9181 = vmatprep.mubr.msk.f32.mxu1 %vm341_vm3, %v4721_v30  ;;  %v4730_v25 = vld [vmem:[#allocation2 + $0x56] sm:$0xff]  ;;  %v4731_v33 = vld [vmem:[#allocation2 + $0x5e] sm:$0xff] }
 0x29b   : > { %9224 = vmatprep.mubr.msk.f32.mxu0 %vm341_vm3, %v4971_v54  ;;  %v8081_v30 = vld [vmem:[%s12402_s3 + $0x190] sm:$0xff]  ;;  %v4981_v54 = vld [vmem:[#allocation2 + $0x5f] sm:$0xff] }
 0x29d   : > { %9182 = vmatmul.mubr.msk.f32.vlgmr.msra.gmra.mxu1 %vm341_vm3, %v4722_v52  ;;  %v8107_v52 = vld [vmem:[%s12402_s3 + $0x1d0] sm:$0xff] }
 0x29e   : > { %9225 = vmatmul.mubr.msk.f32.vlgmr.msra.gmra.mxu0 %vm341_vm3, %v4972_v61  ;;  %9252 = vmatpush3.msra.mxu1 %v8086_v50  ;;  %v8082_v50 = vld [vmem:[%s12402_s3 + $0x198] sm:$0xff]  ;;  %v4732_v61 = vld [vmem:[#allocation2 + $0x66] sm:$0xff] }
 0x29f   : > { %9184 = vmatprep.mubr.msk.f32.mxu1 %vm341_vm3, %v4723_v38  ;;  %9227 = vmatprep.mubr.msk.f32.mxu0 %vm341_vm3, %v4973_v58  ;;  %v4733_v38 = vld [vmem:[#allocation2 + $0x6e] sm:$0xff] }
 0x2a0   : > { %9253 = vmatprep.subr.mxu1 %v8085_v18  ;;  %9295 = vmatpush3.msra.mxu0 %v8112_v28  ;;  %v4980_v28 = vld [vmem:[#allocation2 + $0x57] sm:$0xff]  ;;  %v8080_v58 = vld [vmem:[%s12402_s3 + $0x188] sm:$0xff] }
 0x2a1   : > { %9185 = vmatmul.mubr.msk.f32.gmra.mxu1 %vm341_vm3, %v4724_v13  ;;  %9296 = vmatprep.subr.mxu0 %v8111_v21  ;;  %v8106_v13 = vld [vmem:[%s12402_s3 + $0x1c8] sm:$0xff] }
 0x2a2   : > { %9228 = vmatmul.mubr.msk.f32.gmra.mxu0 %vm341_vm3, %v4974_v9  ;;  %9187 = vmatprep.mubr.msk.f32.mxu1 %vm341_vm3, %v4725_v37  ;;  %v9023_v41 = vpop.f32.mrf.mxu1  ;;  %v4734_v9 = vld [vmem:[#allocation2 + $0x76] sm:$0xff] }
 0x2a3   : > { %9230 = vmatprep.mubr.msk.f32.mxu0 %vm341_vm3, %v4975_v14  ;;  %9254 = vmatpush3.msra.mxu1 %v8085_v18  ;;  %v9066_v10 = vpop.f32.mrf.mxu0  ;;  %v3964_v12 = vadd.f32 %v9023_v41, %v11460_v6  ;;  %v4982_v18 = vld [vmem:[#allocation2 + $0x67] sm:$0xff]  ;;  %v4984_v37 = vld [vmem:[#allocation2 + $0x77] sm:$0xff] }
 0x2a4   : > { %9255 = vmatprep.subr.mxu1 %v8084_v62  ;;  %9297 = vmatpush3.msra.mxu0 %v8111_v21  ;;  %v3908_v35 = vpop.f32.mrf.mxu1  ;;  %v4983_v21 = vld [vmem:[#allocation2 + $0x6f] sm:$0xff]  ;;  %v8079_v14 = vld [vmem:[%s12402_s3 + $0x180] sm:$0xff] }
 0x2a5   : > { %9188 = vmatmul.mubr.msk.f32.gmra.mxu1 %vm341_vm3, %v4726_v53  ;;  %9298 = vmatprep.subr.mxu0 %v8110_v63  ;;  %v11696_v36 = vadd.f32 %v9066_v10, %v3964_v12  ;;  %v3963_v60 = vadd.f32 %v11460_v6, %v3908_v35  ;;  %v4158_v43 = vpop.f32.mrf.mxu0  ;;  %v8105_v53 = vld [vmem:[%s12402_s3 + $0x1c0] sm:$0xff]  ;;  %v4737_v12 = vld [vmem:[#allocation2 + $0x8e] sm:$0xff] }
 0x2a6   : > { %9231 = vmatmul.mubr.msk.f32.gmra.mxu0 %vm341_vm3, %v4976_v55  ;;  %9190 = vmatprep.mubr.msk.f32.mxu1 %vm341_vm3, %v4727_v45  ;;  %v4736_v55 = vld [vmem:[#allocation2 + $0x86] sm:$0xff]  ;;  %v4987_v35 = vld [vmem:[#allocation2 + $0x8f] sm:$0xff] }
 0x2a7   : > { %9233 = vmatprep.mubr.msk.f32.mxu0 %vm341_vm3, %v4977_v27  ;;  %9256 = vmatpush3.msra.mxu1 %v8084_v62  ;;  %v11703_v49 = vadd.f32 %v4158_v43, %v3963_v60  ;;  %v4735_v62 = vld [vmem:[#allocation2 + $0x7e] sm:$0xff] }
 0x2a8   : > { %9257 = vmatprep.subr.mxu1 %v8083_v15  ;;  %9299 = vmatpush3.msra.mxu0 %v8110_v63  ;;  %v4985_v63 = vld [vmem:[#allocation2 + $0x7f] sm:$0xff] }
 0x2a9   : > { %9191 = vmatmul.mubr.msk.f32.gmra.mxu1 %vm341_vm3, %v4728_v42  ;;  %9300 = vmatprep.subr.mxu0 %v8109_v56  ;;  %v8138_v27 = vld [vmem:[%s12402_s3 + $0x238] sm:$0xff] }
 0x2aa   : > { %9234 = vmatmul.mubr.msk.f32.gmra.mxu0 %vm341_vm3, %v4978_v32  ;;  %9193 = vmatprep.mubr.msk.f32.mxu1 %vm341_vm3, %v4729_v40  ;;  %v4738_v32 = vld [vmem:[#allocation2 + $0x96] sm:$0xff] }
 0x2ab   : > { %9236 = vmatprep.mubr.msk.f32.mxu0 %vm341_vm3, %v4979_v1  ;;  %9258 = vmatpush3.msra.mxu1 %v8083_v15  ;;  %v4986_v15 = vld [vmem:[#allocation2 + $0x87] sm:$0xff]  ;;  %v5471_v1 = vld [vmem:[#allocation2 + $0x1b] sm:$0xff] }
 0x2ac   : > { %9259 = vmatprep.subr.mxu1 %v8082_v50  ;;  %9301 = vmatpush3.msra.mxu0 %v8109_v56 }
 0x2ad   : > { %9194 = vmatmul.mubr.msk.f32.gmra.mxu1 %vm341_vm3, %v4730_v25  ;;  %9302 = vmatprep.subr.mxu0 %v8108_v23  ;;  %v8137_v25 = vld [vmem:[%s12402_s3 + $0x230] sm:$0xff] }
 0x2ae   : > { %9237 = vmatmul.mubr.msk.f32.gmra.mxu0 %vm341_vm3, %v4980_v28  ;;  %9196 = vmatprep.mubr.msk.f32.mxu1 %vm341_vm3, %v4731_v33  ;;  %v5473_v28 = vld [vmem:[#allocation2 + $0x2b] sm:$0xff]  ;;  %v5475_v33 = vld [vmem:[#allocation2 + $0x3b] sm:$0xff] }
 0x2af   : > { %9239 = vmatprep.mubr.msk.f32.mxu0 %vm341_vm3, %v4981_v54  ;;  %9260 = vmatpush3.msra.mxu1 %v8082_v50  ;;  %v4988_v50 = vld [vmem:[#allocation2 + $0x97] sm:$0xff] }
 0x2b0   : > { %9261 = vmatprep.subr.mxu1 %v8081_v30  ;;  %9303 = vmatpush3.msra.mxu0 %v8108_v23  ;;  %v5472_v23 = vld [vmem:[#allocation2 + $0x23] sm:$0xff]  ;;  %v5479_v54 = vld [vmem:[#allocation2 + $0x5b] sm:$0xff] }
 0x2b1   : > { %9197 = vmatmul.mubr.msk.f32.gmra.mxu1 %vm341_vm3, %v4732_v61  ;;  %9304 = vmatprep.subr.mxu0 %v8107_v52  ;;  %v5483_v61 = vld [vmem:[#allocation2 + $0x7b] sm:$0xff] }
 0x2b2   : > { %9240 = vmatmul.mubr.msk.f32.gmra.mxu0 %vm341_vm3, %v4982_v18  ;;  %9199 = vmatprep.mubr.msk.f32.mxu1 %vm341_vm3, %v4733_v38  ;;  %v5485_v18 = vld [vmem:[#allocation2 + $0x8b] sm:$0xff]  ;;  %v5486_v38 = vld [vmem:[#allocation2 + $0x93] sm:$0xff] }
 0x2b3   : > { %9242 = vmatprep.mubr.msk.f32.mxu0 %vm341_vm3, %v4983_v21  ;;  %9262 = vmatpush3.msra.mxu1 %v8081_v30  ;;  %v5477_v30 = vld [vmem:[#allocation2 + $0x4b] sm:$0xff]  ;;  %v5238_v21 = vld [vmem:[#allocation2 + $0xa2] sm:$0xff] }
 0x2b4   : > { %9263 = vmatprep.subr.mxu1 %v8080_v58  ;;  %9305 = vmatpush3.msra.mxu0 %v8107_v52  ;;  %v5481_v52 = vld [vmem:[#allocation2 + $0x6b] sm:$0xff] }
 0x2b5   : > { %9200 = vmatmul.mubr.msk.f32.gmra.mxu1 %vm341_vm3, %v4734_v9  ;;  %9306 = vmatprep.subr.mxu0 %v8106_v13  ;;  %v9026_v41 = vpop.f32.mrf.mxu1  ;;  %v5722_v9 = vld [vmem:[#allocation2 + $0x24] sm:$0xff] }
 0x2b6   : > { %9243 = vmatmul.mubr.msk.f32.gmra.mxu0 %vm341_vm3, %v4984_v37  ;;  %9202 = vmatprep.mubr.msk.f32.mxu1 %vm341_vm3, %v4735_v62  ;;  %v9069_v10 = vpop.f32.mrf.mxu0  ;;  %v3966_v45 = vadd.f32 %v9026_v41, %v11460_v6  ;;  %v5723_v37 = vld [vmem:[#allocation2 + $0x2c] sm:$0xff]  ;;  %v5724_v62 = vld [vmem:[#allocation2 + $0x34] sm:$0xff] }
 0x2b7   : > { %9245 = vmatprep.mubr.msk.f32.mxu0 %vm341_vm3, %v4985_v63  ;;  %9264 = vmatpush3.msra.mxu1 %v8080_v58  ;;  %v3918_v56 = vpop.f32.mrf.mxu1  ;;  %v5487_v58 = vld [vmem:[#allocation2 + $0x9b] sm:$0xff]  ;;  %v5726_v63 = vld [vmem:[#allocation2 + $0x44] sm:$0xff] }
 0x2b8   : > { %9265 = vmatprep.subr.mxu1 %v8079_v14  ;;  %9307 = vmatpush3.msra.mxu0 %v8106_v13  ;;  %v11748_v60 = vadd.f32 %v9069_v10, %v3966_v45  ;;  %v3965_v42 = vadd.f32 %v11460_v6, %v3918_v56  ;;  %v4168_v43 = vpop.f32.mrf.mxu0  ;;  %v5721_v13 = vld [vmem:[#allocation2 + $0x1c] sm:$0xff]  ;;  %v5728_v41 = vld [vmem:[#allocation2 + $0x54] sm:$0xff]  ;;  %v5730_v45 = vld [vmem:[#allocation2 + $0x64] sm:$0xff] }
 0x2b9   : > { %9203 = vmatmul.mubr.msk.f32.gmra.mxu1 %vm341_vm3, %v4736_v55  ;;  %9308 = vmatprep.subr.mxu0 %v8105_v53  ;;  %v5729_v55 = vld [vmem:[#allocation2 + $0x5c] sm:$0xff] }
 0x2ba   : > { %9246 = vmatmul.mubr.msk.f32.gmra.mxu0 %vm341_vm3, %v4986_v15  ;;  %9205 = vmatprep.mubr.msk.f32.mxu1 %vm341_vm3, %v4737_v12  ;;  %v11752_v40 = vadd.f32 %v4168_v43, %v3965_v42  ;;  %v5731_v12 = vld [vmem:[#allocation2 + $0x6c] sm:$0xff]  ;;  %v5732_v43 = vld [vmem:[#allocation2 + $0x74] sm:$0xff] }
 0x2bb   : > { %9248 = vmatprep.mubr.msk.f32.mxu0 %vm341_vm3, %v4987_v35  ;;  %9266 = vmatpush3.msra.mxu1 %v8079_v14  ;;  %v5725_v14 = vld [vmem:[#allocation2 + $0x3c] sm:$0xff] }
 0x2bc   : > { %9309 = vmatpush3.msra.mxu0 %v8105_v53  ;;  %9337 = vmatprep.subr.mxu1 %v8138_v27  ;;  %v5727_v53 = vld [vmem:[#allocation2 + $0x4c] sm:$0xff] }
 0x2bd   : > { %9206 = vmatmul.mubr.msk.f32.gmra.mxu1 %vm341_vm3, %v4738_v32 }
 0x2be   : > { %9249 = vmatmul.mubr.msk.f32.gmra.mxu0 %vm341_vm3, %v4988_v50  ;;  %9267 = vmatprep.mubr.msk.f32.mxu1 %vm341_vm3, %v11496_v48  ;;  %v5474_v48 = vld [vmem:[#allocation2 + $0x33] sm:$0xff]  ;;  %v5733_v50 = vld [vmem:[#allocation2 + $0x7c] sm:$0xff] }
 0x2bf   : > { %9310 = vmatprep.mubr.msk.f32.mxu0 %vm341_vm3, %v5471_v1 }
 0x2c1   : > { %9268 = vmatmul.mubr.msk.f32.vlgmr.msra.gmra.mxu1 %vm341_vm3, %v11514_v4  ;;  %v8136_v4 = vld [vmem:[%s12402_s3 + $0x228] sm:$0xff] }
 0x2c2   : > { %9311 = vmatmul.mubr.msk.f32.vlgmr.msra.gmra.mxu0 %vm341_vm3, %v5472_v23  ;;  %9338 = vmatpush3.msra.mxu1 %v8138_v27  ;;  %v5734_v23 = vld [vmem:[#allocation2 + $0x84] sm:$0xff] }
 0x2c3   : > { %9270 = vmatprep.mubr.msk.f32.mxu1 %vm341_vm3, %v11519_v19  ;;  %9313 = vmatprep.mubr.msk.f32.mxu0 %vm341_vm3, %v5473_v28  ;;  %v5476_v19 = vld [vmem:[#allocation2 + $0x43] sm:$0xff]  ;;  %v5736_v28 = vld [vmem:[#allocation2 + $0x94] sm:$0xff] }
 0x2c4   : > { %9339 = vmatprep.subr.mxu1 %v8137_v25 }
 0x2c5   : > { %9271 = vmatmul.mubr.msk.f32.gmra.mxu1 %vm341_vm3, %v11526_v26  ;;  %v8135_v26 = vld [vmem:[%s12402_s3 + $0x220] sm:$0xff] }
 0x2c6   : > { %9314 = vmatmul.mubr.msk.f32.gmra.mxu0 %vm341_vm3, %v5474_v48  ;;  %9273 = vmatprep.mubr.msk.f32.mxu1 %vm341_vm3, %v11542_v39  ;;  %v5478_v39 = vld [vmem:[#allocation2 + $0x53] sm:$0xff] }
 0x2c7   : > { %9316 = vmatprep.mubr.msk.f32.mxu0 %vm341_vm3, %v5475_v33  ;;  %9340 = vmatpush3.msra.mxu1 %v8137_v25  ;;  %v5735_v25 = vld [vmem:[#allocation2 + $0x8c] sm:$0xff]  ;;  %v9587_v33 = vld [vmem:[%s12403_s4] ss:$0 sm:$0xff] }
 0x2c8   : > { %9341 = vmatprep.subr.mxu1 %v8136_v4 }
 0x2c9   : > { %9274 = vmatmul.mubr.msk.f32.gmra.mxu1 %vm341_vm3, %v11550_v17  ;;  %v8134_v17 = vld [vmem:[%s12402_s3 + $0x218] sm:$0xff] }
 0x2ca   : > { %9317 = vmatmul.mubr.msk.f32.gmra.mxu0 %vm341_vm3, %v5476_v19  ;;  %9276 = vmatprep.mubr.msk.f32.mxu1 %vm341_vm3, %v11566_v8  ;;  %v5480_v8 = vld [vmem:[#allocation2 + $0x63] sm:$0xff] }
 0x2cb   : > { %9319 = vmatprep.mubr.msk.f32.mxu0 %vm341_vm3, %v5477_v30  ;;  %9342 = vmatpush3.msra.mxu1 %v8136_v4 }
 0x2cc   : > { %9343 = vmatprep.subr.mxu1 %v8135_v26 }
 0x2cd   : > { %9277 = vmatmul.mubr.msk.f32.gmra.mxu1 %vm341_vm3, %v11572_v22  ;;  %v8133_v22 = vld [vmem:[%s12402_s3 + $0x210] sm:$0xff] }
 0x2ce   : > { %9320 = vmatmul.mubr.msk.f32.gmra.mxu0 %vm341_vm3, %v5478_v39  ;;  %9279 = vmatprep.mubr.msk.f32.mxu1 %vm341_vm3, %v11589_v11  ;;  %v5482_v11 = vld [vmem:[#allocation2 + $0x73] sm:$0xff]  ;;  %v5738_v39 = vld [vmem:[#allocation2 + $0xa4] sm:$0xff] }
 0x2cf   : > { %9322 = vmatprep.mubr.msk.f32.mxu0 %vm341_vm3, %v5479_v54  ;;  %9344 = vmatpush3.msra.mxu1 %v8135_v26 }
 0x2d0   : > { %9345 = vmatprep.subr.mxu1 %v8134_v17 }
 0x2d1   : > { %9280 = vmatmul.mubr.msk.f32.gmra.mxu1 %vm341_vm3, %v11598_v2  ;;  %v8132_v2 = vld [vmem:[%s12402_s3 + $0x208] sm:$0xff] }
 0x2d2   : > { %9323 = vmatmul.mubr.msk.f32.gmra.mxu0 %vm341_vm3, %v5480_v8  ;;  %9282 = vmatprep.mubr.msk.f32.mxu1 %vm341_vm3, %v11609_v34  ;;  %v5484_v34 = vld [vmem:[#allocation2 + $0x83] sm:$0xff] }
 0x2d3   : > { %9325 = vmatprep.mubr.msk.f32.mxu0 %vm341_vm3, %v5481_v52  ;;  %9346 = vmatpush3.msra.mxu1 %v8134_v17 }
 0x2d4   : > { %9347 = vmatprep.subr.mxu1 %v8133_v22 }
 0x2d5   : > { %9283 = vmatmul.mubr.msk.f32.gmra.mxu1 %vm341_vm3, %v11617_v5  ;;  %v8131_v5 = vld [vmem:[%s12402_s3 + $0x200] sm:$0xff] }
 0x2d6   : > { %9326 = vmatmul.mubr.msk.f32.gmra.mxu0 %vm341_vm3, %v5482_v11  ;;  %9285 = vmatprep.mubr.msk.f32.mxu1 %vm341_vm3, %v11632_v3  ;;  %v5236_v3 = vld [vmem:[#allocation2 + $0x92] sm:$0xff] }
 0x2d7   : > { %9328 = vmatprep.mubr.msk.f32.mxu0 %vm341_vm3, %v5483_v61  ;;  %9348 = vmatpush3.msra.mxu1 %v8133_v22  ;;  %v3956_v22 = vadd.f32 %v9587_v33, %v11442_v29 }
 0x2d8   : > { %9349 = vmatprep.subr.mxu1 %v8132_v2 }
 0x2d9   : > { %9286 = vmatmul.mubr.msk.f32.gmra.mxu1 %vm341_vm3, %v11639_v31  ;;  %v5237_v31 = vld [vmem:[#allocation2 + $0x9a] sm:$0xff] }
 0x2da   : > { %9329 = vmatmul.mubr.msk.f32.gmra.mxu0 %vm341_vm3, %v5484_v34  ;;  %9288 = vmatprep.mubr.msk.f32.mxu1 %vm341_vm3, %v11654_v16  ;;  %v5488_v16 = vld [vmem:[#allocation2 + $0xa3] sm:$0xff]  ;;  %v4206_v34 = vadd.f32 %v11451_v47, %v3956_v22 }
 0x2db   : > { %9331 = vmatprep.mubr.msk.f32.mxu0 %vm341_vm3, %v5485_v18  ;;  %9350 = vmatpush3.msra.mxu1 %v8132_v2 }
 0x2dc   : > { %9351 = vmatprep.subr.mxu1 %v8131_v5 }
 0x2dd   : > { %9289 = vmatmul.mubr.msk.f32.gmra.mxu1 %vm341_vm3, %v5236_v3  ;;  %v3957_v3 = vadd.f32 %v9587_v33, %v11534_v24 }
 0x2de   : > { %9332 = vmatmul.mubr.msk.f32.gmra.mxu0 %vm341_vm3, %v5486_v38  ;;  %9291 = vmatprep.mubr.msk.f32.mxu1 %vm341_vm3, %v5237_v31 }
 0x2df   : > { %9334 = vmatprep.mubr.msk.f32.mxu0 %vm341_vm3, %v5487_v58  ;;  %9352 = vmatpush3.msra.mxu1 %v8131_v5 }
 0x2e1   : > { %9292 = vmatmul.mubr.msk.f32.gmra.mxu1 %vm341_vm3, %v5238_v21  ;;  %v3960_v21 = vadd.f32 %v9587_v33, %v11559_v20 }
 0x2e2   : > { %9335 = vmatmul.mubr.msk.f32.gmra.mxu0 %vm341_vm3, %v5488_v16  ;;  %9353 = vmatprep.mubr.msk.f32.mxu1 %vm341_vm3, %v5721_v13 }
 0x2e3   : > { %v4210_v24 = vadd.f32 %v11586_v7, %v3960_v21 }
 0x2e4   : > { %v9029_v10 = vpop.f32.mrf.mxu1 }
 0x2e5   : > { %9354 = vmatmul.mubr.msk.f32.vlgmr.msra.gmra.mxu1 %vm341_vm3, %v5722_v9  ;;  %v3968_v27 = vadd.f32 %v9029_v10, %v11460_v6 }
 0x2e6   : > { %9356 = vmatprep.mubr.msk.f32.mxu1 %vm341_vm3, %v5723_v37  ;;  %v3928_v15 = vpop.f32.mrf.mxu1  ;;  %v4207_v37 = vadd.f32 %v11564_v51, %v3957_v3 }
 0x2e7   : > { %v3967_v35 = vadd.f32 %v11460_v6, %v3928_v15  ;;  %v5737_v6 = vld [vmem:[#allocation2 + $0x9c] sm:$0xff] }
 0x2e9   : > { %9357 = vmatmul.mubr.msk.f32.gmra.mxu1 %vm341_vm3, %v5724_v62 }
 0x2ea   : > { %9359 = vmatprep.mubr.msk.f32.mxu1 %vm341_vm3, %v5725_v14 }
 0x2ed   : > { %9360 = vmatmul.mubr.msk.f32.gmra.mxu1 %vm341_vm3, %v5726_v63 }
 0x2ee   : > { %9362 = vmatprep.mubr.msk.f32.mxu1 %vm341_vm3, %v5727_v53 }
 0x2f1   : > { %9363 = vmatmul.mubr.msk.f32.gmra.mxu1 %vm341_vm3, %v5728_v41 }
 0x2f2   : > { %9365 = vmatprep.mubr.msk.f32.mxu1 %vm341_vm3, %v5729_v55 }
 0x2f5   : > { %9366 = vmatmul.mubr.msk.f32.gmra.mxu1 %vm341_vm3, %v5730_v45 }
 0x2f6   : > { %9368 = vmatprep.mubr.msk.f32.mxu1 %vm341_vm3, %v5731_v12  ;;  %v9072_v56 = vpop.f32.mrf.mxu0 }
 0x2f7   : > { %v11841_v42 = vadd.f32 %v9072_v56, %v3968_v27 }
 0x2f8   : > { %v4178_v32 = vpop.f32.mrf.mxu0 }
 0x2f9   : > { %9369 = vmatmul.mubr.msk.f32.gmra.mxu1 %vm341_vm3, %v5732_v43  ;;  %v11844_v1 = vadd.f32 %v4178_v32, %v3967_v35 }
 0x2fa   : > { %9371 = vmatprep.mubr.msk.f32.mxu1 %vm341_vm3, %v5733_v50 }
 0x2fd   : > { %9372 = vmatmul.mubr.msk.f32.gmra.mxu1 %vm341_vm3, %v5734_v23 }
 0x2fe   : > { %9374 = vmatprep.mubr.msk.f32.mxu1 %vm341_vm3, %v5735_v25 }
 0x2ff   : > { %v9032_v48 = vpop.f32.mrf.mxu1 }
 0x300   : > { %v9075_v4 = vpop.f32.mrf.mxu0  ;;  %v3970_v19 = vadd.f32 %v9587_v33, %v9032_v48 }
 0x301   : > { %9375 = vmatmul.mubr.msk.f32.gmra.mxu1 %vm341_vm3, %v5736_v28  ;;  %v3938_v26 = vpop.f32.mrf.mxu1 }
 0x302   : > { %9377 = vmatprep.mubr.msk.f32.mxu1 %vm341_vm3, %v5737_v6  ;;  %v4188_v30 = vpop.f32.mrf.mxu0  ;;  %v3969_v17 = vadd.f32 %v9587_v33, %v3938_v26  ;;  %v11854_v54 = vadd.f32 %v9075_v4, %v3970_v19 }
 0x304   : > { %v11857_v8 = vadd.f32 %v4188_v30, %v3969_v17 }
 0x305   : > { %9378 = vmatmul.mubr.msk.f32.gmra.mxu1 %vm341_vm3, %v5738_v39  ;;  %vm6004_vm3 = vcmask 257026  }
 0x334   : > { %v9035_v52 = vpop.f32.mrf.mxu1 }
 0x335   : > { %v9078_v11 = vpop.f32.mrf.mxu0 }
 0x336   : > { %v3948_v2 = vpop.f32.mrf.mxu1 }
 0x337   : > { %v4198_v61 = vpop.f32.mrf.mxu0 }
 0x338   : > { %v9097_v5 = vpop.f32.mrf.mxu1 }
 0x339   : > { %v9140_v18 = vpop.f32.mrf.mxu0  ;;  %v4456_v38 = vadd.f32 %v9097_v5, %v4206_v34 }
 0x33a   : > { %v4368_v31 = vpop.f32.mrf.mxu1 }
 0x33b   : > { %v4618_v58 = vpop.f32.mrf.mxu0  ;;  %v11863_v16 = vadd.f32 %v9140_v18, %v4456_v38  ;;  %v4455_v13 = vadd.f32 %v4368_v31, %v11471_v57 }
 0x33d   : > { %v9100_v29 = vpop.f32.mrf.mxu1  ;;  %v9143_v9 = vpop.f32.mrf.mxu0  ;;  %v11867_v62 = vadd.f32 %v4618_v58, %v4455_v13 }
 0x33e   : > { %v4458_v47 = vadd.f32 %v9100_v29, %v11498_v46 }
 0x33f   : > { %v4378_v14 = vpop.f32.mrf.mxu1  ;;  %v4628_v63 = vpop.f32.mrf.mxu0 }
 0x340   : > { %v11871_v53 = vadd.f32 %v9143_v9, %v4458_v47  ;;  %v4457_v41 = vadd.f32 %v4378_v14, %v4207_v37  ;;  %v6251_v47 = vld [vmem:[%s12404_s5 + $0x18] sm:$0xff] }
 0x341   : > { %v9103_v20 = vpop.f32.mrf.mxu1  ;;  %v9146_v57 = vpop.f32.mrf.mxu0  ;;  %9380 = vmatprep.subr.mxu0 %v6251_v47 }
 0x342   : > { %v11873_v10 = vadd.f32 %v4628_v63, %v4457_v41  ;;  %v4460_v55 = vadd.f32 %v9103_v20, %v4210_v24  ;;  %9381 = vmatpush3.msra.mxu0 %v6251_v47 }
 0x343   : > { %v4388_v45 = vpop.f32.mrf.mxu1  ;;  %v4638_v12 = vpop.f32.mrf.mxu0 }
 0x344   : > { %v11875_v15 = vadd.f32 %v9146_v57, %v4460_v55  ;;  %v4459_v51 = vadd.f32 %v4388_v45, %v11626_v59 }
 0x345   : > { %v9106_v27 = vpop.f32.mrf.mxu1  ;;  %v9149_v7 = vpop.f32.mrf.mxu0 }
 0x346   : > { %v11878_v46 = vadd.f32 %v4638_v12, %v4459_v51  ;;  %v4462_v56 = vadd.f32 %v9106_v27, %v11644_v0 }
 0x347   : > { %v4398_v35 = vpop.f32.mrf.mxu1  ;;  %v4648_v50 = vpop.f32.mrf.mxu0 }
 0x348   : > { %v11881_v43 = vadd.f32 %v9149_v7, %v4462_v56  ;;  %v4461_v32 = vadd.f32 %v4398_v35, %v11649_v44 }
 0x349   : > { %v9109_v23 = vpop.f32.mrf.mxu1 }
 0x34a   : > { %v11884_v25 = vadd.f32 %v4648_v50, %v4461_v32  ;;  %v4464_v28 = vadd.f32 %v9109_v23, %v11696_v36  ;;  %v9152_v6 = vpop.f32.mrf.mxu0 }
 0x34b   : > { %v4408_v59 = vpop.f32.mrf.mxu1 }
 0x34c   : > { %v11887_v48 = vadd.f32 %v9152_v6, %v4464_v28  ;;  %v4463_v4 = vadd.f32 %v4408_v59, %v11703_v49  ;;  %v4658_v33 = vpop.f32.mrf.mxu0  ;;  %v12474_v6 = vmov 0.0  }
 0x34d   : > { %v9112_v0 = vpop.f32.mrf.mxu1  ;;  %345 = vst.msk [vmem:[#allocation3 + $0x18] sm:$0xff] %vm344_vm15, %v12474_v6 }
 0x34e   : > { %v11890_v19 = vadd.f32 %v4658_v33, %v4463_v4  ;;  %v4466_v26 = vadd.f32 %v9112_v0, %v11748_v60  ;;  %v9155_v30 = vpop.f32.mrf.mxu0 }
 0x34f   : > { %v4418_v44 = vpop.f32.mrf.mxu1 }
 0x350   : > { %v11893_v39 = vadd.f32 %v9155_v30, %v4466_v26  ;;  %v4465_v17 = vadd.f32 %v4418_v44, %v11752_v40  ;;  %v4668_v22 = vpop.f32.mrf.mxu0 }
 0x351   : > { %v9115_v36 = vpop.f32.mrf.mxu1 }
 0x352   : > { %v11896_v52 = vadd.f32 %v4668_v22, %v4465_v17  ;;  %v4468_v11 = vadd.f32 %v9115_v36, %v11841_v42  ;;  %v9158_v2 = vpop.f32.mrf.mxu0 }
 0x353   : > { %v4428_v49 = vpop.f32.mrf.mxu1 }
 0x354   : > { %v11899_v61 = vadd.f32 %v9158_v2, %v4468_v11  ;;  %v4467_v34 = vadd.f32 %v4428_v49, %v11844_v1  ;;  %v4678_v5 = vpop.f32.mrf.mxu0 }
 0x355   : > { %v9118_v60 = vpop.f32.mrf.mxu1 }
 0x356   : > { %v11902_v18 = vadd.f32 %v4678_v5, %v4467_v34  ;;  %v4470_v3 = vadd.f32 %v9118_v60, %v11854_v54  ;;  %v9161_v38 = vpop.f32.mrf.mxu0 }
 0x357   : > { %v4438_v40 = vpop.f32.mrf.mxu1 }
 0x358   : > { %v11905_v31 = vadd.f32 %v9161_v38, %v4470_v3  ;;  %v4469_v58 = vadd.f32 %v4438_v40, %v11857_v8  ;;  %v4688_v21 = vpop.f32.mrf.mxu0 }
 0x359   : > { %v9121_v42 = vpop.f32.mrf.mxu1 }
 0x35a   : > { %v11908_v13 = vadd.f32 %v4688_v21, %v4469_v58  ;;  %v9164_v29 = vpop.f32.mrf.mxu0 }
 0x35b   : > { %v4448_v9 = vpop.f32.mrf.mxu1 }
 0x35c   : > { %v4698_v37 = vpop.f32.mrf.mxu0 }
 0x35d   : > { %v9183_v1 = vpop.f32.mrf.mxu1  ;;  %v6249_v37 = vld [vmem:[%s12404_s5 + $0x8] sm:$0xff] }
 0x35e   : > { %v4956_v54 = vadd.f32 %v9183_v1, %v11863_v16  ;;  %v9226_v14 = vpop.f32.mrf.mxu0 }
 0x35f   : > { %v4868_v63 = vpop.f32.mrf.mxu1 }
 0x360   : > { %v11914_v24 = vadd.f32 %v9226_v14, %v4956_v54  ;;  %v4955_v8 = vadd.f32 %v4868_v63, %v11867_v62  ;;  %v5118_v41 = vpop.f32.mrf.mxu0  ;;  %v6248_v14 = vld [vmem:[%s12404_s5] sm:$0xff]  ;;  %v8167_v63 = vld [vmem:[%s12404_s5 + $0x48] sm:$0xff] }
 0x361   : > { %v9186_v20 = vpop.f32.mrf.mxu1 }
 0x362   : > { %v11917_v55 = vadd.f32 %v5118_v41, %v4955_v8  ;;  %v4958_v57 = vadd.f32 %v9186_v20, %v11871_v53  ;;  %v9229_v45 = vpop.f32.mrf.mxu0 }
 0x363   : > { %v4878_v51 = vpop.f32.mrf.mxu1 }
 0x364   : > { %v11920_v12 = vadd.f32 %v9229_v45, %v4958_v57  ;;  %v4957_v16 = vadd.f32 %v4878_v51, %v11873_v10  ;;  %v5128_v27 = vpop.f32.mrf.mxu0  ;;  %v11985_v45 = vld [vmem:[%s12404_s5 + $0x38] sm:$0xff] }
 0x365   : > { %v9189_v56 = vpop.f32.mrf.mxu1 }
 0x366   : > { %v11923_v7 = vadd.f32 %v5128_v27, %v4957_v16  ;;  %v4960_v35 = vadd.f32 %v9189_v56, %v11875_v15  ;;  %v9232_v32 = vpop.f32.mrf.mxu0 }
 0x367   : > { %v4888_v62 = vpop.f32.mrf.mxu1 }
 0x368   : > { %v11926_v50 = vadd.f32 %v9232_v32, %v4960_v35  ;;  %v4959_v23 = vadd.f32 %v4888_v62, %v11878_v46  ;;  %v5138_v28 = vpop.f32.mrf.mxu0 }
 0x369   : > { %v9192_v53 = vpop.f32.mrf.mxu1 }
 0x36a   : > { %v11931_v59 = vadd.f32 %v5138_v28, %v4959_v23  ;;  %v4962_v10 = vadd.f32 %v9192_v53, %v11881_v43  ;;  %v9235_v4 = vpop.f32.mrf.mxu0 }
 0x36b   : > { %v4898_v33 = vpop.f32.mrf.mxu1 }
 0x36c   : > { %v11934_v0 = vadd.f32 %v9235_v4, %v4962_v10  ;;  %v4961_v15 = vadd.f32 %v4898_v33, %v11884_v25  ;;  %v5148_v26 = vpop.f32.mrf.mxu0 }
 0x36d   : > { %v9195_v30 = vpop.f32.mrf.mxu1 }
 0x36e   : > { %v11937_v44 = vadd.f32 %v5148_v26, %v4961_v15  ;;  %v4964_v46 = vadd.f32 %v9195_v30, %v11887_v48  ;;  %v9238_v17 = vpop.f32.mrf.mxu0 }
 0x36f   : > { %v4908_v22 = vpop.f32.mrf.mxu1 }
 0x370   : > { %v11940_v36 = vadd.f32 %v9238_v17, %v4964_v46  ;;  %v4963_v11 = vadd.f32 %v4908_v22, %v11890_v19  ;;  %v5158_v2 = vpop.f32.mrf.mxu0 }
 0x371   : > { %v9198_v43 = vpop.f32.mrf.mxu1 }
 0x372   : > { %v11943_v49 = vadd.f32 %v5158_v2, %v4963_v11  ;;  %v4966_v34 = vadd.f32 %v9198_v43, %v11893_v39  ;;  %v9241_v5 = vpop.f32.mrf.mxu0  ;;  %v6250_v39 = vld [vmem:[%s12404_s5 + $0x10] sm:$0xff] }
 0x373   : > { %v4918_v25 = vpop.f32.mrf.mxu1  ;;  %9382 = vmatprep.subr.mxu0 %v6250_v39 }
 0x374   : > { %v11946_v60 = vadd.f32 %v9241_v5, %v4966_v34  ;;  %v4965_v3 = vadd.f32 %v4918_v25, %v11896_v52  ;;  %v5168_v38 = vpop.f32.mrf.mxu0  ;;  %v8169_v52 = vld [vmem:[%s12404_s5 + $0x58] sm:$0xff]  ;;  %9383 = vmatpush3.msra.mxu0 %v6250_v39 }
 0x375   : > { %v9201_v48 = vpop.f32.mrf.mxu1  ;;  %9402 = vmatprep.subr.mxu1 %v8169_v52  ;;  %9384 = vmatprep.subr.mxu0 %v6249_v37 }
 0x376   : > { %v11949_v40 = vadd.f32 %v5168_v38, %v4965_v3  ;;  %v4968_v58 = vadd.f32 %v9201_v48, %v11899_v61  ;;  %v9244_v21 = vpop.f32.mrf.mxu0  ;;  %9403 = vmatpush3.msra.mxu1 %v8169_v52  ;;  %9385 = vmatpush3.msra.mxu0 %v6249_v37 }
 0x377   : > { %v4928_v19 = vpop.f32.mrf.mxu1  ;;  %9386 = vmatprep.subr.mxu0 %v6248_v14 }
 0x378   : > { %v11952_v42 = vadd.f32 %v9244_v21, %v4968_v58  ;;  %v4967_v29 = vadd.f32 %v4928_v19, %v11902_v18  ;;  %v5178_v9 = vpop.f32.mrf.mxu0  ;;  %v8168_v18 = vld [vmem:[%s12404_s5 + $0x50] sm:$0xff]  ;;  %9387 = vmatpush3.msra.mxu0 %v6248_v14 }
 0x379   : > { %v9204_v61 = vpop.f32.mrf.mxu1  ;;  %9404 = vmatprep.subr.mxu1 %v8168_v18  ;;  %9391 = vmatprep.subr.mxu0 %v11985_v45 }
 0x37a   : > { %v11967_v1 = vadd.f32 %v5178_v9, %v4967_v29  ;;  %v4970_v47 = vadd.f32 %v9204_v61, %v11905_v31  ;;  %v9247_v54 = vpop.f32.mrf.mxu0  ;;  %9405 = vmatpush3.msra.mxu1 %v8168_v18  ;;  %v8166_v31 = vld [vmem:[%s12404_s5 + $0x40] sm:$0xff] }
 0x37b   : > { %v4938_v8 = vpop.f32.mrf.mxu1  ;;  %9406 = vmatprep.subr.mxu1 %v8167_v63 }
 0x37c   : > { %v11976_v41 = vadd.f32 %v9247_v54, %v4970_v47  ;;  %v4969_v20 = vadd.f32 %v4938_v8, %v11908_v13  ;;  %v5188_v57 = vpop.f32.mrf.mxu0  ;;  %9407 = vmatpush3.msra.mxu1 %v8167_v63  ;;  %v11992_v13 = vld [vmem:[%s12404_s5 + $0x98] sm:$0xff] }
 0x37d   : > { %v9207_v51 = vpop.f32.mrf.mxu1  ;;  %9408 = vmatprep.subr.mxu1 %v8166_v31 }
 0x37e   : > { %v11987_v16 = vadd.f32 %v5188_v57, %v4969_v20  ;;  %v9250_v27 = vpop.f32.mrf.mxu0  ;;  %9409 = vmatpush3.msra.mxu1 %v8166_v31 }
 0x37f   : > { %v4948_v56 = vpop.f32.mrf.mxu1  ;;  %9424 = vmatprep.subr.mxu1 %v11992_v13 }
 0x380   : > { %v5198_v35 = vpop.f32.mrf.mxu0 }
 0x381   : > { %v9269_v32 = vpop.f32.mrf.mxu1 }
 0x382   : > { %v9312_v62 = vpop.f32.mrf.mxu0  ;;  %v5456_v14 = vadd.f32 %v9269_v32, %v11914_v24 }
 0x383   : > { %v5368_v23 = vpop.f32.mrf.mxu1 }
 0x384   : > { %v5618_v28 = vpop.f32.mrf.mxu0  ;;  %v5706_v31 = vadd.f32 %v9312_v62, %v5456_v14  ;;  %v5455_v51 = vadd.f32 %v5368_v23, %v11917_v55 }
 0x385   : > { %v9272_v53 = vpop.f32.mrf.mxu1 }
 0x386   : > { %v9315_v10 = vpop.f32.mrf.mxu0  ;;  %v5458_v27 = vadd.f32 %v9272_v53, %v11920_v12  ;;  %v5705_v62 = vadd.f32 %v5618_v28, %v5455_v51 }
 0x387   : > { %v5378_v4 = vpop.f32.mrf.mxu1 }
 0x388   : > { %v5628_v33 = vpop.f32.mrf.mxu0 }
 0x389   : > { %v9275_v15 = vpop.f32.mrf.mxu1 }
 0x38a   : > { %v9318_v26 = vpop.f32.mrf.mxu0  ;;  %v5460_v35 = vadd.f32 %v9275_v15, %v11926_v50 }
 0x38b   : > { %v5388_v30 = vpop.f32.mrf.mxu1 }
 0x38c   : > { %v5638_v46 = vpop.f32.mrf.mxu0  ;;  %v5710_v12 = vadd.f32 %v9318_v26, %v5460_v35 }
 0x38d   : > { %v9278_v17 = vpop.f32.mrf.mxu1 }
 0x38e   : > { %v9321_v22 = vpop.f32.mrf.mxu0  ;;  %v5462_v32 = vadd.f32 %v9278_v17, %v11934_v0 }
 0x38f   : > { %v5398_v11 = vpop.f32.mrf.mxu1 }
 0x390   : > { %v5648_v2 = vpop.f32.mrf.mxu0 }
 0x391   : > { %v9281_v43 = vpop.f32.mrf.mxu1 }
 0x392   : > { %v11996_v34 = vpop.f32.mrf.mxu0 }
 0x393   : > { %v5408_v5 = vpop.f32.mrf.mxu1 }
 0x394   : > { %v11998_v25 = vpop.f32.mrf.mxu0 }
 0x395   : > { %v9284_v3 = vpop.f32.mrf.mxu1 }
 0x396   : > { %v9327_v38 = vpop.f32.mrf.mxu0 }
 0x397   : > { %v5418_v48 = vpop.f32.mrf.mxu1 }
 0x398   : > { %v12000_v58 = vpop.f32.mrf.mxu0  ;;  %v5465_v28 = vadd.f32 %v5418_v48, %v11949_v40 }
 0x399   : > { %v9287_v21 = vpop.f32.mrf.mxu1 }
 0x39a   : > { %v5468_v19 = vadd.f32 %v9287_v21, %v11952_v42  ;;  %v9330_v29 = vpop.f32.mrf.mxu0  ;;  %v5457_v42 = vadd.f32 %v5378_v4, %v11923_v7  ;;  %v5459_v21 = vadd.f32 %v5388_v30, %v11931_v59  ;;  %v5461_v7 = vadd.f32 %v5398_v11, %v11937_v44 }
 0x39b   : > { %v5428_v9 = vpop.f32.mrf.mxu1  ;;  %v5464_v59 = vadd.f32 %v9281_v43, %v11940_v36  ;;  %v5463_v4 = vadd.f32 %v5408_v5, %v11943_v49  ;;  %v5712_v30 = vadd.f32 %v9321_v22, %v5462_v32 }
 0x39c   : > { %v12003_v39 = vadd.f32 %v9330_v29, %v5468_v19  ;;  %v5678_v52 = vpop.f32.mrf.mxu0  ;;  %v5707_v24 = vadd.f32 %v5628_v33, %v5457_v42  ;;  %v5709_v23 = vadd.f32 %v5638_v46, %v5459_v21  ;;  %v5466_v33 = vadd.f32 %v9284_v3, %v11946_v60 }
 0x39d   : > { %v9290_v37 = vpop.f32.mrf.mxu1  ;;  %v5711_v44 = vadd.f32 %v5648_v2, %v5461_v7  ;;  %v5467_v11 = vadd.f32 %v5428_v9, %v11967_v1  ;;  %v5714_v60 = vadd.f32 %v11996_v34, %v5464_v59  ;;  %v12027_v22 = vadd.f32 %v11998_v25, %v5463_v4 }
 0x39e   : > { %v9333_v61 = vpop.f32.mrf.mxu0  ;;  %v5470_v26 = vadd.f32 %v9290_v37, %v11976_v41  ;;  %v12029_v40 = vadd.f32 %v9327_v38, %v5466_v33  ;;  %v12032_v1 = vadd.f32 %v12000_v58, %v5465_v28 }
 0x39f   : > { %v12005_v18 = vpop.f32.mrf.mxu1  ;;  %v12036_v9 = vadd.f32 %v5678_v52, %v5467_v11 }
 0x3a0   : > { %v12007_v47 = vpop.f32.mrf.mxu0  ;;  %v12038_v37 = vadd.f32 %v9333_v61, %v5470_v26 }
 0x3a1   : > { %v9293_v54 = vpop.f32.mrf.mxu1 }
 0x3a2   : > { %v9336_v63 = vpop.f32.mrf.mxu0  ;;  %v5708_v54 = vadd.f32 %v9315_v10, %v5458_v27 }
 0x3a3   : > { %v5448_v8 = vpop.f32.mrf.mxu1 }
 0x3a4   : > { %v5698_v20 = vpop.f32.mrf.mxu0 }
 0x3a5   : > { %v9355_v57 = vpop.f32.mrf.mxu1 }
 0x3a6   : > { %v5956_v19 = vadd.f32 %v9355_v57, %v5706_v31 }
 0x3a7   : > { %v5868_v56 = vpop.f32.mrf.mxu1 }
 0x3a8   : > { %v5972_v53 = vmax.f32 %v5956_v19, 0.0  ;;  %v5955_v15 = vadd.f32 %v5868_v56, %v5705_v62  ;;  %v5469_v19 = vadd.f32 %v12005_v18, %v11987_v16 }
 0x3a9   : > { %v9358_v29 = vpop.f32.mrf.mxu1 }
 0x3aa   : > { %v5958_v46 = vadd.f32 %v9358_v29, %v5708_v54  ;;  %v5989_v63 = vrot.slane %v5972_v53, 5  ;;  %v5971_v5 = vmax.f32 %v5955_v15, 0.0 }
 0x3ab   : > { %v5878_v55 = vpop.f32.mrf.mxu1 }
 0x3ac   : > { %v5957_v50 = vadd.f32 %v5878_v55, %v5707_v24  ;;  %v5974_v34 = vmax.f32 %v5958_v46, 0.0 }
 0x3ad   : > { %v9361_v0 = vpop.f32.mrf.mxu1 }
 0x3ae   : > { %v5973_v10 = vmax.f32 %v5957_v50, 0.0  ;;  %v5960_v17 = vadd.f32 %v9361_v0, %v5710_v12 }
 0x3af   : > { %v5888_v14 = vpop.f32.mrf.mxu1 }
 0x3b0   : > { %v5990_v36 = vrot.slane %v5973_v10, 5  ;;  %v5976_v43 = vmax.f32 %v5960_v17, 0.0  ;;  %v12023_v49 = vadd.f32 %v5888_v14, %v5709_v23 }
 0x3b1   : > { %v9364_v2 = vpop.f32.mrf.mxu1 }
 0x3b2   : > { %v5991_v41 = vsel %vm604_vm10, %v5989_v63, %v5990_v36  ;;  %v5995_v3 = vmax.f32 %v5972_v53, %v5990_v36  ;;  %v5975_v48 = vmax.f32 %v12023_v49, 0.0  ;;  %v12041_v20 = vrot.slane %v5976_v43, 5 }
 0x3b3   : > { %v5994_v8 = vmax.f32 %v5971_v5, %v5991_v41  ;;  %v5898_v25 = vpop.f32.mrf.mxu1  ;;  %v12055_v50 = vadd.f32 %v9364_v2, %v5712_v30 }
 0x3b4   : > { %v6028_v38 = vsel %vm5996_vm2, %v5995_v3, -inf  ;;  %v6044_v58 = vrot.slane %v5975_v48, 5  ;;  %v12045_v57 = vadd.f32 %v5898_v25, %v5711_v44 }
 0x3b5   : > { %v5997_v31 = vsel %vm5996_vm2, %v5994_v8, -inf  ;;  %v6005_v42 = vsel %vm6004_vm3, %v5994_v8, -inf  ;;  %v6029_v52 = vrot.slane %v6028_v38, 4  ;;  %v6013_v61 = vsel %vm6012_vm4, %v5994_v8, -inf  ;;  %v9367_v51 = vpop.f32.mrf.mxu1 }
 0x3b6   : > { %v5998_v27 = vrot.slane %v5997_v31, 4  ;;  %v6006_v56 = vrot.slane %v6005_v42, 4  ;;  %v6014_v35 = vrot.slane %v6013_v61, 4  ;;  %v6021_v21 = vsel %vm6020_vm5, %v5994_v8, -inf }
 0x3b7   : > { %v6030_v29 = vmax.f32 %v6028_v38, %v6029_v52  ;;  %v6022_v24 = vrot.slane %v6021_v21, 4  ;;  %v6046_v32 = vsel %vm604_vm10, %v6044_v58, %v12041_v20  ;;  %v5908_v62 = vpop.f32.mrf.mxu1  ;;  %v5977_v59 = vmax.f32 %v12045_v57, 0.0 }
 0x3b8   : > { %v5999_v54 = vmax.f32 %v5997_v31, %v5998_v27  ;;  %v6007_v7 = vmax.f32 %v6005_v42, %v6006_v56  ;;  %v6015_v55 = vmax.f32 %v6013_v61, %v6014_v35  ;;  %v6051_v12 = vmax.f32 %v5974_v34, %v6046_v32 }
 0x3b9   : > { %v6031_v23 = vrot.slane %v6030_v29, 2  ;;  %v6023_v53 = vmax.f32 %v6021_v21, %v6022_v24  ;;  %v9370_v4 = vpop.f32.mrf.mxu1  ;;  %v12063_v43 = vadd.f32 %v9367_v51, %v5714_v60  ;;  %v12068_v8 = vadd.f32 %v12007_v47, %v5469_v19 }
 0x3ba   : > { %v6000_v33 = vrot.slane %v5999_v54, 2  ;;  %v6008_v15 = vrot.slane %v6007_v7, 2  ;;  %v6016_v16 = vrot.slane %v6015_v55, 2  ;;  %v6053_v18 = vsel %vm6004_vm3, %v6051_v12, -inf }
 0x3bb   : > { %v6032_v0 = vmax.f32 %v6030_v29, %v6031_v23  ;;  %v6024_v28 = vrot.slane %v6023_v53, 2  ;;  %v6054_v10 = vrot.slane %v6053_v18, 4  ;;  %v6060_v17 = vsel %vm6012_vm4, %v6051_v12, -inf  ;;  %v12060_v44 = vpop.f32.mrf.mxu1 }
 0x3bc   : > { %v6001_v11 = vmax.f32 %v5999_v54, %v6000_v33  ;;  %v6009_v26 = vmax.f32 %v6007_v7, %v6008_v15  ;;  %v6017_v46 = vmax.f32 %v6015_v55, %v6016_v16  ;;  %v6061_v30 = vrot.slane %v6060_v17, 4 }
 0x3bd   : > { %v6033_v14 = vrot.slane %v6032_v0, 1  ;;  %v6055_v63 = vmax.f32 %v6053_v18, %v6054_v10  ;;  %v6067_v36 = vsel %vm6020_vm5, %v6051_v12, -inf  ;;  %v12065_v5 = vpop.f32.mrf.mxu1  ;;  %v6025_v3 = vmax.f32 %v6023_v53, %v6024_v28 }
 0x3be   : > { %v6002_v2 = vrot.slane %v6001_v11, 1  ;;  %v6010_v41 = vrot.slane %v6009_v26, 1  ;;  %v6062_v34 = vmax.f32 %v6060_v17, %v6061_v30  ;;  %v6018_v25 = vrot.slane %v6017_v46, 1 }
 0x3bf   : > { %v6056_v38 = vrot.slane %v6055_v63, 2  ;;  %v6068_v58 = vrot.slane %v6067_v36, 4  ;;  %v12070_v31 = vpop.f32.mrf.mxu1  ;;  %v5978_v60 = vmax.f32 %v12055_v50, 0.0  ;;  %v12073_v51 = vmax.f32 %v6032_v0, %v6033_v14 }
 0x3c0   : > { %v6003_v42 = vmax.f32 %v6001_v11, %v6002_v2  ;;  %v6011_v52 = vmax.f32 %v6009_v26, %v6010_v41  ;;  %v6063_v61 = vrot.slane %v6062_v34, 2  ;;  %v6047_v35 = vrot.slane %v5977_v59, 5 }
 0x3c1   : > { %v6057_v27 = vmax.f32 %v6055_v63, %v6056_v38  ;;  %v6069_v56 = vmax.f32 %v6067_v36, %v6068_v58  ;;  %v12077_v21 = vpop.f32.mrf.mxu1  ;;  %v6026_v47 = vrot.slane %v6025_v3, 1  ;;  %v5980_v29 = vmax.f32 %v12063_v43, 0.0 }
 0x3c2   : > { %v6064_v19 = vmax.f32 %v6062_v34, %v6063_v61  ;;  %v5963_v24 = vadd.f32 %v5908_v62, %v12027_v22  ;;  %v6019_v32 = vmax.f32 %v6017_v46, %v6018_v25  ;;  %v6048_v55 = vsel %vm604_vm10, %v12041_v20, %v6047_v35 }
 0x3c3   : > { %v6058_v54 = vrot.slane %v6057_v27, 1  ;;  %v6070_v7 = vrot.slane %v6069_v56, 2  ;;  %v12083_v12 = vpop.f32.mrf.mxu1  ;;  %v6035_v23 = vsel %vm375_vm0, %v6003_v42, %v6011_v52  ;;  %v6052_v50 = vmax.f32 %v5975_v48, %v6048_v55 }
 0x3c4   : > { %v6065_v53 = vrot.slane %v6064_v19, 1  ;;  %v5979_v33 = vmax.f32 %v5963_v24, 0.0  ;;  %v6096_v18 = vrot.slane %v5980_v29, 5  ;;  %v5966_v22 = vadd.f32 %v9370_v4, %v12029_v40 }
 0x3c5   : > { %v6059_v15 = vmax.f32 %v6057_v27, %v6058_v54  ;;  %v6071_v16 = vmax.f32 %v6069_v56, %v6070_v7  ;;  %v9379_v62 = vpop.f32.mrf.mxu1  ;;  %v6074_v28 = vsel %vm5996_vm2, %v6052_v50, -inf  ;;  %v6081_v20 = vsel %vm6004_vm3, %v6052_v50, -inf }
 0x3c6   : > { %v6066_v0 = vmax.f32 %v6064_v19, %v6065_v53  ;;  %v6095_v10 = vrot.slane %v5979_v33, 5  ;;  %v6075_v11 = vrot.slane %v6074_v28, 4  ;;  %v6082_v26 = vrot.slane %v6081_v20, 4 }
 0x3c7   : > { %v6072_v17 = vrot.slane %v6071_v16, 1  ;;  %v5982_v46 = vmax.f32 %v5966_v22, 0.0  ;;  %v5948_v30 = vpop.f32.mrf.mxu1  ;;  %v12091_v49 = vmax.f32 %v6025_v3, %v6026_v47  ;;  %v12098_v2 = vsel %vm602_vm9, %v6035_v23, %v6019_v32 }
 0x3c8   : > { %v6088_v48 = vsel %vm375_vm0, %v6059_v15, %v6066_v0  ;;  %v6097_v14 = vsel %vm604_vm10, %v6095_v10, %v6096_v18  ;;  %v6100_v40 = vmax.f32 %v5977_v59, %v6095_v10  ;;  %v6076_v63 = vmax.f32 %v6074_v28, %v6075_v11 }
 0x3c9   : > { %v6073_v4 = vmax.f32 %v6071_v16, %v6072_v17  ;;  %v6083_v36 = vmax.f32 %v6081_v20, %v6082_v26  ;;  %v6101_v43 = vmax.f32 %v5978_v60, %v6097_v14  ;;  %v12102_v3 = vrot.slane %v5982_v46, 5 }
 0x3ca   : > { %v6102_v41 = vsel %vm6012_vm4, %v6100_v40, -inf  ;;  %v6109_v34 = vsel %vm6020_vm5, %v6100_v40, -inf  ;;  %v6077_v25 = vrot.slane %v6076_v63, 2  ;;  %v5965_v26 = vadd.f32 %v12060_v44, %v12032_v1 }
 0x3cb   : > { %v6084_v38 = vrot.slane %v6083_v36, 2  ;;  %v6089_v58 = vsel %vm602_vm9, %v6088_v48, %v6073_v4  ;;  %v6103_v42 = vrot.slane %v6102_v41, 4  ;;  %v6110_v57 = vrot.slane %v6109_v34, 4 }
 0x3cc   : > { %v6116_v59 = vsel %vm5996_vm2, %v6101_v43, -inf  ;;  %v6123_v52 = vsel %vm6004_vm3, %v6101_v43, -inf  ;;  %v6130_v61 = vsel %vm6012_vm4, %v6101_v43, -inf  ;;  %v6078_v60 = vmax.f32 %v6076_v63, %v6077_v25 }
 0x3cd   : > { %v6085_v27 = vmax.f32 %v6083_v36, %v6084_v38  ;;  %v6104_v56 = vmax.f32 %v6102_v41, %v6103_v42  ;;  %v6117_v35 = vrot.slane %v6116_v59, 4  ;;  %v6111_v47 = vmax.f32 %v6109_v34, %v6110_v57 }
 0x3ce   : > { %v6124_v19 = vrot.slane %v6123_v52, 4  ;;  %v6131_v24 = vrot.slane %v6130_v61, 4  ;;  %v6149_v32 = vmax.f32 %v5980_v29, %v12102_v3  ;;  %v6079_v54 = vrot.slane %v6078_v60, 1 }
 0x3cf   : > { %v6086_v7 = vrot.slane %v6085_v27, 1  ;;  %v6105_v55 = vrot.slane %v6104_v56, 2  ;;  %v6118_v23 = vmax.f32 %v6116_v59, %v6117_v35  ;;  %v6112_v53 = vrot.slane %v6111_v47, 2 }
 0x3d0   : > { %v6125_v50 = vmax.f32 %v6123_v52, %v6124_v19  ;;  %v6132_v33 = vmax.f32 %v6130_v61, %v6131_v24  ;;  %v6151_v15 = vsel %vm6020_vm5, %v6149_v32, -inf  ;;  %v6080_v16 = vmax.f32 %v6078_v60, %v6079_v54 }
 0x3d1   : > { %v6087_v18 = vmax.f32 %v6085_v27, %v6086_v7  ;;  %v6106_v22 = vmax.f32 %v6104_v56, %v6105_v55  ;;  %v6119_v62 = vrot.slane %v6118_v23, 2  ;;  %v6113_v0 = vmax.f32 %v6111_v47, %v6112_v53 }
 0x3d2   : > { %v6126_v28 = vrot.slane %v6125_v50, 2  ;;  %v6133_v20 = vrot.slane %v6132_v33, 2  ;;  %v6152_v10 = vrot.slane %v6151_v15, 4  ;;  %v6090_v17 = vsel %vm604_vm10, %v6089_v58, %v6080_v16 }
 0x3d3   : > { %v6107_v29 = vrot.slane %v6106_v22, 1  ;;  %v6120_v11 = vmax.f32 %v6118_v23, %v6119_v62  ;;  %v6091_v46 = vsel %vm606_vm11, %v6090_v17, %v6087_v18  ;;  %v6114_v30 = vrot.slane %v6113_v0, 1 }
 0x3d4   : > { %v6127_v48 = vmax.f32 %v6125_v50, %v6126_v28  ;;  %v6134_v14 = vmax.f32 %v6132_v33, %v6133_v20  ;;  %6092 = vst.msk [vmem:[#allocation3 + $0x5] sm:$0x1f] %vm6039_vm6, %v6091_v46  ;;  %v6153_v63 = vmax.f32 %v6151_v15, %v6152_v10  ;;  %v5967_v36 = vadd.f32 %v12070_v31, %v12036_v9 }
 0x3d5   : > { %v6108_v40 = vmax.f32 %v6106_v22, %v6107_v29  ;;  %v6121_v4 = vrot.slane %v6120_v11, 1  ;;  %v6115_v43 = vmax.f32 %v6113_v0, %v6114_v30  ;;  %v5970_v25 = vadd.f32 %v12077_v21, %v12038_v37 }
 0x3d6   : > { %v6128_v41 = vrot.slane %v6127_v48, 1  ;;  %v6135_v34 = vrot.slane %v6134_v14, 1  ;;  %v5968_v44 = vadd.f32 %v12065_v5, %v12003_v39  ;;  %v5983_v38 = vmax.f32 %v5967_v36, 0.0 }
 0x3d7   : > { %v6122_v1 = vmax.f32 %v6120_v11, %v6121_v4  ;;  %v5969_v58 = vadd.f32 %v12083_v12, %v12068_v8  ;;  %v6137_v57 = vsel %vm375_vm0, %v6108_v40, %v6115_v43  ;;  %v6154_v59 = vrot.slane %v6153_v63, 2 }
 0x3d8   : > { %v6129_v42 = vmax.f32 %v6127_v48, %v6128_v41  ;;  %v5986_v52 = vmax.f32 %v5970_v25, 0.0  ;;  %v6136_v9 = vmax.f32 %v6134_v14, %v6135_v34  ;;  %v6145_v61 = vrot.slane %v5983_v38, 5 }
 0x3d9   : > { %v6138_v31 = vsel %vm602_vm9, %v6137_v57, %v6122_v1  ;;  %v5985_v60 = vmax.f32 %v5969_v58, 0.0  ;;  %v5981_v21 = vmax.f32 %v5965_v26, 0.0  ;;  %v6037_v39 = vsel %vm604_vm10, %v12098_v2, %v12091_v49 }
 0x3da   : > { %v6139_v37 = vsel %vm604_vm10, %v6138_v31, %v6129_v42  ;;  %v6194_v27 = vrot.slane %v5986_v52, 5  ;;  %v6146_v8 = vsel %vm604_vm10, %v12102_v3, %v6145_v61  ;;  %v6155_v56 = vmax.f32 %v6153_v63, %v6154_v59 }
 0x3db   : > { %v6140_v5 = vsel %vm606_vm11, %v6139_v37, %v6136_v9  ;;  %v6193_v12 = vrot.slane %v5985_v60, 5  ;;  %v6150_v35 = vmax.f32 %v5981_v21, %v6146_v8  ;;  %v6038_v19 = vsel %vm606_vm11, %v6037_v39, %v12073_v51 }
 0x3dc   : > { %6141 = vst.msk [vmem:[#allocation3 + $0xa] sm:$0x1f] %vm6039_vm6, %v6140_v5  ;;  %v6199_v47 = vmax.f32 %v5985_v60, %v6194_v27  ;;  %v5984_v24 = vmax.f32 %v5968_v44, 0.0  ;;  %6040 = vst.msk [vmem:[#allocation3] sm:$0x1f] %vm6039_vm6, %v6038_v19  ;;  %v6156_v50 = vrot.slane %v6155_v56, 1 }
 0x3dd   : > { %v6195_v32 = vsel %vm604_vm10, %v6193_v12, %v6194_v27  ;;  %v6158_v49 = vsel %vm5996_vm2, %v6150_v35, -inf  ;;  %v6165_v2 = vsel %vm6004_vm3, %v6150_v35, -inf  ;;  %v6172_v3 = vsel %vm6012_vm4, %v6150_v35, -inf }
 0x3de   : > { %v6179_v54 = vsel %vm6020_vm5, %v6150_v35, -inf  ;;  %v6159_v7 = vrot.slane %v6158_v49, 4  ;;  %v6166_v55 = vrot.slane %v6165_v2, 4  ;;  %v6173_v23 = vrot.slane %v6172_v3, 4 }
 0x3df   : > { %v6180_v53 = vrot.slane %v6179_v54, 4  ;;  %v6198_v33 = vmax.f32 %v5984_v24, %v6195_v32  ;;  %v6228_v51 = vsel %vm5996_vm2, %v6199_v47, -inf  ;;  %v6157_v31 = vmax.f32 %v6155_v56, %v6156_v50 }
 0x3e0   : > { %v6160_v15 = vmax.f32 %v6158_v49, %v6159_v7  ;;  %v6167_v16 = vmax.f32 %v6165_v2, %v6166_v55  ;;  %v6174_v18 = vmax.f32 %v6172_v3, %v6173_v23  ;;  %v6229_v35 = vrot.slane %v6228_v51, 4 }
 0x3e1   : > { %v6181_v22 = vmax.f32 %v6179_v54, %v6180_v53  ;;  %v6200_v62 = vsel %vm5996_vm2, %v6198_v33, -inf  ;;  %v6207_v0 = vsel %vm6004_vm3, %v6198_v33, -inf  ;;  %v6214_v28 = vsel %vm6012_vm4, %v6198_v33, -inf }
 0x3e2   : > { %v6221_v20 = vsel %vm6020_vm5, %v6198_v33, -inf  ;;  %v6161_v10 = vrot.slane %v6160_v15, 2  ;;  %v6168_v17 = vrot.slane %v6167_v16, 2  ;;  %v6175_v29 = vrot.slane %v6174_v18, 2 }
 0x3e3   : > { %v6182_v11 = vrot.slane %v6181_v22, 2  ;;  %v6201_v26 = vrot.slane %v6200_v62, 4  ;;  %v6208_v46 = vrot.slane %v6207_v0, 4  ;;  %v6215_v30 = vrot.slane %v6214_v28, 4  ;;  %v6246_v14 = vld [vmem:[#allocation3] sm:$0xff] }
 0x3e4   : > { %v6222_v48 = vrot.slane %v6221_v20, 4  ;;  %v6425_v40 = vld [vmem:[#allocation3 + $0x2] sm:$0xff]  ;;  %v6162_v4 = vmax.f32 %v6160_v15, %v6161_v10  ;;  %v6169_v63 = vmax.f32 %v6167_v16, %v6168_v17  ;;  %v6176_v36 = vmax.f32 %v6174_v18, %v6175_v29  ;;  %9388 = vmatprep.mubr.msk.f32.mxu0 %vm344_vm15, %v6246_v14  ;;  %v8161_v29 = vld [vmem:[%s12404_s5 + $0x28] sm:$0xff] }
 0x3e5   : > { %v6183_v43 = vmax.f32 %v6181_v22, %v6182_v11  ;;  %v6202_v41 = vmax.f32 %v6200_v62, %v6201_v26  ;;  %v6209_v34 = vmax.f32 %v6207_v0, %v6208_v46  ;;  %v6216_v25 = vmax.f32 %v6214_v28, %v6215_v30  ;;  %9410 = vmatprep.mubr.msk.f32.mxu1 %vm344_vm15, %v6425_v40  ;;  %v8162_v0 = vld [vmem:[%s12404_s5 + $0x30] sm:$0xff]  ;;  %v8179_v11 = vld [vmem:[%s12404_s5 + $0x88] sm:$0xff]  ;;  %v8175_v26 = vld [vmem:[%s12404_s5 + $0x78] sm:$0xff] }
 0x3e6   : > { %v6223_v1 = vmax.f32 %v6221_v20, %v6222_v48  ;;  %v6163_v44 = vrot.slane %v6162_v4, 1  ;;  %v6170_v38 = vrot.slane %v6169_v63, 1  ;;  %v6177_v58 = vrot.slane %v6176_v36, 1  ;;  %v8180_v20 = vld [vmem:[%s12404_s5 + $0x90] sm:$0xff]  ;;  %v8193_v46 = vld [vmem:[%s12404_s5 + $0xd8] sm:$0xff] }
 0x3e7   : > { %v6184_v42 = vrot.slane %v6183_v43, 1  ;;  %v6203_v57 = vrot.slane %v6202_v41, 2  ;;  %v6210_v59 = vrot.slane %v6209_v34, 2  ;;  %v6217_v52 = vrot.slane %v6216_v25, 2  ;;  %v6335_v10 = vld [vmem:[#allocation3 + $0x1] sm:$0xff] }
 0x3e8   : > { %v6224_v9 = vrot.slane %v6223_v1, 2  ;;  %v6164_v61 = vmax.f32 %v6162_v4, %v6163_v44  ;;  %v6171_v60 = vmax.f32 %v6169_v63, %v6170_v38  ;;  %v6178_v5 = vmax.f32 %v6176_v36, %v6177_v58  ;;  %v6605_v17 = vld [vmem:[#allocation3 + $0x6] sm:$0xff]  ;;  %v8173_v63 = vld [vmem:[%s12404_s5 + $0x68] sm:$0xff] }
 0x3e9   : > { %v6204_v37 = vmax.f32 %v6202_v41, %v6203_v57  ;;  %v6211_v21 = vmax.f32 %v6209_v34, %v6210_v59  ;;  %v6218_v27 = vmax.f32 %v6216_v25, %v6217_v52  ;;  %v6185_v8 = vmax.f32 %v6183_v43, %v6184_v42  ;;  %v6515_v14 = vld [vmem:[#allocation3 + $0x5] sm:$0xff]  ;;  %v8191_v36 = vld [vmem:[%s12404_s5 + $0xc8] sm:$0xff]  ;;  %v8172_v43 = vld [vmem:[%s12404_s5 + $0x60] sm:$0xff] }
 0x3ea   : > { %v6225_v39 = vmax.f32 %v6223_v1, %v6224_v9  ;;  %v6186_v12 = vsel %vm375_vm0, %v6157_v31, %v6164_v61  ;;  %v6230_v56 = vmax.f32 %v6228_v51, %v6229_v35  ;;  %v8174_v40 = vld [vmem:[%s12404_s5 + $0x70] sm:$0xff]  ;;  %v8190_v41 = vld [vmem:[%s12404_s5 + $0xc0] sm:$0xff]  ;;  %v8187_v34 = vld [vmem:[%s12404_s5 + $0xb8] sm:$0xff] }
 0x3eb   : > { %v6187_v47 = vsel %vm602_vm9, %v6186_v12, %v6171_v60  ;;  %v6205_v19 = vrot.slane %v6204_v37, 1  ;;  %v6212_v24 = vrot.slane %v6211_v21, 1  ;;  %v6219_v32 = vrot.slane %v6218_v27, 1  ;;  %v8192_v4 = vld [vmem:[%s12404_s5 + $0xd0] sm:$0xff]  ;;  %v8205_v25 = vld [vmem:[%s12404_s5 + $0x118] sm:$0xff]  ;;  %v8185_v59 = vld [vmem:[%s12404_s5 + $0xa8] sm:$0xff] }
 0x3ec   : > { %v6188_v49 = vsel %vm604_vm10, %v6187_v47, %v6178_v5  ;;  %v6226_v2 = vrot.slane %v6225_v39, 1  ;;  %v6231_v23 = vrot.slane %v6230_v56, 2  ;;  %v6695_v38 = vld [vmem:[#allocation3 + $0x7] sm:$0xff]  ;;  %v8203_v52 = vld [vmem:[%s12404_s5 + $0x108] sm:$0xff]  ;;  %v8184_v9 = vld [vmem:[%s12404_s5 + $0xa0] sm:$0xff] }
 0x3ed   : > { %v6189_v3 = vsel %vm606_vm11, %v6188_v49, %v6185_v8  ;;  %v6206_v54 = vmax.f32 %v6204_v37, %v6205_v19  ;;  %v6213_v7 = vmax.f32 %v6211_v21, %v6212_v24  ;;  %v6220_v55 = vmax.f32 %v6218_v27, %v6219_v32  ;;  %v8186_v58 = vld [vmem:[%s12404_s5 + $0xb0] sm:$0xff]  ;;  %v8202_v31 = vld [vmem:[%s12404_s5 + $0x100] sm:$0xff]  ;;  %v8199_v61 = vld [vmem:[%s12404_s5 + $0xf8] sm:$0xff] }
 0x3ee   : > { %6190 = vst.msk [vmem:[#allocation3 + $0xf] sm:$0x1f] %vm6039_vm6, %v6189_v3  ;;  %v6232_v50 = vmax.f32 %v6230_v56, %v6231_v23  ;;  %v6227_v15 = vmax.f32 %v6225_v39, %v6226_v2  ;;  %v8204_v42 = vld [vmem:[%s12404_s5 + $0x110] sm:$0xff]  ;;  %v8197_v39 = vld [vmem:[%s12404_s5 + $0xe8] sm:$0xff]  ;;  %v8196_v5 = vld [vmem:[%s12404_s5 + $0xe0] sm:$0xff] }
 0x3ef   : > { %v6235_v53 = vsel %vm375_vm0, %v6206_v54, %v6213_v7  ;;  %v8198_v37 = vld [vmem:[%s12404_s5 + $0xf0] sm:$0xff]  ;;  %v7057_v12 = vld [vmem:[%s12406_s7 + $0x8] sm:$0xff]  ;;  %v7056_v35 = vld [vmem:[%s12406_s7] sm:$0xff]  ;;  %vm7058_vm0 = vcmask 130048  }
 0x3f0   : > { %v6236_v33 = vsel %vm602_vm9, %v6235_v53, %v6220_v55  ;;  %v6233_v16 = vrot.slane %v6232_v50, 1  ;;  %v8210_v47 = vld [vmem:[%s12406_s7 + $0x18] sm:$0xff]  ;;  %v8209_v19 = vld [vmem:[%s12406_s7 + $0x10] sm:$0xff]  ;;  %v8157_v2 = vld [vmem:[%s12405_s6] ss:$0 sm:$0xff] }
 0x3f1   : > { %v6237_v18 = vsel %vm604_vm10, %v6236_v33, %v6227_v15 }
 0x3f2   : > { %v6234_v22 = vmax.f32 %v6232_v50, %v6233_v16 }
 0x3f4   : > { %v6238_v28 = vsel %vm606_vm11, %v6237_v18, %v6234_v22 }
 0x3f5   : > { %v6247_v62 = vld [vmem:[#allocation3 + $0x8] sm:$0xff]  ;;  %6239 = vst.msk [vmem:[#allocation3 + $0x14] sm:$0x1f] %vm6039_vm6, %v6238_v28 }
 0x3f6   : > { %v6426_v51 = vld [vmem:[#allocation3 + $0xa] sm:$0xff]  ;;  %9389 = vmatmul.mubr.msk.f32.vlgmr.msra.gmra.mxu0 %vm344_vm15, %v6247_v62 }
 0x3f7   : > { %9411 = vmatmul.mubr.msk.f32.vlgmr.msra.gmra.mxu1 %vm344_vm15, %v6426_v51  ;;  %9392 = vmatpush3.msra.mxu0 %v11985_v45  ;;  %v8160_v45 = vld [vmem:[%s12404_s5 + $0x20] sm:$0xff] }
 0x3f8   : > { %9425 = vmatpush3.msra.mxu1 %v11992_v13  ;;  %9393 = vmatprep.subr.mxu0 %v8162_v0  ;;  %v8178_v13 = vld [vmem:[%s12404_s5 + $0x80] sm:$0xff] }
 0x3f9   : > { %9399 = vmatprep.mubr.msk.f32.mxu0 %vm344_vm15, %v6335_v10  ;;  %9426 = vmatprep.subr.mxu1 %v8180_v20  ;;  %v6336_v30 = vld [vmem:[#allocation3 + $0x9] sm:$0xff] }
 0x3fa   : > { %9432 = vmatprep.mubr.msk.f32.mxu1 %vm344_vm15, %v6605_v17  ;;  %9394 = vmatpush3.msra.mxu0 %v8162_v0  ;;  %v6965_v57 = vld [vmem:[#allocation3 + $0xc] sm:$0xff] }
 0x3fb   : > { %9427 = vmatpush3.msra.mxu1 %v8180_v20  ;;  %9395 = vmatprep.subr.mxu0 %v8161_v29  ;;  %v6875_v27 = vld [vmem:[#allocation3 + $0xb] sm:$0xff] }
 0x3fc   : > { %9428 = vmatprep.subr.mxu1 %v8179_v11  ;;  %9396 = vmatpush3.msra.mxu0 %v8161_v29  ;;  %v6606_v48 = vld [vmem:[#allocation3 + $0xe] sm:$0xff] }
 0x3fd   : > { %9429 = vmatpush3.msra.mxu1 %v8179_v11  ;;  %9397 = vmatprep.subr.mxu0 %v8160_v45  ;;  %v6516_v1 = vld [vmem:[#allocation3 + $0xd] sm:$0xff] }
 0x3fe   : > { %9430 = vmatprep.subr.mxu1 %v8178_v13  ;;  %9398 = vmatpush3.msra.mxu0 %v8160_v45  ;;  %v6786_v44 = vld [vmem:[#allocation3 + $0x12] sm:$0xff] }
 0x3ff   : > { %9431 = vmatpush3.msra.mxu1 %v8178_v13  ;;  %9400 = vmatmul.mubr.msk.f32.vlgmr.msra.gmra.mxu0 %vm344_vm15, %v6336_v30  ;;  %v6696_v60 = vld [vmem:[#allocation3 + $0xf] sm:$0xff] }
 0x400   : > { %9413 = vmatprep.subr.mxu0 %v8175_v26  ;;  %9433 = vmatmul.mubr.msk.f32.vlgmr.msra.gmra.mxu1 %vm344_vm15, %v6606_v48  ;;  %v6966_v21 = vld [vmem:[#allocation3 + $0x14] sm:$0xff] }
 0x401   : > { %9446 = vmatprep.subr.mxu1 %v8193_v46  ;;  %9414 = vmatpush3.msra.mxu0 %v8175_v26  ;;  %v6876_v8 = vld [vmem:[#allocation3 + $0x13] sm:$0xff] }
 0x402   : > { %9421 = vmatprep.mubr.msk.f32.mxu0 %vm344_vm15, %v6515_v14  ;;  %9447 = vmatpush3.msra.mxu1 %v8193_v46  ;;  %v8213_v14 = vld [vmem:[%s12406_s7 + $0x28] sm:$0xff] }
 0x403   : > { %9454 = vmatprep.mubr.msk.f32.mxu1 %vm344_vm15, %v6426_v51  ;;  %9415 = vmatprep.subr.mxu0 %v8174_v40 }
 0x404   : > { %9448 = vmatprep.subr.mxu1 %v8192_v4  ;;  %9416 = vmatpush3.msra.mxu0 %v8174_v40 }
 0x405   : > { %9449 = vmatpush3.msra.mxu1 %v8192_v4  ;;  %9417 = vmatprep.subr.mxu0 %v8173_v63 }
 0x406   : > { %9450 = vmatprep.subr.mxu1 %v8191_v36  ;;  %9418 = vmatpush3.msra.mxu0 %v8173_v63  ;;  %v8212_v63 = vld [vmem:[%s12406_s7 + $0x20] sm:$0xff] }
 0x407   : > { %9451 = vmatpush3.msra.mxu1 %v8191_v36  ;;  %9419 = vmatprep.subr.mxu0 %v8172_v43  ;;  %v8216_v36 = vld [vmem:[%s12406_s7 + $0x38] sm:$0xff] }
 0x408   : > { %9452 = vmatprep.subr.mxu1 %v8190_v41  ;;  %9420 = vmatpush3.msra.mxu0 %v8172_v43 }
 0x409   : > { %9453 = vmatpush3.msra.mxu1 %v8190_v41  ;;  %9422 = vmatmul.mubr.msk.f32.vlgmr.msra.gmra.mxu0 %vm344_vm15, %v6516_v1  ;;  %v8215_v41 = vld [vmem:[%s12406_s7 + $0x30] sm:$0xff] }
 0x40a   : > { %9435 = vmatprep.subr.mxu0 %v8187_v34  ;;  %9455 = vmatmul.mubr.msk.f32.vlgmr.msra.gmra.mxu1 %vm344_vm15, %v6786_v44  ;;  %v8218_v44 = vld [vmem:[%s12406_s7 + $0x40] sm:$0xff] }
 0x40b   : > { %9468 = vmatprep.subr.mxu1 %v8205_v25  ;;  %9436 = vmatpush3.msra.mxu0 %v8187_v34 }
 0x40c   : > { %9443 = vmatprep.mubr.msk.f32.mxu0 %vm344_vm15, %v6695_v38  ;;  %9469 = vmatpush3.msra.mxu1 %v8205_v25  ;;  %v8219_v25 = vld [vmem:[%s12406_s7 + $0x48] sm:$0xff] }
 0x40d   : > { %9476 = vmatprep.mubr.msk.f32.mxu1 %vm344_vm15, %v6965_v57  ;;  %9437 = vmatprep.subr.mxu0 %v8186_v58  ;;  %v8221_v57 = vld [vmem:[%s12406_s7 + $0x50] sm:$0xff] }
 0x40e   : > { %9470 = vmatprep.subr.mxu1 %v8204_v42  ;;  %9438 = vmatpush3.msra.mxu0 %v8186_v58  ;;  %v8222_v58 = vld [vmem:[%s12406_s7 + $0x58] sm:$0xff] }
 0x40f   : > { %9471 = vmatpush3.msra.mxu1 %v8204_v42  ;;  %9439 = vmatprep.subr.mxu0 %v8185_v59 }
 0x410   : > { %9472 = vmatprep.subr.mxu1 %v8203_v52  ;;  %9440 = vmatpush3.msra.mxu0 %v8185_v59 }
 0x411   : > { %9473 = vmatpush3.msra.mxu1 %v8203_v52  ;;  %9441 = vmatprep.subr.mxu0 %v8184_v9  ;;  %v8225_v52 = vld [vmem:[%s12406_s7 + $0x68] sm:$0xff] }
 0x412   : > { %9474 = vmatprep.subr.mxu1 %v8202_v31  ;;  %9442 = vmatpush3.msra.mxu0 %v8184_v9 }
 0x413   : > { %9475 = vmatpush3.msra.mxu1 %v8202_v31  ;;  %9444 = vmatmul.mubr.msk.f32.vlgmr.msra.gmra.mxu0 %vm344_vm15, %v6696_v60  ;;  %v8224_v31 = vld [vmem:[%s12406_s7 + $0x60] sm:$0xff]  ;;  %v8228_v60 = vld [vmem:[%s12406_s7 + $0x78] sm:$0xff] }
 0x414   : > { %9457 = vmatprep.subr.mxu0 %v8199_v61  ;;  %9477 = vmatmul.mubr.msk.f32.vlgmr.msra.gmra.mxu1 %vm344_vm15, %v6966_v21 }
 0x415   : > { %9458 = vmatpush3.msra.mxu0 %v8199_v61  ;;  %9465 = vmatprep.mubr.msk.f32.mxu0 %vm344_vm15, %v6875_v27  ;;  %v8231_v27 = vld [vmem:[%s12406_s7 + $0x88] sm:$0xff] }
 0x416   : > { %9459 = vmatprep.subr.mxu0 %v8198_v37  ;;  %9486 = vmatprep.subr.mxu1 %v12474_v6 }
 0x417   : > { %9460 = vmatpush3.msra.mxu0 %v8198_v37  ;;  %9490 = vmatprep.mubr.msk.f32.mxu1 %vm9651_vm1, %v12474_v6  ;;  %v8227_v37 = vld [vmem:[%s12406_s7 + $0x70] sm:$0xff] }
 0x418   : > { %9461 = vmatprep.subr.mxu0 %v8197_v39  ;;  %9487 = vmatpush3.msra.mxu1 %v8210_v47 }
 0x419   : > { %9462 = vmatpush3.msra.mxu0 %v8197_v39  ;;  %9488 = vmatprep.subr.mxu1 %v12474_v6 }
 0x41a   : > { %9463 = vmatprep.subr.mxu0 %v8196_v5  ;;  %9489 = vmatpush3.msra.mxu1 %v8209_v19 }
 0x41b   : > { %9464 = vmatpush3.msra.mxu0 %v8196_v5  ;;  %9500 = vmatprep.subr.mxu1 %v12474_v6  ;;  %v8230_v5 = vld [vmem:[%s12406_s7 + $0x80] sm:$0xff] }
 0x41c   : > { %9466 = vmatmul.mubr.msk.f32.vlgmr.msra.gmra.mxu0 %vm344_vm15, %v6876_v8  ;;  %9479 = vmatprep.subr.mxu0 %v12474_v6 }
 0x41d   : > { %9483 = vmatprep.mubr.msk.f32.mxu0 %vm9651_vm1, %v12474_v6  ;;  %9480 = vmatpush3.msra.mxu0 %v7057_v12  ;;  %v7055_v12 = vld [vmem:[%s12407_s8] sm:$0x1] }
 0x41e   : > { %9481 = vmatprep.subr.mxu0 %v12474_v6 }
 0x41f   : > { %9482 = vmatpush3.msra.mxu0 %v7056_v35 }
 0x420   : > { %9493 = vmatprep.subr.mxu0 %v12474_v6 }
 0x4b6   : > { %v9390_v24 = vpop.f32.mrf.mxu0 }
 0x4b7   : > { %v9412_v56 = vpop.f32.mrf.mxu1  ;;  %v6334_v22 = vadd.f32 %v9390_v24, %v8157_v2 }
 0x4b8   : > { %v6324_v32 = vpop.f32.mrf.mxu0 }
 0x4b9   : > { %v6333_v54 = vadd.f32 %v8157_v2, %v6324_v32  ;;  %v6504_v23 = vpop.f32.mrf.mxu1 }
 0x4bf   : > { %v9401_v49 = vpop.f32.mrf.mxu0 }
 0x4c0   : > { %v9434_v53 = vpop.f32.mrf.mxu1  ;;  %v6424_v28 = vadd.f32 %v9401_v49, %v6334_v22 }
 0x4c1   : > { %v6414_v3 = vpop.f32.mrf.mxu0 }
 0x4c2   : > { %v6423_v55 = vadd.f32 %v6414_v3, %v6333_v54  ;;  %v6684_v16 = vpop.f32.mrf.mxu1  ;;  %v6514_v17 = vadd.f32 %v9412_v56, %v6424_v28 }
 0x4c4   : > { %v6513_v33 = vadd.f32 %v6504_v23, %v6423_v55 }
 0x4c9   : > { %v9423_v7 = vpop.f32.mrf.mxu0 }
 0x4ca   : > { %v9456_v62 = vpop.f32.mrf.mxu1  ;;  %v6604_v13 = vadd.f32 %v9423_v7, %v6514_v17 }
 0x4cb   : > { %v6594_v50 = vpop.f32.mrf.mxu0 }
 0x4cc   : > { %v6603_v15 = vadd.f32 %v6594_v50, %v6513_v33  ;;  %v6864_v10 = vpop.f32.mrf.mxu1  ;;  %v6694_v40 = vadd.f32 %v9434_v53, %v6604_v13 }
 0x4ce   : > { %v6693_v0 = vadd.f32 %v6684_v16, %v6603_v15 }
 0x4d3   : > { %v9445_v18 = vpop.f32.mrf.mxu0 }
 0x4d4   : > { %v9478_v29 = vpop.f32.mrf.mxu1  ;;  %v6784_v43 = vadd.f32 %v9445_v18, %v6694_v40 }
 0x4d5   : > { %v6774_v51 = vpop.f32.mrf.mxu0 }
 0x4d6   : > { %v6783_v20 = vadd.f32 %v6774_v51, %v6693_v0  ;;  %v7044_v30 = vpop.f32.mrf.mxu1  ;;  %v6874_v1 = vadd.f32 %v9456_v62, %v6784_v43 }
 0x4d8   : > { %v6873_v45 = vadd.f32 %v6864_v10, %v6783_v20 }
 0x4dc   : > { %v9467_v11 = vpop.f32.mrf.mxu0 }
 0x4dd   : > { %v6964_v42 = vadd.f32 %v9467_v11, %v6874_v1 }
 0x4de   : > { %v6954_v26 = vpop.f32.mrf.mxu0 }
 0x4df   : > { %v6963_v46 = vadd.f32 %v6954_v26, %v6873_v45  ;;  %v7054_v9 = vadd.f32 %v9478_v29, %v6964_v42 }
 0x4e1   : > { %v7053_v48 = vadd.f32 %v7044_v30, %v6963_v46  ;;  %v7522_v21 = vrot.slane %v7054_v9, 2  ;;  %v7599_v39 = vrot.slane %v7054_v9, 3  ;;  %v7676_v8 = vrot.slane %v7054_v9, 4 }
 0x4e3   : > { %9484 = vmatmul.mubr.msk.f32.vlgmr.msra.gmra.mxu0 %vm7058_vm0, %v7053_v48  ;;  %v7136_v4 = vrot.slane %v7053_v48, 1  ;;  %v7213_v34 = vrot.slane %v7053_v48, 2  ;;  %v7290_v38 = vrot.slane %v7053_v48, 5  ;;  %v7367_v59 = vrot.slane %v7053_v48, 6 }
 0x4e4   : > { %9494 = vmatpush3.msra.mxu0 %v8213_v14  ;;  %9497 = vmatprep.mubr.msk.f32.mxu0 %vm9651_vm1, %v12474_v6  ;;  %v7444_v61 = vrot.slane %v7053_v48, 7 }
 0x4e5   : > { %9495 = vmatprep.subr.mxu0 %v12474_v6  ;;  %9491 = vmatmul.mubr.msk.f32.vlgmr.msra.gmra.mxu1 %vm7058_vm0, %v7136_v4 }
 0x4e6   : > { %9496 = vmatpush3.msra.mxu0 %v8212_v63  ;;  %9501 = vmatpush3.msra.mxu1 %v8216_v36 }
 0x4e7   : > { %9502 = vmatprep.subr.mxu1 %v12474_v6  ;;  %9507 = vmatprep.subr.mxu0 %v12474_v6 }
 0x4e8   : > { %9498 = vmatmul.mubr.msk.f32.vlgmr.msra.gmra.mxu0 %vm7058_vm0, %v7213_v34  ;;  %9503 = vmatpush3.msra.mxu1 %v8215_v41 }
 0x4e9   : > { %9508 = vmatpush3.msra.mxu0 %v8219_v25  ;;  %9504 = vmatprep.mubr.msk.f32.mxu1 %vm9651_vm1, %v12474_v6 }
 0x4ea   : > { %9509 = vmatprep.subr.mxu0 %v12474_v6  ;;  %9514 = vmatprep.subr.mxu1 %v12474_v6 }
 0x4eb   : > { %9505 = vmatmul.mubr.msk.f32.vlgmr.msra.gmra.mxu1 %vm7058_vm0, %v7290_v38  ;;  %9510 = vmatpush3.msra.mxu0 %v8218_v44 }
 0x4ec   : > { %9515 = vmatpush3.msra.mxu1 %v8222_v58  ;;  %9511 = vmatprep.mubr.msk.f32.mxu0 %vm9651_vm1, %v12474_v6 }
 0x4ed   : > { %9516 = vmatprep.subr.mxu1 %v12474_v6  ;;  %9521 = vmatprep.subr.mxu0 %v12474_v6 }
 0x4ee   : > { %9512 = vmatmul.mubr.msk.f32.vlgmr.msra.gmra.mxu0 %vm7058_vm0, %v7367_v59  ;;  %9517 = vmatpush3.msra.mxu1 %v8221_v57 }
 0x4ef   : > { %9522 = vmatpush3.msra.mxu0 %v8225_v52  ;;  %9518 = vmatprep.mubr.msk.f32.mxu1 %vm9651_vm1, %v12474_v6 }
 0x4f0   : > { %9523 = vmatprep.subr.mxu0 %v12474_v6  ;;  %9528 = vmatprep.subr.mxu1 %v12474_v6 }
 0x4f1   : > { %9519 = vmatmul.mubr.msk.f32.vlgmr.msra.gmra.mxu1 %vm7058_vm0, %v7444_v61  ;;  %9524 = vmatpush3.msra.mxu0 %v8224_v31 }
 0x4f2   : > { %9529 = vmatpush3.msra.mxu1 %v8228_v60  ;;  %9525 = vmatprep.mubr.msk.f32.mxu0 %vm9651_vm1, %v12474_v6 }
 0x4f3   : > { %9530 = vmatprep.subr.mxu1 %v12474_v6  ;;  %9535 = vmatprep.subr.mxu0 %v12474_v6 }
 0x4f4   : > { %9526 = vmatmul.mubr.msk.f32.vlgmr.msra.gmra.mxu0 %vm7058_vm0, %v7522_v21  ;;  %9531 = vmatpush3.msra.mxu1 %v8227_v37 }
 0x4f5   : > { %9536 = vmatpush3.msra.mxu0 %v8231_v27  ;;  %9532 = vmatprep.mubr.msk.f32.mxu1 %vm9651_vm1, %v12474_v6 }
 0x4f6   : > { %9537 = vmatprep.subr.mxu0 %v12474_v6  ;;  %9533 = vmatmul.mubr.msk.f32.vlgmr.msra.gmra.mxu1 %vm7058_vm0, %v7599_v39 }
 0x4f7   : > { %9538 = vmatpush3.msra.mxu0 %v8230_v5  ;;  %9539 = vmatprep.mubr.msk.f32.mxu0 %vm9651_vm1, %v12474_v6  ;;  %vm7750_vm1 = vcmask 73728  }
 0x4f8   : > { %9540 = vmatmul.mubr.msk.f32.vlgmr.msra.gmra.mxu0 %vm7058_vm0, %v7676_v8 }
 0x5a3   : > { %v7128_v35 = vpop.f32.mrf.mxu0 }
 0x5a4   : > { %v7132_v47 = vadd.f32 %v7128_v35, %v7055_v12 }
 0x5a5   : > { %v9485_v19 = vpop.f32.mrf.mxu0  ;;  %v7205_v24 = vpop.f32.mrf.mxu1 }
 0x5a6   : > { %v7209_v32 = vadd.f32 %v7205_v24, %v7132_v47 }
 0x5a7   : > { %v9492_v49 = vpop.f32.mrf.mxu1 }
 0x5a8   : > { %v7282_v2 = vpop.f32.mrf.mxu0 }
 0x5a9   : > { %v7286_v56 = vadd.f32 %v7282_v2, %v7209_v32 }
 0x5aa   : > { %v9499_v3 = vpop.f32.mrf.mxu0 }
 0x5ab   : > { %v7359_v54 = vpop.f32.mrf.mxu1 }
 0x5ac   : > { %v7363_v7 = vadd.f32 %v7359_v54, %v7286_v56 }
 0x5ad   : > { %v9506_v6 = vpop.f32.mrf.mxu1 }
 0x5ae   : > { %v7436_v55 = vpop.f32.mrf.mxu0 }
 0x5af   : > { %v7440_v23 = vadd.f32 %v7436_v55, %v7363_v7 }
 0x5b0   : > { %v9513_v53 = vpop.f32.mrf.mxu0 }
 0x5b1   : > { %v7513_v50 = vpop.f32.mrf.mxu1 }
 0x5b2   : > { %v7517_v33 = vadd.f32 %v7513_v50, %v7440_v23 }
 0x5b3   : > { %v9520_v15 = vpop.f32.mrf.mxu1 }
 0x5b4   : > { %v7591_v16 = vpop.f32.mrf.mxu0 }
 0x5b5   : > { %v7595_v18 = vadd.f32 %v7591_v16, %v7517_v33 }
 0x5b6   : > { %v9527_v22 = vpop.f32.mrf.mxu0  ;;  %v7668_v62 = vpop.f32.mrf.mxu1 }
 0x5b7   : > { %v7672_v51 = vadd.f32 %v7668_v62, %v7595_v18 }
 0x5b8   : > { %v9534_v0 = vpop.f32.mrf.mxu1  ;;  %v7745_v28 = vpop.f32.mrf.mxu0 }
 0x5b9   : > { %v7749_v20 = vadd.f32 %v7745_v28, %v7672_v51 }
 0x5ba   : > { %v9541_v10 = vpop.f32.mrf.mxu0 }
 0x5bb   : > { %7751 = vst.msk [vmem:[%s324_s25] sm:$0x1] %vm7750_vm1, %v7749_v20 }
 0x5bc   : > { %9601 = shalt.err (!%p9598_p3)
}
 0x5bd   : > { %s9602_s22 = scalar_lea.hbm %s12364_s14, 16  ;;  %s9606_s25 = scalar_lea.hbm %s12408_s9, 32 }
 0x5be   : > { %p9603_p4 = scmp.ne.s32.totalorder %s12364_s14, %s9602_s22  ;;  %p9607_p9 = scmp.lt.s32.totalorder %s12364_s14, %s12408_s9 }
 0x5bf   : > { %p9608_p10 = scmp.lt.s32.totalorder %s9606_s25, %s9602_s22 }
 0x5c0   : > { %p9604_p7 = pnand %p9603_p4, %p9741_p5 }
 0x5c1   : > { %p9609_p11 = por %p9608_p10, %p9607_p9 }
 0x5c2   : > { %p9605_p8 = pneg %p9604_p7 }
 0x5c4   : > { %p9610_p12 = pnand %p9609_p11, %p9605_p8 }
 0x5c6   : > { %9613 = shalt.err (!%p9610_p12)
}
 0x5c7   : > { %9543 = dma.vmem_to_hbm [thread:$0]  (%p9741_p5), %s7766_s26, 16, %s12364_s14, %s7753_s16  }
 0x5c8 PF: > { %p9549_p13 = scmp.ge.s32.totalorder %s9648_s12, 2  ;;  %s7777_s29 = sand.u32 1, %s9636_s30  }
 0x5c9   : > { %s7778_s13 = scalar_lea.sflag [#allocation5], %s7777_s29 }
 0x5ca   : > { %p9546_p0 = pnand %p9549_p13, %p9745_p6 }
 0x5cc   : > { %p9547_p1 = pneg %p9546_p0 }
 0x5ce   : > { %9631 = dma.done.wait (%p9547_p1), %s7778_s13, 16  }
 0x5cf   : > { %9633 = vsyncadd (%p9547_p1), %s7778_s13, 4294967280  ;;  %p19_p2 = scmp.ge.s32.totalorder %s9728_s15, 4   ;;  %s12475_s30 = smov %s9640_s10 }
 0x5d0   : > { %s12476_s10 = smov %s9644_s11  ;;  %s12477_s11 = smov %s9739_s18 }
 0x5d1   : > { %s12478_s12 = smov %s9728_s15  ;;  %21 = sbr.rel (!%p19_p2) target bundleno = 3 (0x3), region = 115 }
 0x5d6   :  { %7782 = vsyncpa [#allocation5], 1 }
 0x5d7   :  { %7784 = vsyncpa [#allocation5 + $0x1], 1 }

</bundles_post_ra>
